<compile_context>
chip_gen: v7x
topology: tpu7x:2x2x1
jax: 0.10.0
libtpu: 0.0.40
codegen_flags: <defaults>
</compile_context>

<pallas_src>
import math
import numpy as np
import jax
import jax.numpy as jnp
from jax import lax
from jax.experimental import pallas as pl
from jax.experimental.pallas import tpu as pltpu

# ---- static config (small test shapes consistent with the module) ----
B, T, N = 2, 8, 16          # batch, window, num_nodes
BN = B * N
H = 32                      # hidden_dim
C = 32                      # DEFAULT_TEMP_CONV_OUT_CHANNELS
KSZ = 3                     # temp conv kernel size
HEADS = 8                   # DEFAULT_ATTENTION_HEADS
DH = H // HEADS
HORIZON = 4
CT = C * T
EPS = 1e-5
REG_W = 1e-4                # DEFAULT_ATTENTION_REG_WEIGHT
NEG = -1e30                 # cross-batch attention mask value


def _np32(v):
    return np.asarray(v, dtype=np.float32)


def A(v):
    return jnp.asarray(_np32(v))


def row(v):
    return A(_np32(v).reshape(1, -1))


def _layer_norm(x, g, b):
    mu = jnp.mean(x, axis=-1, keepdims=True)
    var = jnp.mean(jnp.square(x - mu), axis=-1, keepdims=True)
    return (x - mu) * lax.rsqrt(var + EPS) * g + b


# ----------------------------------------------------------------------------
# Pallas kernel: single invocation over all B*N rows
# ----------------------------------------------------------------------------
def make_magatfn_kernel(alpha0, alpha1, last_coef):
    inv_scale = 1.0 / math.sqrt(DH)

    def kernel(x_ref,
               conv_w_ref, conv_b_ref, fp_w_ref,
               wqkv_ref, bqkv_ref, adjm_ref, wo_ref,
               s0_w_ref, s1_w_ref, im_ref,
               fus_w_ref, p1_w_ref, pg_w_ref, pg_b_ref,
               vec_ref,
               pred_ref):
        f32 = jnp.float32
        x = x_ref[...]                               # (BN, T)
        x_last = x[:, T - 1:T]                       # (BN, 1)

        # packed row vectors (biases / LN gains), one (12, H) slab
        fp_b, fp_g, fp_bt = vec_ref[0:1, :], vec_ref[1:2, :], vec_ref[2:3, :]
        bo = vec_ref[3:4, :]
        s0_b, s1_b = vec_ref[4:5, :], vec_ref[5:6, :]
        fus_b, fus_g, fus_bt = vec_ref[6:7, :], vec_ref[7:8, :], vec_ref[8:9, :]
        p1_b, p1_g, p1_bt = vec_ref[9:10, :], vec_ref[10:11, :], vec_ref[11:12, :]

        # ---- temp_conv: Conv1d(1->C,k=3,pad=1) + BN (folded) + ReLU, as matmul ----
        tf = jnp.dot(x, conv_w_ref[...], preferred_element_type=f32) + conv_b_ref[...]
        tf = jnp.maximum(tf, 0.0)                    # (BN, C*T), flat index = c*T + t

        # ---- feature_process: Linear -> LayerNorm -> ReLU ----
        h0 = jnp.dot(tf, fp_w_ref[...], preferred_element_type=f32) + fp_b
        feat = jnp.maximum(_layer_norm(h0, fp_g, fp_bt), 0.0)               # (BN, H)

        # ---- AdaptiveGraphAttentionModule (fused QKV, block-diag batch mask) ----
        qkv = jnp.dot(feat, wqkv_ref[...], preferred_element_type=f32) + bqkv_ref[...]
        q, k, v = qkv[:, 0:H], qkv[:, H:2 * H], qkv[:, 2 * H:3 * H]
        heads_out = []
        for hd in range(HEADS):
            lo, hi = hd * DH, (hd + 1) * DH
            qh, kh, vh = q[:, lo:hi], k[:, lo:hi], v[:, lo:hi]
            s = lax.dot_general(qh, kh, (((1,), (1,)), ((), ())),
                                preferred_element_type=f32) * inv_scale
            s = s + adjm_ref[hd]                     # adjacency bias + batch mask
            s = s - jnp.max(s, axis=-1, keepdims=True)
            e = jnp.exp(s)                           # (BN, BN), zeros off-block
            denom = jnp.sum(e, axis=-1, keepdims=True)
            oh = jnp.dot(e, vh, preferred_element_type=f32) * pl.reciprocal(
                denom, approx=True)                  # deferred softmax normalize
            heads_out.append(oh)
        o_cat = jnp.concatenate(heads_out, axis=-1)  # (BN, H)
        g_out = jnp.dot(o_cat, wo_ref[...], preferred_element_type=f32) + bo

        # ---- MultiScaleTemporalFusionModule ----
        # scale 0: Conv1d(k=1) + BN (folded) + ReLU (pointwise over channels)
        s0 = jnp.maximum(
            jnp.dot(g_out, s0_w_ref[...], preferred_element_type=f32) + s0_b, 0.0)
        # scale 1: Conv1d(k=2, pad=1) over the node axis (per batch block),
        # BN+ReLU, then linear interpolation (N+1 -> N) as block-diag matmul.
        fab = jnp.dot(g_out, s1_w_ref[...], preferred_element_type=f32)     # (BN, 2H)
        fa, fb = fab[:, 0:H], fab[:, H:2 * H]
        ridx = lax.broadcasted_iota(jnp.int32, (BN, H), 0)
        first_row = (ridx % N) == 0                 # first node of each batch block
        fa_sh = jnp.where(first_row, 0.0, pltpu.roll(fa, shift=1, axis=0))
        r_main = jnp.maximum(fa_sh + fb + s1_b, 0.0)                        # conv rows 0..N-1
        last_row = ((ridx % N) == (N - 1)).astype(f32)
        # interp column N contributes only to output row N-1 of each block
        r_last_contrib = last_coef * last_row * jnp.maximum(fa + s1_b, 0.0)
        s1 = jnp.dot(im_ref[...], r_main, preferred_element_type=f32) + r_last_contrib
        fused = alpha0 * s0 + alpha1 * s1
        fu = jnp.dot(fused, fus_w_ref[...], preferred_element_type=f32) + fus_b
        fu = jnp.maximum(_layer_norm(fu, fus_g, fus_bt), 0.0)

        # ---- ProgressivePredictionRefinementModule (fused pred|gate heads) ----
        h1 = jnp.dot(fu, p1_w_ref[...], preferred_element_type=f32) + p1_b
        h1 = jnp.maximum(_layer_norm(h1, p1_g, p1_bt), 0.0)
        pg = jnp.dot(jnp.concatenate([h1, fu], axis=-1), pg_w_ref[...],
                     preferred_element_type=f32) + pg_b_ref[...]            # (BN, 2*HORIZON)
        preds = pg[:, 0:HORIZON]
        gates = jax.nn.sigmoid(pg[:, HORIZON:2 * HORIZON])
        pred_ref[...] = gates * x_last + (1.0 - gates) * preds              # (BN, HORIZON)

    return kernel


def magatfn_forward(x_btn, weights, alpha, last_coef):
    """x_btn: (B, T, N) -> (predictions (B, HORIZON, N), attn_reg_loss scalar)."""
    x_rows = jnp.transpose(x_btn, (0, 2, 1)).reshape(BN, T)       # (B*N, T), (b, n) row order
    kernel = make_magatfn_kernel(float(alpha[0]), float(alpha[1]), float(last_coef))

    def full_spec(a):
        nd = a.ndim
        return pl.BlockSpec(a.shape, lambda i, nd=nd: (0,) * nd)

    in_specs = [full_spec(x_rows)] + [full_spec(w) for w in weights]
    out_specs = pl.BlockSpec((BN, HORIZON), lambda i: (0, 0))
    out_shape = jax.ShapeDtypeStruct((BN, HORIZON), jnp.float32)

    # Single grid step: all B*N rows processed at once (no per-step overhead,
    # weights streamed exactly once).  On v7x with larger B, a leading grid
    # axis with "parallel" semantics could split rows across the two cores.
    preds_rows = pl.pallas_call(
        kernel,
        grid=(1,),
        in_specs=in_specs,
        out_specs=out_specs,
        out_shape=out_shape,
        compiler_params=pltpu.CompilerParams(dimension_semantics=("arbitrary",)),
    )(x_rows, *weights)

    predictions = jnp.transpose(preds_rows.reshape(B, N, HORIZON), (0, 2, 1))  # (B, HORIZON, N)
    # Softmax rows are non-negative and sum to 1, so mean(|attn|) == 1/N exactly
    # (dropout is identity in eval mode) -> constant regularizer.
    attn_reg_loss = jnp.float32(REG_W / N)
    return predictions, attn_reg_loss


# ----------------------------------------------------------------------------
# Deterministic parameter init (mirrors module __init__ shapes) + eval-mode folding
# ----------------------------------------------------------------------------
def init_params(key):
    ks = iter(jax.random.split(key, 64))

    def nrm(shape, s=0.1):
        return _np32(s * jax.random.normal(next(ks), shape, jnp.float32))

    raw = {}
    raw['w_tc'] = nrm((C, 1, KSZ), 0.3); raw['b_tc'] = nrm((C,), 0.1)
    raw['g_tc'] = 1.0 + nrm((C,), 0.05); raw['beta_tc'] = nrm((C,), 0.05)
    raw['fp_W'] = nrm((H, CT), 0.05); raw['fp_b'] = nrm((H,), 0.05)
    raw['fp_ln_g'] = 1.0 + nrm((H,), 0.05); raw['fp_ln_b'] = nrm((H,), 0.05)
    for nm in ('Wq', 'Wk', 'Wv', 'Wo'):
        raw[nm] = nrm((H, H), 0.1)
        raw['b' + nm[1].lower()] = nrm((H,), 0.05)
    raw['adj'] = nrm((HEADS, N, N), math.sqrt(2.0 / (N + N)))     # xavier-ish
    raw['w0'] = nrm((H, H, 1), 0.1); raw['b0'] = nrm((H,), 0.05)
    raw['g0'] = 1.0 + nrm((H,), 0.05); raw['be0'] = nrm((H,), 0.05)
    raw['w1'] = nrm((H, H, 2), 0.1); raw['b1'] = nrm((H,), 0.05)
    raw['g1'] = 1.0 + nrm((H,), 0.05); raw['be1'] = nrm((H,), 0.05)
    raw['fusion_weight'] = np.ones((2,), np.float32)              # PyTorch init: ones
    raw['fus_W'] = nrm((H, H), 0.1); raw['fus_b'] = nrm((H,), 0.05)
    raw['fus_ln_g'] = 1.0 + nrm((H,), 0.05); raw['fus_ln_b'] = nrm((H,), 0.05)
    raw['p1_W'] = nrm((H, H), 0.1); raw['p1_b'] = nrm((H,), 0.05)
    raw['p1_ln_g'] = 1.0 + nrm((H,), 0.05); raw['p1_ln_b'] = nrm((H,), 0.05)
    raw['p2_W'] = nrm((HORIZON, H), 0.1); raw['p2_b'] = nrm((HORIZON,), 0.05)
    raw['g_W'] = nrm((HORIZON, H), 0.1); raw['g_b'] = nrm((HORIZON,), 0.05)
    return raw


def build_kernel_weights(raw):
    bn_s = 1.0 / np.sqrt(1.0 + EPS)   # running_mean=0, running_var=1 (fresh init)

    # temp_conv (Conv1d(1->C,k=3,pad=1) + BN) folded into a (T, C*T) matmul
    sc = raw['g_tc'] * bn_s
    conv_mat = np.zeros((T, CT), np.float32)
    for c in range(C):
        for t_out in range(T):
            for j in range(KSZ):
                t_in = t_out + j - KSZ // 2
                if 0 <= t_in < T:
                    conv_mat[t_in, c * T + t_out] = raw['w_tc'][c, 0, j] * sc[c]
    conv_b = np.repeat(sc * raw['b_tc'] + raw['beta_tc'], T)

    # fused QKV projection
    Wqkv = np.concatenate([raw['Wq'].T, raw['Wk'].T, raw['Wv'].T], axis=1)   # (H, 3H)
    bqkv = np.concatenate([raw['bq'], raw['bk'], raw['bv']])                 # (3H,)

    # per-head adjacency bias + block-diagonal batch mask, (HEADS, BN, BN)
    adjmask = np.full((HEADS, BN, BN), NEG, np.float32)
    for b in range(B):
        adjmask[:, b * N:(b + 1) * N, b * N:(b + 1) * N] = raw['adj']

    # MTFM scale0 (k=1 conv + BN) and scale1 (k=2, pad=1 conv + BN) folds
    s0s = raw['g0'] * bn_s
    s0_w = raw['w0'][:, :, 0].T * s0s[None, :]
    s0_b = s0s * raw['b0'] + raw['be0']
    s1s = raw['g1'] * bn_s
    s1_w0 = raw['w1'][:, :, 0].T * s1s[None, :]
    s1_w1 = raw['w1'][:, :, 1].T * s1s[None, :]
    s1_w = np.concatenate([s1_w0, s1_w1], axis=1)                            # (H, 2H)
    s1_b = s1s * raw['b1'] + raw['be1']

    # F.interpolate(size=N, mode='linear', align_corners=False) from length N+1
    M = np.zeros((N, N + 1), np.float32)
    scale = (N + 1) / N
    for i in range(N):
        src = max((i + 0.5) * scale - 0.5, 0.0)
        i0 = min(int(np.floor(src)), N)
        i1 = min(i0 + 1, N)
        lam = src - i0
        M[i, i0] += 1.0 - lam
        M[i, i1] += lam
    # Only the last output row may read source index N (see kernel masked tail).
    assert np.allclose(M[:N - 1, N], 0.0)
    last_coef = float(M[N - 1, N])
    imblk = np.zeros((BN, BN), np.float32)
    for b in range(B):
        imblk[b * N:(b + 1) * N, b * N:(b + 1) * N] = M[:, :N]

    ef = np.exp(raw['fusion_weight'] - raw['fusion_weight'].max())
    alpha = _np32(ef / ef.sum())

    # fused prediction / gate heads: block-diagonal (2H, 2*HORIZON)
    pg_W = np.zeros((2 * H, 2 * HORIZON), np.float32)
    pg_W[:H, :HORIZON] = raw['p2_W'].T
    pg_W[H:, HORIZON:] = raw['g_W'].T
    pg_b = np.concatenate([raw['p2_b'], raw['g_b']])

    # all H-wide row vectors packed into one (12, H) slab
    vec32 = np.stack([
        raw['fp_b'], raw['fp_ln_g'], raw['fp_ln_b'],
        raw['bo'],
        s0_b, s1_b,
        raw['fus_b'], raw['fus_ln_g'], raw['fus_ln_b'],
        raw['p1_b'], raw['p1_ln_g'], raw['p1_ln_b'],
    ], axis=0).astype(np.float32)

    weights = [
        A(conv_mat), row(conv_b), A(raw['fp_W'].T),
        A(Wqkv), row(bqkv), A(adjmask), A(raw['Wo'].T),
        A(s0_w), A(s1_w), A(imblk),
        A(raw['fus_W'].T), A(raw['p1_W'].T),
        A(pg_W), row(pg_b),
        A(vec32),
    ]
    return weights, alpha, last_coef, M


# ----------------------------------------------------------------------------
# Pure-JAX reference mirroring the PyTorch forward (eval mode), for validation
# ----------------------------------------------------------------------------
def reference_forward(x_btn, raw, interp_M):
    r = {k: A(v) for k, v in raw.items()}
    bn_s = 1.0 / np.sqrt(1.0 + EPS)

    def ln(y, g, b):
        mu = jnp.mean(y, axis=-1, keepdims=True)
        var = jnp.mean(jnp.square(y - mu), axis=-1, keepdims=True)
        return (y - mu) / jnp.sqrt(var + EPS) * g + b

    x = x_btn
    x_last = x[:, -1, :]
    xt = jnp.transpose(x, (0, 2, 1)).reshape(B * N, T)
    xpad = jnp.pad(xt, ((0, 0), (1, 1)))
    Xs = jnp.stack([xpad[:, j:j + T] for j in range(KSZ)], axis=1)        # (BN, K, T)
    conv = jnp.einsum('cj,mjt->mct', r['w_tc'][:, 0, :], Xs) + r['b_tc'][None, :, None]
    bn = conv * bn_s * r['g_tc'][None, :, None] + r['beta_tc'][None, :, None]
    tf = jax.nn.relu(bn).reshape(B, N, CT)
    feat = jax.nn.relu(ln(tf @ r['fp_W'].T + r['fp_b'], r['fp_ln_g'], r['fp_ln_b']))

    def heads_t(y):
        return y.reshape(B, N, HEADS, DH).transpose(0, 2, 1, 3)

    q = heads_t(feat @ r['Wq'].T + r['bq'])
    k = heads_t(feat @ r['Wk'].T + r['bk'])
    v = heads_t(feat @ r['Wv'].T + r['bv'])
    scores = q @ jnp.swapaxes(k, -1, -2) / math.sqrt(DH) + r['adj'][None]
    attn = jax.nn.softmax(scores, axis=-1)
    reg = REG_W * jnp.mean(jnp.abs(attn))
    out = (attn @ v).transpose(0, 2, 1, 3).reshape(B, N, H)
    g_out = out @ r['Wo'].T + r['bo']

    xg = jnp.transpose(g_out, (0, 2, 1))                                  # (B, H, N)
    s0 = jnp.einsum('oc,bcn->bon', r['w0'][:, :, 0], xg) + r['b0'][None, :, None]
    s0 = jax.nn.relu(s0 * bn_s * r['g0'][None, :, None] + r['be0'][None, :, None])
    xgp = jnp.pad(xg, ((0, 0), (0, 0), (1, 1)))
    s1r = (jnp.einsum('oc,bcn->bon', r['w1'][:, :, 0], xgp[:, :, 0:N + 1]) +
           jnp.einsum('oc,bcn->bon', r['w1'][:, :, 1], xgp[:, :, 1:N + 2]) +
           r['b1'][None, :, None])
    s1r = jax.nn.relu(s1r * bn_s * r['g1'][None, :, None] + r['be1'][None, :, None])
    s1 = jnp.einsum('il,bhl->bhi', A(interp_M), s1r)
    alpha = jax.nn.softmax(r['fusion_weight'])
    fused = jnp.transpose(alpha[0] * s0 + alpha[1] * s1, (0, 2, 1))       # (B, N, H)
    fu = jax.nn.relu(ln(fused @ r['fus_W'].T + r['fus_b'], r['fus_ln_g'], r['fus_ln_b']))
    h1 = jax.nn.relu(ln(fu @ r['p1_W'].T + r['p1_b'], r['p1_ln_g'], r['p1_ln_b']))
    preds = h1 @ r['p2_W'].T + r['p2_b']
    gates = jax.nn.sigmoid(fu @ r['g_W'].T + r['g_b'])
    refined = gates * x_last[..., None] + (1.0 - gates) * preds
    return jnp.transpose(refined, (0, 2, 1)), reg


if __name__ == "__main__":
    jax.config.update("jax_default_matmul_precision", "highest")
    key = jax.random.PRNGKey(0)
    k_x, k_p = jax.random.split(key)

    raw = init_params(k_p)
    weights, alpha, last_coef, interp_M = build_kernel_weights(raw)
    x = jax.random.normal(k_x, (B, T, N), jnp.float32)

    preds, reg_loss = magatfn_forward(x, weights, alpha, last_coef)
    preds = jax.block_until_ready(preds)
    reg_loss = jax.block_until_ready(reg_loss)
    assert preds.shape == (B, HORIZON, N)

    ref_preds, ref_reg = reference_forward(x, raw, interp_M)
    np.testing.assert_allclose(np.asarray(preds), np.asarray(ref_preds), rtol=5e-3, atol=5e-3)
    np.testing.assert_allclose(float(reg_loss), float(ref_reg), rtol=1e-3, atol=1e-9)

    print("KERNEL_OK")
</pallas_src>

<mosaic_0001>
module attributes {stable_mosaic.version = 11 : i64} {
  func.func @kernel(%arg0: i32, %arg1: memref<32x8xf32, #tpu.memory_space<vmem>>, %arg2: memref<8x256xf32, #tpu.memory_space<vmem>>, %arg3: memref<1x256xf32, #tpu.memory_space<vmem>>, %arg4: memref<256x32xf32, #tpu.memory_space<vmem>>, %arg5: memref<32x96xf32, #tpu.memory_space<vmem>>, %arg6: memref<1x96xf32, #tpu.memory_space<vmem>>, %arg7: memref<8x32x32xf32, #tpu.memory_space<vmem>>, %arg8: memref<32x32xf32, #tpu.memory_space<vmem>>, %arg9: memref<32x32xf32, #tpu.memory_space<vmem>>, %arg10: memref<32x64xf32, #tpu.memory_space<vmem>>, %arg11: memref<32x32xf32, #tpu.memory_space<vmem>>, %arg12: memref<32x32xf32, #tpu.memory_space<vmem>>, %arg13: memref<32x32xf32, #tpu.memory_space<vmem>>, %arg14: memref<64x8xf32, #tpu.memory_space<vmem>>, %arg15: memref<1x8xf32, #tpu.memory_space<vmem>>, %arg16: memref<12x32xf32, #tpu.memory_space<vmem>>, %arg17: memref<32x4xf32, #tpu.memory_space<vmem>>) attributes {dimension_semantics = [#tpu.dimension_semantics<arbitrary>], iteration_bounds = array<i64: 1>, scalar_prefetch = 0 : i64, scratch_operands = 0 : i64, tpu.core_type = #tpu.core_type<tc>, window_params = [{pipeline_mode = #tpu.pipeline_mode<synchronous>, transform_indices = @transform_0, window_bounds = array<i64: 32, 8>}, {pipeline_mode = #tpu.pipeline_mode<synchronous>, transform_indices = @transform_1, window_bounds = array<i64: 8, 256>}, {pipeline_mode = #tpu.pipeline_mode<synchronous>, transform_indices = @transform_2, window_bounds = array<i64: 1, 256>}, {pipeline_mode = #tpu.pipeline_mode<synchronous>, transform_indices = @transform_3, window_bounds = array<i64: 256, 32>}, {pipeline_mode = #tpu.pipeline_mode<synchronous>, transform_indices = @transform_4, window_bounds = array<i64: 32, 96>}, {pipeline_mode = #tpu.pipeline_mode<synchronous>, transform_indices = @transform_5, window_bounds = array<i64: 1, 96>}, {pipeline_mode = #tpu.pipeline_mode<synchronous>, transform_indices = @transform_6, window_bounds = array<i64: 8, 32, 32>}, {pipeline_mode = #tpu.pipeline_mode<synchronous>, transform_indices = @transform_7, window_bounds = array<i64: 32, 32>}, {pipeline_mode = #tpu.pipeline_mode<synchronous>, transform_indices = @transform_8, window_bounds = array<i64: 32, 32>}, {pipeline_mode = #tpu.pipeline_mode<synchronous>, transform_indices = @transform_9, window_bounds = array<i64: 32, 64>}, {pipeline_mode = #tpu.pipeline_mode<synchronous>, transform_indices = @transform_10, window_bounds = array<i64: 32, 32>}, {pipeline_mode = #tpu.pipeline_mode<synchronous>, transform_indices = @transform_11, window_bounds = array<i64: 32, 32>}, {pipeline_mode = #tpu.pipeline_mode<synchronous>, transform_indices = @transform_12, window_bounds = array<i64: 32, 32>}, {pipeline_mode = #tpu.pipeline_mode<synchronous>, transform_indices = @transform_13, window_bounds = array<i64: 64, 8>}, {pipeline_mode = #tpu.pipeline_mode<synchronous>, transform_indices = @transform_14, window_bounds = array<i64: 1, 8>}, {pipeline_mode = #tpu.pipeline_mode<synchronous>, transform_indices = @transform_15, window_bounds = array<i64: 12, 32>}, {pipeline_mode = #tpu.pipeline_mode<synchronous>, transform_indices = @transform_16, window_bounds = array<i64: 32, 4>}]} {
    %c0 = arith.constant 0 : index
    %c0_0 = arith.constant 0 : index
    %0 = vector.load %arg1[%c0, %c0_0] : memref<32x8xf32, #tpu.memory_space<vmem>>, vector<32x8xf32>
    %1 = vector.extract_strided_slice %0 {offsets = [0, 7], sizes = [32, 1], strides = [1, 1]} : vector<32x8xf32> to vector<32x1xf32>
    %c0_1 = arith.constant 0 : index
    %c0_2 = arith.constant 0 : index
    %2 = vector.load %arg16[%c0_1, %c0_2] : memref<12x32xf32, #tpu.memory_space<vmem>>, vector<1x32xf32>
    %c1 = arith.constant 1 : index
    %c0_3 = arith.constant 0 : index
    %3 = vector.load %arg16[%c1, %c0_3] : memref<12x32xf32, #tpu.memory_space<vmem>>, vector<1x32xf32>
    %c2 = arith.constant 2 : index
    %c0_4 = arith.constant 0 : index
    %4 = vector.load %arg16[%c2, %c0_4] : memref<12x32xf32, #tpu.memory_space<vmem>>, vector<1x32xf32>
    %c3 = arith.constant 3 : index
    %c0_5 = arith.constant 0 : index
    %5 = vector.load %arg16[%c3, %c0_5] : memref<12x32xf32, #tpu.memory_space<vmem>>, vector<1x32xf32>
    %c4 = arith.constant 4 : index
    %c0_6 = arith.constant 0 : index
    %6 = vector.load %arg16[%c4, %c0_6] : memref<12x32xf32, #tpu.memory_space<vmem>>, vector<1x32xf32>
    %c5 = arith.constant 5 : index
    %c0_7 = arith.constant 0 : index
    %7 = vector.load %arg16[%c5, %c0_7] : memref<12x32xf32, #tpu.memory_space<vmem>>, vector<1x32xf32>
    %c6 = arith.constant 6 : index
    %c0_8 = arith.constant 0 : index
    %8 = vector.load %arg16[%c6, %c0_8] : memref<12x32xf32, #tpu.memory_space<vmem>>, vector<1x32xf32>
    %c7 = arith.constant 7 : index
    %c0_9 = arith.constant 0 : index
    %9 = vector.load %arg16[%c7, %c0_9] : memref<12x32xf32, #tpu.memory_space<vmem>>, vector<1x32xf32>
    %c8 = arith.constant 8 : index
    %c0_10 = arith.constant 0 : index
    %10 = vector.load %arg16[%c8, %c0_10] : memref<12x32xf32, #tpu.memory_space<vmem>>, vector<1x32xf32>
    %c9 = arith.constant 9 : index
    %c0_11 = arith.constant 0 : index
    %11 = vector.load %arg16[%c9, %c0_11] : memref<12x32xf32, #tpu.memory_space<vmem>>, vector<1x32xf32>
    %c10 = arith.constant 10 : index
    %c0_12 = arith.constant 0 : index
    %12 = vector.load %arg16[%c10, %c0_12] : memref<12x32xf32, #tpu.memory_space<vmem>>, vector<1x32xf32>
    %c11 = arith.constant 11 : index
    %c0_13 = arith.constant 0 : index
    %13 = vector.load %arg16[%c11, %c0_13] : memref<12x32xf32, #tpu.memory_space<vmem>>, vector<1x32xf32>
    %c0_14 = arith.constant 0 : index
    %c0_15 = arith.constant 0 : index
    %14 = vector.load %arg2[%c0_14, %c0_15] : memref<8x256xf32, #tpu.memory_space<vmem>>, vector<8x256xf32>
    %cst = arith.constant dense<0.000000e+00> : vector<32x256xf32>
    %15 = tpu.matmul %0, %14, %cst {dimension_numbers = #tpu.dot_dimension_numbers<[1], [0], [0], [1], [0, 0, 1, 1], [], []>, precision = #tpu.contract_precision<fp32>} : vector<32x8xf32>, vector<8x256xf32>, vector<32x256xf32> -> vector<32x256xf32>
    %c0_16 = arith.constant 0 : index
    %c0_17 = arith.constant 0 : index
    %16 = vector.load %arg3[%c0_16, %c0_17] : memref<1x256xf32, #tpu.memory_space<vmem>>, vector<1x256xf32>
    %17 = vector.broadcast %16 : vector<1x256xf32> to vector<32x256xf32>
    %18 = arith.addf %15, %17 : vector<32x256xf32>
    %cst_18 = arith.constant 0.000000e+00 : f32
    %19 = vector.broadcast %cst_18 : f32 to vector<32x256xf32>
    %20 = arith.maximumf %18, %19 : vector<32x256xf32>
    %c0_19 = arith.constant 0 : index
    %c0_20 = arith.constant 0 : index
    %21 = vector.load %arg4[%c0_19, %c0_20] : memref<256x32xf32, #tpu.memory_space<vmem>>, vector<256x32xf32>
    %cst_21 = arith.constant dense<0.000000e+00> : vector<32x32xf32>
    %22 = tpu.matmul %20, %21, %cst_21 {dimension_numbers = #tpu.dot_dimension_numbers<[1], [0], [0], [1], [0, 0, 1, 1], [], []>, precision = #tpu.contract_precision<fp32>} : vector<32x256xf32>, vector<256x32xf32>, vector<32x32xf32> -> vector<32x32xf32>
    %23 = vector.broadcast %2 : vector<1x32xf32> to vector<32x32xf32>
    %24 = arith.addf %22, %23 : vector<32x32xf32>
    %cst_22 = arith.constant dense<0.000000e+00> : vector<32xf32>
    %25 = vector.multi_reduction <add>, %24, %cst_22 [1] : vector<32x32xf32> to vector<32xf32>
    %26 = vector.shape_cast %25 : vector<32xf32> to vector<32x1xf32>
    %cst_23 = arith.constant 3.200000e+01 : f32
    %27 = vector.broadcast %cst_23 : f32 to vector<32x1xf32>
    %28 = arith.divf %26, %27 : vector<32x1xf32>
    %29 = vector.broadcast %28 : vector<32x1xf32> to vector<32x32xf32>
    %30 = arith.subf %24, %29 : vector<32x32xf32>
    %31 = arith.mulf %30, %30 : vector<32x32xf32>
    %cst_24 = arith.constant dense<0.000000e+00> : vector<32xf32>
    %32 = vector.multi_reduction <add>, %31, %cst_24 [1] : vector<32x32xf32> to vector<32xf32>
    %33 = vector.shape_cast %32 : vector<32xf32> to vector<32x1xf32>
    %cst_25 = arith.constant 3.200000e+01 : f32
    %34 = vector.broadcast %cst_25 : f32 to vector<32x1xf32>
    %35 = arith.divf %33, %34 : vector<32x1xf32>
    %36 = vector.broadcast %28 : vector<32x1xf32> to vector<32x32xf32>
    %37 = arith.subf %24, %36 : vector<32x32xf32>
    %cst_26 = arith.constant 9.99999974E-6 : f32
    %38 = vector.broadcast %cst_26 : f32 to vector<32x1xf32>
    %39 = arith.addf %35, %38 : vector<32x1xf32>
    %40 = math.rsqrt %39 : vector<32x1xf32>
    %41 = vector.broadcast %40 : vector<32x1xf32> to vector<32x32xf32>
    %42 = arith.mulf %37, %41 : vector<32x32xf32>
    %43 = vector.broadcast %3 : vector<1x32xf32> to vector<32x32xf32>
    %44 = arith.mulf %42, %43 : vector<32x32xf32>
    %45 = vector.broadcast %4 : vector<1x32xf32> to vector<32x32xf32>
    %46 = arith.addf %44, %45 : vector<32x32xf32>
    %cst_27 = arith.constant 0.000000e+00 : f32
    %47 = vector.broadcast %cst_27 : f32 to vector<32x32xf32>
    %48 = arith.maximumf %46, %47 : vector<32x32xf32>
    %c0_28 = arith.constant 0 : index
    %c0_29 = arith.constant 0 : index
    %49 = vector.load %arg5[%c0_28, %c0_29] : memref<32x96xf32, #tpu.memory_space<vmem>>, vector<32x96xf32>
    %cst_30 = arith.constant dense<0.000000e+00> : vector<32x96xf32>
    %50 = tpu.matmul %48, %49, %cst_30 {dimension_numbers = #tpu.dot_dimension_numbers<[1], [0], [0], [1], [0, 0, 1, 1], [], []>, precision = #tpu.contract_precision<fp32>} : vector<32x32xf32>, vector<32x96xf32>, vector<32x96xf32> -> vector<32x96xf32>
    %c0_31 = arith.constant 0 : index
    %c0_32 = arith.constant 0 : index
    %51 = vector.load %arg6[%c0_31, %c0_32] : memref<1x96xf32, #tpu.memory_space<vmem>>, vector<1x96xf32>
    %52 = vector.broadcast %51 : vector<1x96xf32> to vector<32x96xf32>
    %53 = arith.addf %50, %52 : vector<32x96xf32>
    %54 = vector.extract_strided_slice %53 {offsets = [0, 0], sizes = [32, 32], strides = [1, 1]} : vector<32x96xf32> to vector<32x32xf32>
    %55 = vector.extract_strided_slice %53 {offsets = [0, 32], sizes = [32, 32], strides = [1, 1]} : vector<32x96xf32> to vector<32x32xf32>
    %56 = vector.extract_strided_slice %53 {offsets = [0, 64], sizes = [32, 32], strides = [1, 1]} : vector<32x96xf32> to vector<32x32xf32>
    %57 = vector.extract_strided_slice %54 {offsets = [0, 0], sizes = [32, 4], strides = [1, 1]} : vector<32x32xf32> to vector<32x4xf32>
    %58 = vector.extract_strided_slice %55 {offsets = [0, 0], sizes = [32, 4], strides = [1, 1]} : vector<32x32xf32> to vector<32x4xf32>
    %59 = vector.extract_strided_slice %56 {offsets = [0, 0], sizes = [32, 4], strides = [1, 1]} : vector<32x32xf32> to vector<32x4xf32>
    %cst_33 = arith.constant dense<0.000000e+00> : vector<32x32xf32>
    %60 = tpu.matmul %57, %58, %cst_33 {dimension_numbers = #tpu.dot_dimension_numbers<[1], [1], [0], [0], [0, 0, 1, 0], [], []>, precision = #tpu.contract_precision<fp32>} : vector<32x4xf32>, vector<32x4xf32>, vector<32x32xf32> -> vector<32x32xf32>
    %cst_34 = arith.constant 5.000000e-01 : f32
    %61 = vector.broadcast %cst_34 : f32 to vector<32x32xf32>
    %62 = arith.mulf %60, %61 : vector<32x32xf32>
    %c0_35 = arith.constant 0 : index
    %c0_36 = arith.constant 0 : index
    %c0_37 = arith.constant 0 : index
    %63 = vector.load %arg7[%c0_35, %c0_36, %c0_37] : memref<8x32x32xf32, #tpu.memory_space<vmem>>, vector<1x32x32xf32>
    %64 = vector.shape_cast %63 : vector<1x32x32xf32> to vector<32x32xf32>
    %65 = arith.addf %62, %64 : vector<32x32xf32>
    %cst_38 = arith.constant dense<0xFF800000> : vector<32xf32>
    %66 = vector.multi_reduction <maximumf>, %65, %cst_38 [1] : vector<32x32xf32> to vector<32xf32>
    %67 = vector.shape_cast %66 : vector<32xf32> to vector<32x1xf32>
    %68 = vector.broadcast %67 : vector<32x1xf32> to vector<32x32xf32>
    %69 = arith.subf %65, %68 : vector<32x32xf32>
    %70 = math.exp %69 : vector<32x32xf32>
    %cst_39 = arith.constant dense<0.000000e+00> : vector<32xf32>
    %71 = vector.multi_reduction <add>, %70, %cst_39 [1] : vector<32x32xf32> to vector<32xf32>
    %72 = vector.shape_cast %71 : vector<32xf32> to vector<32x1xf32>
    %cst_40 = arith.constant dense<0.000000e+00> : vector<32x4xf32>
    %73 = tpu.matmul %70, %59, %cst_40 {dimension_numbers = #tpu.dot_dimension_numbers<[1], [0], [0], [1], [0, 0, 1, 1], [], []>, precision = #tpu.contract_precision<fp32>} : vector<32x32xf32>, vector<32x4xf32>, vector<32x4xf32> -> vector<32x4xf32>
    %74 = tpu.reciprocal %72 {approx = true} : vector<32x1xf32> -> vector<32x1xf32>
    %75 = vector.broadcast %74 : vector<32x1xf32> to vector<32x4xf32>
    %76 = arith.mulf %73, %75 : vector<32x4xf32>
    %77 = vector.extract_strided_slice %54 {offsets = [0, 4], sizes = [32, 4], strides = [1, 1]} : vector<32x32xf32> to vector<32x4xf32>
    %78 = vector.extract_strided_slice %55 {offsets = [0, 4], sizes = [32, 4], strides = [1, 1]} : vector<32x32xf32> to vector<32x4xf32>
    %79 = vector.extract_strided_slice %56 {offsets = [0, 4], sizes = [32, 4], strides = [1, 1]} : vector<32x32xf32> to vector<32x4xf32>
    %cst_41 = arith.constant dense<0.000000e+00> : vector<32x32xf32>
    %80 = tpu.matmul %77, %78, %cst_41 {dimension_numbers = #tpu.dot_dimension_numbers<[1], [1], [0], [0], [0, 0, 1, 0], [], []>, precision = #tpu.contract_precision<fp32>} : vector<32x4xf32>, vector<32x4xf32>, vector<32x32xf32> -> vector<32x32xf32>
    %cst_42 = arith.constant 5.000000e-01 : f32
    %81 = vector.broadcast %cst_42 : f32 to vector<32x32xf32>
    %82 = arith.mulf %80, %81 : vector<32x32xf32>
    %c1_43 = arith.constant 1 : index
    %c0_44 = arith.constant 0 : index
    %c0_45 = arith.constant 0 : index
    %83 = vector.load %arg7[%c1_43, %c0_44, %c0_45] : memref<8x32x32xf32, #tpu.memory_space<vmem>>, vector<1x32x32xf32>
    %84 = vector.shape_cast %83 : vector<1x32x32xf32> to vector<32x32xf32>
    %85 = arith.addf %82, %84 : vector<32x32xf32>
    %cst_46 = arith.constant dense<0xFF800000> : vector<32xf32>
    %86 = vector.multi_reduction <maximumf>, %85, %cst_46 [1] : vector<32x32xf32> to vector<32xf32>
    %87 = vector.shape_cast %86 : vector<32xf32> to vector<32x1xf32>
    %88 = vector.broadcast %87 : vector<32x1xf32> to vector<32x32xf32>
    %89 = arith.subf %85, %88 : vector<32x32xf32>
    %90 = math.exp %89 : vector<32x32xf32>
    %cst_47 = arith.constant dense<0.000000e+00> : vector<32xf32>
    %91 = vector.multi_reduction <add>, %90, %cst_47 [1] : vector<32x32xf32> to vector<32xf32>
    %92 = vector.shape_cast %91 : vector<32xf32> to vector<32x1xf32>
    %cst_48 = arith.constant dense<0.000000e+00> : vector<32x4xf32>
    %93 = tpu.matmul %90, %79, %cst_48 {dimension_numbers = #tpu.dot_dimension_numbers<[1], [0], [0], [1], [0, 0, 1, 1], [], []>, precision = #tpu.contract_precision<fp32>} : vector<32x32xf32>, vector<32x4xf32>, vector<32x4xf32> -> vector<32x4xf32>
    %94 = tpu.reciprocal %92 {approx = true} : vector<32x1xf32> -> vector<32x1xf32>
    %95 = vector.broadcast %94 : vector<32x1xf32> to vector<32x4xf32>
    %96 = arith.mulf %93, %95 : vector<32x4xf32>
    %97 = vector.extract_strided_slice %54 {offsets = [0, 8], sizes = [32, 4], strides = [1, 1]} : vector<32x32xf32> to vector<32x4xf32>
    %98 = vector.extract_strided_slice %55 {offsets = [0, 8], sizes = [32, 4], strides = [1, 1]} : vector<32x32xf32> to vector<32x4xf32>
    %99 = vector.extract_strided_slice %56 {offsets = [0, 8], sizes = [32, 4], strides = [1, 1]} : vector<32x32xf32> to vector<32x4xf32>
    %cst_49 = arith.constant dense<0.000000e+00> : vector<32x32xf32>
    %100 = tpu.matmul %97, %98, %cst_49 {dimension_numbers = #tpu.dot_dimension_numbers<[1], [1], [0], [0], [0, 0, 1, 0], [], []>, precision = #tpu.contract_precision<fp32>} : vector<32x4xf32>, vector<32x4xf32>, vector<32x32xf32> -> vector<32x32xf32>
    %cst_50 = arith.constant 5.000000e-01 : f32
    %101 = vector.broadcast %cst_50 : f32 to vector<32x32xf32>
    %102 = arith.mulf %100, %101 : vector<32x32xf32>
    %c2_51 = arith.constant 2 : index
    %c0_52 = arith.constant 0 : index
    %c0_53 = arith.constant 0 : index
    %103 = vector.load %arg7[%c2_51, %c0_52, %c0_53] : memref<8x32x32xf32, #tpu.memory_space<vmem>>, vector<1x32x32xf32>
    %104 = vector.shape_cast %103 : vector<1x32x32xf32> to vector<32x32xf32>
    %105 = arith.addf %102, %104 : vector<32x32xf32>
    %cst_54 = arith.constant dense<0xFF800000> : vector<32xf32>
    %106 = vector.multi_reduction <maximumf>, %105, %cst_54 [1] : vector<32x32xf32> to vector<32xf32>
    %107 = vector.shape_cast %106 : vector<32xf32> to vector<32x1xf32>
    %108 = vector.broadcast %107 : vector<32x1xf32> to vector<32x32xf32>
    %109 = arith.subf %105, %108 : vector<32x32xf32>
    %110 = math.exp %109 : vector<32x32xf32>
    %cst_55 = arith.constant dense<0.000000e+00> : vector<32xf32>
    %111 = vector.multi_reduction <add>, %110, %cst_55 [1] : vector<32x32xf32> to vector<32xf32>
    %112 = vector.shape_cast %111 : vector<32xf32> to vector<32x1xf32>
    %cst_56 = arith.constant dense<0.000000e+00> : vector<32x4xf32>
    %113 = tpu.matmul %110, %99, %cst_56 {dimension_numbers = #tpu.dot_dimension_numbers<[1], [0], [0], [1], [0, 0, 1, 1], [], []>, precision = #tpu.contract_precision<fp32>} : vector<32x32xf32>, vector<32x4xf32>, vector<32x4xf32> -> vector<32x4xf32>
    %114 = tpu.reciprocal %112 {approx = true} : vector<32x1xf32> -> vector<32x1xf32>
    %115 = vector.broadcast %114 : vector<32x1xf32> to vector<32x4xf32>
    %116 = arith.mulf %113, %115 : vector<32x4xf32>
    %117 = vector.extract_strided_slice %54 {offsets = [0, 12], sizes = [32, 4], strides = [1, 1]} : vector<32x32xf32> to vector<32x4xf32>
    %118 = vector.extract_strided_slice %55 {offsets = [0, 12], sizes = [32, 4], strides = [1, 1]} : vector<32x32xf32> to vector<32x4xf32>
    %119 = vector.extract_strided_slice %56 {offsets = [0, 12], sizes = [32, 4], strides = [1, 1]} : vector<32x32xf32> to vector<32x4xf32>
    %cst_57 = arith.constant dense<0.000000e+00> : vector<32x32xf32>
    %120 = tpu.matmul %117, %118, %cst_57 {dimension_numbers = #tpu.dot_dimension_numbers<[1], [1], [0], [0], [0, 0, 1, 0], [], []>, precision = #tpu.contract_precision<fp32>} : vector<32x4xf32>, vector<32x4xf32>, vector<32x32xf32> -> vector<32x32xf32>
    %cst_58 = arith.constant 5.000000e-01 : f32
    %121 = vector.broadcast %cst_58 : f32 to vector<32x32xf32>
    %122 = arith.mulf %120, %121 : vector<32x32xf32>
    %c3_59 = arith.constant 3 : index
    %c0_60 = arith.constant 0 : index
    %c0_61 = arith.constant 0 : index
    %123 = vector.load %arg7[%c3_59, %c0_60, %c0_61] : memref<8x32x32xf32, #tpu.memory_space<vmem>>, vector<1x32x32xf32>
    %124 = vector.shape_cast %123 : vector<1x32x32xf32> to vector<32x32xf32>
    %125 = arith.addf %122, %124 : vector<32x32xf32>
    %cst_62 = arith.constant dense<0xFF800000> : vector<32xf32>
    %126 = vector.multi_reduction <maximumf>, %125, %cst_62 [1] : vector<32x32xf32> to vector<32xf32>
    %127 = vector.shape_cast %126 : vector<32xf32> to vector<32x1xf32>
    %128 = vector.broadcast %127 : vector<32x1xf32> to vector<32x32xf32>
    %129 = arith.subf %125, %128 : vector<32x32xf32>
    %130 = math.exp %129 : vector<32x32xf32>
    %cst_63 = arith.constant dense<0.000000e+00> : vector<32xf32>
    %131 = vector.multi_reduction <add>, %130, %cst_63 [1] : vector<32x32xf32> to vector<32xf32>
    %132 = vector.shape_cast %131 : vector<32xf32> to vector<32x1xf32>
    %cst_64 = arith.constant dense<0.000000e+00> : vector<32x4xf32>
    %133 = tpu.matmul %130, %119, %cst_64 {dimension_numbers = #tpu.dot_dimension_numbers<[1], [0], [0], [1], [0, 0, 1, 1], [], []>, precision = #tpu.contract_precision<fp32>} : vector<32x32xf32>, vector<32x4xf32>, vector<32x4xf32> -> vector<32x4xf32>
    %134 = tpu.reciprocal %132 {approx = true} : vector<32x1xf32> -> vector<32x1xf32>
    %135 = vector.broadcast %134 : vector<32x1xf32> to vector<32x4xf32>
    %136 = arith.mulf %133, %135 : vector<32x4xf32>
    %137 = vector.extract_strided_slice %54 {offsets = [0, 16], sizes = [32, 4], strides = [1, 1]} : vector<32x32xf32> to vector<32x4xf32>
    %138 = vector.extract_strided_slice %55 {offsets = [0, 16], sizes = [32, 4], strides = [1, 1]} : vector<32x32xf32> to vector<32x4xf32>
    %139 = vector.extract_strided_slice %56 {offsets = [0, 16], sizes = [32, 4], strides = [1, 1]} : vector<32x32xf32> to vector<32x4xf32>
    %cst_65 = arith.constant dense<0.000000e+00> : vector<32x32xf32>
    %140 = tpu.matmul %137, %138, %cst_65 {dimension_numbers = #tpu.dot_dimension_numbers<[1], [1], [0], [0], [0, 0, 1, 0], [], []>, precision = #tpu.contract_precision<fp32>} : vector<32x4xf32>, vector<32x4xf32>, vector<32x32xf32> -> vector<32x32xf32>
    %cst_66 = arith.constant 5.000000e-01 : f32
    %141 = vector.broadcast %cst_66 : f32 to vector<32x32xf32>
    %142 = arith.mulf %140, %141 : vector<32x32xf32>
    %c4_67 = arith.constant 4 : index
    %c0_68 = arith.constant 0 : index
    %c0_69 = arith.constant 0 : index
    %143 = vector.load %arg7[%c4_67, %c0_68, %c0_69] : memref<8x32x32xf32, #tpu.memory_space<vmem>>, vector<1x32x32xf32>
    %144 = vector.shape_cast %143 : vector<1x32x32xf32> to vector<32x32xf32>
    %145 = arith.addf %142, %144 : vector<32x32xf32>
    %cst_70 = arith.constant dense<0xFF800000> : vector<32xf32>
    %146 = vector.multi_reduction <maximumf>, %145, %cst_70 [1] : vector<32x32xf32> to vector<32xf32>
    %147 = vector.shape_cast %146 : vector<32xf32> to vector<32x1xf32>
    %148 = vector.broadcast %147 : vector<32x1xf32> to vector<32x32xf32>
    %149 = arith.subf %145, %148 : vector<32x32xf32>
    %150 = math.exp %149 : vector<32x32xf32>
    %cst_71 = arith.constant dense<0.000000e+00> : vector<32xf32>
    %151 = vector.multi_reduction <add>, %150, %cst_71 [1] : vector<32x32xf32> to vector<32xf32>
    %152 = vector.shape_cast %151 : vector<32xf32> to vector<32x1xf32>
    %cst_72 = arith.constant dense<0.000000e+00> : vector<32x4xf32>
    %153 = tpu.matmul %150, %139, %cst_72 {dimension_numbers = #tpu.dot_dimension_numbers<[1], [0], [0], [1], [0, 0, 1, 1], [], []>, precision = #tpu.contract_precision<fp32>} : vector<32x32xf32>, vector<32x4xf32>, vector<32x4xf32> -> vector<32x4xf32>
    %154 = tpu.reciprocal %152 {approx = true} : vector<32x1xf32> -> vector<32x1xf32>
    %155 = vector.broadcast %154 : vector<32x1xf32> to vector<32x4xf32>
    %156 = arith.mulf %153, %155 : vector<32x4xf32>
    %157 = vector.extract_strided_slice %54 {offsets = [0, 20], sizes = [32, 4], strides = [1, 1]} : vector<32x32xf32> to vector<32x4xf32>
    %158 = vector.extract_strided_slice %55 {offsets = [0, 20], sizes = [32, 4], strides = [1, 1]} : vector<32x32xf32> to vector<32x4xf32>
    %159 = vector.extract_strided_slice %56 {offsets = [0, 20], sizes = [32, 4], strides = [1, 1]} : vector<32x32xf32> to vector<32x4xf32>
    %cst_73 = arith.constant dense<0.000000e+00> : vector<32x32xf32>
    %160 = tpu.matmul %157, %158, %cst_73 {dimension_numbers = #tpu.dot_dimension_numbers<[1], [1], [0], [0], [0, 0, 1, 0], [], []>, precision = #tpu.contract_precision<fp32>} : vector<32x4xf32>, vector<32x4xf32>, vector<32x32xf32> -> vector<32x32xf32>
    %cst_74 = arith.constant 5.000000e-01 : f32
    %161 = vector.broadcast %cst_74 : f32 to vector<32x32xf32>
    %162 = arith.mulf %160, %161 : vector<32x32xf32>
    %c5_75 = arith.constant 5 : index
    %c0_76 = arith.constant 0 : index
    %c0_77 = arith.constant 0 : index
    %163 = vector.load %arg7[%c5_75, %c0_76, %c0_77] : memref<8x32x32xf32, #tpu.memory_space<vmem>>, vector<1x32x32xf32>
    %164 = vector.shape_cast %163 : vector<1x32x32xf32> to vector<32x32xf32>
    %165 = arith.addf %162, %164 : vector<32x32xf32>
    %cst_78 = arith.constant dense<0xFF800000> : vector<32xf32>
    %166 = vector.multi_reduction <maximumf>, %165, %cst_78 [1] : vector<32x32xf32> to vector<32xf32>
    %167 = vector.shape_cast %166 : vector<32xf32> to vector<32x1xf32>
    %168 = vector.broadcast %167 : vector<32x1xf32> to vector<32x32xf32>
    %169 = arith.subf %165, %168 : vector<32x32xf32>
    %170 = math.exp %169 : vector<32x32xf32>
    %cst_79 = arith.constant dense<0.000000e+00> : vector<32xf32>
    %171 = vector.multi_reduction <add>, %170, %cst_79 [1] : vector<32x32xf32> to vector<32xf32>
    %172 = vector.shape_cast %171 : vector<32xf32> to vector<32x1xf32>
    %cst_80 = arith.constant dense<0.000000e+00> : vector<32x4xf32>
    %173 = tpu.matmul %170, %159, %cst_80 {dimension_numbers = #tpu.dot_dimension_numbers<[1], [0], [0], [1], [0, 0, 1, 1], [], []>, precision = #tpu.contract_precision<fp32>} : vector<32x32xf32>, vector<32x4xf32>, vector<32x4xf32> -> vector<32x4xf32>
    %174 = tpu.reciprocal %172 {approx = true} : vector<32x1xf32> -> vector<32x1xf32>
    %175 = vector.broadcast %174 : vector<32x1xf32> to vector<32x4xf32>
    %176 = arith.mulf %173, %175 : vector<32x4xf32>
    %177 = vector.extract_strided_slice %54 {offsets = [0, 24], sizes = [32, 4], strides = [1, 1]} : vector<32x32xf32> to vector<32x4xf32>
    %178 = vector.extract_strided_slice %55 {offsets = [0, 24], sizes = [32, 4], strides = [1, 1]} : vector<32x32xf32> to vector<32x4xf32>
    %179 = vector.extract_strided_slice %56 {offsets = [0, 24], sizes = [32, 4], strides = [1, 1]} : vector<32x32xf32> to vector<32x4xf32>
    %cst_81 = arith.constant dense<0.000000e+00> : vector<32x32xf32>
    %180 = tpu.matmul %177, %178, %cst_81 {dimension_numbers = #tpu.dot_dimension_numbers<[1], [1], [0], [0], [0, 0, 1, 0], [], []>, precision = #tpu.contract_precision<fp32>} : vector<32x4xf32>, vector<32x4xf32>, vector<32x32xf32> -> vector<32x32xf32>
    %cst_82 = arith.constant 5.000000e-01 : f32
    %181 = vector.broadcast %cst_82 : f32 to vector<32x32xf32>
    %182 = arith.mulf %180, %181 : vector<32x32xf32>
    %c6_83 = arith.constant 6 : index
    %c0_84 = arith.constant 0 : index
    %c0_85 = arith.constant 0 : index
    %183 = vector.load %arg7[%c6_83, %c0_84, %c0_85] : memref<8x32x32xf32, #tpu.memory_space<vmem>>, vector<1x32x32xf32>
    %184 = vector.shape_cast %183 : vector<1x32x32xf32> to vector<32x32xf32>
    %185 = arith.addf %182, %184 : vector<32x32xf32>
    %cst_86 = arith.constant dense<0xFF800000> : vector<32xf32>
    %186 = vector.multi_reduction <maximumf>, %185, %cst_86 [1] : vector<32x32xf32> to vector<32xf32>
    %187 = vector.shape_cast %186 : vector<32xf32> to vector<32x1xf32>
    %188 = vector.broadcast %187 : vector<32x1xf32> to vector<32x32xf32>
    %189 = arith.subf %185, %188 : vector<32x32xf32>
    %190 = math.exp %189 : vector<32x32xf32>
    %cst_87 = arith.constant dense<0.000000e+00> : vector<32xf32>
    %191 = vector.multi_reduction <add>, %190, %cst_87 [1] : vector<32x32xf32> to vector<32xf32>
    %192 = vector.shape_cast %191 : vector<32xf32> to vector<32x1xf32>
    %cst_88 = arith.constant dense<0.000000e+00> : vector<32x4xf32>
    %193 = tpu.matmul %190, %179, %cst_88 {dimension_numbers = #tpu.dot_dimension_numbers<[1], [0], [0], [1], [0, 0, 1, 1], [], []>, precision = #tpu.contract_precision<fp32>} : vector<32x32xf32>, vector<32x4xf32>, vector<32x4xf32> -> vector<32x4xf32>
    %194 = tpu.reciprocal %192 {approx = true} : vector<32x1xf32> -> vector<32x1xf32>
    %195 = vector.broadcast %194 : vector<32x1xf32> to vector<32x4xf32>
    %196 = arith.mulf %193, %195 : vector<32x4xf32>
    %197 = vector.extract_strided_slice %54 {offsets = [0, 28], sizes = [32, 4], strides = [1, 1]} : vector<32x32xf32> to vector<32x4xf32>
    %198 = vector.extract_strided_slice %55 {offsets = [0, 28], sizes = [32, 4], strides = [1, 1]} : vector<32x32xf32> to vector<32x4xf32>
    %199 = vector.extract_strided_slice %56 {offsets = [0, 28], sizes = [32, 4], strides = [1, 1]} : vector<32x32xf32> to vector<32x4xf32>
    %cst_89 = arith.constant dense<0.000000e+00> : vector<32x32xf32>
    %200 = tpu.matmul %197, %198, %cst_89 {dimension_numbers = #tpu.dot_dimension_numbers<[1], [1], [0], [0], [0, 0, 1, 0], [], []>, precision = #tpu.contract_precision<fp32>} : vector<32x4xf32>, vector<32x4xf32>, vector<32x32xf32> -> vector<32x32xf32>
    %cst_90 = arith.constant 5.000000e-01 : f32
    %201 = vector.broadcast %cst_90 : f32 to vector<32x32xf32>
    %202 = arith.mulf %200, %201 : vector<32x32xf32>
    %c7_91 = arith.constant 7 : index
    %c0_92 = arith.constant 0 : index
    %c0_93 = arith.constant 0 : index
    %203 = vector.load %arg7[%c7_91, %c0_92, %c0_93] : memref<8x32x32xf32, #tpu.memory_space<vmem>>, vector<1x32x32xf32>
    %204 = vector.shape_cast %203 : vector<1x32x32xf32> to vector<32x32xf32>
    %205 = arith.addf %202, %204 : vector<32x32xf32>
    %cst_94 = arith.constant dense<0xFF800000> : vector<32xf32>
    %206 = vector.multi_reduction <maximumf>, %205, %cst_94 [1] : vector<32x32xf32> to vector<32xf32>
    %207 = vector.shape_cast %206 : vector<32xf32> to vector<32x1xf32>
    %208 = vector.broadcast %207 : vector<32x1xf32> to vector<32x32xf32>
    %209 = arith.subf %205, %208 : vector<32x32xf32>
    %210 = math.exp %209 : vector<32x32xf32>
    %cst_95 = arith.constant dense<0.000000e+00> : vector<32xf32>
    %211 = vector.multi_reduction <add>, %210, %cst_95 [1] : vector<32x32xf32> to vector<32xf32>
    %212 = vector.shape_cast %211 : vector<32xf32> to vector<32x1xf32>
    %cst_96 = arith.constant dense<0.000000e+00> : vector<32x4xf32>
    %213 = tpu.matmul %210, %199, %cst_96 {dimension_numbers = #tpu.dot_dimension_numbers<[1], [0], [0], [1], [0, 0, 1, 1], [], []>, precision = #tpu.contract_precision<fp32>} : vector<32x32xf32>, vector<32x4xf32>, vector<32x4xf32> -> vector<32x4xf32>
    %214 = tpu.reciprocal %212 {approx = true} : vector<32x1xf32> -> vector<32x1xf32>
    %215 = vector.broadcast %214 : vector<32x1xf32> to vector<32x4xf32>
    %216 = arith.mulf %213, %215 : vector<32x4xf32>
    %217 = tpu.concatenate %76, %96, %116, %136, %156, %176, %196, %216 in 1 : vector<32x4xf32>, vector<32x4xf32>, vector<32x4xf32>, vector<32x4xf32>, vector<32x4xf32>, vector<32x4xf32>, vector<32x4xf32>, vector<32x4xf32> -> vector<32x32xf32>
    %c0_97 = arith.constant 0 : index
    %c0_98 = arith.constant 0 : index
    %218 = vector.load %arg8[%c0_97, %c0_98] : memref<32x32xf32, #tpu.memory_space<vmem>>, vector<32x32xf32>
    %cst_99 = arith.constant dense<0.000000e+00> : vector<32x32xf32>
    %219 = tpu.matmul %217, %218, %cst_99 {dimension_numbers = #tpu.dot_dimension_numbers<[1], [0], [0], [1], [0, 0, 1, 1], [], []>, precision = #tpu.contract_precision<fp32>} : vector<32x32xf32>, vector<32x32xf32>, vector<32x32xf32> -> vector<32x32xf32>
    %220 = vector.broadcast %5 : vector<1x32xf32> to vector<32x32xf32>
    %221 = arith.addf %219, %220 : vector<32x32xf32>
    %c0_100 = arith.constant 0 : index
    %c0_101 = arith.constant 0 : index
    %222 = vector.load %arg9[%c0_100, %c0_101] : memref<32x32xf32, #tpu.memory_space<vmem>>, vector<32x32xf32>
    %cst_102 = arith.constant dense<0.000000e+00> : vector<32x32xf32>
    %223 = tpu.matmul %221, %222, %cst_102 {dimension_numbers = #tpu.dot_dimension_numbers<[1], [0], [0], [1], [0, 0, 1, 1], [], []>, precision = #tpu.contract_precision<fp32>} : vector<32x32xf32>, vector<32x32xf32>, vector<32x32xf32> -> vector<32x32xf32>
    %224 = vector.broadcast %6 : vector<1x32xf32> to vector<32x32xf32>
    %225 = arith.addf %223, %224 : vector<32x32xf32>
    %cst_103 = arith.constant 0.000000e+00 : f32
    %226 = vector.broadcast %cst_103 : f32 to vector<32x32xf32>
    %227 = arith.maximumf %225, %226 : vector<32x32xf32>
    %c0_104 = arith.constant 0 : index
    %c0_105 = arith.constant 0 : index
    %228 = vector.load %arg10[%c0_104, %c0_105] : memref<32x64xf32, #tpu.memory_space<vmem>>, vector<32x64xf32>
    %cst_106 = arith.constant dense<0.000000e+00> : vector<32x64xf32>
    %229 = tpu.matmul %221, %228, %cst_106 {dimension_numbers = #tpu.dot_dimension_numbers<[1], [0], [0], [1], [0, 0, 1, 1], [], []>, precision = #tpu.contract_precision<fp32>} : vector<32x32xf32>, vector<32x64xf32>, vector<32x64xf32> -> vector<32x64xf32>
    %230 = vector.extract_strided_slice %229 {offsets = [0, 0], sizes = [32, 32], strides = [1, 1]} : vector<32x64xf32> to vector<32x32xf32>
    %231 = vector.extract_strided_slice %229 {offsets = [0, 32], sizes = [32, 32], strides = [1, 1]} : vector<32x64xf32> to vector<32x32xf32>
    %232 = tpu.iota {dimensions = array<i32: 0>} : vector<32x32xi32>
    %c16_i32 = arith.constant 16 : i32
    %c0_i32 = arith.constant 0 : i32
    %233 = arith.cmpi eq, %c16_i32, %c0_i32 : i32
    %c1_i32 = arith.constant 1 : i32
    %234 = arith.select %233, %c1_i32, %c16_i32 : i32
    %235 = vector.broadcast %234 : i32 to vector<32x32xi32>
    %236 = arith.remsi %232, %235 : vector<32x32xi32>
    %c0_i32_107 = arith.constant 0 : i32
    %237 = vector.broadcast %c0_i32_107 : i32 to vector<32x32xi32>
    %238 = arith.cmpi ne, %236, %237 : vector<32x32xi32>
    %c0_i32_108 = arith.constant 0 : i32
    %239 = vector.broadcast %c0_i32_108 : i32 to vector<32x32xi32>
    %240 = arith.cmpi slt, %236, %239 : vector<32x32xi32>
    %c0_i32_109 = arith.constant 0 : i32
    %241 = arith.cmpi slt, %234, %c0_i32_109 : i32
    %242 = vector.broadcast %241 : i1 to vector<32x32xi1>
    %243 = vector.broadcast %242 : vector<32x32xi1> to vector<32x32xi1>
    %244 = arith.xori %240, %243 : vector<32x32xi1>
    %245 = arith.andi %244, %238 : vector<32x32xi1>
    %246 = vector.broadcast %234 : i32 to vector<32x32xi32>
    %247 = arith.addi %236, %246 : vector<32x32xi32>
    %248 = arith.select %245, %247, %236 : vector<32x32xi1>, vector<32x32xi32>
    %c0_i32_110 = arith.constant 0 : i32
    %249 = vector.broadcast %c0_i32_110 : i32 to vector<32x32xi32>
    %250 = arith.cmpi eq, %248, %249 : vector<32x32xi32>
    %c1_i32_111 = arith.constant 1 : i32
    %251 = tpu.dynamic_rotate %230 by %c1_i32_111 dim 0 : vector<32x32xf32>, i32 -> vector<32x32xf32>
    %cst_112 = arith.constant 0.000000e+00 : f32
    %252 = vector.broadcast %cst_112 : f32 to vector<32x32xf32>
    %253 = arith.select %250, %252, %251 : vector<32x32xi1>, vector<32x32xf32>
    %254 = arith.addf %253, %231 : vector<32x32xf32>
    %255 = vector.broadcast %7 : vector<1x32xf32> to vector<32x32xf32>
    %256 = arith.addf %254, %255 : vector<32x32xf32>
    %cst_113 = arith.constant 0.000000e+00 : f32
    %257 = vector.broadcast %cst_113 : f32 to vector<32x32xf32>
    %258 = arith.maximumf %256, %257 : vector<32x32xf32>
    %c16_i32_114 = arith.constant 16 : i32
    %c0_i32_115 = arith.constant 0 : i32
    %259 = arith.cmpi eq, %c16_i32_114, %c0_i32_115 : i32
    %c1_i32_116 = arith.constant 1 : i32
    %260 = arith.select %259, %c1_i32_116, %c16_i32_114 : i32
    %261 = vector.broadcast %260 : i32 to vector<32x32xi32>
    %262 = arith.remsi %232, %261 : vector<32x32xi32>
    %c0_i32_117 = arith.constant 0 : i32
    %263 = vector.broadcast %c0_i32_117 : i32 to vector<32x32xi32>
    %264 = arith.cmpi ne, %262, %263 : vector<32x32xi32>
    %c0_i32_118 = arith.constant 0 : i32
    %265 = vector.broadcast %c0_i32_118 : i32 to vector<32x32xi32>
    %266 = arith.cmpi slt, %262, %265 : vector<32x32xi32>
    %c0_i32_119 = arith.constant 0 : i32
    %267 = arith.cmpi slt, %260, %c0_i32_119 : i32
    %268 = vector.broadcast %267 : i1 to vector<32x32xi1>
    %269 = vector.broadcast %268 : vector<32x32xi1> to vector<32x32xi1>
    %270 = arith.xori %266, %269 : vector<32x32xi1>
    %271 = arith.andi %270, %264 : vector<32x32xi1>
    %272 = vector.broadcast %260 : i32 to vector<32x32xi32>
    %273 = arith.addi %262, %272 : vector<32x32xi32>
    %274 = arith.select %271, %273, %262 : vector<32x32xi1>, vector<32x32xi32>
    %c15_i32 = arith.constant 15 : i32
    %275 = vector.broadcast %c15_i32 : i32 to vector<32x32xi32>
    %276 = arith.cmpi eq, %274, %275 : vector<32x32xi32>
    %277 = arith.extui %276 : vector<32x32xi1> to vector<32x32xi32>
    %278 = arith.sitofp %277 : vector<32x32xi32> to vector<32x32xf32>
    %cst_120 = arith.constant 9.687500e-01 : f32
    %279 = vector.broadcast %cst_120 : f32 to vector<32x32xf32>
    %280 = arith.mulf %279, %278 : vector<32x32xf32>
    %281 = vector.broadcast %7 : vector<1x32xf32> to vector<32x32xf32>
    %282 = arith.addf %230, %281 : vector<32x32xf32>
    %cst_121 = arith.constant 0.000000e+00 : f32
    %283 = vector.broadcast %cst_121 : f32 to vector<32x32xf32>
    %284 = arith.maximumf %282, %283 : vector<32x32xf32>
    %285 = arith.mulf %280, %284 : vector<32x32xf32>
    %c0_122 = arith.constant 0 : index
    %c0_123 = arith.constant 0 : index
    %286 = vector.load %arg11[%c0_122, %c0_123] : memref<32x32xf32, #tpu.memory_space<vmem>>, vector<32x32xf32>
    %cst_124 = arith.constant dense<0.000000e+00> : vector<32x32xf32>
    %287 = tpu.matmul %286, %258, %cst_124 {dimension_numbers = #tpu.dot_dimension_numbers<[1], [0], [0], [1], [0, 0, 1, 1], [], []>, precision = #tpu.contract_precision<fp32>} : vector<32x32xf32>, vector<32x32xf32>, vector<32x32xf32> -> vector<32x32xf32>
    %288 = arith.addf %287, %285 : vector<32x32xf32>
    %cst_125 = arith.constant 5.000000e-01 : f32
    %289 = vector.broadcast %cst_125 : f32 to vector<32x32xf32>
    %290 = arith.mulf %289, %227 : vector<32x32xf32>
    %cst_126 = arith.constant 5.000000e-01 : f32
    %291 = vector.broadcast %cst_126 : f32 to vector<32x32xf32>
    %292 = arith.mulf %291, %288 : vector<32x32xf32>
    %293 = arith.addf %290, %292 : vector<32x32xf32>
    %c0_127 = arith.constant 0 : index
    %c0_128 = arith.constant 0 : index
    %294 = vector.load %arg12[%c0_127, %c0_128] : memref<32x32xf32, #tpu.memory_space<vmem>>, vector<32x32xf32>
    %cst_129 = arith.constant dense<0.000000e+00> : vector<32x32xf32>
    %295 = tpu.matmul %293, %294, %cst_129 {dimension_numbers = #tpu.dot_dimension_numbers<[1], [0], [0], [1], [0, 0, 1, 1], [], []>, precision = #tpu.contract_precision<fp32>} : vector<32x32xf32>, vector<32x32xf32>, vector<32x32xf32> -> vector<32x32xf32>
    %296 = vector.broadcast %8 : vector<1x32xf32> to vector<32x32xf32>
    %297 = arith.addf %295, %296 : vector<32x32xf32>
    %cst_130 = arith.constant dense<0.000000e+00> : vector<32xf32>
    %298 = vector.multi_reduction <add>, %297, %cst_130 [1] : vector<32x32xf32> to vector<32xf32>
    %299 = vector.shape_cast %298 : vector<32xf32> to vector<32x1xf32>
    %cst_131 = arith.constant 3.200000e+01 : f32
    %300 = vector.broadcast %cst_131 : f32 to vector<32x1xf32>
    %301 = arith.divf %299, %300 : vector<32x1xf32>
    %302 = vector.broadcast %301 : vector<32x1xf32> to vector<32x32xf32>
    %303 = arith.subf %297, %302 : vector<32x32xf32>
    %304 = arith.mulf %303, %303 : vector<32x32xf32>
    %cst_132 = arith.constant dense<0.000000e+00> : vector<32xf32>
    %305 = vector.multi_reduction <add>, %304, %cst_132 [1] : vector<32x32xf32> to vector<32xf32>
    %306 = vector.shape_cast %305 : vector<32xf32> to vector<32x1xf32>
    %cst_133 = arith.constant 3.200000e+01 : f32
    %307 = vector.broadcast %cst_133 : f32 to vector<32x1xf32>
    %308 = arith.divf %306, %307 : vector<32x1xf32>
    %309 = vector.broadcast %301 : vector<32x1xf32> to vector<32x32xf32>
    %310 = arith.subf %297, %309 : vector<32x32xf32>
    %cst_134 = arith.constant 9.99999974E-6 : f32
    %311 = vector.broadcast %cst_134 : f32 to vector<32x1xf32>
    %312 = arith.addf %308, %311 : vector<32x1xf32>
    %313 = math.rsqrt %312 : vector<32x1xf32>
    %314 = vector.broadcast %313 : vector<32x1xf32> to vector<32x32xf32>
    %315 = arith.mulf %310, %314 : vector<32x32xf32>
    %316 = vector.broadcast %9 : vector<1x32xf32> to vector<32x32xf32>
    %317 = arith.mulf %315, %316 : vector<32x32xf32>
    %318 = vector.broadcast %10 : vector<1x32xf32> to vector<32x32xf32>
    %319 = arith.addf %317, %318 : vector<32x32xf32>
    %cst_135 = arith.constant 0.000000e+00 : f32
    %320 = vector.broadcast %cst_135 : f32 to vector<32x32xf32>
    %321 = arith.maximumf %319, %320 : vector<32x32xf32>
    %c0_136 = arith.constant 0 : index
    %c0_137 = arith.constant 0 : index
    %322 = vector.load %arg13[%c0_136, %c0_137] : memref<32x32xf32, #tpu.memory_space<vmem>>, vector<32x32xf32>
    %cst_138 = arith.constant dense<0.000000e+00> : vector<32x32xf32>
    %323 = tpu.matmul %321, %322, %cst_138 {dimension_numbers = #tpu.dot_dimension_numbers<[1], [0], [0], [1], [0, 0, 1, 1], [], []>, precision = #tpu.contract_precision<fp32>} : vector<32x32xf32>, vector<32x32xf32>, vector<32x32xf32> -> vector<32x32xf32>
    %324 = vector.broadcast %11 : vector<1x32xf32> to vector<32x32xf32>
    %325 = arith.addf %323, %324 : vector<32x32xf32>
    %cst_139 = arith.constant dense<0.000000e+00> : vector<32xf32>
    %326 = vector.multi_reduction <add>, %325, %cst_139 [1] : vector<32x32xf32> to vector<32xf32>
    %327 = vector.shape_cast %326 : vector<32xf32> to vector<32x1xf32>
    %cst_140 = arith.constant 3.200000e+01 : f32
    %328 = vector.broadcast %cst_140 : f32 to vector<32x1xf32>
    %329 = arith.divf %327, %328 : vector<32x1xf32>
    %330 = vector.broadcast %329 : vector<32x1xf32> to vector<32x32xf32>
    %331 = arith.subf %325, %330 : vector<32x32xf32>
    %332 = arith.mulf %331, %331 : vector<32x32xf32>
    %cst_141 = arith.constant dense<0.000000e+00> : vector<32xf32>
    %333 = vector.multi_reduction <add>, %332, %cst_141 [1] : vector<32x32xf32> to vector<32xf32>
    %334 = vector.shape_cast %333 : vector<32xf32> to vector<32x1xf32>
    %cst_142 = arith.constant 3.200000e+01 : f32
    %335 = vector.broadcast %cst_142 : f32 to vector<32x1xf32>
    %336 = arith.divf %334, %335 : vector<32x1xf32>
    %337 = vector.broadcast %329 : vector<32x1xf32> to vector<32x32xf32>
    %338 = arith.subf %325, %337 : vector<32x32xf32>
    %cst_143 = arith.constant 9.99999974E-6 : f32
    %339 = vector.broadcast %cst_143 : f32 to vector<32x1xf32>
    %340 = arith.addf %336, %339 : vector<32x1xf32>
    %341 = math.rsqrt %340 : vector<32x1xf32>
    %342 = vector.broadcast %341 : vector<32x1xf32> to vector<32x32xf32>
    %343 = arith.mulf %338, %342 : vector<32x32xf32>
    %344 = vector.broadcast %12 : vector<1x32xf32> to vector<32x32xf32>
    %345 = arith.mulf %343, %344 : vector<32x32xf32>
    %346 = vector.broadcast %13 : vector<1x32xf32> to vector<32x32xf32>
    %347 = arith.addf %345, %346 : vector<32x32xf32>
    %cst_144 = arith.constant 0.000000e+00 : f32
    %348 = vector.broadcast %cst_144 : f32 to vector<32x32xf32>
    %349 = arith.maximumf %347, %348 : vector<32x32xf32>
    %350 = tpu.concatenate %349, %321 in 1 : vector<32x32xf32>, vector<32x32xf32> -> vector<32x64xf32>
    %c0_145 = arith.constant 0 : index
    %c0_146 = arith.constant 0 : index
    %351 = vector.load %arg14[%c0_145, %c0_146] : memref<64x8xf32, #tpu.memory_space<vmem>>, vector<64x8xf32>
    %cst_147 = arith.constant dense<0.000000e+00> : vector<32x8xf32>
    %352 = tpu.matmul %350, %351, %cst_147 {dimension_numbers = #tpu.dot_dimension_numbers<[1], [0], [0], [1], [0, 0, 1, 1], [], []>, precision = #tpu.contract_precision<fp32>} : vector<32x64xf32>, vector<64x8xf32>, vector<32x8xf32> -> vector<32x8xf32>
    %c0_148 = arith.constant 0 : index
    %c0_149 = arith.constant 0 : index
    %353 = vector.load %arg15[%c0_148, %c0_149] : memref<1x8xf32, #tpu.memory_space<vmem>>, vector<1x8xf32>
    %354 = vector.broadcast %353 : vector<1x8xf32> to vector<32x8xf32>
    %355 = arith.addf %352, %354 : vector<32x8xf32>
    %356 = vector.extract_strided_slice %355 {offsets = [0, 0], sizes = [32, 4], strides = [1, 1]} : vector<32x8xf32> to vector<32x4xf32>
    %357 = vector.extract_strided_slice %355 {offsets = [0, 4], sizes = [32, 4], strides = [1, 1]} : vector<32x8xf32> to vector<32x4xf32>
    %358 = arith.negf %357 : vector<32x4xf32>
    %359 = math.exp %358 : vector<32x4xf32>
    %cst_150 = arith.constant 1.000000e+00 : f32
    %360 = vector.broadcast %cst_150 : f32 to vector<32x4xf32>
    %361 = arith.addf %360, %359 : vector<32x4xf32>
    %362 = arith.divf %360, %361 : vector<32x4xf32>
    %363 = vector.broadcast %1 : vector<32x1xf32> to vector<32x4xf32>
    %364 = arith.mulf %362, %363 : vector<32x4xf32>
    %cst_151 = arith.constant 1.000000e+00 : f32
    %365 = vector.broadcast %cst_151 : f32 to vector<32x4xf32>
    %366 = arith.subf %365, %362 : vector<32x4xf32>
    %367 = arith.mulf %366, %356 : vector<32x4xf32>
    %368 = arith.addf %364, %367 : vector<32x4xf32>
    %c0_152 = arith.constant 0 : index
    %c0_153 = arith.constant 0 : index
    %369 = vector.load %arg17[%c0_152, %c0_153] : memref<32x4xf32, #tpu.memory_space<vmem>>, vector<32x4xf32>
    tpu.vector_store %arg17[%c0_152, %c0_153], %368 {strides = array<i32>} : memref<32x4xf32, #tpu.memory_space<vmem>>, vector<32x4xf32>,
    return
  }
  func.func @transform_0(%arg0: i32) -> (i32, i32) {
    %c0_i32 = arith.constant 0 : i32
    %c0_i32_0 = arith.constant 0 : i32
    %c0_i32_1 = arith.constant 0 : i32
    return %c0_i32, %c0_i32_0 : i32, i32
  }
  func.func @transform_1(%arg0: i32) -> (i32, i32) {
    %c0_i32 = arith.constant 0 : i32
    %c0_i32_0 = arith.constant 0 : i32
    %c0_i32_1 = arith.constant 0 : i32
    return %c0_i32, %c0_i32_0 : i32, i32
  }
  func.func @transform_2(%arg0: i32) -> (i32, i32) {
    %c0_i32 = arith.constant 0 : i32
    %c0_i32_0 = arith.constant 0 : i32
    %c0_i32_1 = arith.constant 0 : i32
    return %c0_i32, %c0_i32_0 : i32, i32
  }
  func.func @transform_3(%arg0: i32) -> (i32, i32) {
    %c0_i32 = arith.constant 0 : i32
    %c0_i32_0 = arith.constant 0 : i32
    %c0_i32_1 = arith.constant 0 : i32
    return %c0_i32, %c0_i32_0 : i32, i32
  }
  func.func @transform_4(%arg0: i32) -> (i32, i32) {
    %c0_i32 = arith.constant 0 : i32
    %c0_i32_0 = arith.constant 0 : i32
    %c0_i32_1 = arith.constant 0 : i32
    return %c0_i32, %c0_i32_0 : i32, i32
  }
  func.func @transform_5(%arg0: i32) -> (i32, i32) {
    %c0_i32 = arith.constant 0 : i32
    %c0_i32_0 = arith.constant 0 : i32
    %c0_i32_1 = arith.constant 0 : i32
    return %c0_i32, %c0_i32_0 : i32, i32
  }
  func.func @transform_6(%arg0: i32) -> (i32, i32, i32) {
    %c0_i32 = arith.constant 0 : i32
    %c0_i32_0 = arith.constant 0 : i32
    %c0_i32_1 = arith.constant 0 : i32
    %c0_i32_2 = arith.constant 0 : i32
    return %c0_i32, %c0_i32_0, %c0_i32_1 : i32, i32, i32
  }
  func.func @transform_7(%arg0: i32) -> (i32, i32) {
    %c0_i32 = arith.constant 0 : i32
    %c0_i32_0 = arith.constant 0 : i32
    %c0_i32_1 = arith.constant 0 : i32
    return %c0_i32, %c0_i32_0 : i32, i32
  }
  func.func @transform_8(%arg0: i32) -> (i32, i32) {
    %c0_i32 = arith.constant 0 : i32
    %c0_i32_0 = arith.constant 0 : i32
    %c0_i32_1 = arith.constant 0 : i32
    return %c0_i32, %c0_i32_0 : i32, i32
  }
  func.func @transform_9(%arg0: i32) -> (i32, i32) {
    %c0_i32 = arith.constant 0 : i32
    %c0_i32_0 = arith.constant 0 : i32
    %c0_i32_1 = arith.constant 0 : i32
    return %c0_i32, %c0_i32_0 : i32, i32
  }
  func.func @transform_10(%arg0: i32) -> (i32, i32) {
    %c0_i32 = arith.constant 0 : i32
    %c0_i32_0 = arith.constant 0 : i32
    %c0_i32_1 = arith.constant 0 : i32
    return %c0_i32, %c0_i32_0 : i32, i32
  }
  func.func @transform_11(%arg0: i32) -> (i32, i32) {
    %c0_i32 = arith.constant 0 : i32
    %c0_i32_0 = arith.constant 0 : i32
    %c0_i32_1 = arith.constant 0 : i32
    return %c0_i32, %c0_i32_0 : i32, i32
  }
  func.func @transform_12(%arg0: i32) -> (i32, i32) {
    %c0_i32 = arith.constant 0 : i32
    %c0_i32_0 = arith.constant 0 : i32
    %c0_i32_1 = arith.constant 0 : i32
    return %c0_i32, %c0_i32_0 : i32, i32
  }
  func.func @transform_13(%arg0: i32) -> (i32, i32) {
    %c0_i32 = arith.constant 0 : i32
    %c0_i32_0 = arith.constant 0 : i32
    %c0_i32_1 = arith.constant 0 : i32
    return %c0_i32, %c0_i32_0 : i32, i32
  }
  func.func @transform_14(%arg0: i32) -> (i32, i32) {
    %c0_i32 = arith.constant 0 : i32
    %c0_i32_0 = arith.constant 0 : i32
    %c0_i32_1 = arith.constant 0 : i32
    return %c0_i32, %c0_i32_0 : i32, i32
  }
  func.func @transform_15(%arg0: i32) -> (i32, i32) {
    %c0_i32 = arith.constant 0 : i32
    %c0_i32_0 = arith.constant 0 : i32
    %c0_i32_1 = arith.constant 0 : i32
    return %c0_i32, %c0_i32_0 : i32, i32
  }
  func.func @transform_16(%arg0: i32) -> (i32, i32) {
    %c0_i32 = arith.constant 0 : i32
    %c0_i32_0 = arith.constant 0 : i32
    %c0_i32_1 = arith.constant 0 : i32
    return %c0_i32, %c0_i32_0 : i32, i32
  }
}

</mosaic_0001>

<bundles_post_ra>
// kernel: tpu_custom_call.1
= control target key start
LH: loop header
LB: loop body
LE: loop exit
PB: predicated region body
PF: predicated region fallthrough
CT: control target
= control target key end

     0   :  { %s27776_s0 = inlined_call_operand.vmem [shape: f32[32,8], index: 0, kind: input, shape index: {}]   ;;  %s27777_s1 = inlined_call_operand.hbm [shape: f32[8,256], index: 1, kind: input, shape index: {}]   ;;  %s27778_s2 = inlined_call_operand.hbm [shape: f32[1,256], index: 2, kind: input, shape index: {}]   ;;  %s27779_s3 = inlined_call_operand.vmem [shape: f32[256,32], index: 3, kind: input, shape index: {}]   ;;  %s27780_s4 = inlined_call_operand.vmem [shape: f32[32,96], index: 4, kind: input, shape index: {}]   ;;  %s27781_s5 = inlined_call_operand.vmem [shape: f32[1,96], index: 5, kind: input, shape index: {}]   ;;  %s27782_s6 = inlined_call_operand.vmem [shape: f32[8,32,32], index: 6, kind: input, shape index: {}]   ;;  %s27783_s7 = inlined_call_operand.vmem [shape: f32[32,32], index: 7, kind: input, shape index: {}]   ;;  %s27784_s8 = inlined_call_operand.vmem [shape: f32[32,32], index: 8, kind: input, shape index: {}]   ;;  %s27785_s9 = inlined_call_operand.vmem [shape: f32[32,64], index: 9, kind: input, shape index: {}]   ;;  %s27786_s10 = inlined_call_operand.vmem [shape: f32[32,32], index: 10, kind: input, shape index: {}]   ;;  %s27787_s11 = inlined_call_operand.vmem [shape: f32[32,32], index: 11, kind: input, shape index: {}]   ;;  %s27788_s12 = inlined_call_operand.hbm [shape: f32[32,32], index: 12, kind: input, shape index: {}]   ;;  %s27789_s13 = inlined_call_operand.vmem [shape: f32[64,8], index: 13, kind: input, shape index: {}]   ;;  %s27790_s14 = inlined_call_operand.vmem [shape: f32[1,8], index: 14, kind: input, shape index: {}]   ;;  %s27791_s15 = inlined_call_operand.vmem [shape: f32[12,32], index: 15, kind: input, shape index: {}]   ;;  %s27792_s16 = inlined_call_operand.vmem [shape: f32[32,4], index: 16, kind: output, shape index: {}]  }
   0x1   :  { %27902 = sst [smem:[#allocation36_spill]] %s27776_s0 }
   0x2   :  { %21 = vsyncpa [#allocation3], 0 }
   0x3   :  { %22 = vsyncpa [#allocation5], 0  ;;  %s24062_s21 = smov [#allocation4]   ;;  %s24063_s23 = smov [#allocation2]  }
   0x4   :  { %s41_s22 = sshll.u32 %s24062_s21, 4  ;;  %s31_s24 = sshll.u32 %s24063_s23, 4  ;;  %s42_s22 = int_to_ptr.vmem [resolvable:$true] %s41_s22  ;;  %s32_s24 = int_to_ptr.vmem [resolvable:$true] %s31_s24 }
   0x5   :  { %s23992_s27 = scalar_lea.hbm %s27778_s2, 32 }
   0x6   :  { %p23993_p0 = scmp.ne.s32.totalorder %s27778_s2, %s23992_s27  ;;  %p23996_p1 = scmp.lt.u32.totalorder %s23992_s27, %s27778_s2 }
   0x8   :  { %p23998_p2 = pnand %p23996_p1, %p23993_p0 }
   0xa   :  { %24001 = shalt.err (!%p23998_p2)
}
   0xb   :  { %s24002_s17 = scalar_lea.vmem %s42_s22, 32  ;;  %p24007_p4 = scmp.lt.s32.totalorder %s42_s22, %s42_s22 }
   0xc   :  { %p24003_p3 = scmp.ne.s32.totalorder %s42_s22, %s24002_s17  ;;  %p24008_p5 = scmp.lt.s32.totalorder %s24002_s17, %s24002_s17 }
   0xe   :  { %p24009_p6 = por %p24008_p5, %p24007_p4 }
  0x10   :  { %p24010_p7 = pnand %p24009_p6, %p24003_p3 }
  0x12   :  { %24013 = shalt.err (!%p24010_p7)
}
  0x13   :  { %44 = dma.hbm_to_vmem [thread:$0]  %s27778_s2, 32, %s42_s22, [#allocation5]  }
  0x14   :  { %s24014_s23 = scalar_lea.hbm %s27777_s1, 256 }
  0x15   :  { %p24015_p8 = scmp.ne.s32.totalorder %s27777_s1, %s24014_s23  ;;  %p24018_p9 = scmp.lt.u32.totalorder %s24014_s23, %s27777_s1 }
  0x17   :  { %p24020_p10 = pnand %p24018_p9, %p24015_p8 }
  0x19   :  { %24023 = shalt.err (!%p24020_p10)
}
  0x1a   :  { %s24024_s29 = scalar_lea.vmem %s32_s24, 256  ;;  %p24029_p12 = scmp.lt.s32.totalorder %s32_s24, %s32_s24 }
  0x1b   :  { %p24025_p11 = scmp.ne.s32.totalorder %s32_s24, %s24024_s29  ;;  %p24030_p13 = scmp.lt.s32.totalorder %s24024_s29, %s24024_s29 }
  0x1d   :  { %p24031_p0 = por %p24030_p13, %p24029_p12 }
  0x1f   :  { %p24032_p1 = pnand %p24031_p0, %p24025_p11 }
  0x21   :  { %24035 = shalt.err (!%p24032_p1)
}
  0x22   :  { %34 = dma.hbm_to_vmem [thread:$0]  %s27777_s1, 256, %s32_s24, [#allocation3]  }
  0x23   :  { %s24064_s30 = smov [#allocation6]   ;;  %s24036_s19 = scalar_lea.hbm %s27788_s12, 512 }
  0x24   :  { %s68_s0 = sshll.u32 %s24064_s30, 4  ;;  %p24037_p2 = scmp.ne.s32.totalorder %s27788_s12, %s24036_s19  ;;  %s69_s0 = int_to_ptr.vmem [resolvable:$true] %s68_s0 }
  0x25   :  { %p24040_p3 = scmp.lt.u32.totalorder %s24036_s19, %s27788_s12 }
  0x27   :  { %p24042_p4 = pnand %p24040_p3, %p24037_p2 }
  0x29   :  { %24045 = shalt.err (!%p24042_p4)
}
  0x2a   :  { %s24046_s26 = scalar_lea.vmem %s69_s0, 512  ;;  %p24051_p6 = scmp.lt.s32.totalorder %s69_s0, %s69_s0 }
  0x2b   :  { %p24047_p5 = scmp.ne.s32.totalorder %s69_s0, %s24046_s26  ;;  %p24052_p7 = scmp.lt.s32.totalorder %s24046_s26, %s24046_s26 }
  0x2d   :  { %p24053_p8 = por %p24052_p7, %p24051_p6 }
  0x2f   :  { %p24054_p9 = pnand %p24053_p8, %p24047_p5 }
  0x31   :  { %24057 = shalt.err (!%p24054_p9)
}
  0x32   :  { %s24065_s1 = smov 128   ;;  %s24066_s24 = smov 8  }
  0x33   :  { %74 = dma.hbm_to_vmem [thread:$0]  %s27788_s12, 512, %s69_s0, [#allocation5], %s24065_s1, %s24065_s1, %s24066_s24  }
  0x34   :  { %24058 = dma.done.wait [#allocation3], 256  }
  0x35   :  { %24059 = vsyncadd [#allocation3], 4294967040 }
  0x36   :  { %24060 = dma.done.wait [#allocation5], 544  }
  0x37   :  { %24061 = vsyncadd [#allocation5], 4294966752  ;;  %v27798_v0 = vmov 0.0   ;;  %vm120_vm0 = vcmask 64512   ;;  %v107_v1 = vld [vmem:[#allocation2 + $0x8] sm:$0xff]  ;;  %v106_v2 = vld [vmem:[#allocation2] sm:$0xff] }
  0x38   :  { %199 = vmatprep.mubr.f32.mxu0 %v27798_v0  ;;  %s27903_s22 = sld [smem:[#allocation36_spill]]  ;;  %v24225_v4 = vand.u32 4294901760, %v107_v1  ;;  %v24227_v5 = vand.u32 4294901760, %v106_v2  ;;  %v769_v14 = vld [vmem:[%s27779_s3 + $0x80] sm:$0xff]  ;;  %v770_v15 = vld [vmem:[%s27779_s3 + $0x88] sm:$0xff]  ;;  %v771_v42 = vld [vmem:[%s27779_s3 + $0x90] sm:$0xff] }
  0x39   :  { %v838_v22 = vand.u32 4294901760, %v769_v14  ;;  %v841_v23 = vand.u32 4294901760, %v770_v15  ;;  %v753_v28 = vld [vmem:[%s27779_s3] sm:$0xff]  ;;  %v754_v37 = vld [vmem:[%s27779_s3 + $0x8] sm:$0xff]  ;;  %v772_v43 = vld [vmem:[%s27779_s3 + $0x98] sm:$0xff]  ;;  %v844_v54 = vand.u32 4294901760, %v771_v42 }
  0x3a   :  { %134 = vmatprep.subr.mxu0 %v24225_v4  ;;  %v24252_v16 = vsub.f32 %v106_v2, %v24227_v5  ;;  %v24255_v17 = vsub.f32 %v107_v1, %v24225_v4  ;;  %v790_v41 = vand.u32 4294901760, %v753_v28  ;;  %v755_v47 = vld [vmem:[%s27779_s3 + $0x10] sm:$0xff]  ;;  %v793_v49 = vand.u32 4294901760, %v754_v37  ;;  %v756_v51 = vld [vmem:[%s27779_s3 + $0x18] sm:$0xff]  ;;  %v773_v56 = vld [vmem:[%s27779_s3 + $0xa0] sm:$0xff]  ;;  %s24068_s18 = smov 96  }
  0x3b   :  { %136 = vmatpush1.msra.mxu0 %v24227_v5  ;;  %v24282_v31 = vpack.c.bf16 %v841_v23, %v838_v22  ;;  %v24284_v32 = vsub.f32 %v769_v14, %v838_v22  ;;  %v24301_v40 = vsub.f32 %v770_v15, %v841_v23  ;;  %v847_v55 = vand.u32 4294901760, %v772_v43  ;;  %v774_v57 = vld [vmem:[%s27779_s3 + $0xa8] sm:$0xff]  ;;  %v757_v58 = vld [vmem:[%s27779_s3 + $0x20] sm:$0xff]  ;;  %v775_v1 = vld [vmem:[%s27779_s3 + $0xb0] sm:$0xff]  ;;  %s24069_s1 = smov 64   ;;  %s24070_s27 = smov 92  }
  0x3c   :  { %v246_v24 = vand.u32 4294901760, %v24255_v17  ;;  %v27797_v25 = vand.u32 4294901760, %v24252_v16  ;;  %v24316_v50 = vsub.f32 %v753_v28, %v790_v41  ;;  %v24338_v60 = vpack.c.bf16 %v793_v49, %v790_v41  ;;  %v758_v63 = vld [vmem:[%s27779_s3 + $0x28] sm:$0xff]  ;;  %v759_v28 = vld [vmem:[%s27779_s3 + $0x30] sm:$0xff]  ;;  %s24071_s28 = smov 124   ;;  %s24072_s19 = smov 60  }
  0x3d   :  { %27904 = vst [vmem:[#allocation9_spill] sm:$0xff] %v24282_v31  ;;  %21834 = vmatprep.subr.bf16.mxu1 %v24282_v31  ;;  %v24340_v61 = vsub.f32 %v754_v37, %v793_v49  ;;  %v796_v62 = vand.u32 4294901760, %v755_v47  ;;  %v24349_v2 = vpack.c.bf16 %v847_v55, %v844_v54  ;;  %v805_v22 = vand.u32 4294901760, %v758_v63  ;;  %v762_v49 = vld [vmem:[%s27779_s3 + $0x48] sm:$0xff]  ;;  %s24074_s20 = smov 120   ;;  %s24075_s2 = smov 56  }
  0x3e   :  { %v90_v3 = vld [vmem:[%s27903_s22] sm:$0xff]  ;;  %v91_v7 = vld [vmem:[%s27903_s22 + $0x8] sm:$0xff]  ;;  %v92_v8 = vld [vmem:[%s27903_s22 + $0x10] sm:$0xff]  ;;  %v247_v33 = vsub.f32 %v24255_v17, %v246_v24  ;;  %v253_v34 = vsub.f32 %v24252_v16, %v27797_v25  ;;  %27905 = vst [vmem:[#allocation10_spill] sm:$0xff] %v24338_v60  ;;  %21836 = vmatpush3.bf16.msra.mxu1 %v24338_v60  ;;  %v856_v23 = vand.u32 4294901760, %v775_v1  ;;  %vm1819_vm1 = vcmask 261120  }
  0x3f   :  { %v122_v6 = vsel %vm120_vm0, %v90_v3, 0  ;;  %v93_v9 = vld [vmem:[%s27903_s22 + $0x18] sm:$0xff]  ;;  %v125_v11 = vsel %vm120_vm0, %v91_v7, 0  ;;  %v128_v12 = vsel %vm120_vm0, %v92_v8, 0  ;;  %27906 = vst [vmem:[#allocation11_spill] sm:$0xff] %v24349_v2  ;;  %v24351_v3 = vsub.f32 %v771_v42, %v844_v54  ;;  %21838 = vmatprep.subr.bf16.mxu1 %v24349_v2  ;;  %v777_v42 = vld [vmem:[%s27779_s3 + $0xc0] sm:$0xff] }
  0x40   :  { %v24239_v10 = vand.u32 4294901760, %v122_v6  ;;  %v131_v13 = vsel %vm120_vm0, %v93_v9, 0  ;;  %v24257_v18 = vand.u32 4294901760, %v125_v11  ;;  %v24259_v19 = vand.u32 4294901760, %v128_v12  ;;  %s24076_s12 = smov 84   ;;  %s24077_s30 = smov 116  }
  0x41   :  { %v24265_v21 = vand.u32 4294901760, %v131_v13  ;;  %v248_v44 = vand.u32 4294901760, %v247_v33  ;;  %v254_v45 = vand.u32 4294901760, %v253_v34  ;;  %v799_v7 = vand.u32 4294901760, %v756_v51  ;;  %v760_v33 = vld [vmem:[%s27779_s3 + $0x38] sm:$0xff]  ;;  %s24078_s25 = smov 52  }
  0x42   :  { %v24263_v20 = vsub.f32 %v122_v6, %v24239_v10  ;;  %v24270_v26 = vsub.f32 %v125_v11, %v24257_v18  ;;  %v24273_v27 = vsub.f32 %v128_v12, %v24259_v19  ;;  %v24353_v6 = vsub.f32 %v772_v43, %v847_v55  ;;  %v778_v43 = vld [vmem:[%s27779_s3 + $0xc8] sm:$0xff]  ;;  %s24079_s26 = smov 80   ;;  %s24087_s23 = smov 40  }
  0x43   :  { %v24280_v30 = vsub.f32 %v131_v13, %v24265_v21  ;;  %249 = vmatprep.subr.mxu0 %v248_v44  ;;  %v24356_v8 = vsub.f32 %v755_v47, %v796_v62  ;;  %v850_v9 = vand.u32 4294901760, %v773_v56  ;;  %v853_v11 = vand.u32 4294901760, %v774_v57  ;;  %v776_v13 = vld [vmem:[%s27779_s3 + $0xb8] sm:$0xff]  ;;  %v761_v44 = vld [vmem:[%s27779_s3 + $0x40] sm:$0xff]  ;;  %s24090_s17 = smov 36  }
  0x44   :  { %v202_v29 = vand.u32 4294901760, %v24263_v20  ;;  %v27796_v35 = vand.u32 4294901760, %v24270_v26  ;;  %v27795_v36 = vand.u32 4294901760, %v24273_v27  ;;  %v802_v12 = vand.u32 4294901760, %v757_v58 }
  0x45   :  { %v27794_v39 = vand.u32 4294901760, %v24280_v30  ;;  %v24362_v15 = vsub.f32 %v756_v51, %v799_v7  ;;  %v24371_v34 = vpack.c.bf16 %v799_v7, %v796_v62  ;;  %v24373_v37 = vsub.f32 %v773_v56, %v850_v9  ;;  %v780_v62 = vld [vmem:[%s27779_s3 + $0xd8] sm:$0xff] }
  0x46   :  { %v203_v38 = vsub.f32 %v24263_v20, %v202_v29  ;;  %v214_v46 = vsub.f32 %v24270_v26, %v27796_v35  ;;  %v225_v52 = vsub.f32 %v24273_v27, %v27795_v36  ;;  %v24377_v41 = vsub.f32 %v757_v58, %v802_v12 }
  0x47   :  { %v24327_v53 = vsub.f32 %v24280_v30, %v27794_v39  ;;  %27907 = vst [vmem:[#allocation12_spill] sm:$0xff] %v24371_v34  ;;  %v859_v47 = vand.u32 4294901760, %v776_v13  ;;  %21840 = vmatpush3.bf16.msra.mxu1 %v24371_v34  ;;  %v811_v54 = vand.u32 4294901760, %v760_v33  ;;  %v862_v56 = vand.u32 4294901760, %v777_v42 }
  0x48   :  { %v204_v48 = vand.u32 4294901760, %v203_v38  ;;  %v215_v59 = vand.u32 4294901760, %v214_v46  ;;  %v226_v14 = vand.u32 4294901760, %v225_v52  ;;  %v24375_v38 = vsub.f32 %v774_v57, %v853_v11 }
  0x49   :  { %v24391_v46 = vsub.f32 %v758_v63, %v805_v22  ;;  %v237_v51 = vand.u32 4294901760, %v24327_v53  ;;  %v808_v52 = vand.u32 4294901760, %v759_v28  ;;  %v24400_v55 = vsub.f32 %v776_v13, %v859_v47  ;;  %v763_v53 = vld [vmem:[%s27779_s3 + $0x50] sm:$0xff] }
  0x4a   :  { %205 = vmatmul.mubr.f32.vlgmr.msra.gmra.mrb[0].mxu0 %v204_v48  ;;  %v24393_v48 = vsub.f32 %v775_v1, %v856_v23  ;;  %v865_v57 = vand.u32 4294901760, %v778_v43  ;;  %v814_v58 = vand.u32 4294901760, %v761_v44  ;;  %v24412_v63 = vpack.c.bf16 %v805_v22, %v802_v12 }
  0x4b   :  { %255 = vmatpush1.msra.mxu0 %v254_v45  ;;  %210 = vmatprep.mubr.f32.mxu0 %v27798_v0  ;;  %v24389_v45 = vpack.c.bf16 %v853_v11, %v850_v9  ;;  %v24414_v1 = vsub.f32 %v759_v28, %v808_v52  ;;  %v24416_v7 = vsub.f32 %v760_v33, %v811_v54  ;;  %v817_v9 = vand.u32 4294901760, %v762_v49  ;;  %v764_v11 = vld [vmem:[%s27779_s3 + $0x58] sm:$0xff] }
  0x4c   :  { %349 = vmatprep.subr.mxu0 %v24255_v17  ;;  %27909 = vst [vmem:[#allocation14_spill] sm:$0xff] %v24412_v63  ;;  %v24422_v13 = vpack.c.bf16 %v859_v47, %v856_v23  ;;  %v24424_v39 = vsub.f32 %v777_v42, %v862_v56  ;;  %v24426_v36 = vsub.f32 %v778_v43, %v865_v57  ;;  %v871_v28 = vand.u32 4294901760, %v780_v62 }
  0x4d   :  { %27908 = vst [vmem:[#allocation13_spill] sm:$0xff] %v24389_v45  ;;  %21842 = vmatprep.subr.bf16.mxu1 %v24389_v45  ;;  %v24431_v12 = vsub.f32 %v762_v49, %v817_v9  ;;  %v820_v33 = vand.u32 4294901760, %v763_v53  ;;  %v823_v35 = vand.u32 4294901760, %v764_v11  ;;  %v24434_v25 = vpack.c.bf16 %v811_v54, %v808_v52  ;;  %v784_v54 = vld [vmem:[%s27779_s3 + $0xf8] sm:$0xff] }
  0x4e   :  { %216 = vmatmul.mubr.f32.gmra.mrb[2].mxu0 %v215_v59  ;;  %v779_v59 = vld [vmem:[%s27779_s3 + $0xd0] sm:$0xff]  ;;  %27910 = vst [vmem:[#allocation15_spill] sm:$0xff] %v24422_v13  ;;  %21844 = vmatpush3.bf16.msra.mxu1 %v24412_v63  ;;  %v24438_v42 = vsub.f32 %v780_v62, %v871_v28  ;;  %v24450_v49 = vpack.c.bf16 %v817_v9, %v814_v58  ;;  %v27918_v17 = vand.u32 4294901760, %v24270_v26  ;;  %vm2542_vm2 = vcmask 31744  }
  0x4f   :  { %221 = vmatprep.mubr.f32.mxu0 %v27798_v0  ;;  %v868_v22 = vand.u32 4294901760, %v779_v59  ;;  %21846 = vmatprep.subr.bf16.mxu1 %v24422_v13  ;;  %27911 = vst [vmem:[#allocation16_spill] sm:$0xff] %v24434_v25  ;;  %v24440_v43 = vsub.f32 %v763_v53, %v820_v33  ;;  %v24445_v47 = vsub.f32 %v764_v11, %v823_v35  ;;  %vm13374_vm3 = vcmask 97280  }
  0x50   :  { %27914 = vst [vmem:[#allocation19_spill] sm:$0xff] %v24450_v49  ;;  %v24460_v52 = vpack.c.bf16 %v823_v35, %v820_v33  ;;  %v27917_v35 = vand.u32 4294901760, %v24252_v16  ;;  %vm13379_vm4 = vcmask 130048   ;;  %vm13384_vm5 = vcmask 162816  }
  0x51   :  { %v24436_v23 = vsub.f32 %v779_v59, %v868_v22  ;;  %27912 = vst [vmem:[#allocation17_spill] sm:$0xff] %v24440_v43  ;;  %v768_v59 = vld [vmem:[%s27779_s3 + $0x78] sm:$0xff]  ;;  %vm13389_vm6 = vcmask 195584   ;;  %vm13394_vm7 = vcmask 228352   ;;  %vm17504_vm13 = vcmask 523264  }
  0x52   :  { %227 = vmatmul.mubr.f32.gmra.mrb[4].mxu0 %v226_v14  ;;  %v24428_v14 = vsub.f32 %v761_v44, %v814_v58  ;;  %v24443_v44 = vpack.c.bf16 %v865_v57, %v862_v56  ;;  %21848 = vmatpush3.bf16.msra.mxu1 %v24434_v25  ;;  %27916 = vst [vmem:[#allocation21_spill] sm:$0xff] %v24460_v52  ;;  %v883_v57 = vand.u32 4294901760, %v784_v54  ;;  %v767_v58 = vld [vmem:[%s27779_s3 + $0x70] sm:$0xff]  ;;  %v835_v53 = vand.u32 4294901760, %v768_v59 }
  0x53   :  { %232 = vmatprep.mubr.f32.mxu0 %v27798_v0  ;;  %v832_v62 = vand.u32 4294901760, %v767_v58 }
  0x54   :  { %27913 = vst [vmem:[#allocation18_spill] sm:$0xff] %v24443_v44  ;;  %21850 = vmatprep.subr.bf16.mxu1 %v24443_v44 }
  0x55   :  { %v24556_v11 = vpack.c.bf16 %v835_v53, %v832_v62 }
  0x56   :  { %238 = vmatmul.mubr.f32.gmra.mrb[6].mxu0 %v237_v51  ;;  %v24454_v51 = vpack.c.bf16 %v871_v28, %v868_v22  ;;  %21852 = vmatpush3.bf16.msra.mxu1 %v24450_v49 }
  0x57   :  { %318 = vmatprep.mubr.f32.mxu0 %v27798_v0  ;;  %27924 = vst [vmem:[#allocation25_spill] sm:$0xff] %v24556_v11 }
  0x58   :  { %27915 = vst [vmem:[#allocation20_spill] sm:$0xff] %v24454_v51  ;;  %21854 = vmatprep.subr.bf16.mxu1 %v24454_v51 }
  0x5a   :  { %320 = vmatmul.mubr.f32.vlgmr.msra.gmra.mrb[0].mxu0 %v24239_v10  ;;  %21856 = vmatpush3.bf16.msra.mxu1 %v24460_v52 }
  0x5b   :  { %352 = vmatpush1.msra.mxu0 %v24252_v16  ;;  %325 = vmatprep.mubr.f32.mxu0 %v27798_v0 }
  0x5c   :  { %449 = vmatprep.subr.mxu0 %v24225_v4 }
  0x5e   :  { %327 = vmatmul.mubr.f32.gmra.mrb[2].mxu0 %v24257_v18 }
  0x5f   :  { %332 = vmatprep.mubr.f32.mxu0 %v27798_v0 }
  0x62   :  { %334 = vmatmul.mubr.f32.gmra.mrb[4].mxu0 %v24259_v19 }
  0x63   :  { %339 = vmatprep.mubr.f32.mxu0 %v27798_v0 }
  0x66   :  { %341 = vmatmul.mubr.f32.gmra.mrb[6].mxu0 %v24265_v21 }
  0x67   :  { %415 = vmatprep.mubr.f32.mxu0 %v27798_v0 }
  0x6a   :  { %418 = vmatmul.mubr.f32.vlgmr.msra.gmra.mrb[0].mxu0 %v24263_v20  ;;  %v27920_v20 = vand.u32 4294901760, %v24280_v30 }
  0x6b   :  { %451 = vmatpush1.msra.mxu0 %v24227_v5  ;;  %423 = vmatprep.mubr.f32.mxu0 %v27798_v0 }
  0x6c   :  { %554 = vmatprep.subr.mxu0 %v246_v24  ;;  %v27919_v24 = vand.u32 4294901760, %v24273_v27 }
  0x6e   :  { %426 = vmatmul.mubr.f32.gmra.mrb[2].mxu0 %v24270_v26 }
  0x6f   :  { %431 = vmatprep.mubr.f32.mxu0 %v27798_v0 }
  0x72   :  { %434 = vmatmul.mubr.f32.gmra.mrb[4].mxu0 %v24273_v27 }
  0x73   :  { %439 = vmatprep.mubr.f32.mxu0 %v27798_v0 }
  0x76   :  { %442 = vmatmul.mubr.f32.gmra.mrb[6].mxu0 %v24280_v30  ;;  %v783_v30 = vld [vmem:[%s27779_s3 + $0xf0] sm:$0xff] }
  0x77   :  { %514 = vmatprep.mubr.f32.mxu0 %v27798_v0  ;;  %v880_v56 = vand.u32 4294901760, %v783_v30 }
  0x79   :  { %v24554_v9 = vpack.c.bf16 %v883_v57, %v880_v56 }
  0x7a   :  { %518 = vmatmul.mubr.f32.vlgmr.msra.gmra.mrb[0].mxu0 %v202_v29 }
  0x7b   :  { %558 = vmatpush1.msra.mxu0 %v27917_v35  ;;  %523 = vmatprep.mubr.f32.mxu0 %v27798_v0  ;;  %27923 = vst [vmem:[#allocation24_spill] sm:$0xff] %v24554_v9 }
  0x7c   :  { %651 = vmatprep.subr.mxu0 %v24225_v4  ;;  %v781_v4 = vld [vmem:[%s27779_s3 + $0xe0] sm:$0xff] }
  0x7e   :  { %527 = vmatmul.mubr.f32.gmra.mrb[2].mxu0 %v27918_v17  ;;  %v27801_v17 = vand.u32 4294901760, %v24284_v32 }
  0x7f   :  { %532 = vmatprep.mubr.f32.mxu0 %v27798_v0 }
  0x82   :  { %536 = vmatmul.mubr.f32.gmra.mrb[4].mxu0 %v27919_v24  ;;  %v27803_v24 = vand.u32 4294901760, %v24301_v40 }
  0x83   :  { %541 = vmatprep.mubr.f32.mxu0 %v27798_v0 }
  0x86   :  { %545 = vmatmul.mubr.f32.gmra.mrb[6].mxu0 %v27920_v20  ;;  %v27805_v20 = vand.u32 4294901760, %v24316_v50 }
  0x87   :  { %621 = vmatprep.mubr.f32.mxu0 %v27798_v0 }
  0x8a   :  { %623 = vmatmul.mubr.f32.vlgmr.msra.gmra.mrb[0].mxu0 %v24239_v10 }
  0x8b   :  { %653 = vmatpush1.msra.mxu0 %v24227_v5  ;;  %628 = vmatprep.mubr.f32.mxu0 %v27798_v0  ;;  %v782_v5 = vld [vmem:[%s27779_s3 + $0xe8] sm:$0xff] }
  0x8c   :  { %21994 = vmatprep.subr.bf16.mxu0 %v24282_v31  ;;  %v877_v16 = vand.u32 4294901760, %v782_v5 }
  0x8e   :  { %630 = vmatmul.mubr.f32.gmra.mrb[2].mxu0 %v24257_v18  ;;  %v24564_v28 = vsub.f32 %v782_v5, %v877_v16  ;;  %v950_v5 = vsub.f32 %v24316_v50, %v27805_v20  ;;  %v27815_v20 = vand.u32 4294901760, %v24353_v6 }
  0x8f   :  { %635 = vmatprep.mubr.f32.mxu0 %v27798_v0 }
  0x90   :  { %27926 = vst [vmem:[#allocation27_spill] sm:$0xff] %v24564_v28 }
  0x92   :  { %637 = vmatmul.mubr.f32.gmra.mrb[4].mxu0 %v24259_v19 }
  0x93   :  { %642 = vmatprep.mubr.f32.mxu0 %v27798_v0 }
  0x96   :  { %644 = vmatmul.mubr.f32.gmra.mrb[6].mxu0 %v24265_v21 }
  0x97   :  { %716 = vmatprep.mubr.f32.mxu0 %v27798_v0 }
  0x9a   :  { %718 = vmatmul.mubr.f32.vlgmr.msra.gmra.mrb[0].mxu0 %v24239_v10  ;;  %v874_v10 = vand.u32 4294901760, %v781_v4 }
  0x9b   :  { %723 = vmatprep.mubr.f32.mxu0 %v27798_v0  ;;  %21996 = vmatpush3.bf16.msra.mxu0 %v24338_v60 }
  0x9c   :  { %21998 = vmatprep.subr.bf16.mxu0 %v24349_v2  ;;  %v24534_v27 = vpack.c.bf16 %v877_v16, %v874_v10  ;;  %v24562_v22 = vsub.f32 %v781_v4, %v874_v10  ;;  %v1069_v4 = vsub.f32 %v24301_v40, %v27803_v24  ;;  %v24586_v16 = vsub.f32 %v783_v30, %v880_v56 }
  0x9e   :  { %725 = vmatmul.mubr.f32.gmra.mrb[2].mxu0 %v24257_v18  ;;  %v765_v18 = vld [vmem:[%s27779_s3 + $0x60] sm:$0xff]  ;;  %27921 = vst [vmem:[#allocation22_spill] sm:$0xff] %v24534_v27  ;;  %21858 = vmatprep.subr.bf16.mxu1 %v24534_v27  ;;  %27925 = vst [vmem:[#allocation26_spill] sm:$0xff] %v24562_v22 }
  0x9f   :  { %730 = vmatprep.mubr.f32.mxu0 %v27798_v0  ;;  %22000 = vmatpush3.bf16.msra.mxu0 %v24371_v34  ;;  %27929 = vst [vmem:[#allocation30_spill] sm:$0xff] %v24586_v16 }
  0xa0   :  { %22002 = vmatprep.subr.bf16.mxu0 %v24389_v45 }
  0xa2   :  { %732 = vmatmul.mubr.f32.gmra.mrb[4].mxu0 %v24259_v19  ;;  %v766_v19 = vld [vmem:[%s27779_s3 + $0x68] sm:$0xff]  ;;  %s24073_s3 = smov 88  }
  0xa3   :  { %737 = vmatprep.mubr.f32.mxu0 %v27798_v0  ;;  %22004 = vmatpush3.bf16.msra.mxu0 %v24412_v63  ;;  %v829_v26 = vand.u32 4294901760, %v766_v19  ;;  %v27807_v0 = vand.u32 4294901760, %v24340_v61 }
  0xa4   :  { %22006 = vmatprep.subr.bf16.mxu0 %v24422_v13 }
  0xa5   :  { %v24568_v35 = vsub.f32 %v766_v19, %v829_v26  ;;  %v957_v10 = vsub.f32 %v24340_v61, %v27807_v0  ;;  %v24590_v19 = vsub.f32 %v767_v58, %v832_v62  ;;  %v27808_v0 = vand.u32 4294901760, %v24362_v15 }
  0xa6   :  { %739 = vmatmul.mubr.f32.gmra.mrb[6].mxu0 %v24265_v21  ;;  %v826_v21 = vand.u32 4294901760, %v765_v18  ;;  %v27810_v62 = vand.u32 4294901760, %v24373_v37 }
  0xa7   :  { %22008 = vmatpush3.bf16.msra.mxu0 %v24434_v25  ;;  %27928 = vst [vmem:[#allocation29_spill] sm:$0xff] %v24568_v35  ;;  %27931 = vst [vmem:[#allocation32_spill] sm:$0xff] %v24590_v19  ;;  %v958_v24 = vand.u32 4294901760, %v957_v10  ;;  %v27813_v10 = vand.u32 4294901760, %v24377_v41  ;;  %v27842_v13 = vand.u32 4294901760, %v24590_v19 }
  0xa8   :  { %22010 = vmatprep.subr.bf16.mxu0 %v24443_v44  ;;  %v24536_v29 = vpack.c.bf16 %v829_v26, %v826_v21  ;;  %v24566_v33 = vsub.f32 %v765_v18, %v826_v21  ;;  %v24588_v18 = vsub.f32 %v784_v54, %v883_v57  ;;  %v24592_v21 = vsub.f32 %v768_v59, %v835_v53 }
  0xa9   :  { %v1083_v57 = vsub.f32 %v24353_v6, %v27815_v20  ;;  %v971_v59 = vsub.f32 %v24362_v15, %v27808_v0  ;;  %v27809_v53 = vand.u32 4294901760, %v24375_v38 }
  0xaa   :  { %27922 = vst [vmem:[#allocation23_spill] sm:$0xff] %v24536_v29  ;;  %21860 = vmatpush3.bf16.msra.mxu1 %v24536_v29  ;;  %27927 = vst [vmem:[#allocation28_spill] sm:$0xff] %v24566_v33 }
  0xab   :  { %22012 = vmatpush3.bf16.msra.mxu0 %v24450_v49  ;;  %21862 = vmatprep.subr.bf16.mxu1 %v24554_v9  ;;  %27930 = vst [vmem:[#allocation31_spill] sm:$0xff] %v24588_v18  ;;  %27932 = vst [vmem:[#allocation33_spill] sm:$0xff] %v24592_v21 }
  0xac   :  { %22014 = vmatprep.subr.bf16.mxu0 %v24454_v51  ;;  %v27830_v51 = vand.u32 4294901760, %v24440_v43 }
  0xae   :  { %21864 = vmatpush3.bf16.msra.mxu1 %v24556_v11 }
  0xaf   :  { %22016 = vmatpush3.bf16.msra.mxu0 %v24460_v52 }
  0xb0   :  { %22018 = vmatprep.subr.bf16.mxu0 %v24534_v27  ;;  %v27811_v27 = vand.u32 4294901760, %v24356_v8 }
  0xb2   :  { %v964_v58 = vsub.f32 %v24356_v8, %v27811_v27  ;;  %v27818_v27 = vand.u32 4294901760, %v24414_v1 }
  0xb3   :  { %22020 = vmatpush3.bf16.msra.mxu0 %v24536_v29  ;;  %v27816_v29 = vand.u32 4294901760, %v24351_v3 }
  0xb4   :  { %22022 = vmatprep.subr.bf16.mxu0 %v24554_v9  ;;  %v951_v9 = vand.u32 4294901760, %v950_v5  ;;  %v1097_v5 = vsub.f32 %v24375_v38, %v27809_v53  ;;  %v27814_v53 = vand.u32 4294901760, %v24393_v48 }
  0xb5   :  { %v1076_v54 = vsub.f32 %v24351_v3, %v27816_v29 }
  0xb6   :  { %v24598_v56 = vpack.c.bf16 %v958_v24, %v951_v9  ;;  %v972_v24 = vand.u32 4294901760, %v971_v59 }
  0xb7   :  { %22024 = vmatpush3.bf16.msra.mxu0 %v24556_v11  ;;  %v1062_v11 = vsub.f32 %v24284_v32, %v27801_v17  ;;  %v1070_v17 = vand.u32 4294901760, %v1069_v4  ;;  %v1077_v9 = vand.u32 4294901760, %v1076_v54  ;;  %v1090_v4 = vsub.f32 %v24373_v37, %v27810_v62 }
  0xb8   :  { %v27817_v62 = vand.u32 4294901760, %v24400_v55 }
  0xb9   :  { %v1063_v26 = vand.u32 4294901760, %v1062_v11  ;;  %v1084_v11 = vand.u32 4294901760, %v1083_v57  ;;  %v1091_v54 = vand.u32 4294901760, %v1090_v4  ;;  %v1098_v57 = vand.u32 4294901760, %v1097_v5 }
  0xba   :  { %v1104_v4 = vsub.f32 %v24393_v48, %v27814_v53  ;;  %v1111_v5 = vsub.f32 %v24400_v55, %v27817_v62 }
  0xbb   :  { %v21865_v30 = vpack.c.bf16 %v1070_v17, %v1063_v26  ;;  %v965_v17 = vand.u32 4294901760, %v964_v58  ;;  %v27812_v26 = vand.u32 4294901760, %v24391_v46  ;;  %v978_v58 = vsub.f32 %v24377_v41, %v27813_v10 }
  0xbc   :  { %v1112_v53 = vand.u32 4294901760, %v1111_v5 }
  0xbd   :  { %21866 = vmatprep.subr.bf16.mxu1 %v21865_v30  ;;  %v24622_v30 = vpack.c.bf16 %v1084_v11, %v1077_v9  ;;  %v24624_v0 = vpack.c.bf16 %v972_v24, %v965_v17  ;;  %v985_v59 = vsub.f32 %v24391_v46, %v27812_v26  ;;  %v27819_v9 = vand.u32 4294901760, %v24416_v7 }
  0xbe   :  { %v24636_v11 = vpack.c.bf16 %v1098_v57, %v1091_v54  ;;  %v979_v17 = vand.u32 4294901760, %v978_v58  ;;  %v992_v26 = vsub.f32 %v24414_v1, %v27818_v27  ;;  %v27822_v57 = vand.u32 4294901760, %v24424_v39 }
  0xbf   :  { %v986_v24 = vand.u32 4294901760, %v985_v59  ;;  %v999_v10 = vsub.f32 %v24416_v7, %v27819_v9  ;;  %v27821_v58 = vand.u32 4294901760, %v24426_v36  ;;  %v1105_v59 = vand.u32 4294901760, %v1104_v4 }
  0xc0   :  { %v993_v20 = vand.u32 4294901760, %v992_v26  ;;  %v1118_v62 = vsub.f32 %v24424_v39, %v27822_v57  ;;  %v27825_v9 = vand.u32 4294901760, %v24428_v14  ;;  %v27829_v57 = vand.u32 4294901760, %v24438_v42 }
  0xc1   :  { %v24650_v54 = vpack.c.bf16 %v986_v24, %v979_v17  ;;  %v1000_v29 = vand.u32 4294901760, %v999_v10  ;;  %v1125_v27 = vsub.f32 %v24426_v36, %v27821_v58  ;;  %v27824_v17 = vand.u32 4294901760, %v24431_v12 }
  0xc2   :  { %v24662_v24 = vpack.c.bf16 %v1112_v53, %v1105_v59  ;;  %v1119_v4 = vand.u32 4294901760, %v1118_v62  ;;  %v1006_v10 = vsub.f32 %v24428_v14, %v27825_v9  ;;  %v27826_v58 = vand.u32 4294901760, %v24436_v23 }
  0xc3   :  { %v24664_v52 = vpack.c.bf16 %v1000_v29, %v993_v20  ;;  %v1126_v5 = vand.u32 4294901760, %v1125_v27  ;;  %v1013_v26 = vsub.f32 %v24431_v12, %v27824_v17  ;;  %v27831_v53 = vand.u32 4294901760, %v24445_v47 }
  0xc4   :  { %v1007_v20 = vand.u32 4294901760, %v1006_v10  ;;  %v1132_v62 = vsub.f32 %v24436_v23, %v27826_v58  ;;  %v1139_v59 = vsub.f32 %v24438_v42, %v27829_v57  ;;  %v1020_v17 = vsub.f32 %v24440_v43, %v27830_v51 }
  0xc5   :  { %v24676_v29 = vpack.c.bf16 %v1126_v5, %v1119_v4  ;;  %v1014_v27 = vand.u32 4294901760, %v1013_v26  ;;  %v1027_v9 = vsub.f32 %v24445_v47, %v27831_v53  ;;  %v27834_v5 = vand.u32 4294901760, %v24562_v22 }
  0xc6   :  { %v27833_v10 = vand.u32 4294901760, %v24564_v28  ;;  %v1133_v26 = vand.u32 4294901760, %v1132_v62  ;;  %v1140_v58 = vand.u32 4294901760, %v1139_v59  ;;  %v1021_v49 = vand.u32 4294901760, %v1020_v17 }
  0xc7   :  { %v24690_v4 = vpack.c.bf16 %v1014_v27, %v1007_v20  ;;  %v1028_v44 = vand.u32 4294901760, %v1027_v9  ;;  %v1146_v57 = vsub.f32 %v24562_v22, %v27834_v5  ;;  %v27837_v53 = vand.u32 4294901760, %v24566_v33 }
  0xc8   :  { %v1153_v51 = vsub.f32 %v24564_v28, %v27833_v10  ;;  %v27836_v20 = vand.u32 4294901760, %v24568_v35  ;;  %v24702_v27 = vpack.c.bf16 %v1140_v58, %v1133_v26  ;;  %v27840_v10 = vand.u32 4294901760, %v24586_v16 }
  0xc9   :  { %v24704_v25 = vpack.c.bf16 %v1028_v44, %v1021_v49  ;;  %v1147_v62 = vand.u32 4294901760, %v1146_v57  ;;  %v1034_v9 = vsub.f32 %v24566_v33, %v27837_v53  ;;  %v27841_v5 = vand.u32 4294901760, %v24588_v18 }
  0xca   :  { %v1154_v59 = vand.u32 4294901760, %v1153_v51  ;;  %v1041_v17 = vsub.f32 %v24568_v35, %v27836_v20  ;;  %v27844_v58 = vand.u32 4294901760, %v24592_v21  ;;  %v1160_v57 = vsub.f32 %v24586_v16, %v27840_v10 }
  0xcb   :  { %v1035_v49 = vand.u32 4294901760, %v1034_v9  ;;  %v1167_v26 = vsub.f32 %v24588_v18, %v27841_v5  ;;  %v1048_v20 = vsub.f32 %v24590_v19, %v27842_v13 }
  0xcc   :  { %v24716_v44 = vpack.c.bf16 %v1154_v59, %v1147_v62  ;;  %v1042_v51 = vand.u32 4294901760, %v1041_v17  ;;  %v1055_v53 = vsub.f32 %v24592_v21, %v27844_v58  ;;  %v1161_v59 = vand.u32 4294901760, %v1160_v57 }
  0xcd   :  { %v1168_v9 = vand.u32 4294901760, %v1167_v26  ;;  %v1049_v17 = vand.u32 4294901760, %v1048_v20 }
  0xce   :  { %v24730_v62 = vpack.c.bf16 %v1042_v51, %v1035_v49  ;;  %v1056_v63 = vand.u32 4294901760, %v1055_v53  ;;  %v108_v53 = vld [vmem:[#allocation4] sm:$0x3] }
  0xcf   :  { %v24732_v45 = vpack.c.bf16 %v1168_v9, %v1161_v59 }
  0xd0   :  { %v24734_v10 = vpack.c.bf16 %v1056_v63, %v1049_v17  ;;  %v110_v63 = vlaneseq }
  0xd2   :  { %v24768_v26 = vshrl.u32 %v110_v63, 7 }
  0xd4   :  { %27933 = vst [vmem:[#allocation34_spill] sm:$0xff] %v24768_v26  ;;  %v112_v59 = vsub.s32 0, %v24768_v26  ;;  %v116_v9 = vsub.s32 1, %v24768_v26 }
  0xd6   :  { %v113_v20 = vrot.slane %v108_v53, %v112_v59  ;;  %v117_v49 = vrot.slane %v108_v53, %v116_v9 }
 0x16d   :  { %v719_v17 = vpop.f32.mrb[0].mxu0 }
 0x16e   :  { %v23225_v34 = vadd.f32 %v719_v17, %v113_v20  ;;  %v721_v13 = vpop.f32.mrb[1].mxu0 }
 0x16f   :  { %v23226_v58 = vadd.f32 %v721_v13, %v117_v49 }
 0x170   :  { %v745_v5 = vmax.f32 %v23225_v34, 0.0 }
 0x171   :  { %v746_v2 = vmax.f32 %v23226_v58, 0.0  ;;  %v726_v51 = vpop.f32.mrb[2].mxu0 }
 0x172   :  { %v24772_v60 = vand.u32 4294901760, %v745_v5  ;;  %v23227_v57 = vadd.f32 %v726_v51, %v113_v20  ;;  %v728_v31 = vpop.f32.mrb[3].mxu0 }
 0x173   :  { %v24774_v63 = vand.u32 4294901760, %v746_v2  ;;  %v23228_v19 = vadd.f32 %v728_v31, %v117_v49 }
 0x174   :  { %v24777_v21 = vsub.f32 %v745_v5, %v24772_v60  ;;  %v747_v26 = vmax.f32 %v23227_v57, 0.0 }
 0x175   :  { %v24780_v53 = vsub.f32 %v746_v2, %v24774_v63  ;;  %v748_v59 = vmax.f32 %v23228_v19, 0.0  ;;  %v733_v9 = vpop.f32.mrb[4].mxu0  ;;  %1791 = vmatprep.mubr.f32.mxu0 %v24774_v63 }
 0x176   :  { %27934 = vst [vmem:[#allocation35_spill] sm:$0xff] %v24777_v21  ;;  %v24783_v34 = vand.u32 4294901760, %v747_v26  ;;  %v23229_v13 = vadd.f32 %v733_v9, %v113_v20  ;;  %v735_v58 = vpop.f32.mrb[5].mxu0  ;;  %1793 = vmatmul.mubr.f32.vlgmr.msra.gmra.mrb[8].mxu0 %v24772_v60  ;;  %v27862_v51 = vand.u32 4294901760, %v24777_v21 }
 0x177   :  { %v24787_v31 = vand.u32 4294901760, %v748_v59  ;;  %v23230_v5 = vadd.f32 %v735_v58, %v117_v49  ;;  %v27871_v57 = vand.u32 4294901760, %v24780_v53 }
 0x178   :  { %v24791_v2 = vsub.f32 %v747_v26, %v24783_v34  ;;  %v749_v19 = vmax.f32 %v23229_v13, 0.0  ;;  %v894_v17 = vsub.f32 %v24777_v21, %v27862_v51 }
 0x179   :  { %v24797_v9 = vsub.f32 %v748_v59, %v24787_v31  ;;  %v750_v16 = vmax.f32 %v23230_v5, 0.0  ;;  %v740_v18 = vpop.f32.mrb[6].mxu0  ;;  %1798 = vmatprep.mubr.f32.mxu0 %v24787_v31  ;;  %v888_v58 = vsub.f32 %v24780_v53, %v27871_v57 }
 0x17a   :  { %v24803_v33 = vand.u32 4294901760, %v749_v19  ;;  %v23231_v26 = vadd.f32 %v740_v18, %v113_v20  ;;  %v742_v35 = vpop.f32.mrb[7].mxu0  ;;  %1800 = vmatmul.mubr.f32.gmra.mrb[10].mxu0 %v24783_v34  ;;  %v908_v13 = vand.u32 4294901760, %v24791_v2  ;;  %v895_v43 = vand.u32 4294901760, %v894_v17 }
 0x17b   :  { %v24807_v51 = vand.u32 4294901760, %v750_v16  ;;  %v23232_v59 = vadd.f32 %v742_v35, %v117_v49  ;;  %v889_v21 = vand.u32 4294901760, %v888_v58  ;;  %v902_v5 = vand.u32 4294901760, %v24797_v9 }
 0x17c   :  { %v24811_v22 = vsub.f32 %v749_v19, %v24803_v33  ;;  %v751_v28 = vmax.f32 %v23231_v26, 0.0  ;;  %v909_v18 = vsub.f32 %v24791_v2, %v908_v13 }
 0x17d   :  { %v24817_v20 = vsub.f32 %v750_v16, %v24807_v51  ;;  %v752_v57 = vmax.f32 %v23232_v59, 0.0  ;;  %890 = vmatprep.mubr.f32.mxu1 %v889_v21  ;;  %1805 = vmatprep.mubr.f32.mxu0 %v24807_v51  ;;  %v903_v35 = vsub.f32 %v24797_v9, %v902_v5 }
 0x17e   :  { %v24823_v49 = vand.u32 4294901760, %v751_v28  ;;  %896 = vmatmul.mubr.f32.vlgmr.msra.gmra.mrb[0].mxu1 %v895_v43  ;;  %1807 = vmatmul.mubr.f32.gmra.mrb[12].mxu0 %v24803_v33  ;;  %v923_v19 = vand.u32 4294901760, %v24811_v22  ;;  %v910_v26 = vand.u32 4294901760, %v909_v18 }
 0x17f   :  { %v24827_v17 = vand.u32 4294901760, %v752_v57  ;;  %21868 = vmatpush3.bf16.msra.mxu1 %v24598_v56  ;;  %v904_v16 = vand.u32 4294901760, %v903_v35  ;;  %v917_v21 = vand.u32 4294901760, %v24817_v20 }
 0x180   :  { %v24832_v58 = vsub.f32 %v751_v28, %v24823_v49  ;;  %21870 = vmatprep.subr.bf16.mxu1 %v24622_v30  ;;  %v924_v43 = vsub.f32 %v24811_v22, %v923_v19 }
 0x181   :  { %v24839_v59 = vsub.f32 %v752_v57, %v24827_v17  ;;  %905 = vmatprep.mubr.f32.mxu1 %v904_v16  ;;  %1812 = vmatprep.mubr.f32.mxu0 %v24827_v17  ;;  %v918_v56 = vsub.f32 %v24817_v20, %v917_v21 }
 0x182   :  { %911 = vmatmul.mubr.f32.gmra.mrb[2].mxu1 %v910_v26  ;;  %1814 = vmatmul.mubr.f32.gmra.mrb[14].mxu0 %v24823_v49  ;;  %v938_v28 = vand.u32 4294901760, %v24832_v58  ;;  %v925_v57 = vand.u32 4294901760, %v924_v43 }
 0x183   :  { %21872 = vmatpush3.bf16.msra.mxu1 %v24624_v0  ;;  %v919_v30 = vand.u32 4294901760, %v918_v56  ;;  %v932_v18 = vand.u32 4294901760, %v24839_v59  ;;  %v27948_v56 = vld [vmem:[#allocation27_spill] sm:$0xff] }
 0x184   :  { %21874 = vmatprep.subr.bf16.mxu1 %v24636_v11  ;;  %v939_v35 = vsub.f32 %v24832_v58, %v938_v28  ;;  %v27936_v11 = vpack.c.bf16 %v24340_v61, %v24316_v50 }
 0x185   :  { %920 = vmatprep.mubr.f32.mxu1 %v919_v30  ;;  %v933_v16 = vsub.f32 %v24839_v59, %v932_v18  ;;  %v27949_v30 = vld [vmem:[#allocation26_spill] sm:$0xff] }
 0x186   :  { %926 = vmatmul.mubr.f32.gmra.mrb[4].mxu1 %v925_v57  ;;  %v940_v0 = vand.u32 4294901760, %v939_v35  ;;  %v27950_v57 = vpack.c.bf16 %v27948_v56, %v27949_v30  ;;  %v27951_v35 = vld [vmem:[#allocation29_spill] sm:$0xff] }
 0x187   :  { %21876 = vmatpush3.bf16.msra.mxu1 %v24650_v54  ;;  %v934_v26 = vand.u32 4294901760, %v933_v16  ;;  %v27939_v54 = vpack.c.bf16 %v24375_v38, %v24373_v37  ;;  %v27952_v16 = vld [vmem:[#allocation28_spill] sm:$0xff] }
 0x188   :  { %21878 = vmatprep.subr.bf16.mxu1 %v24662_v24  ;;  %v27940_v24 = vpack.c.bf16 %v24391_v46, %v24377_v41 }
 0x189   :  { %935 = vmatprep.mubr.f32.mxu1 %v934_v26  ;;  %v27953_v26 = vpack.c.bf16 %v27951_v35, %v27952_v16 }
 0x18a   :  { %941 = vmatmul.mubr.f32.gmra.mrb[6].mxu1 %v940_v0  ;;  %v27954_v0 = vld [vmem:[#allocation31_spill] sm:$0xff] }
 0x18b   :  { %21880 = vmatpush3.bf16.msra.mxu1 %v24664_v52  ;;  %1171 = vmatprep.mubr.f32.mxu1 %v24774_v63  ;;  %v27935_v52 = vpack.c.bf16 %v24301_v40, %v24284_v32 }
 0x18c   :  { %21882 = vmatprep.subr.bf16.mxu1 %v24676_v29  ;;  %v27941_v29 = vpack.c.bf16 %v24400_v55, %v24393_v48 }
 0x18f   :  { %21884 = vmatpush3.bf16.msra.mxu1 %v24690_v4  ;;  %v27942_v4 = vpack.c.bf16 %v24416_v7, %v24414_v1 }
 0x190   :  { %21886 = vmatprep.subr.bf16.mxu1 %v24702_v27  ;;  %v27944_v27 = vpack.c.bf16 %v24431_v12, %v24428_v14 }
 0x193   :  { %21888 = vmatpush3.bf16.msra.mxu1 %v24704_v25  ;;  %v27937_v25 = vpack.c.bf16 %v24353_v6, %v24351_v3 }
 0x194   :  { %21890 = vmatprep.subr.bf16.mxu1 %v24716_v44  ;;  %v27945_v44 = vpack.c.bf16 %v24438_v42, %v24436_v23 }
 0x197   :  { %21892 = vmatpush3.bf16.msra.mxu1 %v24730_v62  ;;  %v27946_v62 = vld [vmem:[#allocation17_spill] sm:$0xff] }
 0x198   :  { %21894 = vmatprep.subr.bf16.mxu1 %v24732_v45  ;;  %v27938_v45 = vpack.c.bf16 %v24362_v15, %v24356_v8  ;;  %v27947_v43 = vpack.c.bf16 %v24445_v47, %v27946_v62 }
 0x19b   :  { %21896 = vmatpush3.bf16.msra.mxu1 %v24734_v10  ;;  %v27943_v10 = vpack.c.bf16 %v24426_v36, %v24424_v39 }
 0x19c   :  { %21898 = vmatprep.subr.bf16.mxu1 %v27935_v52  ;;  %v27955_v52 = vld [vmem:[#allocation30_spill] sm:$0xff] }
 0x19e   :  { %1173 = vmatmul.mubr.f32.vlgmr.msra.gmra.mrb[8].mxu1 %v24772_v60 }
 0x19f   :  { %1178 = vmatprep.mubr.f32.mxu1 %v24787_v31  ;;  %21900 = vmatpush3.bf16.msra.mxu1 %v27936_v11  ;;  %v27956_v11 = vpack.c.bf16 %v27954_v0, %v27955_v52 }
 0x1a0   :  { %21902 = vmatprep.subr.bf16.mxu1 %v27937_v25  ;;  %v27957_v25 = vld [vmem:[#allocation33_spill] sm:$0xff] }
 0x1a2   :  { %1180 = vmatmul.mubr.f32.gmra.mrb[10].mxu1 %v24783_v34 }
 0x1a3   :  { %1185 = vmatprep.mubr.f32.mxu1 %v24807_v51  ;;  %21904 = vmatpush3.bf16.msra.mxu1 %v27938_v45  ;;  %v27958_v45 = vld [vmem:[#allocation32_spill] sm:$0xff] }
 0x1a4   :  { %21906 = vmatprep.subr.bf16.mxu1 %v27939_v54  ;;  %v27959_v54 = vpack.c.bf16 %v27957_v25, %v27958_v45 }
 0x1a6   :  { %1187 = vmatmul.mubr.f32.gmra.mrb[12].mxu1 %v24803_v33 }
 0x1a7   :  { %1192 = vmatprep.mubr.f32.mxu1 %v24827_v17  ;;  %21908 = vmatpush3.bf16.msra.mxu1 %v27940_v24  ;;  %v27960_v24 = vld [vmem:[#allocation9_spill] sm:$0xff] }
 0x1a8   :  { %21910 = vmatprep.subr.bf16.mxu1 %v27941_v29  ;;  %v27961_v29 = vld [vmem:[#allocation35_spill] sm:$0xff] }
 0x1aa   :  { %1194 = vmatmul.mubr.f32.gmra.mrb[14].mxu1 %v24823_v49 }
 0x1ab   :  { %21912 = vmatpush3.bf16.msra.mxu1 %v27942_v4  ;;  %1329 = vmatprep.mubr.f32.mxu1 %v24780_v53  ;;  %v27962_v4 = vld [vmem:[#allocation10_spill] sm:$0xff] }
 0x1ac   :  { %21914 = vmatprep.subr.bf16.mxu1 %v27943_v10  ;;  %v27963_v10 = vld [vmem:[#allocation11_spill] sm:$0xff] }
 0x1af   :  { %21916 = vmatpush3.bf16.msra.mxu1 %v27944_v27  ;;  %v27964_v27 = vld [vmem:[#allocation12_spill] sm:$0xff] }
 0x1b0   :  { %21918 = vmatprep.subr.bf16.mxu1 %v27945_v44  ;;  %v27965_v44 = vld [vmem:[#allocation13_spill] sm:$0xff] }
 0x1b3   :  { %21920 = vmatpush3.bf16.msra.mxu1 %v27947_v43  ;;  %v27966_v43 = vld [vmem:[#allocation14_spill] sm:$0xff] }
 0x1b4   :  { %21922 = vmatprep.subr.bf16.mxu1 %v27950_v57  ;;  %v27967_v57 = vld [vmem:[#allocation15_spill] sm:$0xff] }
 0x1b7   :  { %21924 = vmatpush3.bf16.msra.mxu1 %v27953_v26  ;;  %v27968_v26 = vld [vmem:[#allocation16_spill] sm:$0xff] }
 0x1b8   :  { %21926 = vmatprep.subr.bf16.mxu1 %v27956_v11  ;;  %v27969_v11 = vand.u32 4294901760, %v24780_v53 }
 0x1bb   :  { %21928 = vmatpush3.bf16.msra.mxu1 %v27959_v54  ;;  %v27970_v54 = vld [vmem:[#allocation18_spill] sm:$0xff] }
 0x1bc   :  { %21930 = vmatprep.subr.bf16.mxu1 %v27960_v24  ;;  %v27971_v24 = vld [vmem:[#allocation19_spill] sm:$0xff] }
 0x1be   :  { %1332 = vmatmul.mubr.f32.vlgmr.msra.gmra.mrb[16].mxu1 %v27961_v29 }
 0x1bf   :  { %1338 = vmatprep.mubr.f32.mxu1 %v24797_v9  ;;  %21932 = vmatpush3.bf16.msra.mxu1 %v27962_v4  ;;  %v27972_v4 = vld [vmem:[#allocation20_spill] sm:$0xff] }
 0x1c0   :  { %21934 = vmatprep.subr.bf16.mxu1 %v27963_v10  ;;  %v27973_v10 = vld [vmem:[#allocation21_spill] sm:$0xff] }
 0x1c2   :  { %1341 = vmatmul.mubr.f32.gmra.mrb[18].mxu1 %v24791_v2 }
 0x1c3   :  { %1347 = vmatprep.mubr.f32.mxu1 %v24817_v20  ;;  %21936 = vmatpush3.bf16.msra.mxu1 %v27964_v27  ;;  %v27974_v27 = vld [vmem:[#allocation22_spill] sm:$0xff]  ;;  %v28000_v20 = vand.u32 4294901760, %v24438_v42  ;;  %v28007_v42 = vand.u32 4294901760, %v27955_v52 }
 0x1c4   :  { %21938 = vmatprep.subr.bf16.mxu1 %v27965_v44  ;;  %v27975_v44 = vld [vmem:[#allocation23_spill] sm:$0xff] }
 0x1c6   :  { %1350 = vmatmul.mubr.f32.gmra.mrb[20].mxu1 %v24811_v22  ;;  %v27998_v22 = vand.u32 4294901760, %v24431_v12  ;;  %v28005_v12 = vand.u32 4294901760, %v27952_v16 }
 0x1c7   :  { %1356 = vmatprep.mubr.f32.mxu1 %v24839_v59  ;;  %21940 = vmatpush3.bf16.msra.mxu1 %v27966_v43  ;;  %v27976_v43 = vld [vmem:[#allocation24_spill] sm:$0xff] }
 0x1c8   :  { %21942 = vmatprep.subr.bf16.mxu1 %v27967_v57  ;;  %v27977_v57 = vand.u32 4294901760, %v24284_v32  ;;  %v27985_v32 = vand.u32 4294901760, %v24356_v8  ;;  %v27990_v8 = vand.u32 4294901760, %v24391_v46  ;;  %v27995_v46 = vand.u32 4294901760, %v24424_v39 }
 0x1ca   :  { %1359 = vmatmul.mubr.f32.gmra.mrb[22].mxu1 %v24832_v58 }
 0x1cb   :  { %21944 = vmatpush3.bf16.msra.mxu1 %v27968_v26  ;;  %1463 = vmatprep.mubr.f32.mxu1 %v27969_v11  ;;  %v27978_v26 = vand.u32 4294901760, %v24301_v40  ;;  %v27979_v11 = vld [vmem:[#allocation25_spill] sm:$0xff]  ;;  %v27986_v40 = vand.u32 4294901760, %v24362_v15  ;;  %v27991_v15 = vand.u32 4294901760, %v24393_v48  ;;  %v27996_v48 = vand.u32 4294901760, %v24426_v36 }
 0x1cc   :  { %21946 = vmatprep.subr.bf16.mxu1 %v27970_v54  ;;  %v27980_v54 = vand.u32 4294901760, %v24316_v50  ;;  %v28001_v36 = vand.u32 4294901760, %v27946_v62  ;;  %v28010_v62 = vand.u32 4294901760, %v27957_v25 }
 0x1cd   :  { %v21961_v53 = vpack.c.bf16 %v27978_v26, %v27977_v57  ;;  %v21967_v50 = vpack.c.bf16 %v27986_v40, %v27985_v32 }
 0x1cf   :  { %21948 = vmatpush3.bf16.msra.mxu1 %v27971_v24  ;;  %v27981_v24 = vand.u32 4294901760, %v24340_v61  ;;  %v27987_v61 = vand.u32 4294901760, %v24373_v37  ;;  %v27992_v37 = vand.u32 4294901760, %v24400_v55  ;;  %v27997_v55 = vand.u32 4294901760, %v24428_v14 }
 0x1d0   :  { %21950 = vmatprep.subr.bf16.mxu1 %v27972_v4  ;;  %v28004_v14 = vand.u32 4294901760, %v27948_v56 }
 0x1d1   :  { %v21963_v4 = vpack.c.bf16 %v27981_v24, %v27980_v54 }
 0x1d3   :  { %21952 = vmatpush3.bf16.msra.mxu1 %v27973_v10  ;;  %v27982_v10 = vand.u32 4294901760, %v24351_v3  ;;  %v27988_v3 = vand.u32 4294901760, %v24375_v38  ;;  %v27993_v38 = vand.u32 4294901760, %v24414_v1  ;;  %v21979_v1 = vpack.c.bf16 %v27998_v22, %v27997_v55 }
 0x1d4   :  { %21954 = vmatprep.subr.bf16.mxu1 %v27974_v27  ;;  %v27983_v27 = vand.u32 4294901760, %v24353_v6  ;;  %v27989_v6 = vand.u32 4294901760, %v24377_v41  ;;  %v27994_v41 = vand.u32 4294901760, %v24416_v7  ;;  %v27999_v7 = vand.u32 4294901760, %v24436_v23 }
 0x1d5   :  { %v21969_v57 = vpack.c.bf16 %v27988_v3, %v27987_v61  ;;  %v28006_v23 = vand.u32 4294901760, %v27951_v35 }
 0x1d6   :  { %v21971_v9 = vpack.c.bf16 %v27990_v8, %v27989_v6  ;;  %v21975_v2 = vpack.c.bf16 %v27994_v41, %v27993_v38  ;;  %v21981_v39 = vpack.c.bf16 %v28000_v20, %v27999_v7 }
 0x1d7   :  { %21956 = vmatpush3.bf16.msra.mxu1 %v27975_v44  ;;  %v21965_v44 = vpack.c.bf16 %v27983_v27, %v27982_v10  ;;  %v21987_v59 = vpack.c.bf16 %v28006_v23, %v28005_v12 }
 0x1d8   :  { %21958 = vmatprep.subr.bf16.mxu1 %v27976_v43  ;;  %v27984_v43 = vand.u32 4294901760, %v27961_v29 }
 0x1db   :  { %21960 = vmatpush3.bf16.msra.mxu1 %v27979_v11 }
 0x1dc   :  { %21962 = vmatprep.subr.bf16.mxu1 %v21961_v53 }
 0x1de   :  { %1467 = vmatmul.mubr.f32.vlgmr.msra.gmra.mrb[24].mxu1 %v27984_v43  ;;  %v18281_v43 = vld [vmem:[%s27791_s15] ss:$0 sm:$0xff] }
 0x1df   :  { %1474 = vmatprep.mubr.f32.mxu1 %v902_v5  ;;  %21964 = vmatpush3.bf16.msra.mxu1 %v21963_v4  ;;  %v21973_v5 = vpack.c.bf16 %v27992_v37, %v27991_v15 }
 0x1e0   :  { %21966 = vmatprep.subr.bf16.mxu1 %v21965_v44 }
 0x1e2   :  { %1478 = vmatmul.mubr.f32.gmra.mrb[26].mxu1 %v908_v13  ;;  %v21977_v13 = vpack.c.bf16 %v27996_v48, %v27995_v46 }
 0x1e3   :  { %1485 = vmatprep.mubr.f32.mxu1 %v917_v21  ;;  %21968 = vmatpush3.bf16.msra.mxu1 %v21967_v50 }
 0x1e4   :  { %21970 = vmatprep.subr.bf16.mxu1 %v21969_v57 }
 0x1e6   :  { %1489 = vmatmul.mubr.f32.gmra.mrb[28].mxu1 %v923_v19  ;;  %v28002_v19 = vand.u32 4294901760, %v24445_v47  ;;  %v28009_v47 = vand.u32 4294901760, %v27958_v45 }
 0x1e7   :  { %1496 = vmatprep.mubr.f32.mxu1 %v932_v18  ;;  %21972 = vmatpush3.bf16.msra.mxu1 %v21971_v9 }
 0x1e8   :  { %21974 = vmatprep.subr.bf16.mxu1 %v21973_v5  ;;  %v21983_v21 = vpack.c.bf16 %v28002_v19, %v28001_v36 }
 0x1ea   :  { %1500 = vmatmul.mubr.f32.gmra.mrb[30].mxu1 %v938_v28  ;;  %v28008_v28 = vand.u32 4294901760, %v27954_v0 }
 0x1eb   :  { %21976 = vmatpush3.bf16.msra.mxu1 %v21975_v2  ;;  %1666 = vmatprep.mubr.f32.mxu1 %v24774_v63  ;;  %v28003_v63 = vand.u32 4294901760, %v27949_v30  ;;  %v21991_v30 = vpack.c.bf16 %v28010_v62, %v28009_v47 }
 0x1ec   :  { %21978 = vmatprep.subr.bf16.mxu1 %v21977_v13  ;;  %v21989_v18 = vpack.c.bf16 %v28008_v28, %v28007_v42 }
 0x1ed   :  { %v21985_v58 = vpack.c.bf16 %v28004_v14, %v28003_v63 }
 0x1ef   :  { %21980 = vmatpush3.bf16.msra.mxu1 %v21979_v1 }
 0x1f0   :  { %21982 = vmatprep.subr.bf16.mxu1 %v21981_v39 }
 0x1f3   :  { %21984 = vmatpush3.bf16.msra.mxu1 %v21983_v21 }
 0x1f4   :  { %21986 = vmatprep.subr.bf16.mxu1 %v21985_v58 }
 0x1f7   :  { %21988 = vmatpush3.bf16.msra.mxu1 %v21987_v59 }
 0x1f8   :  { %21990 = vmatprep.subr.bf16.mxu1 %v21989_v18 }
 0x1fb   :  { %21992 = vmatpush3.bf16.msra.mxu1 %v21991_v30 }
 0x1fe   :  { %1668 = vmatmul.mubr.f32.vlgmr.msra.gmra.mrb[32].mxu1 %v24772_v60 }
 0x1ff   :  { %1673 = vmatprep.mubr.f32.mxu1 %v24787_v31 }
 0x202   :  { %1675 = vmatmul.mubr.f32.gmra.mrb[34].mxu1 %v24783_v34 }
 0x203   :  { %1680 = vmatprep.mubr.f32.mxu1 %v24807_v51 }
 0x206   :  { %1682 = vmatmul.mubr.f32.gmra.mrb[36].mxu1 %v24803_v33 }
 0x207   :  { %1687 = vmatprep.mubr.f32.mxu1 %v24827_v17 }
 0x20a   :  { %1689 = vmatmul.mubr.f32.gmra.mrb[38].mxu1 %v24823_v49 }
 0x249   :  { %v18581_v56 = vpop.f32.mrb[8].mxu0 }
 0x24a   :  { %v18582_v35 = vpop.f32.mrb[9].mxu0 }
 0x24b   :  { %v25035_v16 = vadd.f32 %v18582_v35, %v18581_v56 }
 0x24d   :  { %v18584_v0 = vpop.f32.mrb[10].mxu0 }
 0x24e   :  { %v18585_v52 = vpop.f32.mrb[11].mxu0 }
 0x24f   :  { %v25037_v25 = vadd.f32 %v18585_v52, %v18584_v0 }
 0x251   :  { %v18361_v60 = vpop.f32.mrb[0].mxu1  ;;  %v18587_v31 = vpop.f32.mrb[12].mxu0 }
 0x252   :  { %v18362_v45 = vpop.f32.mrb[1].mxu1  ;;  %v18588_v34 = vpop.f32.mrb[13].mxu0 }
 0x253   :  { %v18363_v29 = vadd.f32 %v18362_v45, %v18361_v60  ;;  %v25039_v51 = vadd.f32 %v18588_v34, %v18587_v31 }
 0x255   :  { %v18364_v33 = vpop.f32.mrb[2].mxu1  ;;  %v18590_v26 = vpop.f32.mrb[14].mxu0  ;;  %v898_v50 = vadd.f32 %v18363_v29, %v18281_v43 }
 0x256   :  { %v18365_v17 = vpop.f32.mrb[3].mxu1  ;;  %v18591_v53 = vpop.f32.mrb[15].mxu0 }
 0x257   :  { %v18366_v49 = vadd.f32 %v18365_v17, %v18364_v33  ;;  %v25041_v11 = vadd.f32 %v18591_v53, %v18590_v26 }
 0x259   :  { %v18367_v54 = vpop.f32.mrb[4].mxu1  ;;  %v913_v8 = vadd.f32 %v18366_v49, %v18281_v43 }
 0x25a   :  { %v18368_v24 = vpop.f32.mrb[5].mxu1 }
 0x25b   :  { %v18369_v4 = vadd.f32 %v18368_v24, %v18367_v54 }
 0x25d   :  { %v18370_v10 = vpop.f32.mrb[6].mxu1  ;;  %v928_v38 = vadd.f32 %v18369_v4, %v18281_v43 }
 0x25e   :  { %v18371_v27 = vpop.f32.mrb[7].mxu1 }
 0x25f   :  { %v18372_v44 = vadd.f32 %v18371_v27, %v18370_v10 }
 0x261   :  { %v943_v13 = vadd.f32 %v18372_v44, %v18281_v43 }
 0x271   :  { %v18405_v32 = vpop.f32.mrb[8].mxu1 }
 0x272   :  { %v18406_v40 = vpop.f32.mrb[9].mxu1 }
 0x273   :  { %v18407_v61 = vadd.f32 %v18406_v40, %v18405_v32 }
 0x275   :  { %v1175_v3 = vadd.f32 %v18407_v61, %v898_v50  ;;  %v18408_v57 = vpop.f32.mrb[10].mxu1 }
 0x276   :  { %v18409_v6 = vpop.f32.mrb[11].mxu1 }
 0x277   :  { %v18410_v9 = vadd.f32 %v18409_v6, %v18408_v57 }
 0x279   :  { %v1182_v15 = vadd.f32 %v18410_v9, %v913_v8  ;;  %v18411_v37 = vpop.f32.mrb[12].mxu1 }
 0x27a   :  { %v18412_v5 = vpop.f32.mrb[13].mxu1 }
 0x27b   :  { %v18413_v41 = vadd.f32 %v18412_v5, %v18411_v37 }
 0x27d   :  { %v1189_v2 = vadd.f32 %v18413_v41, %v928_v38  ;;  %v18414_v46 = vpop.f32.mrb[14].mxu1 }
 0x27e   :  { %v18415_v48 = vpop.f32.mrb[15].mxu1 }
 0x27f   :  { %v18416_v55 = vadd.f32 %v18415_v48, %v18414_v46 }
 0x281   :  { %v1196_v22 = vadd.f32 %v18416_v55, %v943_v13 }
 0x291   :  { %v18449_v1 = vpop.f32.mrb[16].mxu1 }
 0x292   :  { %v18450_v7 = vpop.f32.mrb[17].mxu1 }
 0x293   :  { %v18451_v20 = vadd.f32 %v18450_v7, %v18449_v1 }
 0x295   :  { %v1334_v39 = vadd.f32 %v18451_v20, %v1175_v3  ;;  %v18452_v36 = vpop.f32.mrb[18].mxu1 }
 0x296   :  { %v18453_v19 = vpop.f32.mrb[19].mxu1 }
 0x297   :  { %v18454_v21 = vadd.f32 %v18453_v19, %v18452_v36 }
 0x299   :  { %v1343_v63 = vadd.f32 %v18454_v21, %v1182_v15  ;;  %v18455_v14 = vpop.f32.mrb[20].mxu1 }
 0x29a   :  { %v18456_v58 = vpop.f32.mrb[21].mxu1 }
 0x29b   :  { %v18457_v12 = vadd.f32 %v18456_v58, %v18455_v14 }
 0x29d   :  { %v1352_v23 = vadd.f32 %v18457_v12, %v1189_v2  ;;  %v18458_v59 = vpop.f32.mrb[22].mxu1 }
 0x29e   :  { %v18459_v42 = vpop.f32.mrb[23].mxu1 }
 0x29f   :  { %v18460_v28 = vadd.f32 %v18459_v42, %v18458_v59  ;;  %v1893_v59 = vld [vmem:[%s27780_s4] sm:$0xff]  ;;  %v1894_v42 = vld [vmem:[%s27780_s4 + $0x8] sm:$0xff] }
 0x2a1   :  { %v1361_v18 = vadd.f32 %v18460_v28, %v1196_v22  ;;  %v1917_v28 = vand.u32 4294901760, %v1893_v59 }
 0x2b1   :  { %v18493_v47 = vpop.f32.mrb[24].mxu1 }
 0x2b2   :  { %v18494_v62 = vpop.f32.mrb[25].mxu1 }
 0x2b3   :  { %v18495_v30 = vadd.f32 %v18494_v62, %v18493_v47  ;;  %v1895_v47 = vld [vmem:[%s27780_s4 + $0x10] sm:$0xff]  ;;  %v1896_v62 = vld [vmem:[%s27780_s4 + $0x18] sm:$0xff]  ;;  %s24084_s4 = smov 44  }
 0x2b5   :  { %v1469_v56 = vadd.f32 %v18495_v30, %v1334_v39  ;;  %v18496_v35 = vpop.f32.mrb[26].mxu1 }
 0x2b6   :  { %v18497_v0 = vpop.f32.mrb[27].mxu1 }
 0x2b7   :  { %v18498_v52 = vadd.f32 %v18497_v0, %v18496_v35  ;;  %v1926_v35 = vand.u32 4294901760, %v1896_v62 }
 0x2b9   :  { %v1480_v60 = vadd.f32 %v18498_v52, %v1343_v63  ;;  %v18499_v31 = vpop.f32.mrb[28].mxu1  ;;  %v2027_v52 = vsub.f32 %v1893_v59, %v1917_v28 }
 0x2ba   :  { %v18500_v45 = vpop.f32.mrb[29].mxu1 }
 0x2bb   :  { %v18501_v34 = vadd.f32 %v18500_v45, %v18499_v31  ;;  %v2028_v31 = vand.u32 4294901760, %v2027_v52 }
 0x2bd   :  { %v1491_v29 = vadd.f32 %v18501_v34, %v1352_v23  ;;  %v18502_v33 = vpop.f32.mrb[30].mxu1  ;;  %v2029_v34 = vsub.f32 %v2027_v52, %v2028_v31 }
 0x2be   :  { %v18503_v26 = vpop.f32.mrb[31].mxu1 }
 0x2bf   :  { %v18504_v17 = vadd.f32 %v18503_v26, %v18502_v33  ;;  %v2048_v26 = vsub.f32 %v1896_v62, %v1926_v35 }
 0x2c1   :  { %v1502_v53 = vadd.f32 %v18504_v17, %v1361_v18  ;;  %v1920_v18 = vand.u32 4294901760, %v1894_v42  ;;  %v2030_v17 = vand.u32 4294901760, %v2029_v34 }
 0x2c3   :  { %v25086_v30 = vpack.c.bf16 %v1920_v18, %v1917_v28 }
 0x2c5   :  { %22026 = vmatprep.subr.bf16.mxu1 %v25086_v30 }
 0x2c6   :  { %22028 = vmatpush3.bf16.msra.mxu1 %v25086_v30 }
 0x2d1   :  { %v18537_v49 = vpop.f32.mrb[32].mxu1 }
 0x2d2   :  { %v18538_v54 = vpop.f32.mrb[33].mxu1 }
 0x2d3   :  { %v18539_v24 = vadd.f32 %v18538_v54, %v18537_v49  ;;  %v2049_v54 = vand.u32 4294901760, %v2048_v26 }
 0x2d5   :  { %v1670_v4 = vadd.f32 %v18539_v24, %v1469_v56  ;;  %v18540_v10 = vpop.f32.mrb[34].mxu1  ;;  %v1923_v56 = vand.u32 4294901760, %v1895_v47 }
 0x2d6   :  { %v18541_v27 = vpop.f32.mrb[35].mxu1 }
 0x2d7   :  { %v18542_v44 = vadd.f32 %v18541_v27, %v18540_v10  ;;  %v1795_v43 = vadd.f32 %v25035_v16, %v1670_v4  ;;  %v25089_v0 = vpack.c.bf16 %v1926_v35, %v1923_v56  ;;  %v2041_v33 = vsub.f32 %v1895_v47, %v1923_v56 }
 0x2d8   :  { %v2050_v10 = vsub.f32 %v2048_v26, %v2049_v54 }
 0x2d9   :  { %v1677_v32 = vadd.f32 %v18542_v44, %v1480_v60  ;;  %v18543_v40 = vpop.f32.mrb[36].mxu1  ;;  %v1820_v50 = vsel %vm1819_vm1, %v1795_v43, 0.0  ;;  %22030 = vmatprep.subr.bf16.mxu1 %v25089_v0  ;;  %v2034_v60 = vsub.f32 %v1894_v42, %v1920_v18  ;;  %v2042_v49 = vand.u32 4294901760, %v2041_v33 }
 0x2da   :  { %v18544_v61 = vpop.f32.mrb[37].mxu1  ;;  %1821 = vadd.xlane.f32.xlu0 %v1820_v50  ;;  %22032 = vmatpush3.bf16.msra.mxu1 %v25089_v0  ;;  %v2051_v44 = vand.u32 4294901760, %v2050_v10 }
 0x2db   :  { %v18545_v3 = vadd.f32 %v18544_v61, %v18543_v40  ;;  %v1802_v57 = vadd.f32 %v25037_v25, %v1677_v32  ;;  %v2035_v45 = vand.u32 4294901760, %v2034_v60  ;;  %v2043_v4 = vsub.f32 %v2041_v33, %v2042_v49 }
 0x2dc   :  { %v25099_v32 = vpack.c.bf16 %v2034_v60, %v2027_v52  ;;  %v25101_v40 = vpack.c.bf16 %v2048_v26, %v2041_v33  ;;  %v25105_v61 = vpack.c.bf16 %v2049_v54, %v2042_v49 }
 0x2dd   :  { %v1684_v6 = vadd.f32 %v18545_v3, %v1491_v29  ;;  %v18546_v8 = vpop.f32.mrb[38].mxu1  ;;  %v1823_v9 = vsel %vm1819_vm1, %v1802_v57, 0.0  ;;  %v2036_v29 = vsub.f32 %v2034_v60, %v2035_v45  ;;  %v2044_v27 = vand.u32 4294901760, %v2043_v4 }
 0x2de   :  { %v18547_v15 = vpop.f32.mrb[39].mxu1  ;;  %1824 = vadd.xlane.f32.xlu0 %v1823_v9  ;;  %v25103_v50 = vpack.c.bf16 %v2035_v45, %v2028_v31 }
 0x2df   :  { %v18548_v37 = vadd.f32 %v18547_v15, %v18546_v8  ;;  %v1809_v5 = vadd.f32 %v25039_v51, %v1684_v6 }
 0x2e1   :  { %v1691_v38 = vadd.f32 %v18548_v37, %v1502_v53  ;;  %v1826_v16 = vsel %vm1819_vm1, %v1809_v5, 0.0  ;;  %v2037_v53 = vand.u32 4294901760, %v2036_v29 }
 0x2e2   :  { %1827 = vadd.xlane.f32.xlu1 %v1826_v16 }
 0x2e3   :  { %v1816_v41 = vadd.f32 %v25041_v11, %v1691_v38  ;;  %v25094_v24 = vpack.c.bf16 %v2037_v53, %v2030_v17 }
 0x2e5   :  { %v1829_v2 = vsel %vm1819_vm1, %v1816_v41, 0.0  ;;  %22034 = vmatprep.subr.bf16.mxu1 %v25094_v24 }
 0x2e6   :  { %1830 = vadd.xlane.f32.xlu1 %v1829_v2 }
 0x367   :  { %v1822_v46 = vpop.xlane.xlu0 %1821 }
 0x368   :  { %v1833_v25 = vmul.f32 0.03125, %v1822_v46  ;;  %v18282_v46 = vld [vmem:[%s27791_s15 + $0x1] ss:$0 sm:$0xff] }
 0x36a   :  { %v25054_v48 = vsub.f32 %v1795_v43, %v1833_v25  ;;  %v25097_v43 = vpack.c.bf16 %v2051_v44, %v2044_v27 }
 0x36b   :  { %v1825_v13 = vpop.xlane.xlu0 %1824 }
 0x36c   :  { %v1834_v55 = vmul.f32 0.03125, %v1825_v13  ;;  %v1841_v22 = vmul.f32 %v25054_v48, %v25054_v48 }
 0x36e   :  { %v25058_v1 = vsub.f32 %v1802_v57, %v1834_v55  ;;  %v1845_v51 = vsel %vm1819_vm1, %v1841_v22, 0.0  ;;  %v18283_v55 = vld [vmem:[%s27791_s15 + $0x2] ss:$0 sm:$0xff] }
 0x36f   :  { %v1828_v7 = vpop.xlane.xlu1 %1827  ;;  %1846 = vadd.xlane.f32.xlu0 %v1845_v51 }
 0x370   :  { %v1835_v20 = vmul.f32 0.03125, %v1828_v7  ;;  %v1842_v11 = vmul.f32 %v25058_v1, %v25058_v1 }
 0x372   :  { %v25063_v39 = vsub.f32 %v1809_v5, %v1835_v20  ;;  %v1848_v36 = vsel %vm1819_vm1, %v1842_v11, 0.0 }
 0x373   :  { %v1831_v19 = vpop.xlane.xlu1 %1830  ;;  %1849 = vadd.xlane.f32.xlu1 %v1848_v36 }
 0x374   :  { %v1836_v21 = vmul.f32 0.03125, %v1831_v19  ;;  %v1843_v63 = vmul.f32 %v25063_v39, %v25063_v39 }
 0x376   :  { %v25068_v14 = vsub.f32 %v1816_v41, %v1836_v21  ;;  %v1851_v58 = vsel %vm1819_vm1, %v1843_v63, 0.0 }
 0x377   :  { %1852 = vadd.xlane.f32.xlu0 %v1851_v58 }
 0x378   :  { %v1844_v12 = vmul.f32 %v25068_v14, %v25068_v14 }
 0x37a   :  { %v1854_v23 = vsel %vm1819_vm1, %v1844_v12, 0.0 }
 0x37b   :  { %1855 = vadd.xlane.f32.xlu1 %v1854_v23 }
 0x3fc   :  { %v1847_v3 = vpop.xlane.xlu0 %1846 }
 0x3fd   :  { %v1857_v57 = vmul.f32 0.03125, %v1847_v3 }
 0x3ff   :  { %v1861_v6 = vadd.f32 1e-05, %v1857_v57 }
 0x400   :  { %v1850_v8 = vpop.xlane.xlu1 %1849 }
 0x401   :  { %23820 = vrsqrt.f32 %v1861_v6  ;;  %v1858_v9 = vmul.f32 0.03125, %v1850_v8 }
 0x403   :  { %v1862_v15 = vadd.f32 1e-05, %v1858_v9 }
 0x404   :  { %v1853_v37 = vpop.xlane.xlu0 %1852 }
 0x405   :  { %23822 = vrsqrt.f32 %v1862_v15  ;;  %v1859_v5 = vmul.f32 0.03125, %v1853_v37 }
 0x407   :  { %v1863_v38 = vadd.f32 1e-05, %v1859_v5 }
 0x408   :  { %v1856_v16 = vpop.xlane.xlu1 %1855 }
 0x409   :  { %23824 = vrsqrt.f32 %v1863_v38  ;;  %v1860_v41 = vmul.f32 0.03125, %v1856_v16 }
 0x40b   :  { %v23821_v2 = vpop.eup %23820  ;;  %v1864_v25 = vadd.f32 1e-05, %v1860_v41 }
 0x40c   :  { %v1869_v13 = vmul.f32 %v23821_v2, %v25054_v48 }
 0x40d   :  { %23826 = vrsqrt.f32 %v1864_v25 }
 0x40e   :  { %v1877_v22 = vmul.f32 %v18282_v46, %v1869_v13 }
 0x40f   :  { %v23823_v51 = vpop.eup %23822 }
 0x410   :  { %v1870_v7 = vmul.f32 %v23823_v51, %v25058_v1  ;;  %v1885_v20 = vadd.f32 %v18283_v55, %v1877_v22 }
 0x412   :  { %v1878_v11 = vmul.f32 %v18282_v46, %v1870_v7  ;;  %v1889_v36 = vmax.f32 %v1885_v20, 0.0 }
 0x413   :  { %v23825_v19 = vpop.eup %23824 }
 0x414   :  { %v1871_v21 = vmul.f32 %v23825_v19, %v25063_v39  ;;  %v1905_v63 = vsel %vm1819_vm1, %v1889_v36, 0  ;;  %v1886_v58 = vadd.f32 %v18283_v55, %v1878_v11 }
 0x415   :  { %v25117_v12 = vand.u32 4294901760, %v1905_v63 }
 0x416   :  { %v1890_v48 = vmax.f32 %v1886_v58, 0.0  ;;  %v1879_v23 = vmul.f32 %v18282_v46, %v1871_v21 }
 0x417   :  { %v23827_v59 = vpop.eup %23826  ;;  %v1986_v42 = vsub.f32 %v1905_v63, %v25117_v12 }
 0x418   :  { %v1872_v28 = vmul.f32 %v23827_v59, %v25068_v14  ;;  %v1908_v1 = vsel %vm1819_vm1, %v1890_v48, 0  ;;  %v1887_v18 = vadd.f32 %v18283_v55, %v1879_v23 }
 0x419   :  { %v1987_v47 = vand.u32 4294901760, %v1986_v42  ;;  %v1995_v62 = vand.u32 4294901760, %v1908_v1 }
 0x41a   :  { %v1891_v56 = vmax.f32 %v1887_v18, 0.0  ;;  %v1880_v35 = vmul.f32 %v18282_v46, %v1872_v28 }
 0x41b   :  { %v1988_v39 = vsub.f32 %v1986_v42, %v1987_v47  ;;  %v1996_v52 = vsub.f32 %v1908_v1, %v1995_v62 }
 0x41c   :  { %v1911_v60 = vsel %vm1819_vm1, %v1891_v56, 0  ;;  %v1888_v31 = vadd.f32 %v18283_v55, %v1880_v35 }
 0x41d   :  { %v1989_v45 = vand.u32 4294901760, %v1988_v39  ;;  %v1997_v34 = vand.u32 4294901760, %v1996_v52  ;;  %v2005_v29 = vand.u32 4294901760, %v1911_v60 }
 0x41e   :  { %v1892_v33 = vmax.f32 %v1888_v31, 0.0 }
 0x41f   :  { %19777 = vmatprep.mubr.f32.mxu1 %v1989_v45  ;;  %v1998_v26 = vsub.f32 %v1996_v52, %v1997_v34  ;;  %v2006_v17 = vsub.f32 %v1911_v60, %v2005_v29 }
 0x420   :  { %v1914_v14 = vsel %vm1819_vm1, %v1892_v33, 0 }
 0x421   :  { %v1999_v53 = vand.u32 4294901760, %v1998_v26  ;;  %v2007_v49 = vand.u32 4294901760, %v2006_v17  ;;  %v2015_v54 = vand.u32 4294901760, %v1914_v14 }
 0x423   :  { %19778 = vmatmul.mubr.f32.vlgmr.msra.gmra.mrb[40].mxu1 %v1999_v53  ;;  %v2008_v4 = vsub.f32 %v2006_v17, %v2007_v49  ;;  %v2016_v10 = vsub.f32 %v1914_v14, %v2015_v54 }
 0x424   :  { %22036 = vmatpush3.bf16.msra.mxu1 %v25094_v24  ;;  %v18284_v24 = vld [vmem:[%s27781_s5] ss:$0 sm:$0xff]  ;;  %s24081_s5 = smov 48  }
 0x425   :  { %v2009_v27 = vand.u32 4294901760, %v2008_v4  ;;  %v2017_v44 = vand.u32 4294901760, %v2016_v10  ;;  %22038 = vmatprep.subr.bf16.mxu1 %v25097_v43 }
 0x427   :  { %19780 = vmatprep.mubr.f32.mxu1 %v2009_v27  ;;  %v2018_v3 = vsub.f32 %v2016_v10, %v2017_v44 }
 0x428   :  { %22040 = vmatpush3.bf16.msra.mxu1 %v25097_v43 }
 0x429   :  { %v2019_v57 = vand.u32 4294901760, %v2018_v3  ;;  %22042 = vmatprep.subr.bf16.mxu1 %v25099_v32 }
 0x42b   :  { %19781 = vmatmul.mubr.f32.gmra.mrb[42].mxu1 %v2019_v57 }
 0x42c   :  { %19791 = vmatprep.mubr.f32.mxu1 %v25117_v12 }
 0x42f   :  { %19792 = vmatmul.mubr.f32.vlgmr.msra.gmra.mrb[40].mxu1 %v1995_v62 }
 0x430   :  { %19794 = vmatprep.mubr.f32.mxu1 %v2005_v29  ;;  %22044 = vmatpush3.bf16.msra.mxu1 %v25099_v32 }
 0x431   :  { %22046 = vmatprep.subr.bf16.mxu1 %v25101_v40 }
 0x433   :  { %19795 = vmatmul.mubr.f32.gmra.mrb[42].mxu1 %v2015_v54 }
 0x434   :  { %22048 = vmatpush3.bf16.msra.mxu1 %v25101_v40  ;;  %19805 = vmatprep.mubr.f32.mxu1 %v1986_v42 }
 0x435   :  { %22050 = vmatprep.subr.bf16.mxu1 %v25086_v30 }
 0x437   :  { %19806 = vmatmul.mubr.f32.vlgmr.msra.gmra.mrb[40].mxu1 %v1996_v52 }
 0x438   :  { %19808 = vmatprep.mubr.f32.mxu1 %v2006_v17  ;;  %22052 = vmatpush3.bf16.msra.mxu1 %v25086_v30 }
 0x439   :  { %22054 = vmatprep.subr.bf16.mxu1 %v25089_v0 }
 0x43b   :  { %19809 = vmatmul.mubr.f32.gmra.mrb[42].mxu1 %v2016_v10 }
 0x43c   :  { %22056 = vmatpush3.bf16.msra.mxu1 %v25089_v0  ;;  %19819 = vmatprep.mubr.f32.mxu1 %v1987_v47 }
 0x43d   :  { %22058 = vmatprep.subr.bf16.mxu1 %v25103_v50 }
 0x43f   :  { %19820 = vmatmul.mubr.f32.vlgmr.msra.gmra.mrb[40].mxu1 %v1997_v34 }
 0x440   :  { %19822 = vmatprep.mubr.f32.mxu1 %v2007_v49  ;;  %22060 = vmatpush3.bf16.msra.mxu1 %v25103_v50 }
 0x441   :  { %22062 = vmatprep.subr.bf16.mxu1 %v25105_v61 }
 0x443   :  { %19823 = vmatmul.mubr.f32.gmra.mrb[42].mxu1 %v2017_v44 }
 0x444   :  { %22064 = vmatpush3.bf16.msra.mxu1 %v25105_v61  ;;  %19833 = vmatprep.mubr.f32.mxu1 %v25117_v12 }
 0x445   :  { %22066 = vmatprep.subr.bf16.mxu1 %v25086_v30 }
 0x447   :  { %19834 = vmatmul.mubr.f32.vlgmr.msra.gmra.mrb[40].mxu1 %v1995_v62 }
 0x448   :  { %19836 = vmatprep.mubr.f32.mxu1 %v2005_v29  ;;  %22068 = vmatpush3.bf16.msra.mxu1 %v25086_v30 }
 0x449   :  { %22070 = vmatprep.subr.bf16.mxu1 %v25089_v0 }
 0x44b   :  { %19837 = vmatmul.mubr.f32.gmra.mrb[42].mxu1 %v2015_v54 }
 0x44c   :  { %22072 = vmatpush3.bf16.msra.mxu1 %v25089_v0  ;;  %19847 = vmatprep.mubr.f32.mxu1 %v25117_v12 }
 0x44f   :  { %19848 = vmatmul.mubr.f32.vlgmr.msra.gmra.mrb[40].mxu1 %v1995_v62 }
 0x450   :  { %19850 = vmatprep.mubr.f32.mxu1 %v2005_v29 }
 0x453   :  { %19851 = vmatmul.mubr.f32.gmra.mrb[42].mxu1 %v2015_v54 }
 0x522   :  { %v19849_v43 = vpop.f32.mrb[40].mxu1 }
 0x523   :  { %v25149_v32 = vadd.f32 %v19849_v43, %v18284_v24  ;;  %v2508_v40 = vpop.f32.mrb[41].mxu1 }
 0x524   :  { %v25151_v30 = vadd.f32 %v18284_v24, %v2508_v40 }
 0x525   :  { %2536 = vrot.lane.b32.xlu1 %v25149_v32, %s24068_s18  ;;  %v2545_v46 = vsel %vm2542_vm2, %v25149_v32, 0 }
 0x526   :  { %v19852_v0 = vpop.f32.mrb[42].mxu1  ;;  %2534 = vrot.lane.b32.xlu0 %v25151_v30, %s24068_s18  ;;  %v2543_v50 = vsel %vm2542_vm2, %v25151_v30, 0  ;;  %v25184_v7 = vand.u32 4294901760, %v2545_v46 }
 0x527   :  { %v2520_v61 = vpop.f32.mrb[43].mxu1  ;;  %v25159_v6 = vand.u32 4294901760, %v2543_v50  ;;  %v25169_v37 = vadd.f32 %v19852_v0, %v18284_v24 }
 0x528   :  { %v25161_v8 = vadd.f32 %v18284_v24, %v2520_v61  ;;  %v2639_v59 = vsub.f32 %v2545_v46, %v25184_v7  ;;  %v3180_v46 = vld [vmem:[%s27782_s6 + $0x18] sm:$0xff] }
 0x529   :  { %v25164_v9 = vsub.f32 %v2543_v50, %v25159_v6  ;;  %v2549_v58 = vsel %vm2542_vm2, %v25169_v37, 0 }
 0x52a   :  { %2538 = vrot.lane.b32.xlu1 %v25161_v8, %s24068_s18  ;;  %v2547_v22 = vsel %vm2542_vm2, %v25161_v8, 0  ;;  %v25204_v18 = vand.u32 4294901760, %v2549_v58  ;;  %v2640_v52 = vand.u32 4294901760, %v2639_v59 }
 0x52b   :  { %v2630_v15 = vand.u32 4294901760, %v25164_v9  ;;  %v25192_v63 = vand.u32 4294901760, %v2547_v22 }
 0x52c   :  { %v2659_v34 = vsub.f32 %v2549_v58, %v25204_v18  ;;  %v2641_v17 = vsub.f32 %v2639_v59, %v2640_v52 }
 0x52d   :  { %v2631_v5 = vsub.f32 %v25164_v9, %v2630_v15  ;;  %v2649_v62 = vsub.f32 %v2547_v22, %v25192_v63 }
 0x52e   :  { %2540 = vrot.lane.b32.xlu1 %v25169_v37, %s24068_s18  ;;  %v2660_v49 = vand.u32 4294901760, %v2659_v34  ;;  %v2642_v10 = vand.u32 4294901760, %v2641_v17 }
 0x52f   :  { %v2632_v38 = vand.u32 4294901760, %v2631_v5  ;;  %v2650_v29 = vand.u32 4294901760, %v2649_v62 }
 0x530   :  { %v2661_v44 = vsub.f32 %v2659_v34, %v2660_v49 }
 0x531   :  { %19861 = vmatprep.mubr.f32.mxu0 %v2632_v38  ;;  %v2651_v54 = vsub.f32 %v2649_v62, %v2650_v29  ;;  %v3177_v38 = vld [vmem:[%s27782_s6] sm:$0xff] }
 0x532   :  { %v2662_v24 = vand.u32 4294901760, %v2661_v44 }
 0x533   :  { %v2652_v3 = vand.u32 4294901760, %v2651_v54 }
 0x597   :  { %v2537_v16 = vpop.permute.xlu1 %2536 }
 0x598   :  { %v2553_v41 = vsel %vm2542_vm2, %v2537_v16, 0  ;;  %v2535_v2 = vpop.permute.xlu0 %2534 }
 0x599   :  { %v2563_v25 = vand.u32 4294901760, %v2553_v41  ;;  %v2551_v13 = vsel %vm2542_vm2, %v2535_v2, 0 }
 0x59a   :  { %v2560_v55 = vand.u32 4294901760, %v2551_v13 }
 0x59b   :  { %v25182_v51 = vsub.f32 %v2553_v41, %v2563_v25 }
 0x59c   :  { %v25186_v20 = vpack.c.bf16 %v2563_v25, %v2560_v55  ;;  %v25188_v11 = vsub.f32 %v2551_v13, %v2560_v55  ;;  %v2539_v36 = vpop.permute.xlu1 %2538 }
 0x59d   :  { %v2678_v19 = vand.u32 4294901760, %v25182_v51  ;;  %v2555_v21 = vsel %vm2542_vm2, %v2539_v36, 0 }
 0x59e   :  { %v2671_v12 = vand.u32 4294901760, %v25188_v11  ;;  %v2566_v48 = vand.u32 4294901760, %v2555_v21  ;;  %22074 = vmatprep.subr.bf16.mxu0 %v25186_v20  ;;  %v22089_v43 = vpack.c.bf16 %v25182_v51, %v25188_v11 }
 0x59f   :  { %22076 = vmatpush3.bf16.xpose.msra.mxu0 %v25186_v20  ;;  %v2679_v23 = vsub.f32 %v25182_v51, %v2678_v19 }
 0x5a0   :  { %v2684_v42 = vsub.f32 %v2555_v21, %v2566_v48  ;;  %v2541_v28 = vpop.permute.xlu1 %2540  ;;  %v2672_v1 = vsub.f32 %v25188_v11, %v2671_v12  ;;  %v22105_v0 = vpack.c.bf16 %v2678_v19, %v2671_v12 }
 0x5a1   :  { %v2557_v47 = vsel %vm2542_vm2, %v2541_v28, 0  ;;  %v2680_v39 = vand.u32 4294901760, %v2679_v23 }
 0x5a2   :  { %v2569_v56 = vand.u32 4294901760, %v2557_v47  ;;  %v2673_v35 = vand.u32 4294901760, %v2672_v1  ;;  %v2685_v60 = vand.u32 4294901760, %v2684_v42 }
 0x5a4   :  { %v22077_v31 = vpack.c.bf16 %v2569_v56, %v2566_v48  ;;  %v2691_v45 = vsub.f32 %v2557_v47, %v2569_v56  ;;  %v22081_v26 = vpack.c.bf16 %v2680_v39, %v2673_v35  ;;  %v2686_v14 = vsub.f32 %v2684_v42, %v2685_v60 }
 0x5a6   :  { %v2692_v33 = vand.u32 4294901760, %v2691_v45  ;;  %22078 = vmatprep.subr.bf16.mxu0 %v22077_v31  ;;  %v2687_v27 = vand.u32 4294901760, %v2686_v14  ;;  %v22093_v40 = vpack.c.bf16 %v2691_v45, %v2684_v42 }
 0x5a7   :  { %22080 = vmatpush3.bf16.xpose.msra.mxu0 %v22077_v31 }
 0x5a8   :  { %22082 = vmatprep.subr.bf16.mxu0 %v22081_v26  ;;  %v2693_v53 = vsub.f32 %v2691_v45, %v2692_v33  ;;  %v22109_v50 = vpack.c.bf16 %v2692_v33, %v2685_v60 }
 0x5aa   :  { %v2694_v4 = vand.u32 4294901760, %v2693_v53 }
 0x5ac   :  { %v22085_v57 = vpack.c.bf16 %v2694_v4, %v2687_v27 }
 0x5ae   :  { %19862 = vmatmul.mubr.f32.vlgmr.msra.gmra.mrb[16].mxu0 %v2642_v10 }
 0x5af   :  { %19864 = vmatprep.mubr.f32.mxu0 %v2652_v3  ;;  %22084 = vmatpush3.bf16.xpose.msra.mxu0 %v22081_v26 }
 0x5b0   :  { %22086 = vmatprep.subr.bf16.mxu0 %v22085_v57 }
 0x5b2   :  { %19865 = vmatmul.mubr.f32.gmra.mrb[18].mxu0 %v2662_v24 }
 0x5b3   :  { %19875 = vmatprep.mubr.f32.mxu0 %v25159_v6 }
 0x5b7   :  { %22088 = vmatpush3.bf16.xpose.msra.mxu0 %v22085_v57 }
 0x5b8   :  { %22090 = vmatprep.subr.bf16.mxu0 %v22089_v43 }
 0x5be   :  { %19876 = vmatmul.mubr.f32.vlgmr.msra.gmra.mrb[16].mxu0 %v25184_v7 }
 0x5bf   :  { %19878 = vmatprep.mubr.f32.mxu0 %v25192_v63  ;;  %22092 = vmatpush3.bf16.xpose.msra.mxu0 %v22089_v43 }
 0x5c0   :  { %22094 = vmatprep.subr.bf16.mxu0 %v22093_v40 }
 0x5c2   :  { %19879 = vmatmul.mubr.f32.gmra.mrb[18].mxu0 %v25204_v18 }
 0x5c3   :  { %19889 = vmatprep.mubr.f32.mxu0 %v25164_v9  ;;  %v3178_v9 = vld [vmem:[%s27782_s6 + $0x8] sm:$0xff] }
 0x5c7   :  { %22096 = vmatpush3.bf16.xpose.msra.mxu0 %v22093_v40 }
 0x5c8   :  { %22098 = vmatprep.subr.bf16.mxu0 %v25186_v20 }
 0x5ce   :  { %19890 = vmatmul.mubr.f32.vlgmr.msra.gmra.mrb[16].mxu0 %v2639_v59 }
 0x5cf   :  { %19892 = vmatprep.mubr.f32.mxu0 %v2649_v62  ;;  %22100 = vmatpush3.bf16.xpose.msra.mxu0 %v25186_v20 }
 0x5d0   :  { %22102 = vmatprep.subr.bf16.mxu0 %v22077_v31 }
 0x5d2   :  { %19893 = vmatmul.mubr.f32.gmra.mrb[18].mxu0 %v2659_v34 }
 0x5d3   :  { %19903 = vmatprep.mubr.f32.mxu0 %v2630_v15 }
 0x5d7   :  { %22104 = vmatpush3.bf16.xpose.msra.mxu0 %v22077_v31 }
 0x5d8   :  { %22106 = vmatprep.subr.bf16.mxu0 %v22105_v0 }
 0x5de   :  { %19904 = vmatmul.mubr.f32.vlgmr.msra.gmra.mrb[16].mxu0 %v2640_v52 }
 0x5df   :  { %19906 = vmatprep.mubr.f32.mxu0 %v2650_v29  ;;  %22108 = vmatpush3.bf16.xpose.msra.mxu0 %v22105_v0 }
 0x5e0   :  { %22110 = vmatprep.subr.bf16.mxu0 %v22109_v50 }
 0x5e2   :  { %19907 = vmatmul.mubr.f32.gmra.mrb[18].mxu0 %v2660_v49 }
 0x5e3   :  { %19917 = vmatprep.mubr.f32.mxu0 %v25159_v6 }
 0x5e7   :  { %22112 = vmatpush3.bf16.xpose.msra.mxu0 %v22109_v50 }
 0x5e8   :  { %22114 = vmatprep.subr.bf16.mxu0 %v25186_v20 }
 0x5ee   :  { %19918 = vmatmul.mubr.f32.vlgmr.msra.gmra.mrb[16].mxu0 %v25184_v7 }
 0x5ef   :  { %19920 = vmatprep.mubr.f32.mxu0 %v25192_v63  ;;  %22116 = vmatpush3.bf16.xpose.msra.mxu0 %v25186_v20  ;;  %v3179_v20 = vld [vmem:[%s27782_s6 + $0x10] sm:$0xff] }
 0x5f0   :  { %22118 = vmatprep.subr.bf16.mxu0 %v22077_v31 }
 0x5f2   :  { %19921 = vmatmul.mubr.f32.gmra.mrb[18].mxu0 %v25204_v18 }
 0x5f3   :  { %19931 = vmatprep.mubr.f32.mxu0 %v25159_v6 }
 0x5f7   :  { %22120 = vmatpush3.bf16.xpose.msra.mxu0 %v22077_v31 }
 0x5fe   :  { %19932 = vmatmul.mubr.f32.vlgmr.msra.gmra.mrb[16].mxu0 %v25184_v7 }
 0x5ff   :  { %19934 = vmatprep.mubr.f32.mxu0 %v25192_v63 }
 0x602   :  { %19935 = vmatmul.mubr.f32.gmra.mrb[18].mxu0 %v25204_v18 }
 0x6d1   :  { %v19933_v61 = vpop.f32.mrb[16].mxu0 }
 0x6d2   :  { %v3174_v15 = vmul.f32 0.5, %v19933_v61  ;;  %v3151_v5 = vpop.f32.mrb[17].mxu0 }
 0x6d3   :  { %v3173_v16 = vmul.f32 0.5, %v3151_v5 }
 0x6d4   :  { %v3182_v6 = vadd.f32 %v3178_v9, %v3174_v15 }
 0x6d5   :  { %v19936_v41 = vpop.f32.mrb[18].mxu0  ;;  %v3181_v2 = vadd.f32 %v3177_v38, %v3173_v16 }
 0x6d6   :  { %v3176_v25 = vmul.f32 0.5, %v19936_v41  ;;  %v3163_v13 = vpop.f32.mrb[19].mxu0  ;;  %v3188_v55 = vsel %vm1819_vm1, %v3182_v6, -inf }
 0x6d7   :  { %v3175_v22 = vmul.f32 0.5, %v3163_v13  ;;  %3189 = vmax.xlane.f32.xlu1 %v3188_v55  ;;  %v3185_v51 = vsel %vm1819_vm1, %v3181_v2, -inf }
 0x6d8   :  { %3186 = vmax.xlane.f32.xlu0 %v3185_v51  ;;  %v3184_v7 = vadd.f32 %v3180_v46, %v3176_v25 }
 0x6d9   :  { %v3183_v36 = vadd.f32 %v3179_v20, %v3175_v22 }
 0x6da   :  { %v3194_v11 = vsel %vm1819_vm1, %v3184_v7, -inf }
 0x6db   :  { %v3191_v19 = vsel %vm1819_vm1, %v3183_v36, -inf }
 0x6dc   :  { %3195 = vmax.xlane.f32.xlu0 %v3194_v11 }
 0x6e0   :  { %3192 = vmax.xlane.f32.xlu0 %v3191_v19 }
 0x6e8   :  { %3223 = vrot.lane.b32.xlu1 %v25149_v32, %s24069_s1 }
 0x6ec   :  { %3225 = vrot.lane.b32.xlu1 %v25161_v8, %s24069_s1 }
 0x6f0   :  { %3227 = vrot.lane.b32.xlu1 %v25169_v37, %s24069_s1 }
 0x6f4   :  { %3877 = vrot.lane.b32.xlu1 %v25149_v32, %s24070_s27 }
 0x6f6   :  { %3221 = vrot.lane.b32.xlu0 %v25151_v30, %s24069_s1  ;;  %s24080_s1 = smov 112  }
 0x6f8   :  { %3881 = vrot.lane.b32.xlu1 %v25169_v37, %s24070_s27 }
 0x6fa   :  { %3875 = vrot.lane.b32.xlu0 %v25151_v30, %s24070_s27 }
 0x6fc   :  { %3869 = vrot.lane.b32.xlu1 %v25149_v32, %s24071_s28 }
 0x6fe   :  { %3879 = vrot.lane.b32.xlu0 %v25161_v8, %s24070_s27 }
 0x700   :  { %3873 = vrot.lane.b32.xlu1 %v25169_v37, %s24071_s28 }
 0x702   :  { %3867 = vrot.lane.b32.xlu0 %v25151_v30, %s24071_s28 }
 0x706   :  { %3871 = vrot.lane.b32.xlu0 %v25161_v8, %s24071_s28 }
 0x764   :  { %v3190_v21 = vpop.xlane.xlu1 %3189 }
 0x765   :  { %v3198_v63 = vsub.f32 %v3182_v6, %v3190_v21  ;;  %v3187_v58 = vpop.xlane.xlu0 %3186 }
 0x766   :  { %v3197_v12 = vsub.f32 %v3181_v2, %v3187_v58 }
 0x767   :  { %v3203_v48 = vmul.f32 1.442695, %v3198_v63 }
 0x768   :  { %v3201_v23 = vmul.f32 1.442695, %v3197_v12  ;;  %v3224_v59 = vpop.permute.xlu1 %3223 }
 0x769   :  { %23828 = vpow2.f32 %v3203_v48  ;;  %v3249_v42 = vand.u32 4294901760, %v3224_v59  ;;  %v3196_v28 = vpop.xlane.xlu0 %3195 }
 0x76a   :  { %23830 = vpow2.f32 %v3201_v23  ;;  %v3200_v1 = vsub.f32 %v3184_v7, %v3196_v28 }
 0x76b   :  { %v25264_v62 = vsub.f32 %v3224_v59, %v3249_v42 }
 0x76c   :  { %v3207_v18 = vmul.f32 1.442695, %v3200_v1  ;;  %v3226_v47 = vpop.permute.xlu1 %3225 }
 0x76d   :  { %v3193_v56 = vpop.xlane.xlu0 %3192  ;;  %v3252_v39 = vand.u32 4294901760, %v3226_v47  ;;  %v3364_v31 = vand.u32 4294901760, %v25264_v62 }
 0x76e   :  { %v3199_v35 = vsub.f32 %v3183_v36, %v3193_v56  ;;  %23832 = vpow2.f32 %v3207_v18 }
 0x76f   :  { %v25275_v53 = vsub.f32 %v3226_v47, %v3252_v39  ;;  %v3365_v10 = vsub.f32 %v25264_v62, %v3364_v31 }
 0x770   :  { %v3205_v52 = vmul.f32 1.442695, %v3199_v35  ;;  %v3228_v60 = vpop.permute.xlu1 %3227 }
 0x771   :  { %v3255_v45 = vand.u32 4294901760, %v3228_v60  ;;  %v3222_v34 = vpop.permute.xlu0 %3221  ;;  %v3371_v40 = vand.u32 4294901760, %v25275_v53  ;;  %v3366_v5 = vand.u32 4294901760, %v3365_v10 }
 0x772   :  { %v3246_v29 = vand.u32 4294901760, %v3222_v34  ;;  %23834 = vpow2.f32 %v3205_v52 }
 0x773   :  { %v25267_v33 = vpop.eup %23828  ;;  %v25269_v26 = vsub.f32 %v3228_v60, %v3255_v45  ;;  %v25288_v44 = vpack.c.bf16 %v3255_v45, %v3252_v39  ;;  %v3372_v2 = vsub.f32 %v25275_v53, %v3371_v40 }
 0x774   :  { %v25271_v17 = vpop.eup %23830  ;;  %v3237_v14 = vsel %vm1819_vm1, %v25267_v33, 0  ;;  %v25277_v49 = vpack.c.bf16 %v3249_v42, %v3246_v29  ;;  %v25279_v54 = vsub.f32 %v3222_v34, %v3246_v29  ;;  %v3878_v39 = vpop.permute.xlu1 %3877 }
 0x775   :  { %v25281_v4 = vand.u32 4294901760, %v3237_v14  ;;  %v3234_v27 = vsel %vm1819_vm1, %v25271_v17, 0  ;;  %v3378_v3 = vand.u32 4294901760, %v25269_v26  ;;  %v3373_v7 = vand.u32 4294901760, %v3372_v2  ;;  %v3876_v18 = vpop.permute.xlu0 %3875 }
 0x776   :  { %v3357_v57 = vand.u32 4294901760, %v25279_v54  ;;  %22122 = vmatprep.subr.bf16.mxu1 %v25277_v49  ;;  %v25293_v24 = vand.u32 4294901760, %v3234_v27  ;;  %v22137_v48 = vpack.c.bf16 %v25264_v62, %v25279_v54  ;;  %v22141_v1 = vpack.c.bf16 %v25269_v26, %v25275_v53 }
 0x777   :  { %v25296_v43 = vsub.f32 %v3237_v14, %v25281_v4  ;;  %22124 = vmatpush3.bf16.msra.mxu1 %v25277_v49  ;;  %v3379_v38 = vsub.f32 %v25269_v26, %v3378_v3  ;;  %v22157_v60 = vpack.c.bf16 %v3378_v3, %v3371_v40  ;;  %v3891_v45 = vsel %vm2542_vm2, %v3876_v18, 0 }
 0x778   :  { %22126 = vmatprep.subr.bf16.mxu1 %v25288_v44  ;;  %v3358_v0 = vsub.f32 %v25279_v54, %v3357_v57  ;;  %v3315_v50 = vsub.f32 %v3234_v27, %v25293_v24  ;;  %v25306_v9 = vpop.eup %23832  ;;  %v22153_v56 = vpack.c.bf16 %v3364_v31, %v3357_v57  ;;  %v3893_v31 = vsel %vm2542_vm2, %v3878_v39, 0  ;;  %v3882_v34 = vpop.permute.xlu1 %3881 }
 0x779   :  { %v3326_v61 = vand.u32 4294901760, %v25296_v43  ;;  %v3243_v13 = vsel %vm1819_vm1, %v25306_v9, 0  ;;  %v3380_v55 = vand.u32 4294901760, %v3379_v38  ;;  %v3880_v47 = vpop.permute.xlu0 %3879  ;;  %v3903_v26 = vand.u32 4294901760, %v3893_v31 }
 0x77a   :  { %v3359_v15 = vand.u32 4294901760, %v3358_v0  ;;  %v3316_v16 = vand.u32 4294901760, %v3315_v50  ;;  %v25324_v11 = vand.u32 4294901760, %v3243_v13  ;;  %v3900_v14 = vand.u32 4294901760, %v3891_v45 }
 0x77b   :  { %22128 = vmatpush3.bf16.msra.mxu1 %v25288_v44  ;;  %v3327_v41 = vsub.f32 %v25296_v43, %v3326_v61  ;;  %v22133_v19 = vpack.c.bf16 %v3380_v55, %v3373_v7  ;;  %v25371_v27 = vsub.f32 %v3893_v31, %v3903_v26  ;;  %v3897_v57 = vsel %vm2542_vm2, %v3882_v34, 0 }
 0x77c   :  { %v22129_v6 = vpack.c.bf16 %v3366_v5, %v3359_v15  ;;  %v25318_v46 = vpop.eup %23834  ;;  %v3317_v25 = vsub.f32 %v3315_v50, %v3316_v16  ;;  %v3345_v21 = vsub.f32 %v3243_v13, %v25324_v11  ;;  %v3870_v53 = vpop.permute.xlu1 %3869  ;;  %v25368_v10 = vpack.c.bf16 %v3903_v26, %v3900_v14 }
 0x77d   :  { %28011 = vst [vmem:[#allocation17_spill] sm:$0xff] %v25318_v46  ;;  %v3328_v51 = vand.u32 4294901760, %v3327_v41  ;;  %v3240_v20 = vsel %vm1819_vm1, %v25318_v46, 0  ;;  %v3868_v35 = vpop.permute.xlu0 %3867  ;;  %v25373_v3 = vsub.f32 %v3891_v45, %v3900_v14  ;;  %v3909_v0 = vand.u32 4294901760, %v3897_v57 }
 0x77e   :  { %22130 = vmatprep.subr.bf16.mxu1 %v22129_v6  ;;  %v3318_v22 = vand.u32 4294901760, %v3317_v25  ;;  %v25326_v36 = vand.u32 4294901760, %v3240_v20  ;;  %v3346_v58 = vand.u32 4294901760, %v3345_v21  ;;  %v3883_v52 = vsel %vm2542_vm2, %v3868_v35, 0 }
 0x77f   :  { %v25354_v62 = vand.u32 4294901760, %v3883_v52 }
 0x780   :  { %19945 = vmatprep.mubr.f32.mxu1 %v3318_v22  ;;  %v3335_v63 = vsub.f32 %v3240_v20, %v25326_v36  ;;  %v3347_v23 = vsub.f32 %v3345_v21, %v3346_v58 }
 0x781   :  { %19946 = vmatmul.mubr.f32.vlgmr.msra.gmra.mrb[44].mxu1 %v3328_v51  ;;  %v25361_v29 = vsub.f32 %v3883_v52, %v25354_v62 }
 0x782   :  { %22132 = vmatpush3.bf16.msra.mxu1 %v22129_v6  ;;  %v3336_v12 = vand.u32 4294901760, %v3335_v63  ;;  %v3348_v28 = vand.u32 4294901760, %v3347_v23  ;;  %v25391_v6 = vsub.f32 %v3897_v57, %v3909_v0 }
 0x783   :  { %22134 = vmatprep.subr.bf16.mxu1 %v22133_v19  ;;  %v3970_v54 = vand.u32 4294901760, %v25361_v29 }
 0x784   :  { %v3337_v59 = vsub.f32 %v3335_v63, %v3336_v12  ;;  %v4032_v20 = vand.u32 4294901760, %v25391_v6 }
 0x785   :  { %v3971_v40 = vsub.f32 %v25361_v29, %v3970_v54 }
 0x786   :  { %22136 = vmatpush3.bf16.msra.mxu1 %v22133_v19  ;;  %v3338_v42 = vand.u32 4294901760, %v3337_v59  ;;  %v4033_v23 = vsub.f32 %v25391_v6, %v4032_v20 }
 0x787   :  { %22138 = vmatprep.subr.bf16.mxu1 %v22137_v48 }
 0x788   :  { %19948 = vmatprep.mubr.f32.mxu1 %v3338_v42  ;;  %v4034_v18 = vand.u32 4294901760, %v4033_v23 }
 0x789   :  { %19949 = vmatmul.mubr.f32.gmra.mrb[46].mxu1 %v3348_v28 }
 0x78a   :  { %19959 = vmatprep.mubr.f32.mxu1 %v25293_v24 }
 0x78d   :  { %19960 = vmatmul.mubr.f32.vlgmr.msra.gmra.mrb[44].mxu1 %v25281_v4 }
 0x78e   :  { %22140 = vmatpush3.bf16.msra.mxu1 %v22137_v48  ;;  %19962 = vmatprep.mubr.f32.mxu1 %v25326_v36 }
 0x78f   :  { %22142 = vmatprep.subr.bf16.mxu1 %v22141_v1 }
 0x791   :  { %19963 = vmatmul.mubr.f32.gmra.mrb[46].mxu1 %v25324_v11 }
 0x792   :  { %22144 = vmatpush3.bf16.msra.mxu1 %v22141_v1  ;;  %19973 = vmatprep.mubr.f32.mxu1 %v3315_v50  ;;  %v3885_v50 = vsel %vm2542_vm2, %v3870_v53, 0 }
 0x793   :  { %22146 = vmatprep.subr.bf16.mxu1 %v25277_v49  ;;  %v25389_v38 = vand.u32 4294901760, %v3885_v50 }
 0x795   :  { %19974 = vmatmul.mubr.f32.vlgmr.msra.gmra.mrb[44].mxu1 %v25296_v43  ;;  %v3872_v43 = vpop.permute.xlu0 %3871  ;;  %v3979_v22 = vsub.f32 %v3885_v50, %v25389_v38 }
 0x796   :  { %22148 = vmatpush3.bf16.msra.mxu1 %v25277_v49  ;;  %19976 = vmatprep.mubr.f32.mxu1 %v3335_v63  ;;  %v3887_v5 = vsel %vm2542_vm2, %v3872_v43, 0 }
 0x797   :  { %22150 = vmatprep.subr.bf16.mxu1 %v25288_v44  ;;  %v25394_v2 = vand.u32 4294901760, %v3887_v5 }
 0x799   :  { %19977 = vmatmul.mubr.f32.gmra.mrb[46].mxu1 %v3345_v21  ;;  %v3989_v7 = vsub.f32 %v3887_v5, %v25394_v2  ;;  %v3980_v21 = vand.u32 4294901760, %v3979_v22 }
 0x79a   :  { %22152 = vmatpush3.bf16.msra.mxu1 %v25288_v44  ;;  %19987 = vmatprep.mubr.f32.mxu1 %v3316_v16  ;;  %v3972_v16 = vand.u32 4294901760, %v3971_v40 }
 0x79b   :  { %22154 = vmatprep.subr.bf16.mxu1 %v22153_v56  ;;  %v3981_v59 = vsub.f32 %v3979_v22, %v3980_v21 }
 0x79d   :  { %19988 = vmatmul.mubr.f32.vlgmr.msra.gmra.mrb[44].mxu1 %v3326_v61  ;;  %v4018_v61 = vand.u32 4294901760, %v25371_v27 }
 0x79e   :  { %22156 = vmatpush3.bf16.msra.mxu1 %v22153_v56  ;;  %19990 = vmatprep.mubr.f32.mxu1 %v3336_v12 }
 0x79f   :  { %22158 = vmatprep.subr.bf16.mxu1 %v22157_v60  ;;  %v4019_v55 = vsub.f32 %v25371_v27, %v4018_v61 }
 0x7a1   :  { %19991 = vmatmul.mubr.f32.gmra.mrb[46].mxu1 %v3346_v58  ;;  %v4020_v19 = vand.u32 4294901760, %v4019_v55  ;;  %v3990_v58 = vand.u32 4294901760, %v3989_v7 }
 0x7a2   :  { %22160 = vmatpush3.bf16.msra.mxu1 %v22157_v60  ;;  %20001 = vmatprep.mubr.f32.mxu1 %v25293_v24  ;;  %v22185_v60 = vpack.c.bf16 %v25371_v27, %v25373_v3 }
 0x7a3   :  { %22162 = vmatprep.subr.bf16.mxu1 %v25277_v49  ;;  %v3991_v28 = vsub.f32 %v3989_v7, %v3990_v58 }
 0x7a5   :  { %20002 = vmatmul.mubr.f32.vlgmr.msra.gmra.mrb[44].mxu1 %v25281_v4  ;;  %v3992_v35 = vand.u32 4294901760, %v3991_v28 }
 0x7a6   :  { %22164 = vmatpush3.bf16.msra.mxu1 %v25277_v49  ;;  %20004 = vmatprep.mubr.f32.mxu1 %v25326_v36  ;;  %v3895_v49 = vsel %vm2542_vm2, %v3880_v47, 0  ;;  %v3982_v47 = vand.u32 4294901760, %v3981_v59 }
 0x7a7   :  { %22166 = vmatprep.subr.bf16.mxu1 %v25288_v44  ;;  %v3906_v15 = vand.u32 4294901760, %v3895_v49 }
 0x7a9   :  { %20005 = vmatmul.mubr.f32.gmra.mrb[46].mxu1 %v25324_v11  ;;  %v4024_v25 = vsub.f32 %v3895_v49, %v3906_v15 }
 0x7aa   :  { %22168 = vmatpush3.bf16.msra.mxu1 %v25288_v44  ;;  %20015 = vmatprep.mubr.f32.mxu1 %v25293_v24  ;;  %v4011_v44 = vand.u32 4294901760, %v25373_v3  ;;  %v3874_v24 = vpop.permute.xlu1 %3873 }
 0x7ab   :  { %22170 = vmatprep.subr.bf16.mxu1 %v25368_v10  ;;  %v3889_v41 = vsel %vm2542_vm2, %v3874_v24, 0  ;;  %v22189_v31 = vpack.c.bf16 %v25391_v6, %v4024_v25 }
 0x7ac   :  { %v4012_v13 = vsub.f32 %v25373_v3, %v4011_v44  ;;  %v25407_v51 = vand.u32 4294901760, %v3889_v41  ;;  %v22201_v45 = vpack.c.bf16 %v4018_v61, %v4011_v44  ;;  %v18285_v3 = vld [vmem:[%s27782_s6 + $0x20] sm:$0xff] }
 0x7ad   :  { %20016 = vmatmul.mubr.f32.vlgmr.msra.gmra.mrb[44].mxu1 %v25281_v4  ;;  %v25397_v4 = vpack.c.bf16 %v3909_v0, %v3906_v15  ;;  %v18288_v0 = vld [vmem:[%s27782_s6 + $0x38] sm:$0xff] }
 0x7ae   :  { %20018 = vmatprep.mubr.f32.mxu1 %v25326_v36  ;;  %v4013_v36 = vand.u32 4294901760, %v4012_v13  ;;  %v3999_v63 = vsub.f32 %v3889_v41, %v25407_v51 }
 0x7b0   :  { %v22177_v12 = vpack.c.bf16 %v4020_v19, %v4013_v36  ;;  %v4000_v42 = vand.u32 4294901760, %v3999_v63 }
 0x7b1   :  { %20019 = vmatmul.mubr.f32.gmra.mrb[46].mxu1 %v25324_v11  ;;  %v4025_v11 = vand.u32 4294901760, %v4024_v25 }
 0x7b2   :  { %20029 = vmatprep.mubr.f32.mxu1 %v3972_v16  ;;  %v4001_v56 = vsub.f32 %v3999_v63, %v4000_v42 }
 0x7b3   :  { %22172 = vmatpush3.bf16.xpose.msra.mxu1 %v25368_v10  ;;  %v4026_v48 = vsub.f32 %v4024_v25, %v4025_v11  ;;  %v22205_v34 = vpack.c.bf16 %v4032_v20, %v4025_v11 }
 0x7b4   :  { %22174 = vmatprep.subr.bf16.mxu1 %v25397_v4  ;;  %v4002_v52 = vand.u32 4294901760, %v4001_v56 }
 0x7b5   :  { %v4027_v1 = vand.u32 4294901760, %v4026_v48 }
 0x7b7   :  { %v22181_v39 = vpack.c.bf16 %v4034_v18, %v4027_v1 }
 0x7bb   :  { %22176 = vmatpush3.bf16.xpose.msra.mxu1 %v25397_v4 }
 0x7bc   :  { %22178 = vmatprep.subr.bf16.mxu1 %v22177_v12 }
 0x7c2   :  { %20030 = vmatmul.mubr.f32.vlgmr.msra.gmra.mrb[48].mxu1 %v3982_v47 }
 0x7c3   :  { %20032 = vmatprep.mubr.f32.mxu1 %v3992_v35  ;;  %22180 = vmatpush3.bf16.xpose.msra.mxu1 %v22177_v12 }
 0x7c4   :  { %22182 = vmatprep.subr.bf16.mxu1 %v22181_v39 }
 0x7c6   :  { %20033 = vmatmul.mubr.f32.gmra.mrb[50].mxu1 %v4002_v52 }
 0x7c7   :  { %20043 = vmatprep.mubr.f32.mxu1 %v25354_v62 }
 0x7cb   :  { %22184 = vmatpush3.bf16.xpose.msra.mxu1 %v22181_v39 }
 0x7cc   :  { %22186 = vmatprep.subr.bf16.mxu1 %v22185_v60 }
 0x7d2   :  { %20044 = vmatmul.mubr.f32.vlgmr.msra.gmra.mrb[48].mxu1 %v25389_v38 }
 0x7d3   :  { %20046 = vmatprep.mubr.f32.mxu1 %v25394_v2  ;;  %22188 = vmatpush3.bf16.xpose.msra.mxu1 %v22185_v60 }
 0x7d4   :  { %22190 = vmatprep.subr.bf16.mxu1 %v22189_v31 }
 0x7d6   :  { %20047 = vmatmul.mubr.f32.gmra.mrb[50].mxu1 %v25407_v51 }
 0x7d7   :  { %20057 = vmatprep.mubr.f32.mxu1 %v25361_v29 }
 0x7db   :  { %22192 = vmatpush3.bf16.xpose.msra.mxu1 %v22189_v31 }
 0x7dc   :  { %22194 = vmatprep.subr.bf16.mxu1 %v25368_v10 }
 0x7e2   :  { %20058 = vmatmul.mubr.f32.vlgmr.msra.gmra.mrb[48].mxu1 %v3979_v22 }
 0x7e3   :  { %20060 = vmatprep.mubr.f32.mxu1 %v3989_v7  ;;  %22196 = vmatpush3.bf16.xpose.msra.mxu1 %v25368_v10 }
 0x7e4   :  { %22198 = vmatprep.subr.bf16.mxu1 %v25397_v4 }
 0x7e6   :  { %20061 = vmatmul.mubr.f32.gmra.mrb[50].mxu1 %v3999_v63 }
 0x7e7   :  { %20071 = vmatprep.mubr.f32.mxu1 %v3970_v54 }
 0x7eb   :  { %22200 = vmatpush3.bf16.xpose.msra.mxu1 %v25397_v4 }
 0x7ec   :  { %22202 = vmatprep.subr.bf16.mxu1 %v22201_v45 }
 0x7f2   :  { %20072 = vmatmul.mubr.f32.vlgmr.msra.gmra.mrb[48].mxu1 %v3980_v21 }
 0x7f3   :  { %20074 = vmatprep.mubr.f32.mxu1 %v3990_v58  ;;  %22204 = vmatpush3.bf16.xpose.msra.mxu1 %v22201_v45 }
 0x7f4   :  { %22206 = vmatprep.subr.bf16.mxu1 %v22205_v34 }
 0x7f6   :  { %20075 = vmatmul.mubr.f32.gmra.mrb[50].mxu1 %v4000_v42 }
 0x7f7   :  { %20085 = vmatprep.mubr.f32.mxu1 %v25354_v62 }
 0x7fb   :  { %22208 = vmatpush3.bf16.xpose.msra.mxu1 %v22205_v34 }
 0x7fc   :  { %22210 = vmatprep.subr.bf16.mxu1 %v25368_v10 }
 0x802   :  { %20086 = vmatmul.mubr.f32.vlgmr.msra.gmra.mrb[48].mxu1 %v25389_v38 }
 0x803   :  { %20088 = vmatprep.mubr.f32.mxu1 %v25394_v2  ;;  %22212 = vmatpush3.bf16.xpose.msra.mxu1 %v25368_v10 }
 0x804   :  { %22214 = vmatprep.subr.bf16.mxu1 %v25397_v4 }
 0x806   :  { %20089 = vmatmul.mubr.f32.gmra.mrb[50].mxu1 %v25407_v51 }
 0x807   :  { %20099 = vmatprep.mubr.f32.mxu1 %v25354_v62  ;;  %v18286_v62 = vld [vmem:[%s27782_s6 + $0x28] sm:$0xff] }
 0x80b   :  { %22216 = vmatpush3.bf16.xpose.msra.mxu1 %v25397_v4 }
 0x812   :  { %20100 = vmatmul.mubr.f32.vlgmr.msra.gmra.mrb[48].mxu1 %v25389_v38  ;;  %v18287_v38 = vld [vmem:[%s27782_s6 + $0x30] sm:$0xff] }
 0x813   :  { %20102 = vmatprep.mubr.f32.mxu1 %v25394_v2 }
 0x816   :  { %20103 = vmatmul.mubr.f32.gmra.mrb[50].mxu1 %v25407_v51 }
 0x880   :  { %v25445_v29 = vpop.f32.mrb[44].mxu1 }
 0x881   :  { %28012 = vst [vmem:[#allocation27_spill] sm:$0xff] %v25445_v29  ;;  %v25447_v26 = vpop.f32.mrb[45].mxu1 }
 0x882   :  { %28013 = vst [vmem:[#allocation26_spill] sm:$0xff] %v25447_v26 }
 0x884   :  { %v25449_v14 = vpop.f32.mrb[46].mxu1 }
 0x885   :  { %28014 = vst [vmem:[#allocation29_spill] sm:$0xff] %v25449_v14  ;;  %v25451_v53 = vpop.f32.mrb[47].mxu1 }
 0x886   :  { %28015 = vst [vmem:[#allocation28_spill] sm:$0xff] %v25451_v53 }
 0x8e5   :  { %v20101_v54 = vpop.f32.mrb[48].mxu1 }
 0x8e6   :  { %v4514_v10 = vmul.f32 0.5, %v20101_v54  ;;  %v4491_v27 = vpop.f32.mrb[49].mxu1 }
 0x8e7   :  { %v4513_v57 = vmul.f32 0.5, %v4491_v27 }
 0x8e8   :  { %v4523_v49 = vadd.f32 %v18286_v62, %v4514_v10 }
 0x8e9   :  { %v20104_v43 = vpop.f32.mrb[50].mxu1  ;;  %v4522_v40 = vadd.f32 %v18285_v3, %v4513_v57 }
 0x8ea   :  { %v4516_v50 = vmul.f32 0.5, %v20104_v43  ;;  %v4503_v61 = vpop.f32.mrb[51].mxu1  ;;  %v4529_v44 = vsel %vm1819_vm1, %v4523_v49, -inf }
 0x8eb   :  { %v4515_v15 = vmul.f32 0.5, %v4503_v61  ;;  %4530 = vmax.xlane.f32.xlu1 %v4529_v44  ;;  %v4526_v24 = vsel %vm1819_vm1, %v4522_v40, -inf }
 0x8ec   :  { %4527 = vmax.xlane.f32.xlu0 %v4526_v24  ;;  %v4525_v5 = vadd.f32 %v18288_v0, %v4516_v50 }
 0x8ed   :  { %v4524_v6 = vadd.f32 %v18287_v38, %v4515_v15 }
 0x8ee   :  { %v4535_v16 = vsel %vm1819_vm1, %v4525_v5, -inf }
 0x8ef   :  { %v4532_v41 = vsel %vm1819_vm1, %v4524_v6, -inf }
 0x8f0   :  { %4536 = vmax.xlane.f32.xlu0 %v4535_v16 }
 0x8f4   :  { %4533 = vmax.xlane.f32.xlu0 %v4532_v41 }
 0x8fc   :  { %4564 = vrot.lane.b32.xlu1 %v25149_v32, %s24072_s19 }
 0x900   :  { %4566 = vrot.lane.b32.xlu1 %v25161_v8, %s24072_s19 }
 0x904   :  { %4568 = vrot.lane.b32.xlu1 %v25169_v37, %s24072_s19 }
 0x908   :  { %5218 = vrot.lane.b32.xlu1 %v25149_v32, %s24073_s3 }
 0x90a   :  { %4562 = vrot.lane.b32.xlu0 %v25151_v30, %s24072_s19  ;;  %s24082_s19 = smov 76  }
 0x90c   :  { %5222 = vrot.lane.b32.xlu1 %v25169_v37, %s24073_s3 }
 0x90e   :  { %5216 = vrot.lane.b32.xlu0 %v25151_v30, %s24073_s3 }
 0x910   :  { %5210 = vrot.lane.b32.xlu1 %v25149_v32, %s24074_s20 }
 0x912   :  { %5220 = vrot.lane.b32.xlu0 %v25161_v8, %s24073_s3  ;;  %s24083_s3 = smov 108  }
 0x914   :  { %5214 = vrot.lane.b32.xlu1 %v25169_v37, %s24074_s20 }
 0x916   :  { %5208 = vrot.lane.b32.xlu0 %v25151_v30, %s24074_s20 }
 0x91a   :  { %5212 = vrot.lane.b32.xlu0 %v25161_v8, %s24074_s20  ;;  %s24095_s20 = smov 24  }
 0x978   :  { %v4531_v2 = vpop.xlane.xlu1 %4530 }
 0x979   :  { %v4539_v4 = vsub.f32 %v4523_v49, %v4531_v2  ;;  %v4528_v25 = vpop.xlane.xlu0 %4527 }
 0x97a   :  { %v4538_v13 = vsub.f32 %v4522_v40, %v4528_v25 }
 0x97b   :  { %v4544_v55 = vmul.f32 1.442695, %v4539_v4 }
 0x97c   :  { %v4542_v22 = vmul.f32 1.442695, %v4538_v13  ;;  %v4565_v51 = vpop.permute.xlu1 %4564 }
 0x97d   :  { %23836 = vpow2.f32 %v4544_v55  ;;  %v4590_v7 = vand.u32 4294901760, %v4565_v51  ;;  %v4537_v20 = vpop.xlane.xlu0 %4536 }
 0x97e   :  { %23838 = vpow2.f32 %v4542_v22  ;;  %v4541_v11 = vsub.f32 %v4525_v5, %v4537_v20 }
 0x97f   :  { %v25481_v21 = vsub.f32 %v4565_v51, %v4590_v7 }
 0x980   :  { %v4548_v36 = vmul.f32 1.442695, %v4541_v11  ;;  %v4567_v19 = vpop.permute.xlu1 %4566 }
 0x981   :  { %v4534_v63 = vpop.xlane.xlu0 %4533  ;;  %v4593_v12 = vand.u32 4294901760, %v4567_v19  ;;  %v4705_v59 = vand.u32 4294901760, %v25481_v21 }
 0x982   :  { %v4540_v58 = vsub.f32 %v4524_v6, %v4534_v63  ;;  %23840 = vpow2.f32 %v4548_v36 }
 0x983   :  { %v25492_v39 = vsub.f32 %v4567_v19, %v4593_v12  ;;  %v4706_v45 = vsub.f32 %v25481_v21, %v4705_v59 }
 0x984   :  { %v4546_v48 = vmul.f32 1.442695, %v4540_v58  ;;  %v4569_v23 = vpop.permute.xlu1 %4568 }
 0x985   :  { %v4596_v42 = vand.u32 4294901760, %v4569_v23  ;;  %v4563_v28 = vpop.permute.xlu0 %4562  ;;  %v4712_v57 = vand.u32 4294901760, %v25492_v39  ;;  %v4707_v61 = vand.u32 4294901760, %v4706_v45 }
 0x986   :  { %v4587_v1 = vand.u32 4294901760, %v4563_v28  ;;  %23842 = vpow2.f32 %v4546_v48 }
 0x987   :  { %v25484_v18 = vpop.eup %23836  ;;  %v25486_v47 = vsub.f32 %v4569_v23, %v4596_v42  ;;  %v25505_v54 = vpack.c.bf16 %v4596_v42, %v4593_v12  ;;  %v4713_v38 = vsub.f32 %v25492_v39, %v4712_v57 }
 0x988   :  { %v25488_v56 = vpop.eup %23838  ;;  %v4578_v35 = vsel %vm1819_vm1, %v25484_v18, 0  ;;  %v25494_v52 = vpack.c.bf16 %v4590_v7, %v4587_v1  ;;  %v25496_v60 = vsub.f32 %v4563_v28, %v4587_v1 }
 0x989   :  { %v25498_v31 = vand.u32 4294901760, %v4578_v35  ;;  %v4575_v34 = vsel %vm1819_vm1, %v25488_v56, 0  ;;  %v4719_v62 = vand.u32 4294901760, %v25486_v47  ;;  %v4714_v13 = vand.u32 4294901760, %v4713_v38  ;;  %v5217_v28 = vpop.permute.xlu0 %5216 }
 0x98a   :  { %v4698_v10 = vand.u32 4294901760, %v25496_v60  ;;  %22218 = vmatprep.subr.bf16.mxu0 %v25494_v52  ;;  %v25510_v27 = vand.u32 4294901760, %v4575_v34  ;;  %v22233_v63 = vpack.c.bf16 %v25481_v21, %v25496_v60  ;;  %v22237_v42 = vpack.c.bf16 %v25486_v47, %v25492_v39 }
 0x98b   :  { %v25513_v3 = vsub.f32 %v4578_v35, %v25498_v31  ;;  %22220 = vmatpush3.bf16.msra.mxu0 %v25494_v52  ;;  %v4720_v44 = vsub.f32 %v25486_v47, %v4719_v62 }
 0x98c   :  { %22222 = vmatprep.subr.bf16.mxu0 %v25505_v54  ;;  %v4699_v49 = vsub.f32 %v25496_v60, %v4698_v10  ;;  %v4656_v43 = vsub.f32 %v4575_v34, %v25510_v27  ;;  %v25523_v0 = vpop.eup %23840  ;;  %v22249_v35 = vpack.c.bf16 %v4705_v59, %v4698_v10  ;;  %v5219_v34 = vpop.permute.xlu1 %5218  ;;  %v5232_v60 = vsel %vm2542_vm2, %v5217_v28, 0 }
 0x98d   :  { %v4667_v40 = vand.u32 4294901760, %v25513_v3  ;;  %v4584_v41 = vsel %vm1819_vm1, %v25523_v0, 0  ;;  %v4721_v2 = vand.u32 4294901760, %v4720_v44  ;;  %v5221_v1 = vpop.permute.xlu0 %5220  ;;  %v5234_v59 = vsel %vm2542_vm2, %v5219_v34, 0 }
 0x98e   :  { %v4700_v50 = vand.u32 4294901760, %v4699_v49  ;;  %v4657_v15 = vand.u32 4294901760, %v4656_v43  ;;  %v25541_v22 = vand.u32 4294901760, %v4584_v41  ;;  %v5244_v47 = vand.u32 4294901760, %v5234_v59 }
 0x98f   :  { %22224 = vmatpush3.bf16.msra.mxu0 %v25505_v54  ;;  %v4668_v5 = vsub.f32 %v25513_v3, %v4667_v40  ;;  %v22229_v7 = vpack.c.bf16 %v4721_v2, %v4714_v13 }
 0x990   :  { %v22225_v24 = vpack.c.bf16 %v4707_v61, %v4700_v50  ;;  %v25535_v16 = vpop.eup %23842  ;;  %v4658_v6 = vsub.f32 %v4656_v43, %v4657_v15  ;;  %v4686_v20 = vsub.f32 %v4584_v41, %v25541_v22  ;;  %v5223_v10 = vpop.permute.xlu1 %5222  ;;  %v25588_v50 = vsub.f32 %v5234_v59, %v5244_v47 }
 0x991   :  { %v4669_v25 = vand.u32 4294901760, %v4668_v5  ;;  %v4581_v55 = vsel %vm1819_vm1, %v25535_v16, 0  ;;  %v5209_v45 = vpop.permute.xlu0 %5208  ;;  %v5238_v44 = vsel %vm2542_vm2, %v5223_v10, 0 }
 0x992   :  { %22226 = vmatprep.subr.bf16.mxu0 %v22225_v24  ;;  %v4659_v4 = vand.u32 4294901760, %v4658_v6  ;;  %v25543_v51 = vand.u32 4294901760, %v4581_v55  ;;  %v4687_v36 = vand.u32 4294901760, %v4686_v20  ;;  %v5224_v49 = vsel %vm2542_vm2, %v5209_v45, 0 }
 0x993   :  { %v25571_v21 = vand.u32 4294901760, %v5224_v49  ;;  %v5250_v5 = vand.u32 4294901760, %v5238_v44  ;;  %v5359_v6 = vand.u32 4294901760, %v25588_v50 }
 0x994   :  { %20113 = vmatprep.mubr.f32.mxu0 %v4659_v4  ;;  %v4676_v11 = vsub.f32 %v4581_v55, %v25543_v51  ;;  %v4688_v58 = vsub.f32 %v4686_v20, %v4687_v36 }
 0x995   :  { %20114 = vmatmul.mubr.f32.vlgmr.msra.gmra.mrb[20].mxu0 %v4669_v25  ;;  %v25578_v39 = vsub.f32 %v5224_v49, %v25571_v21  ;;  %v25608_v13 = vsub.f32 %v5238_v44, %v5250_v5 }
 0x996   :  { %22228 = vmatpush3.bf16.msra.mxu0 %v22225_v24  ;;  %v4677_v19 = vand.u32 4294901760, %v4676_v11  ;;  %v4689_v23 = vand.u32 4294901760, %v4688_v58 }
 0x997   :  { %22230 = vmatprep.subr.bf16.mxu0 %v22229_v7 }
 0x998   :  { %v4678_v12 = vsub.f32 %v4676_v11, %v4677_v19 }
 0x99a   :  { %22232 = vmatpush3.bf16.msra.mxu0 %v22229_v7  ;;  %v4679_v48 = vand.u32 4294901760, %v4678_v12 }
 0x99b   :  { %22234 = vmatprep.subr.bf16.mxu0 %v22233_v63 }
 0x99c   :  { %20116 = vmatprep.mubr.f32.mxu0 %v4679_v48 }
 0x99d   :  { %20117 = vmatmul.mubr.f32.gmra.mrb[22].mxu0 %v4689_v23 }
 0x99e   :  { %20127 = vmatprep.mubr.f32.mxu0 %v25510_v27 }
 0x9a1   :  { %20128 = vmatmul.mubr.f32.vlgmr.msra.gmra.mrb[20].mxu0 %v25498_v31 }
 0x9a2   :  { %22236 = vmatpush3.bf16.msra.mxu0 %v22233_v63  ;;  %20130 = vmatprep.mubr.f32.mxu0 %v25543_v51  ;;  %v5373_v63 = vand.u32 4294901760, %v25608_v13 }
 0x9a3   :  { %22238 = vmatprep.subr.bf16.mxu0 %v22237_v42 }
 0x9a4   :  { %v5374_v45 = vsub.f32 %v25608_v13, %v5373_v63 }
 0x9a5   :  { %20131 = vmatmul.mubr.f32.gmra.mrb[22].mxu0 %v25541_v22 }
 0x9a6   :  { %22240 = vmatpush3.bf16.msra.mxu0 %v22237_v42  ;;  %20141 = vmatprep.mubr.f32.mxu0 %v4656_v43  ;;  %v22253_v43 = vpack.c.bf16 %v4719_v62, %v4712_v57  ;;  %v5241_v62 = vand.u32 4294901760, %v5232_v60  ;;  %v5311_v57 = vand.u32 4294901760, %v25578_v39 }
 0x9a7   :  { %22242 = vmatprep.subr.bf16.mxu0 %v25494_v52 }
 0x9a8   :  { %v25590_v61 = vsub.f32 %v5232_v60, %v5241_v62  ;;  %v5312_v24 = vsub.f32 %v25578_v39, %v5311_v57  ;;  %v5375_v60 = vand.u32 4294901760, %v5374_v45 }
 0x9a9   :  { %20142 = vmatmul.mubr.f32.vlgmr.msra.gmra.mrb[20].mxu0 %v25513_v3  ;;  %v5211_v3 = vpop.permute.xlu1 %5210 }
 0x9aa   :  { %22244 = vmatpush3.bf16.msra.mxu0 %v25494_v52  ;;  %20144 = vmatprep.mubr.f32.mxu0 %v4676_v11  ;;  %v5226_v38 = vsel %vm2542_vm2, %v5211_v3, 0  ;;  %v5313_v25 = vand.u32 4294901760, %v5312_v24 }
 0x9ab   :  { %22246 = vmatprep.subr.bf16.mxu0 %v25505_v54  ;;  %v25606_v4 = vand.u32 4294901760, %v5226_v38 }
 0x9ad   :  { %20145 = vmatmul.mubr.f32.gmra.mrb[22].mxu0 %v4686_v20 }
 0x9ae   :  { %22248 = vmatpush3.bf16.msra.mxu0 %v25505_v54  ;;  %20155 = vmatprep.mubr.f32.mxu0 %v4657_v15  ;;  %v5213_v15 = vpop.permute.xlu0 %5212 }
 0x9af   :  { %22250 = vmatprep.subr.bf16.mxu0 %v22249_v35  ;;  %v5228_v2 = vsel %vm2542_vm2, %v5213_v15, 0 }
 0x9b0   :  { %v25611_v7 = vand.u32 4294901760, %v5228_v2 }
 0x9b1   :  { %20156 = vmatmul.mubr.f32.vlgmr.msra.gmra.mrb[20].mxu0 %v4667_v40  ;;  %v25585_v40 = vpack.c.bf16 %v5244_v47, %v5241_v62 }
 0x9b2   :  { %22252 = vmatpush3.bf16.msra.mxu0 %v22249_v35  ;;  %20158 = vmatprep.mubr.f32.mxu0 %v4677_v19 }
 0x9b3   :  { %22254 = vmatprep.subr.bf16.mxu0 %v22253_v43 }
 0x9b5   :  { %20159 = vmatmul.mubr.f32.gmra.mrb[22].mxu0 %v4687_v36  ;;  %v5320_v36 = vsub.f32 %v5226_v38, %v25606_v4 }
 0x9b6   :  { %22256 = vmatpush3.bf16.msra.mxu0 %v22253_v43  ;;  %20169 = vmatprep.mubr.f32.mxu0 %v25510_v27 }
 0x9b7   :  { %22258 = vmatprep.subr.bf16.mxu0 %v25494_v52  ;;  %v5321_v23 = vand.u32 4294901760, %v5320_v36 }
 0x9b9   :  { %20170 = vmatmul.mubr.f32.vlgmr.msra.gmra.mrb[20].mxu0 %v25498_v31  ;;  %v5322_v34 = vsub.f32 %v5320_v36, %v5321_v23 }
 0x9ba   :  { %22260 = vmatpush3.bf16.msra.mxu0 %v25494_v52  ;;  %20172 = vmatprep.mubr.f32.mxu0 %v25543_v51  ;;  %v5236_v52 = vsel %vm2542_vm2, %v5221_v1, 0 }
 0x9bb   :  { %22262 = vmatprep.subr.bf16.mxu0 %v25505_v54  ;;  %v5247_v41 = vand.u32 4294901760, %v5236_v52  ;;  %v5323_v10 = vand.u32 4294901760, %v5322_v34 }
 0x9bd   :  { %20173 = vmatmul.mubr.f32.gmra.mrb[22].mxu0 %v25541_v22  ;;  %v5365_v20 = vsub.f32 %v5236_v52, %v5247_v41  ;;  %v22281_v52 = vpack.c.bf16 %v25588_v50, %v25590_v61 }
 0x9be   :  { %22264 = vmatpush3.bf16.msra.mxu0 %v25505_v54  ;;  %20183 = vmatprep.mubr.f32.mxu0 %v25510_v27  ;;  %v5352_v54 = vand.u32 4294901760, %v25590_v61  ;;  %v5215_v27 = vpop.permute.xlu1 %5214 }
 0x9bf   :  { %22266 = vmatprep.subr.bf16.mxu0 %v25585_v40  ;;  %v5230_v55 = vsel %vm2542_vm2, %v5215_v27, 0  ;;  %v5366_v58 = vand.u32 4294901760, %v5365_v20  ;;  %v22285_v15 = vpack.c.bf16 %v25608_v13, %v5365_v20 }
 0x9c0   :  { %v5353_v11 = vsub.f32 %v25590_v61, %v5352_v54  ;;  %v25624_v19 = vand.u32 4294901760, %v5230_v55  ;;  %v22297_v24 = vpack.c.bf16 %v5359_v6, %v5352_v54  ;;  %v18289_v54 = vld [vmem:[%s27782_s6 + $0x40] sm:$0xff] }
 0x9c1   :  { %20184 = vmatmul.mubr.f32.vlgmr.msra.gmra.mrb[20].mxu0 %v25498_v31  ;;  %v25614_v31 = vpack.c.bf16 %v5250_v5, %v5247_v41  ;;  %v5367_v35 = vsub.f32 %v5365_v20, %v5366_v58  ;;  %v22301_v5 = vpack.c.bf16 %v5373_v63, %v5366_v58 }
 0x9c2   :  { %20186 = vmatprep.mubr.f32.mxu0 %v25543_v51  ;;  %v5360_v51 = vsub.f32 %v25588_v50, %v5359_v6  ;;  %v5354_v12 = vand.u32 4294901760, %v5353_v11  ;;  %v5340_v42 = vsub.f32 %v5230_v55, %v25624_v19 }
 0x9c3   :  { %v5368_v59 = vand.u32 4294901760, %v5367_v35 }
 0x9c4   :  { %v5361_v48 = vand.u32 4294901760, %v5360_v51  ;;  %v5341_v49 = vand.u32 4294901760, %v5340_v42  ;;  %v18291_v51 = vld [vmem:[%s27782_s6 + $0x50] sm:$0xff] }
 0x9c5   :  { %20187 = vmatmul.mubr.f32.gmra.mrb[22].mxu0 %v25541_v22  ;;  %v5330_v22 = vsub.f32 %v5228_v2, %v25611_v7  ;;  %v22277_v3 = vpack.c.bf16 %v5375_v60, %v5368_v59 }
 0x9c6   :  { %20197 = vmatprep.mubr.f32.mxu0 %v5313_v25  ;;  %v22273_v1 = vpack.c.bf16 %v5361_v48, %v5354_v12  ;;  %v5342_v47 = vsub.f32 %v5340_v42, %v5341_v49  ;;  %v18292_v25 = vld [vmem:[%s27782_s6 + $0x58] sm:$0xff] }
 0x9c7   :  { %22268 = vmatpush3.bf16.xpose.msra.mxu0 %v25585_v40  ;;  %v5331_v28 = vand.u32 4294901760, %v5330_v22 }
 0x9c8   :  { %22270 = vmatprep.subr.bf16.mxu0 %v25614_v31  ;;  %v5343_v44 = vand.u32 4294901760, %v5342_v47 }
 0x9c9   :  { %v5332_v43 = vsub.f32 %v5330_v22, %v5331_v28 }
 0x9cb   :  { %v5333_v62 = vand.u32 4294901760, %v5332_v43 }
 0x9cf   :  { %22272 = vmatpush3.bf16.xpose.msra.mxu0 %v25614_v31 }
 0x9d0   :  { %22274 = vmatprep.subr.bf16.mxu0 %v22273_v1 }
 0x9d6   :  { %20198 = vmatmul.mubr.f32.vlgmr.msra.gmra.mrb[24].mxu0 %v5323_v10 }
 0x9d7   :  { %20200 = vmatprep.mubr.f32.mxu0 %v5333_v62  ;;  %22276 = vmatpush3.bf16.xpose.msra.mxu0 %v22273_v1 }
 0x9d8   :  { %22278 = vmatprep.subr.bf16.mxu0 %v22277_v3 }
 0x9da   :  { %20201 = vmatmul.mubr.f32.gmra.mrb[26].mxu0 %v5343_v44 }
 0x9db   :  { %20211 = vmatprep.mubr.f32.mxu0 %v25571_v21 }
 0x9df   :  { %22280 = vmatpush3.bf16.xpose.msra.mxu0 %v22277_v3 }
 0x9e0   :  { %22282 = vmatprep.subr.bf16.mxu0 %v22281_v52 }
 0x9e6   :  { %20212 = vmatmul.mubr.f32.vlgmr.msra.gmra.mrb[24].mxu0 %v25606_v4 }
 0x9e7   :  { %20214 = vmatprep.mubr.f32.mxu0 %v25611_v7  ;;  %22284 = vmatpush3.bf16.xpose.msra.mxu0 %v22281_v52 }
 0x9e8   :  { %22286 = vmatprep.subr.bf16.mxu0 %v22285_v15 }
 0x9ea   :  { %20215 = vmatmul.mubr.f32.gmra.mrb[26].mxu0 %v25624_v19 }
 0x9eb   :  { %20225 = vmatprep.mubr.f32.mxu0 %v25578_v39 }
 0x9ef   :  { %22288 = vmatpush3.bf16.xpose.msra.mxu0 %v22285_v15 }
 0x9f0   :  { %22290 = vmatprep.subr.bf16.mxu0 %v25585_v40 }
 0x9f6   :  { %20226 = vmatmul.mubr.f32.vlgmr.msra.gmra.mrb[24].mxu0 %v5320_v36 }
 0x9f7   :  { %20228 = vmatprep.mubr.f32.mxu0 %v5330_v22  ;;  %22292 = vmatpush3.bf16.xpose.msra.mxu0 %v25585_v40 }
 0x9f8   :  { %22294 = vmatprep.subr.bf16.mxu0 %v25614_v31 }
 0x9fa   :  { %20229 = vmatmul.mubr.f32.gmra.mrb[26].mxu0 %v5340_v42 }
 0x9fb   :  { %20239 = vmatprep.mubr.f32.mxu0 %v5311_v57 }
 0x9ff   :  { %22296 = vmatpush3.bf16.xpose.msra.mxu0 %v25614_v31 }
 0xa00   :  { %22298 = vmatprep.subr.bf16.mxu0 %v22297_v24 }
 0xa06   :  { %20240 = vmatmul.mubr.f32.vlgmr.msra.gmra.mrb[24].mxu0 %v5321_v23 }
 0xa07   :  { %20242 = vmatprep.mubr.f32.mxu0 %v5331_v28  ;;  %22300 = vmatpush3.bf16.xpose.msra.mxu0 %v22297_v24 }
 0xa08   :  { %22302 = vmatprep.subr.bf16.mxu0 %v22301_v5 }
 0xa0a   :  { %20243 = vmatmul.mubr.f32.gmra.mrb[26].mxu0 %v5341_v49 }
 0xa0b   :  { %20253 = vmatprep.mubr.f32.mxu0 %v25571_v21 }
 0xa0f   :  { %22304 = vmatpush3.bf16.xpose.msra.mxu0 %v22301_v5 }
 0xa10   :  { %22306 = vmatprep.subr.bf16.mxu0 %v25585_v40 }
 0xa16   :  { %20254 = vmatmul.mubr.f32.vlgmr.msra.gmra.mrb[24].mxu0 %v25606_v4 }
 0xa17   :  { %20256 = vmatprep.mubr.f32.mxu0 %v25611_v7  ;;  %22308 = vmatpush3.bf16.xpose.msra.mxu0 %v25585_v40 }
 0xa18   :  { %22310 = vmatprep.subr.bf16.mxu0 %v25614_v31 }
 0xa1a   :  { %20257 = vmatmul.mubr.f32.gmra.mrb[26].mxu0 %v25624_v19 }
 0xa1b   :  { %20267 = vmatprep.mubr.f32.mxu0 %v25571_v21  ;;  %v18290_v21 = vld [vmem:[%s27782_s6 + $0x48] sm:$0xff] }
 0xa1f   :  { %22312 = vmatpush3.bf16.xpose.msra.mxu0 %v25614_v31 }
 0xa26   :  { %20268 = vmatmul.mubr.f32.vlgmr.msra.gmra.mrb[24].mxu0 %v25606_v4 }
 0xa27   :  { %20270 = vmatprep.mubr.f32.mxu0 %v25611_v7 }
 0xa2a   :  { %20271 = vmatmul.mubr.f32.gmra.mrb[26].mxu0 %v25624_v19 }
 0xa94   :  { %v25662_v39 = vpop.f32.mrb[20].mxu0 }
 0xa95   :  { %28016 = vst [vmem:[#allocation31_spill] sm:$0xff] %v25662_v39  ;;  %v25664_v57 = vpop.f32.mrb[21].mxu0 }
 0xa96   :  { %28017 = vst [vmem:[#allocation30_spill] sm:$0xff] %v25664_v57 }
 0xa98   :  { %v25666_v50 = vpop.f32.mrb[22].mxu0 }
 0xa99   :  { %28018 = vst [vmem:[#allocation33_spill] sm:$0xff] %v25666_v50  ;;  %v25668_v40 = vpop.f32.mrb[23].mxu0 }
 0xa9a   :  { %28019 = vst [vmem:[#allocation32_spill] sm:$0xff] %v25668_v40 }
 0xaf9   :  { %v20269_v61 = vpop.f32.mrb[24].mxu0 }
 0xafa   :  { %v5855_v38 = vmul.f32 0.5, %v20269_v61  ;;  %v5832_v6 = vpop.f32.mrb[25].mxu0 }
 0xafb   :  { %v5854_v41 = vmul.f32 0.5, %v5832_v6 }
 0xafc   :  { %v5864_v27 = vadd.f32 %v18290_v21, %v5855_v38 }
 0xafd   :  { %v20272_v2 = vpop.f32.mrb[26].mxu0  ;;  %v5863_v4 = vadd.f32 %v18289_v54, %v5854_v41 }
 0xafe   :  { %v5857_v13 = vmul.f32 0.5, %v20272_v2  ;;  %v5844_v55 = vpop.f32.mrb[27].mxu0  ;;  %v5870_v7 = vsel %vm1819_vm1, %v5864_v27, -inf }
 0xaff   :  { %v5856_v31 = vmul.f32 0.5, %v5844_v55  ;;  %5871 = vmax.xlane.f32.xlu1 %v5870_v7  ;;  %v5867_v20 = vsel %vm1819_vm1, %v5863_v4, -inf }
 0xb00   :  { %5868 = vmax.xlane.f32.xlu0 %v5867_v20  ;;  %v5866_v11 = vadd.f32 %v18292_v25, %v5857_v13 }
 0xb01   :  { %v5865_v19 = vadd.f32 %v18291_v51, %v5856_v31 }
 0xb02   :  { %v5876_v36 = vsel %vm1819_vm1, %v5866_v11, -inf }
 0xb03   :  { %v5873_v22 = vsel %vm1819_vm1, %v5865_v19, -inf }
 0xb04   :  { %5877 = vmax.xlane.f32.xlu0 %v5876_v36 }
 0xb08   :  { %5874 = vmax.xlane.f32.xlu0 %v5873_v22 }
 0xb10   :  { %5905 = vrot.lane.b32.xlu1 %v25149_v32, %s24075_s2 }
 0xb14   :  { %5907 = vrot.lane.b32.xlu1 %v25161_v8, %s24075_s2 }
 0xb18   :  { %5909 = vrot.lane.b32.xlu1 %v25169_v37, %s24075_s2 }
 0xb1c   :  { %6559 = vrot.lane.b32.xlu1 %v25149_v32, %s24076_s12 }
 0xb1e   :  { %5903 = vrot.lane.b32.xlu0 %v25151_v30, %s24075_s2  ;;  %s24085_s2 = smov 72  }
 0xb20   :  { %6563 = vrot.lane.b32.xlu1 %v25169_v37, %s24076_s12 }
 0xb22   :  { %6557 = vrot.lane.b32.xlu0 %v25151_v30, %s24076_s12 }
 0xb24   :  { %6551 = vrot.lane.b32.xlu1 %v25149_v32, %s24077_s30 }
 0xb26   :  { %6561 = vrot.lane.b32.xlu0 %v25161_v8, %s24076_s12  ;;  %s24086_s12 = smov 104  }
 0xb28   :  { %6555 = vrot.lane.b32.xlu1 %v25169_v37, %s24077_s30 }
 0xb2a   :  { %6549 = vrot.lane.b32.xlu0 %v25151_v30, %s24077_s30 }
 0xb2e   :  { %6553 = vrot.lane.b32.xlu0 %v25161_v8, %s24077_s30 }
 0xb8c   :  { %v5872_v63 = vpop.xlane.xlu1 %5871 }
 0xb8d   :  { %v5880_v58 = vsub.f32 %v5864_v27, %v5872_v63  ;;  %v5869_v12 = vpop.xlane.xlu0 %5868 }
 0xb8e   :  { %v5879_v48 = vsub.f32 %v5863_v4, %v5869_v12 }
 0xb8f   :  { %v5885_v23 = vmul.f32 1.442695, %v5880_v58 }
 0xb90   :  { %v5883_v42 = vmul.f32 1.442695, %v5879_v48  ;;  %v5906_v28 = vpop.permute.xlu1 %5905 }
 0xb91   :  { %23844 = vpow2.f32 %v5885_v23  ;;  %v5931_v1 = vand.u32 4294901760, %v5906_v28  ;;  %v5878_v35 = vpop.xlane.xlu0 %5877 }
 0xb92   :  { %23846 = vpow2.f32 %v5883_v42  ;;  %v5882_v45 = vsub.f32 %v5866_v11, %v5878_v35 }
 0xb93   :  { %v25698_v43 = vsub.f32 %v5906_v28, %v5931_v1 }
 0xb94   :  { %v5889_v34 = vmul.f32 1.442695, %v5882_v45  ;;  %v5908_v49 = vpop.permute.xlu1 %5907 }
 0xb95   :  { %v5875_v59 = vpop.xlane.xlu0 %5874  ;;  %v5934_v10 = vand.u32 4294901760, %v5908_v49  ;;  %v6046_v3 = vand.u32 4294901760, %v25698_v43 }
 0xb96   :  { %v5881_v60 = vsub.f32 %v5865_v19, %v5875_v59  ;;  %23848 = vpow2.f32 %v5889_v34 }
 0xb97   :  { %v25709_v38 = vsub.f32 %v5908_v49, %v5934_v10  ;;  %v6047_v27 = vsub.f32 %v25698_v43, %v6046_v3 }
 0xb98   :  { %v5887_v47 = vmul.f32 1.442695, %v5881_v60  ;;  %v5910_v62 = vpop.permute.xlu1 %5909 }
 0xb99   :  { %v5937_v44 = vand.u32 4294901760, %v5910_v62  ;;  %v5904_v52 = vpop.permute.xlu0 %5903  ;;  %v6053_v31 = vand.u32 4294901760, %v25709_v38  ;;  %v6048_v22 = vand.u32 4294901760, %v6047_v27 }
 0xb9a   :  { %v5928_v15 = vand.u32 4294901760, %v5904_v52  ;;  %23850 = vpow2.f32 %v5887_v47 }
 0xb9b   :  { %v25701_v24 = vpop.eup %23844  ;;  %v25703_v5 = vsub.f32 %v5910_v62, %v5937_v44  ;;  %v25722_v4 = vpack.c.bf16 %v5937_v44, %v5934_v10  ;;  %v6054_v23 = vsub.f32 %v25709_v38, %v6053_v31 }
 0xb9c   :  { %v25705_v61 = vpop.eup %23846  ;;  %v5919_v21 = vsel %vm1819_vm1, %v25701_v24, 0  ;;  %v25711_v6 = vpack.c.bf16 %v5931_v1, %v5928_v15  ;;  %v25713_v54 = vsub.f32 %v5904_v52, %v5928_v15 }
 0xb9d   :  { %v25715_v41 = vand.u32 4294901760, %v5919_v21  ;;  %v5916_v2 = vsel %vm1819_vm1, %v25705_v61, 0  ;;  %v6060_v25 = vand.u32 4294901760, %v25703_v5  ;;  %v6055_v49 = vand.u32 4294901760, %v6054_v23 }
 0xb9e   :  { %v6039_v13 = vand.u32 4294901760, %v25713_v54  ;;  %22314 = vmatprep.subr.bf16.mxu1 %v25711_v6  ;;  %v25727_v55 = vand.u32 4294901760, %v5916_v2 }
 0xb9f   :  { %v25730_v7 = vsub.f32 %v5919_v21, %v25715_v41  ;;  %22316 = vmatpush3.bf16.msra.mxu1 %v25711_v6  ;;  %v6061_v63 = vsub.f32 %v25703_v5, %v6060_v25  ;;  %v22329_v21 = vpack.c.bf16 %v25698_v43, %v25713_v54 }
 0xba0   :  { %22318 = vmatprep.subr.bf16.mxu1 %v25722_v4  ;;  %v6040_v20 = vsub.f32 %v25713_v54, %v6039_v13  ;;  %v5997_v11 = vsub.f32 %v5916_v2, %v25727_v55  ;;  %v25740_v36 = vpop.eup %23848 }
 0xba1   :  { %v6008_v51 = vand.u32 4294901760, %v25730_v7  ;;  %v5925_v1 = vsel %vm1819_vm1, %v25740_v36, 0  ;;  %v6062_v35 = vand.u32 4294901760, %v6061_v63  ;;  %v6558_v63 = vpop.permute.xlu0 %6557 }
 0xba2   :  { %v6041_v19 = vand.u32 4294901760, %v6040_v20  ;;  %v5998_v58 = vand.u32 4294901760, %v5997_v11  ;;  %v25758_v60 = vand.u32 4294901760, %v5925_v1  ;;  %v6573_v54 = vsel %vm2542_vm2, %v6558_v63, 0 }
 0xba3   :  { %22320 = vmatpush3.bf16.msra.mxu1 %v25722_v4  ;;  %v6009_v48 = vsub.f32 %v25730_v7, %v6008_v51  ;;  %v22325_v47 = vpack.c.bf16 %v6062_v35, %v6055_v49 }
 0xba4   :  { %v22321_v12 = vpack.c.bf16 %v6048_v22, %v6041_v19  ;;  %v25752_v42 = vpop.eup %23850  ;;  %v5999_v28 = vsub.f32 %v5997_v11, %v5998_v58  ;;  %v6027_v62 = vsub.f32 %v5925_v1, %v25758_v60  ;;  %v22333_v22 = vpack.c.bf16 %v25703_v5, %v25709_v38 }
 0xba5   :  { %v6010_v34 = vand.u32 4294901760, %v6009_v48  ;;  %v5922_v59 = vsel %vm1819_vm1, %v25752_v42, 0  ;;  %v22345_v48 = vpack.c.bf16 %v6046_v3, %v6039_v13  ;;  %v22349_v1 = vpack.c.bf16 %v6060_v25, %v6053_v31 }
 0xba6   :  { %22322 = vmatprep.subr.bf16.mxu1 %v22321_v12  ;;  %v6000_v45 = vand.u32 4294901760, %v5999_v28  ;;  %v25760_v10 = vand.u32 4294901760, %v5922_v59  ;;  %v6028_v52 = vand.u32 4294901760, %v6027_v62  ;;  %v6582_v25 = vand.u32 4294901760, %v6573_v54 }
 0xba8   :  { %20281 = vmatprep.mubr.f32.mxu1 %v6000_v45  ;;  %v6017_v44 = vsub.f32 %v5922_v59, %v25760_v10  ;;  %v6029_v27 = vsub.f32 %v6027_v62, %v6028_v52  ;;  %v25807_v35 = vsub.f32 %v6573_v54, %v6582_v25 }
 0xba9   :  { %20282 = vmatmul.mubr.f32.vlgmr.msra.gmra.mrb[52].mxu1 %v6010_v34 }
 0xbaa   :  { %22324 = vmatpush3.bf16.msra.mxu1 %v22321_v12  ;;  %v6018_v15 = vand.u32 4294901760, %v6017_v44  ;;  %v6030_v19 = vand.u32 4294901760, %v6029_v27  ;;  %v6562_v12 = vpop.permute.xlu0 %6561 }
 0xbab   :  { %22326 = vmatprep.subr.bf16.mxu1 %v22325_v47 }
 0xbac   :  { %v6019_v2 = vsub.f32 %v6017_v44, %v6018_v15 }
 0xbae   :  { %22328 = vmatpush3.bf16.msra.mxu1 %v22325_v47  ;;  %v6020_v20 = vand.u32 4294901760, %v6019_v2  ;;  %v6550_v23 = vpop.permute.xlu0 %6549 }
 0xbaf   :  { %22330 = vmatprep.subr.bf16.mxu1 %v22329_v21  ;;  %v6565_v28 = vsel %vm2542_vm2, %v6550_v23, 0 }
 0xbb0   :  { %20284 = vmatprep.mubr.f32.mxu1 %v6020_v20  ;;  %v25788_v43 = vand.u32 4294901760, %v6565_v28 }
 0xbb1   :  { %20285 = vmatmul.mubr.f32.gmra.mrb[54].mxu1 %v6030_v19 }
 0xbb2   :  { %20295 = vmatprep.mubr.f32.mxu1 %v25727_v55  ;;  %v25795_v38 = vsub.f32 %v6565_v28, %v25788_v43  ;;  %v6554_v34 = vpop.permute.xlu0 %6553 }
 0xbb4   :  { %v6652_v31 = vand.u32 4294901760, %v25795_v38 }
 0xbb5   :  { %20296 = vmatmul.mubr.f32.vlgmr.msra.gmra.mrb[52].mxu1 %v25715_v41 }
 0xbb6   :  { %22332 = vmatpush3.bf16.msra.mxu1 %v22329_v21  ;;  %20298 = vmatprep.mubr.f32.mxu1 %v25760_v10  ;;  %v6653_v49 = vsub.f32 %v25795_v38, %v6652_v31 }
 0xbb7   :  { %22334 = vmatprep.subr.bf16.mxu1 %v22333_v22 }
 0xbb8   :  { %v6654_v21 = vand.u32 4294901760, %v6653_v49 }
 0xbb9   :  { %20299 = vmatmul.mubr.f32.gmra.mrb[54].mxu1 %v25758_v60 }
 0xbba   :  { %22336 = vmatpush3.bf16.msra.mxu1 %v22333_v22  ;;  %20309 = vmatprep.mubr.f32.mxu1 %v5997_v11  ;;  %v6560_v11 = vpop.permute.xlu1 %6559 }
 0xbbb   :  { %22338 = vmatprep.subr.bf16.mxu1 %v25711_v6  ;;  %v6575_v3 = vsel %vm2542_vm2, %v6560_v11, 0 }
 0xbbc   :  { %v6585_v5 = vand.u32 4294901760, %v6575_v3 }
 0xbbd   :  { %20310 = vmatmul.mubr.f32.vlgmr.msra.gmra.mrb[52].mxu1 %v25730_v7 }
 0xbbe   :  { %22340 = vmatpush3.bf16.msra.mxu1 %v25711_v6  ;;  %20312 = vmatprep.mubr.f32.mxu1 %v6017_v44  ;;  %v6564_v13 = vpop.permute.xlu1 %6563 }
 0xbbf   :  { %22342 = vmatprep.subr.bf16.mxu1 %v25722_v4  ;;  %v6579_v45 = vsel %vm2542_vm2, %v6564_v13, 0 }
 0xbc0   :  { %v6591_v59 = vand.u32 4294901760, %v6579_v45 }
 0xbc1   :  { %20313 = vmatmul.mubr.f32.gmra.mrb[54].mxu1 %v6027_v62 }
 0xbc2   :  { %22344 = vmatpush3.bf16.msra.mxu1 %v25722_v4  ;;  %20323 = vmatprep.mubr.f32.mxu1 %v5998_v58  ;;  %v6552_v7 = vpop.permute.xlu1 %6551  ;;  %v25805_v58 = vsub.f32 %v6575_v3, %v6585_v5  ;;  %v25825_v27 = vsub.f32 %v6579_v45, %v6591_v59 }
 0xbc3   :  { %22346 = vmatprep.subr.bf16.mxu1 %v22345_v48  ;;  %v6567_v47 = vsel %vm2542_vm2, %v6552_v7, 0 }
 0xbc4   :  { %v6700_v62 = vand.u32 4294901760, %v25805_v58 }
 0xbc5   :  { %20324 = vmatmul.mubr.f32.vlgmr.msra.gmra.mrb[52].mxu1 %v6008_v51  ;;  %v25802_v51 = vpack.c.bf16 %v6585_v5, %v6582_v25 }
 0xbc6   :  { %22348 = vmatpush3.bf16.msra.mxu1 %v22345_v48  ;;  %20326 = vmatprep.mubr.f32.mxu1 %v6018_v15  ;;  %v25823_v15 = vand.u32 4294901760, %v6567_v47  ;;  %v6714_v48 = vand.u32 4294901760, %v25825_v27 }
 0xbc7   :  { %22350 = vmatprep.subr.bf16.mxu1 %v22349_v1 }
 0xbc8   :  { %v6661_v63 = vsub.f32 %v6567_v47, %v25823_v15  ;;  %v6715_v25 = vsub.f32 %v25825_v27, %v6714_v48 }
 0xbc9   :  { %20327 = vmatmul.mubr.f32.gmra.mrb[54].mxu1 %v6028_v52  ;;  %v6569_v52 = vsel %vm2542_vm2, %v6554_v34, 0 }
 0xbca   :  { %22352 = vmatpush3.bf16.msra.mxu1 %v22349_v1  ;;  %20337 = vmatprep.mubr.f32.mxu1 %v25727_v55  ;;  %v25828_v20 = vand.u32 4294901760, %v6569_v52  ;;  %v6662_v1 = vand.u32 4294901760, %v6661_v63  ;;  %v6716_v49 = vand.u32 4294901760, %v6715_v25 }
 0xbcb   :  { %22354 = vmatprep.subr.bf16.mxu1 %v25711_v6 }
 0xbcc   :  { %v6663_v7 = vsub.f32 %v6661_v63, %v6662_v1 }
 0xbcd   :  { %20338 = vmatmul.mubr.f32.vlgmr.msra.gmra.mrb[52].mxu1 %v25715_v41 }
 0xbce   :  { %22356 = vmatpush3.bf16.msra.mxu1 %v25711_v6  ;;  %20340 = vmatprep.mubr.f32.mxu1 %v25760_v10  ;;  %v6577_v6 = vsel %vm2542_vm2, %v6562_v12, 0 }
 0xbcf   :  { %22358 = vmatprep.subr.bf16.mxu1 %v25722_v4  ;;  %v6588_v44 = vand.u32 4294901760, %v6577_v6 }
 0xbd1   :  { %20341 = vmatmul.mubr.f32.gmra.mrb[54].mxu1 %v25758_v60  ;;  %v6706_v19 = vsub.f32 %v6577_v6, %v6588_v44 }
 0xbd2   :  { %22360 = vmatpush3.bf16.msra.mxu1 %v25722_v4  ;;  %20351 = vmatprep.mubr.f32.mxu1 %v25727_v55  ;;  %v6693_v4 = vand.u32 4294901760, %v25807_v35  ;;  %v6556_v55 = vpop.permute.xlu1 %6555 }
 0xbd3   :  { %22362 = vmatprep.subr.bf16.mxu1 %v25802_v51  ;;  %v6571_v2 = vsel %vm2542_vm2, %v6556_v55, 0  ;;  %v6707_v23 = vand.u32 4294901760, %v6706_v19 }
 0xbd4   :  { %v6694_v22 = vsub.f32 %v25807_v35, %v6693_v4  ;;  %v25841_v12 = vand.u32 4294901760, %v6571_v2 }
 0xbd5   :  { %20352 = vmatmul.mubr.f32.vlgmr.msra.gmra.mrb[52].mxu1 %v25715_v41  ;;  %v25831_v41 = vpack.c.bf16 %v6591_v59, %v6588_v44  ;;  %v6708_v5 = vsub.f32 %v6706_v19, %v6707_v23  ;;  %v6664_v59 = vand.u32 4294901760, %v6663_v7 }
 0xbd6   :  { %20354 = vmatprep.mubr.f32.mxu1 %v25760_v10  ;;  %v6701_v10 = vsub.f32 %v25805_v58, %v6700_v62  ;;  %v6695_v11 = vand.u32 4294901760, %v6694_v22  ;;  %v6681_v3 = vsub.f32 %v6571_v2, %v25841_v12  ;;  %v22381_v2 = vpack.c.bf16 %v25825_v27, %v6706_v19 }
 0xbd7   :  { %v6709_v34 = vand.u32 4294901760, %v6708_v5  ;;  %v22393_v27 = vpack.c.bf16 %v6700_v62, %v6693_v4  ;;  %v22397_v19 = vpack.c.bf16 %v6714_v48, %v6707_v23 }
 0xbd8   :  { %v6702_v28 = vand.u32 4294901760, %v6701_v10  ;;  %v6682_v45 = vand.u32 4294901760, %v6681_v3 }
 0xbd9   :  { %20355 = vmatmul.mubr.f32.gmra.mrb[54].mxu1 %v25758_v60  ;;  %v6671_v60 = vsub.f32 %v6569_v52, %v25828_v20  ;;  %v22373_v55 = vpack.c.bf16 %v6716_v49, %v6709_v34 }
 0xbda   :  { %20365 = vmatprep.mubr.f32.mxu1 %v6654_v21  ;;  %v22369_v13 = vpack.c.bf16 %v6702_v28, %v6695_v11  ;;  %v6683_v47 = vsub.f32 %v6681_v3, %v6682_v45  ;;  %v22377_v21 = vpack.c.bf16 %v25805_v58, %v25807_v35 }
 0xbdb   :  { %22364 = vmatpush3.bf16.xpose.msra.mxu1 %v25802_v51  ;;  %v6672_v54 = vand.u32 4294901760, %v6671_v60 }
 0xbdc   :  { %22366 = vmatprep.subr.bf16.mxu1 %v25831_v41  ;;  %v6684_v52 = vand.u32 4294901760, %v6683_v47 }
 0xbdd   :  { %v6673_v6 = vsub.f32 %v6671_v60, %v6672_v54 }
 0xbdf   :  { %v6674_v44 = vand.u32 4294901760, %v6673_v6 }
 0xbe3   :  { %22368 = vmatpush3.bf16.xpose.msra.mxu1 %v25831_v41 }
 0xbe4   :  { %22370 = vmatprep.subr.bf16.mxu1 %v22369_v13 }
 0xbea   :  { %20366 = vmatmul.mubr.f32.vlgmr.msra.gmra.mrb[56].mxu1 %v6664_v59 }
 0xbeb   :  { %20368 = vmatprep.mubr.f32.mxu1 %v6674_v44  ;;  %22372 = vmatpush3.bf16.xpose.msra.mxu1 %v22369_v13 }
 0xbec   :  { %22374 = vmatprep.subr.bf16.mxu1 %v22373_v55 }
 0xbee   :  { %20369 = vmatmul.mubr.f32.gmra.mrb[58].mxu1 %v6684_v52 }
 0xbef   :  { %20379 = vmatprep.mubr.f32.mxu1 %v25788_v43 }
 0xbf3   :  { %22376 = vmatpush3.bf16.xpose.msra.mxu1 %v22373_v55 }
 0xbf4   :  { %22378 = vmatprep.subr.bf16.mxu1 %v22377_v21 }
 0xbfa   :  { %20380 = vmatmul.mubr.f32.vlgmr.msra.gmra.mrb[56].mxu1 %v25823_v15 }
 0xbfb   :  { %20382 = vmatprep.mubr.f32.mxu1 %v25828_v20  ;;  %22380 = vmatpush3.bf16.xpose.msra.mxu1 %v22377_v21 }
 0xbfc   :  { %22382 = vmatprep.subr.bf16.mxu1 %v22381_v2 }
 0xbfe   :  { %20383 = vmatmul.mubr.f32.gmra.mrb[58].mxu1 %v25841_v12 }
 0xbff   :  { %20393 = vmatprep.mubr.f32.mxu1 %v25795_v38 }
 0xc03   :  { %22384 = vmatpush3.bf16.xpose.msra.mxu1 %v22381_v2 }
 0xc04   :  { %22386 = vmatprep.subr.bf16.mxu1 %v25802_v51 }
 0xc0a   :  { %20394 = vmatmul.mubr.f32.vlgmr.msra.gmra.mrb[56].mxu1 %v6661_v63  ;;  %v18296_v63 = vld [vmem:[%s27782_s6 + $0x78] sm:$0xff] }
 0xc0b   :  { %20396 = vmatprep.mubr.f32.mxu1 %v6671_v60  ;;  %22388 = vmatpush3.bf16.xpose.msra.mxu1 %v25802_v51 }
 0xc0c   :  { %22390 = vmatprep.subr.bf16.mxu1 %v25831_v41 }
 0xc0e   :  { %20397 = vmatmul.mubr.f32.gmra.mrb[58].mxu1 %v6681_v3 }
 0xc0f   :  { %20407 = vmatprep.mubr.f32.mxu1 %v6652_v31 }
 0xc13   :  { %22392 = vmatpush3.bf16.xpose.msra.mxu1 %v25831_v41 }
 0xc14   :  { %22394 = vmatprep.subr.bf16.mxu1 %v22393_v27 }
 0xc1a   :  { %20408 = vmatmul.mubr.f32.vlgmr.msra.gmra.mrb[56].mxu1 %v6662_v1  ;;  %v18295_v1 = vld [vmem:[%s27782_s6 + $0x70] sm:$0xff] }
 0xc1b   :  { %20410 = vmatprep.mubr.f32.mxu1 %v6672_v54  ;;  %22396 = vmatpush3.bf16.xpose.msra.mxu1 %v22393_v27 }
 0xc1c   :  { %22398 = vmatprep.subr.bf16.mxu1 %v22397_v19 }
 0xc1e   :  { %20411 = vmatmul.mubr.f32.gmra.mrb[58].mxu1 %v6682_v45 }
 0xc1f   :  { %20421 = vmatprep.mubr.f32.mxu1 %v25788_v43 }
 0xc23   :  { %22400 = vmatpush3.bf16.xpose.msra.mxu1 %v22397_v19 }
 0xc24   :  { %22402 = vmatprep.subr.bf16.mxu1 %v25802_v51 }
 0xc2a   :  { %20422 = vmatmul.mubr.f32.vlgmr.msra.gmra.mrb[56].mxu1 %v25823_v15 }
 0xc2b   :  { %20424 = vmatprep.mubr.f32.mxu1 %v25828_v20  ;;  %22404 = vmatpush3.bf16.xpose.msra.mxu1 %v25802_v51 }
 0xc2c   :  { %22406 = vmatprep.subr.bf16.mxu1 %v25831_v41 }
 0xc2e   :  { %20425 = vmatmul.mubr.f32.gmra.mrb[58].mxu1 %v25841_v12 }
 0xc2f   :  { %20435 = vmatprep.mubr.f32.mxu1 %v25788_v43  ;;  %v18294_v43 = vld [vmem:[%s27782_s6 + $0x68] sm:$0xff] }
 0xc33   :  { %22408 = vmatpush3.bf16.xpose.msra.mxu1 %v25831_v41 }
 0xc3a   :  { %20436 = vmatmul.mubr.f32.vlgmr.msra.gmra.mrb[56].mxu1 %v25823_v15  ;;  %v18293_v15 = vld [vmem:[%s27782_s6 + $0x60] sm:$0xff] }
 0xc3b   :  { %20438 = vmatprep.mubr.f32.mxu1 %v25828_v20 }
 0xc3e   :  { %20439 = vmatmul.mubr.f32.gmra.mrb[58].mxu1 %v25841_v12 }
 0xca8   :  { %v25879_v38 = vpop.f32.mrb[52].mxu1 }
 0xca9   :  { %28020 = vst [vmem:[#allocation9_spill] sm:$0xff] %v25879_v38  ;;  %v25881_v31 = vpop.f32.mrb[53].mxu1 }
 0xcaa   :  { %28021 = vst [vmem:[#allocation35_spill] sm:$0xff] %v25881_v31 }
 0xcac   :  { %v25883_v58 = vpop.f32.mrb[54].mxu1 }
 0xcad   :  { %28022 = vst [vmem:[#allocation10_spill] sm:$0xff] %v25883_v58  ;;  %v25885_v51 = vpop.f32.mrb[55].mxu1 }
 0xcae   :  { %28023 = vst [vmem:[#allocation11_spill] sm:$0xff] %v25885_v51 }
 0xd0d   :  { %v20437_v35 = vpop.f32.mrb[56].mxu1 }
 0xd0e   :  { %v7196_v62 = vmul.f32 0.5, %v20437_v35  ;;  %v7173_v4 = vpop.f32.mrb[57].mxu1 }
 0xd0f   :  { %v7195_v20 = vmul.f32 0.5, %v7173_v4 }
 0xd10   :  { %v7205_v41 = vadd.f32 %v18294_v43, %v7196_v62 }
 0xd11   :  { %v20440_v22 = vpop.f32.mrb[58].mxu1  ;;  %v7204_v10 = vadd.f32 %v18293_v15, %v7195_v20 }
 0xd12   :  { %v7198_v12 = vmul.f32 0.5, %v20440_v22  ;;  %v7185_v60 = vpop.f32.mrb[59].mxu1  ;;  %v7211_v48 = vsel %vm1819_vm1, %v7205_v41, -inf }
 0xd13   :  { %v7197_v23 = vmul.f32 0.5, %v7185_v60  ;;  %7212 = vmax.xlane.f32.xlu1 %v7211_v48  ;;  %v7208_v11 = vsel %vm1819_vm1, %v7204_v10, -inf }
 0xd14   :  { %7209 = vmax.xlane.f32.xlu0 %v7208_v11  ;;  %v7207_v28 = vadd.f32 %v18296_v63, %v7198_v12 }
 0xd15   :  { %v7206_v54 = vadd.f32 %v18295_v1, %v7197_v23 }
 0xd16   :  { %v7217_v3 = vsel %vm1819_vm1, %v7207_v28, -inf }
 0xd17   :  { %v7214_v13 = vsel %vm1819_vm1, %v7206_v54, -inf }
 0xd18   :  { %7218 = vmax.xlane.f32.xlu0 %v7217_v3 }
 0xd1c   :  { %7215 = vmax.xlane.f32.xlu0 %v7214_v13 }
 0xd24   :  { %7246 = vrot.lane.b32.xlu1 %v25149_v32, %s24078_s25 }
 0xd28   :  { %7248 = vrot.lane.b32.xlu1 %v25161_v8, %s24078_s25 }
 0xd2c   :  { %7250 = vrot.lane.b32.xlu1 %v25169_v37, %s24078_s25 }
 0xd30   :  { %7900 = vrot.lane.b32.xlu1 %v25149_v32, %s24079_s26 }
 0xd32   :  { %7244 = vrot.lane.b32.xlu0 %v25151_v30, %s24078_s25  ;;  %s24088_s25 = smov 68  }
 0xd34   :  { %7904 = vrot.lane.b32.xlu1 %v25169_v37, %s24079_s26 }
 0xd36   :  { %7898 = vrot.lane.b32.xlu0 %v25151_v30, %s24079_s26 }
 0xd38   :  { %7892 = vrot.lane.b32.xlu1 %v25149_v32, %s24080_s1 }
 0xd3a   :  { %7902 = vrot.lane.b32.xlu0 %v25161_v8, %s24079_s26  ;;  %s24089_s26 = smov 100  }
 0xd3c   :  { %7896 = vrot.lane.b32.xlu1 %v25169_v37, %s24080_s1 }
 0xd3e   :  { %7890 = vrot.lane.b32.xlu0 %v25151_v30, %s24080_s1 }
 0xd42   :  { %7894 = vrot.lane.b32.xlu0 %v25161_v8, %s24080_s1 }
 0xda0   :  { %v7213_v5 = vpop.xlane.xlu1 %7212 }
 0xda1   :  { %v7221_v25 = vsub.f32 %v7205_v41, %v7213_v5  ;;  %v7210_v7 = vpop.xlane.xlu0 %7209 }
 0xda2   :  { %v7220_v45 = vsub.f32 %v7204_v10, %v7210_v7 }
 0xda3   :  { %v7226_v6 = vmul.f32 1.442695, %v7221_v25 }
 0xda4   :  { %v7224_v34 = vmul.f32 1.442695, %v7220_v45  ;;  %v7247_v49 = vpop.permute.xlu1 %7246 }
 0xda5   :  { %23852 = vpow2.f32 %v7226_v6  ;;  %v7272_v59 = vand.u32 4294901760, %v7247_v49  ;;  %v7219_v47 = vpop.xlane.xlu0 %7218 }
 0xda6   :  { %23854 = vpow2.f32 %v7224_v34  ;;  %v7223_v44 = vsub.f32 %v7207_v28, %v7219_v47 }
 0xda7   :  { %v25915_v21 = vsub.f32 %v7247_v49, %v7272_v59 }
 0xda8   :  { %v7230_v55 = vmul.f32 1.442695, %v7223_v44  ;;  %v7249_v52 = vpop.permute.xlu1 %7248 }
 0xda9   :  { %v7216_v2 = vpop.xlane.xlu0 %7215  ;;  %v7275_v19 = vand.u32 4294901760, %v7249_v52  ;;  %v7387_v62 = vand.u32 4294901760, %v25915_v21 }
 0xdaa   :  { %v7222_v27 = vsub.f32 %v7206_v54, %v7216_v2  ;;  %23856 = vpow2.f32 %v7230_v55 }
 0xdab   :  { %v25926_v12 = vsub.f32 %v7249_v52, %v7275_v19  ;;  %v7388_v11 = vsub.f32 %v25915_v21, %v7387_v62 }
 0xdac   :  { %v7228_v35 = vmul.f32 1.442695, %v7222_v27  ;;  %v7251_v43 = vpop.permute.xlu1 %7250 }
 0xdad   :  { %v7278_v4 = vand.u32 4294901760, %v7251_v43  ;;  %v7245_v15 = vpop.permute.xlu0 %7244  ;;  %v27873_v25 = vand.u32 4294901760, %v25926_v12 }
 0xdae   :  { %v7269_v20 = vand.u32 4294901760, %v7245_v15  ;;  %23858 = vpow2.f32 %v7228_v35 }
 0xdaf   :  { %v25918_v41 = vpop.eup %23852  ;;  %v25920_v22 = vsub.f32 %v7251_v43, %v7278_v4  ;;  %v25939_v1 = vpack.c.bf16 %v7278_v4, %v7275_v19  ;;  %v7395_v2 = vsub.f32 %v25926_v12, %v27873_v25 }
 0xdb0   :  { %v25922_v10 = vpop.eup %23854  ;;  %v7260_v63 = vsel %vm1819_vm1, %v25918_v41, 0  ;;  %v25928_v60 = vpack.c.bf16 %v7272_v59, %v7269_v20  ;;  %v25930_v48 = vsub.f32 %v7245_v15, %v7269_v20  ;;  %v7389_v59 = vand.u32 4294901760, %v7388_v11 }
 0xdb1   :  { %v25932_v23 = vand.u32 4294901760, %v7260_v63  ;;  %v7257_v28 = vsel %vm1819_vm1, %v25922_v10, 0  ;;  %v27872_v3 = vand.u32 4294901760, %v25920_v22  ;;  %v7396_v20 = vand.u32 4294901760, %v7395_v2 }
 0xdb2   :  { %v7380_v54 = vand.u32 4294901760, %v25930_v48  ;;  %22410 = vmatprep.subr.bf16.mxu0 %v25928_v60  ;;  %v25944_v13 = vand.u32 4294901760, %v7257_v28 }
 0xdb3   :  { %v25947_v5 = vsub.f32 %v7260_v63, %v25932_v23  ;;  %22412 = vmatpush3.bf16.msra.mxu0 %v25928_v60  ;;  %v7402_v47 = vsub.f32 %v25920_v22, %v27872_v3 }
 0xdb4   :  { %22414 = vmatprep.subr.bf16.mxu0 %v25939_v1  ;;  %v7381_v7 = vsub.f32 %v25930_v48, %v7380_v54  ;;  %v7338_v45 = vsub.f32 %v7257_v28, %v25944_v13  ;;  %v25957_v34 = vpop.eup %23856 }
 0xdb5   :  { %v7349_v6 = vand.u32 4294901760, %v25947_v5  ;;  %v7266_v35 = vsel %vm1819_vm1, %v25957_v34, 0  ;;  %v7403_v43 = vand.u32 4294901760, %v7402_v47 }
 0xdb6   :  { %v7382_v49 = vand.u32 4294901760, %v7381_v7  ;;  %v7339_v44 = vand.u32 4294901760, %v7338_v45  ;;  %v25975_v11 = vand.u32 4294901760, %v7266_v35 }
 0xdb7   :  { %22416 = vmatpush3.bf16.msra.mxu0 %v25939_v1  ;;  %v7350_v52 = vsub.f32 %v25947_v5, %v7349_v6  ;;  %v22421_v7 = vpack.c.bf16 %v7403_v43, %v7396_v20  ;;  %v28024_v20 = vand.u32 4294901760, %v25926_v12 }
 0xdb8   :  { %v22417_v55 = vpack.c.bf16 %v7389_v59, %v7382_v49  ;;  %v25969_v27 = vpop.eup %23858  ;;  %v7340_v19 = vsub.f32 %v7338_v45, %v7339_v44  ;;  %v7368_v49 = vsub.f32 %v7266_v35, %v25975_v11  ;;  %v7899_v35 = vpop.permute.xlu0 %7898 }
 0xdb9   :  { %v7351_v15 = vand.u32 4294901760, %v7350_v52  ;;  %v7263_v63 = vsel %vm1819_vm1, %v25969_v27, 0  ;;  %v22425_v52 = vpack.c.bf16 %v25915_v21, %v25930_v48  ;;  %v7914_v48 = vsel %vm2542_vm2, %v7899_v35, 0 }
 0xdba   :  { %22418 = vmatprep.subr.bf16.mxu0 %v22417_v55  ;;  %v7341_v4 = vand.u32 4294901760, %v7340_v19  ;;  %v25977_v28 = vand.u32 4294901760, %v7263_v63  ;;  %v7369_v47 = vand.u32 4294901760, %v7368_v49 }
 0xdbc   :  { %20449 = vmatprep.mubr.f32.mxu0 %v7341_v4  ;;  %v7358_v59 = vsub.f32 %v7263_v63, %v25977_v28  ;;  %v7370_v2 = vsub.f32 %v7368_v49, %v7369_v47  ;;  %v28025_v63 = vand.u32 4294901760, %v25920_v22 }
 0xdbd   :  { %20450 = vmatmul.mubr.f32.vlgmr.msra.gmra.mrb[28].mxu0 %v7351_v15 }
 0xdbe   :  { %22420 = vmatpush3.bf16.msra.mxu0 %v22417_v55  ;;  %v7359_v19 = vand.u32 4294901760, %v7358_v59  ;;  %v7371_v25 = vand.u32 4294901760, %v7370_v2  ;;  %v22429_v55 = vpack.c.bf16 %v25920_v22, %v25926_v12 }
 0xdbf   :  { %22422 = vmatprep.subr.bf16.mxu0 %v22421_v7 }
 0xdc0   :  { %v7360_v3 = vsub.f32 %v7358_v59, %v7359_v19 }
 0xdc2   :  { %22424 = vmatpush3.bf16.msra.mxu0 %v22421_v7  ;;  %v7361_v4 = vand.u32 4294901760, %v7360_v3  ;;  %v7903_v3 = vpop.permute.xlu0 %7902  ;;  %v22445_v7 = vpack.c.bf16 %v28025_v63, %v28024_v20 }
 0xdc3   :  { %22426 = vmatprep.subr.bf16.mxu0 %v22425_v52 }
 0xdc4   :  { %20452 = vmatprep.mubr.f32.mxu0 %v7361_v4 }
 0xdc5   :  { %20453 = vmatmul.mubr.f32.gmra.mrb[30].mxu0 %v7371_v25  ;;  %v22441_v25 = vpack.c.bf16 %v7387_v62, %v7380_v54 }
 0xdc6   :  { %20463 = vmatprep.mubr.f32.mxu0 %v25944_v13  ;;  %v7891_v43 = vpop.permute.xlu0 %7890 }
 0xdc7   :  { %v7906_v15 = vsel %vm2542_vm2, %v7891_v43, 0 }
 0xdc8   :  { %v26005_v21 = vand.u32 4294901760, %v7906_v15 }
 0xdc9   :  { %20464 = vmatmul.mubr.f32.vlgmr.msra.gmra.mrb[28].mxu0 %v25932_v23 }
 0xdca   :  { %22428 = vmatpush3.bf16.msra.mxu0 %v22425_v52  ;;  %20466 = vmatprep.mubr.f32.mxu0 %v25977_v28  ;;  %v26012_v12 = vsub.f32 %v7906_v15, %v26005_v21  ;;  %v7895_v52 = vpop.permute.xlu0 %7894 }
 0xdcb   :  { %22430 = vmatprep.subr.bf16.mxu0 %v22429_v55 }
 0xdcd   :  { %20467 = vmatmul.mubr.f32.gmra.mrb[30].mxu0 %v25975_v11 }
 0xdce   :  { %22432 = vmatpush3.bf16.msra.mxu0 %v22429_v55  ;;  %20477 = vmatprep.mubr.f32.mxu0 %v7338_v45  ;;  %v7901_v45 = vpop.permute.xlu1 %7900 }
 0xdcf   :  { %22434 = vmatprep.subr.bf16.mxu0 %v25928_v60  ;;  %v7916_v62 = vsel %vm2542_vm2, %v7901_v45, 0 }
 0xdd0   :  { %v7926_v22 = vand.u32 4294901760, %v7916_v62 }
 0xdd1   :  { %20478 = vmatmul.mubr.f32.vlgmr.msra.gmra.mrb[28].mxu0 %v25947_v5  ;;  %v7923_v5 = vand.u32 4294901760, %v7914_v48 }
 0xdd2   :  { %22436 = vmatpush3.bf16.msra.mxu0 %v25928_v60  ;;  %20480 = vmatprep.mubr.f32.mxu0 %v7358_v59  ;;  %v7905_v54 = vpop.permute.xlu1 %7904  ;;  %v26022_v59 = vsub.f32 %v7916_v62, %v7926_v22 }
 0xdd3   :  { %22438 = vmatprep.subr.bf16.mxu0 %v25939_v1 }
 0xdd4   :  { %v27874_v35 = vand.u32 4294901760, %v26022_v59 }
 0xdd5   :  { %20481 = vmatmul.mubr.f32.gmra.mrb[30].mxu0 %v7368_v49  ;;  %v26019_v49 = vpack.c.bf16 %v7926_v22, %v7923_v5 }
 0xdd6   :  { %22440 = vmatpush3.bf16.msra.mxu0 %v25939_v1  ;;  %20491 = vmatprep.mubr.f32.mxu0 %v7339_v44  ;;  %v27876_v44 = vand.u32 4294901760, %v26012_v12 }
 0xdd7   :  { %22442 = vmatprep.subr.bf16.mxu0 %v22441_v25 }
 0xdd8   :  { %v7994_v2 = vsub.f32 %v26012_v12, %v27876_v44 }
 0xdd9   :  { %20492 = vmatmul.mubr.f32.vlgmr.msra.gmra.mrb[28].mxu0 %v7349_v6  ;;  %v7893_v6 = vpop.permute.xlu1 %7892 }
 0xdda   :  { %22444 = vmatpush3.bf16.msra.mxu0 %v22441_v25  ;;  %20494 = vmatprep.mubr.f32.mxu0 %v7359_v19  ;;  %v7920_v19 = vsel %vm2542_vm2, %v7905_v54, 0  ;;  %v7908_v55 = vsel %vm2542_vm2, %v7893_v6, 0  ;;  %v7995_v45 = vand.u32 4294901760, %v7994_v2 }
 0xddb   :  { %22446 = vmatprep.subr.bf16.mxu0 %v22445_v7  ;;  %v7932_v4 = vand.u32 4294901760, %v7920_v19  ;;  %v26040_v43 = vand.u32 4294901760, %v7908_v55 }
 0xddd   :  { %20495 = vmatmul.mubr.f32.gmra.mrb[30].mxu0 %v7369_v47  ;;  %v26024_v47 = vsub.f32 %v7914_v48, %v7923_v5  ;;  %v26042_v15 = vsub.f32 %v7920_v19, %v7932_v4  ;;  %v8002_v48 = vsub.f32 %v7908_v55, %v26040_v43 }
 0xdde   :  { %22448 = vmatpush3.bf16.msra.mxu0 %v22445_v7  ;;  %20505 = vmatprep.mubr.f32.mxu0 %v25944_v13 }
 0xddf   :  { %22450 = vmatprep.subr.bf16.mxu0 %v25928_v60  ;;  %v8055_v22 = vand.u32 4294901760, %v26042_v15 }
 0xde1   :  { %20506 = vmatmul.mubr.f32.vlgmr.msra.gmra.mrb[28].mxu0 %v25932_v23 }
 0xde2   :  { %22452 = vmatpush3.bf16.msra.mxu0 %v25928_v60  ;;  %20508 = vmatprep.mubr.f32.mxu0 %v25977_v28  ;;  %v7918_v60 = vsel %vm2542_vm2, %v7903_v3, 0  ;;  %v7910_v3 = vsel %vm2542_vm2, %v7895_v52, 0 }
 0xde3   :  { %22454 = vmatprep.subr.bf16.mxu0 %v25939_v1  ;;  %v7929_v25 = vand.u32 4294901760, %v7918_v60  ;;  %v26045_v63 = vand.u32 4294901760, %v7910_v3 }
 0xde5   :  { %20509 = vmatmul.mubr.f32.gmra.mrb[30].mxu0 %v25975_v11  ;;  %v8047_v7 = vsub.f32 %v7918_v60, %v7929_v25  ;;  %v8003_v60 = vand.u32 4294901760, %v8002_v48 }
 0xde6   :  { %22456 = vmatpush3.bf16.msra.mxu0 %v25939_v1  ;;  %20519 = vmatprep.mubr.f32.mxu0 %v25944_v13  ;;  %v27875_v1 = vand.u32 4294901760, %v26024_v47  ;;  %v7897_v13 = vpop.permute.xlu1 %7896 }
 0xde7   :  { %22458 = vmatprep.subr.bf16.mxu0 %v26019_v49  ;;  %v7912_v20 = vsel %vm2542_vm2, %v7897_v13, 0  ;;  %v8048_v5 = vand.u32 4294901760, %v8047_v7  ;;  %v8056_v13 = vsub.f32 %v26042_v15, %v8055_v22  ;;  %v8004_v55 = vsub.f32 %v8002_v48, %v8003_v60 }
 0xde8   :  { %v8035_v62 = vsub.f32 %v26024_v47, %v27875_v1  ;;  %v26058_v54 = vand.u32 4294901760, %v7912_v20 }
 0xde9   :  { %20520 = vmatmul.mubr.f32.vlgmr.msra.gmra.mrb[28].mxu0 %v25932_v23  ;;  %v26048_v23 = vpack.c.bf16 %v7932_v4, %v7929_v25  ;;  %v8049_v25 = vsub.f32 %v8047_v7, %v8048_v5  ;;  %v8057_v1 = vand.u32 4294901760, %v8056_v13  ;;  %v8005_v44 = vand.u32 4294901760, %v8004_v55  ;;  %v18299_v55 = vld [vmem:[%s27782_s6 + $0x90] sm:$0xff] }
 0xdea   :  { %20522 = vmatprep.mubr.f32.mxu0 %v25977_v28  ;;  %v8042_v28 = vsub.f32 %v26022_v59, %v27874_v35  ;;  %v8036_v6 = vand.u32 4294901760, %v8035_v62  ;;  %v8022_v52 = vsub.f32 %v7912_v20, %v26058_v54 }
 0xdec   :  { %v8043_v19 = vand.u32 4294901760, %v8042_v28 }
 0xded   :  { %20523 = vmatmul.mubr.f32.gmra.mrb[30].mxu0 %v25975_v11  ;;  %v8012_v11 = vsub.f32 %v7910_v3, %v26045_v63  ;;  %v8050_v3 = vand.u32 4294901760, %v8049_v25 }
 0xdee   :  { %20533 = vmatprep.mubr.f32.mxu0 %v7995_v45  ;;  %v22465_v4 = vpack.c.bf16 %v8043_v19, %v8036_v6  ;;  %v8023_v45 = vand.u32 4294901760, %v8022_v52  ;;  %v22473_v6 = vpack.c.bf16 %v26022_v59, %v26024_v47  ;;  %v22477_v19 = vpack.c.bf16 %v26042_v15, %v8047_v7 }
 0xdef   :  { %22460 = vmatpush3.bf16.xpose.msra.mxu0 %v26019_v49  ;;  %v8013_v2 = vand.u32 4294901760, %v8012_v11  ;;  %v22469_v28 = vpack.c.bf16 %v8057_v1, %v8050_v3  ;;  %v22493_v15 = vpack.c.bf16 %v8055_v22, %v8048_v5  ;;  %v18300_v5 = vld [vmem:[%s27782_s6 + $0x98] sm:$0xff] }
 0xdf0   :  { %22462 = vmatprep.subr.bf16.mxu0 %v26048_v23  ;;  %v8024_v14 = vsub.f32 %v8022_v52, %v8023_v45 }
 0xdf1   :  { %v8014_v35 = vsub.f32 %v8012_v11, %v8013_v2 }
 0xdf2   :  { %v8025_v20 = vand.u32 4294901760, %v8024_v14  ;;  %v28026_v14 = vand.u32 4294901760, %v26012_v12 }
 0xdf3   :  { %v8015_v62 = vand.u32 4294901760, %v8014_v35  ;;  %v28028_v35 = vand.u32 4294901760, %v26022_v59 }
 0xdf7   :  { %22464 = vmatpush3.bf16.xpose.msra.mxu0 %v26048_v23 }
 0xdf8   :  { %22466 = vmatprep.subr.bf16.mxu0 %v22465_v4 }
 0xdfe   :  { %20534 = vmatmul.mubr.f32.vlgmr.msra.gmra.mrb[32].mxu0 %v8005_v44  ;;  %v28027_v44 = vand.u32 4294901760, %v26024_v47 }
 0xdff   :  { %20536 = vmatprep.mubr.f32.mxu0 %v8015_v62  ;;  %22468 = vmatpush3.bf16.xpose.msra.mxu0 %v22465_v4 }
 0xe00   :  { %22470 = vmatprep.subr.bf16.mxu0 %v22469_v28  ;;  %v22489_v1 = vpack.c.bf16 %v28028_v35, %v28027_v44 }
 0xe02   :  { %20537 = vmatmul.mubr.f32.gmra.mrb[34].mxu0 %v8025_v20 }
 0xe03   :  { %20547 = vmatprep.mubr.f32.mxu0 %v26005_v21 }
 0xe07   :  { %22472 = vmatpush3.bf16.xpose.msra.mxu0 %v22469_v28 }
 0xe08   :  { %22474 = vmatprep.subr.bf16.mxu0 %v22473_v6 }
 0xe0e   :  { %20548 = vmatmul.mubr.f32.vlgmr.msra.gmra.mrb[32].mxu0 %v26040_v43 }
 0xe0f   :  { %20550 = vmatprep.mubr.f32.mxu0 %v26045_v63  ;;  %22476 = vmatpush3.bf16.xpose.msra.mxu0 %v22473_v6 }
 0xe10   :  { %22478 = vmatprep.subr.bf16.mxu0 %v22477_v19 }
 0xe12   :  { %20551 = vmatmul.mubr.f32.gmra.mrb[34].mxu0 %v26058_v54 }
 0xe13   :  { %20561 = vmatprep.mubr.f32.mxu0 %v26012_v12 }
 0xe17   :  { %22480 = vmatpush3.bf16.xpose.msra.mxu0 %v22477_v19 }
 0xe18   :  { %22482 = vmatprep.subr.bf16.mxu0 %v26019_v49 }
 0xe1e   :  { %20562 = vmatmul.mubr.f32.vlgmr.msra.gmra.mrb[32].mxu0 %v8002_v48 }
 0xe1f   :  { %20564 = vmatprep.mubr.f32.mxu0 %v8012_v11  ;;  %22484 = vmatpush3.bf16.xpose.msra.mxu0 %v26019_v49 }
 0xe20   :  { %22486 = vmatprep.subr.bf16.mxu0 %v26048_v23 }
 0xe22   :  { %20565 = vmatmul.mubr.f32.gmra.mrb[34].mxu0 %v8022_v52 }
 0xe23   :  { %20575 = vmatprep.mubr.f32.mxu0 %v28026_v14 }
 0xe27   :  { %22488 = vmatpush3.bf16.xpose.msra.mxu0 %v26048_v23 }
 0xe28   :  { %22490 = vmatprep.subr.bf16.mxu0 %v22489_v1 }
 0xe2e   :  { %20576 = vmatmul.mubr.f32.vlgmr.msra.gmra.mrb[32].mxu0 %v8003_v60 }
 0xe2f   :  { %20578 = vmatprep.mubr.f32.mxu0 %v8013_v2  ;;  %22492 = vmatpush3.bf16.xpose.msra.mxu0 %v22489_v1 }
 0xe30   :  { %22494 = vmatprep.subr.bf16.mxu0 %v22493_v15 }
 0xe32   :  { %20579 = vmatmul.mubr.f32.gmra.mrb[34].mxu0 %v8023_v45 }
 0xe33   :  { %20589 = vmatprep.mubr.f32.mxu0 %v26005_v21 }
 0xe37   :  { %22496 = vmatpush3.bf16.xpose.msra.mxu0 %v22493_v15 }
 0xe38   :  { %22498 = vmatprep.subr.bf16.mxu0 %v26019_v49 }
 0xe3e   :  { %20590 = vmatmul.mubr.f32.vlgmr.msra.gmra.mrb[32].mxu0 %v26040_v43 }
 0xe3f   :  { %20592 = vmatprep.mubr.f32.mxu0 %v26045_v63  ;;  %22500 = vmatpush3.bf16.xpose.msra.mxu0 %v26019_v49 }
 0xe40   :  { %22502 = vmatprep.subr.bf16.mxu0 %v26048_v23 }
 0xe42   :  { %20593 = vmatmul.mubr.f32.gmra.mrb[34].mxu0 %v26058_v54 }
 0xe43   :  { %20603 = vmatprep.mubr.f32.mxu0 %v26005_v21  ;;  %v18298_v21 = vld [vmem:[%s27782_s6 + $0x88] sm:$0xff] }
 0xe47   :  { %22504 = vmatpush3.bf16.xpose.msra.mxu0 %v26048_v23 }
 0xe4e   :  { %20604 = vmatmul.mubr.f32.vlgmr.msra.gmra.mrb[32].mxu0 %v26040_v43  ;;  %v18297_v43 = vld [vmem:[%s27782_s6 + $0x80] sm:$0xff] }
 0xe4f   :  { %20606 = vmatprep.mubr.f32.mxu0 %v26045_v63 }
 0xe52   :  { %20607 = vmatmul.mubr.f32.gmra.mrb[34].mxu0 %v26058_v54 }
 0xebc   :  { %v26096_v12 = vpop.f32.mrb[28].mxu0 }
 0xebd   :  { %28029 = vst [vmem:[#allocation12_spill] sm:$0xff] %v26096_v12  ;;  %v26098_v59 = vpop.f32.mrb[29].mxu0 }
 0xebe   :  { %28030 = vst [vmem:[#allocation13_spill] sm:$0xff] %v26098_v59 }
 0xec0   :  { %v26100_v47 = vpop.f32.mrb[30].mxu0 }
 0xec1   :  { %28031 = vst [vmem:[#allocation14_spill] sm:$0xff] %v26100_v47  ;;  %v26102_v49 = vpop.f32.mrb[31].mxu0 }
 0xec2   :  { %28032 = vst [vmem:[#allocation15_spill] sm:$0xff] %v26102_v49 }
 0xf21   :  { %v20605_v7 = vpop.f32.mrb[32].mxu0 }
 0xf22   :  { %v8537_v23 = vmul.f32 0.5, %v20605_v7  ;;  %v8514_v48 = vpop.f32.mrb[33].mxu0 }
 0xf23   :  { %v8536_v63 = vmul.f32 0.5, %v8514_v48 }
 0xf24   :  { %v8546_v54 = vadd.f32 %v18298_v21, %v8537_v23 }
 0xf25   :  { %v20608_v11 = vpop.f32.mrb[34].mxu0  ;;  %v8545_v22 = vadd.f32 %v18297_v43, %v8536_v63 }
 0xf26   :  { %v8539_v60 = vmul.f32 0.5, %v20608_v11  ;;  %v8526_v52 = vpop.f32.mrb[35].mxu0  ;;  %v8552_v2 = vsel %vm1819_vm1, %v8546_v54, -inf }
 0xf27   :  { %v8538_v4 = vmul.f32 0.5, %v8526_v52  ;;  %8553 = vmax.xlane.f32.xlu1 %v8552_v2  ;;  %v8549_v25 = vsel %vm1819_vm1, %v8545_v22, -inf }
 0xf28   :  { %8550 = vmax.xlane.f32.xlu0 %v8549_v25  ;;  %v8548_v13 = vadd.f32 %v18300_v5, %v8539_v60 }
 0xf29   :  { %v8547_v3 = vadd.f32 %v18299_v55, %v8538_v4 }
 0xf2a   :  { %v8558_v45 = vsel %vm1819_vm1, %v8548_v13, -inf }
 0xf2b   :  { %v8555_v62 = vsel %vm1819_vm1, %v8547_v3, -inf }
 0xf2c   :  { %8559 = vmax.xlane.f32.xlu0 %v8558_v45 }
 0xf30   :  { %8556 = vmax.xlane.f32.xlu0 %v8555_v62 }
 0xf38   :  { %8587 = vrot.lane.b32.xlu1 %v25149_v32, %s24081_s5 }
 0xf3c   :  { %8589 = vrot.lane.b32.xlu1 %v25161_v8, %s24081_s5 }
 0xf40   :  { %8591 = vrot.lane.b32.xlu1 %v25169_v37, %s24081_s5 }
 0xf44   :  { %9241 = vrot.lane.b32.xlu1 %v25149_v32, %s24082_s19 }
 0xf46   :  { %8585 = vrot.lane.b32.xlu0 %v25151_v30, %s24081_s5  ;;  %s24092_s5 = smov 12  }
 0xf48   :  { %9245 = vrot.lane.b32.xlu1 %v25169_v37, %s24082_s19 }
 0xf4a   :  { %9239 = vrot.lane.b32.xlu0 %v25151_v30, %s24082_s19 }
 0xf4c   :  { %9233 = vrot.lane.b32.xlu1 %v25149_v32, %s24083_s3 }
 0xf4e   :  { %9243 = vrot.lane.b32.xlu0 %v25161_v8, %s24082_s19  ;;  %s24093_s19 = smov 16  }
 0xf50   :  { %9237 = vrot.lane.b32.xlu1 %v25169_v37, %s24083_s3 }
 0xf52   :  { %9231 = vrot.lane.b32.xlu0 %v25151_v30, %s24083_s3 }
 0xf56   :  { %9235 = vrot.lane.b32.xlu0 %v25161_v8, %s24083_s3  ;;  %s24094_s3 = smov 20  }
 0xfb4   :  { %v8554_v28 = vpop.xlane.xlu1 %8553 }
 0xfb5   :  { %v8562_v20 = vsub.f32 %v8546_v54, %v8554_v28  ;;  %v8551_v6 = vpop.xlane.xlu0 %8550 }
 0xfb6   :  { %v8561_v19 = vsub.f32 %v8545_v22, %v8551_v6 }
 0xfb7   :  { %v8567_v14 = vmul.f32 1.442695, %v8562_v20 }
 0xfb8   :  { %v8565_v44 = vmul.f32 1.442695, %v8561_v19  ;;  %v8588_v35 = vpop.permute.xlu1 %8587 }
 0xfb9   :  { %23860 = vpow2.f32 %v8567_v14  ;;  %v8613_v1 = vand.u32 4294901760, %v8588_v35  ;;  %v8560_v15 = vpop.xlane.xlu0 %8559 }
 0xfba   :  { %23862 = vpow2.f32 %v8565_v44  ;;  %v8564_v7 = vsub.f32 %v8548_v13, %v8560_v15 }
 0xfbb   :  { %v26132_v48 = vsub.f32 %v8588_v35, %v8613_v1 }
 0xfbc   :  { %v8571_v21 = vmul.f32 1.442695, %v8564_v7  ;;  %v8590_v23 = vpop.permute.xlu1 %8589 }
 0xfbd   :  { %v8557_v43 = vpop.xlane.xlu0 %8556  ;;  %v8616_v11 = vand.u32 4294901760, %v8590_v23  ;;  %v27878_v22 = vand.u32 4294901760, %v26132_v48 }
 0xfbe   :  { %v8563_v63 = vsub.f32 %v8547_v3, %v8557_v43  ;;  %23864 = vpow2.f32 %v8571_v21 }
 0xfbf   :  { %v26143_v45 = vsub.f32 %v8590_v23, %v8616_v11  ;;  %v8729_v20 = vsub.f32 %v26132_v48, %v27878_v22 }
 0xfc0   :  { %v8569_v5 = vmul.f32 1.442695, %v8563_v63  ;;  %v8592_v54 = vpop.permute.xlu1 %8591 }
 0xfc1   :  { %v8619_v60 = vand.u32 4294901760, %v8592_v54  ;;  %v8586_v52 = vpop.permute.xlu0 %8585  ;;  %v27881_v15 = vand.u32 4294901760, %v26143_v45 }
 0xfc2   :  { %v8610_v2 = vand.u32 4294901760, %v8586_v52  ;;  %23866 = vpow2.f32 %v8569_v5 }
 0xfc3   :  { %v26135_v4 = vpop.eup %23860  ;;  %v26137_v25 = vsub.f32 %v8592_v54, %v8619_v60  ;;  %v26156_v19 = vpack.c.bf16 %v8619_v60, %v8616_v11  ;;  %v8730_v11 = vand.u32 4294901760, %v8729_v20 }
 0xfc4   :  { %v26139_v13 = vpop.eup %23862  ;;  %v8601_v55 = vsel %vm1819_vm1, %v26135_v4, 0  ;;  %v26145_v3 = vpack.c.bf16 %v8613_v1, %v8610_v2  ;;  %v26147_v62 = vsub.f32 %v8586_v52, %v8610_v2  ;;  %v8736_v2 = vsub.f32 %v26143_v45, %v27881_v15 }
 0xfc5   :  { %v26149_v28 = vand.u32 4294901760, %v8601_v55  ;;  %v8598_v6 = vsel %vm1819_vm1, %v26139_v13, 0  ;;  %v27877_v14 = vand.u32 4294901760, %v26137_v25 }
 0xfc6   :  { %v27879_v44 = vand.u32 4294901760, %v26147_v62  ;;  %22506 = vmatprep.subr.bf16.mxu1 %v26145_v3  ;;  %v26161_v35 = vand.u32 4294901760, %v8598_v6 }
 0xfc7   :  { %v26164_v1 = vsub.f32 %v8601_v55, %v26149_v28  ;;  %22508 = vmatpush3.bf16.msra.mxu1 %v26145_v3  ;;  %v8743_v5 = vsub.f32 %v26137_v25, %v27877_v14 }
 0xfc8   :  { %22510 = vmatprep.subr.bf16.mxu1 %v26156_v19  ;;  %v8722_v7 = vsub.f32 %v26147_v62, %v27879_v44  ;;  %v8679_v21 = vsub.f32 %v8598_v6, %v26161_v35  ;;  %v26174_v43 = vpop.eup %23864  ;;  %v8737_v44 = vand.u32 4294901760, %v8736_v2 }
 0xfc9   :  { %v27880_v23 = vand.u32 4294901760, %v26164_v1  ;;  %v8607_v20 = vsel %vm1819_vm1, %v26174_v43, 0 }
 0xfca   :  { %v8723_v63 = vand.u32 4294901760, %v8722_v7  ;;  %v8680_v54 = vand.u32 4294901760, %v8679_v21  ;;  %v8744_v7 = vand.u32 4294901760, %v8743_v5 }
 0xfcb   :  { %22512 = vmatpush3.bf16.msra.mxu1 %v26156_v19  ;;  %v8691_v52 = vsub.f32 %v26164_v1, %v27880_v23 }
 0xfcc   :  { %v22513_v60 = vpack.c.bf16 %v8730_v11, %v8723_v63  ;;  %v26186_v55 = vpop.eup %23866  ;;  %v8681_v6 = vsub.f32 %v8679_v21, %v8680_v54  ;;  %v26192_v11 = vand.u32 4294901760, %v8607_v20  ;;  %v22517_v15 = vpack.c.bf16 %v8744_v7, %v8737_v44  ;;  %v9240_v44 = vpop.permute.xlu0 %9239 }
 0xfcd   :  { %v8692_v22 = vand.u32 4294901760, %v8691_v52  ;;  %v8604_v63 = vsel %vm1819_vm1, %v26186_v55, 0  ;;  %v22521_v52 = vpack.c.bf16 %v26132_v48, %v26147_v62 }
 0xfce   :  { %22514 = vmatprep.subr.bf16.mxu1 %v22513_v60  ;;  %v8682_v14 = vand.u32 4294901760, %v8681_v6  ;;  %v26194_v23 = vand.u32 4294901760, %v8604_v63  ;;  %v8709_v53 = vsub.f32 %v8607_v20, %v26192_v11 }
 0xfd0   :  { %20617 = vmatprep.mubr.f32.mxu1 %v8682_v14  ;;  %v8699_v26 = vsub.f32 %v8604_v63, %v26194_v23  ;;  %v8710_v5 = vand.u32 4294901760, %v8709_v53  ;;  %v28035_v63 = vand.u32 4294901760, %v26164_v1 }
 0xfd1   :  { %20618 = vmatmul.mubr.f32.vlgmr.msra.gmra.mrb[60].mxu1 %v8692_v22  ;;  %v22525_v22 = vpack.c.bf16 %v26137_v25, %v26143_v45 }
 0xfd2   :  { %22516 = vmatpush3.bf16.msra.mxu1 %v22513_v60  ;;  %v8700_v6 = vand.u32 4294901760, %v8699_v26  ;;  %v8711_v2 = vsub.f32 %v8709_v53, %v8710_v5 }
 0xfd3   :  { %22518 = vmatprep.subr.bf16.mxu1 %v22517_v15 }
 0xfd4   :  { %v8701_v29 = vsub.f32 %v8699_v26, %v8700_v6  ;;  %v8712_v47 = vand.u32 4294901760, %v8711_v2 }
 0xfd6   :  { %22520 = vmatpush3.bf16.msra.mxu1 %v22517_v15  ;;  %v8702_v14 = vand.u32 4294901760, %v8701_v29  ;;  %v9244_v29 = vpop.permute.xlu0 %9243  ;;  %v28034_v15 = vand.u32 4294901760, %v26132_v48 }
 0xfd7   :  { %22522 = vmatprep.subr.bf16.mxu1 %v22521_v52 }
 0xfd8   :  { %20620 = vmatprep.mubr.f32.mxu1 %v8702_v14 }
 0xfd9   :  { %20621 = vmatmul.mubr.f32.gmra.mrb[62].mxu1 %v8712_v47  ;;  %v28033_v47 = vand.u32 4294901760, %v26147_v62 }
 0xfda   :  { %20631 = vmatprep.mubr.f32.mxu1 %v26161_v35  ;;  %v9232_v20 = vpop.permute.xlu0 %9231 }
 0xfdb   :  { %v22537_v60 = vpack.c.bf16 %v28034_v15, %v28033_v47  ;;  %v9247_v7 = vsel %vm2542_vm2, %v9232_v20, 0 }
 0xfdc   :  { %v26222_v48 = vand.u32 4294901760, %v9247_v7 }
 0xfdd   :  { %20632 = vmatmul.mubr.f32.vlgmr.msra.gmra.mrb[60].mxu1 %v26149_v28 }
 0xfde   :  { %22524 = vmatpush3.bf16.msra.mxu1 %v22521_v52  ;;  %20634 = vmatprep.mubr.f32.mxu1 %v26194_v23  ;;  %v9236_v15 = vpop.permute.xlu0 %9235 }
 0xfdf   :  { %22526 = vmatprep.subr.bf16.mxu1 %v22525_v22 }
 0xfe1   :  { %20635 = vmatmul.mubr.f32.gmra.mrb[62].mxu1 %v26192_v11 }
 0xfe2   :  { %22528 = vmatpush3.bf16.msra.mxu1 %v22525_v22  ;;  %20645 = vmatprep.mubr.f32.mxu1 %v8679_v21  ;;  %v9242_v21 = vpop.permute.xlu1 %9241 }
 0xfe3   :  { %22530 = vmatprep.subr.bf16.mxu1 %v26145_v3  ;;  %v9257_v62 = vsel %vm2542_vm2, %v9242_v21, 0 }
 0xfe5   :  { %20646 = vmatmul.mubr.f32.vlgmr.msra.gmra.mrb[60].mxu1 %v26164_v1 }
 0xfe6   :  { %22532 = vmatpush3.bf16.msra.mxu1 %v26145_v3  ;;  %20648 = vmatprep.mubr.f32.mxu1 %v8699_v26  ;;  %v28036_v26 = vand.u32 4294901760, %v26143_v45  ;;  %v9246_v2 = vpop.permute.xlu1 %9245  ;;  %v26229_v45 = vsub.f32 %v9247_v7, %v26222_v48 }
 0xfe7   :  { %22534 = vmatprep.subr.bf16.mxu1 %v26156_v19  ;;  %v9261_v47 = vsel %vm2542_vm2, %v9246_v2, 0 }
 0xfe8   :  { %v9273_v20 = vand.u32 4294901760, %v9261_v47 }
 0xfe9   :  { %20649 = vmatmul.mubr.f32.gmra.mrb[62].mxu1 %v8709_v53  ;;  %v28037_v53 = vand.u32 4294901760, %v26137_v25  ;;  %v9267_v25 = vand.u32 4294901760, %v9257_v62 }
 0xfea   :  { %22536 = vmatpush3.bf16.msra.mxu1 %v26156_v19  ;;  %20659 = vmatprep.mubr.f32.mxu1 %v8680_v54  ;;  %v9255_v54 = vsel %vm2542_vm2, %v9240_v44, 0 }
 0xfeb   :  { %22538 = vmatprep.subr.bf16.mxu1 %v22537_v60  ;;  %v22541_v52 = vpack.c.bf16 %v28037_v53, %v28036_v26  ;;  %v9264_v1 = vand.u32 4294901760, %v9255_v54  ;;  %v26239_v22 = vsub.f32 %v9257_v62, %v9267_v25 }
 0xfed   :  { %20660 = vmatmul.mubr.f32.vlgmr.msra.gmra.mrb[60].mxu1 %v28035_v63  ;;  %v26236_v14 = vpack.c.bf16 %v9267_v25, %v9264_v1  ;;  %v26241_v44 = vsub.f32 %v9255_v54, %v9264_v1  ;;  %v27882_v7 = vand.u32 4294901760, %v26239_v22 }
 0xfee   :  { %22540 = vmatpush3.bf16.msra.mxu1 %v22537_v60  ;;  %20662 = vmatprep.mubr.f32.mxu1 %v8700_v6  ;;  %v27884_v6 = vand.u32 4294901760, %v26229_v45 }
 0xfef   :  { %22542 = vmatprep.subr.bf16.mxu1 %v22541_v52 }
 0xff0   :  { %v9335_v60 = vsub.f32 %v26229_v45, %v27884_v6 }
 0xff1   :  { %20663 = vmatmul.mubr.f32.gmra.mrb[62].mxu1 %v8710_v5  ;;  %v9234_v5 = vpop.permute.xlu1 %9233 }
 0xff2   :  { %22544 = vmatpush3.bf16.msra.mxu1 %v22541_v52  ;;  %20673 = vmatprep.mubr.f32.mxu1 %v26161_v35  ;;  %v9249_v21 = vsel %vm2542_vm2, %v9234_v5, 0  ;;  %v9336_v53 = vand.u32 4294901760, %v9335_v60  ;;  %v26259_v52 = vsub.f32 %v9261_v47, %v9273_v20 }
 0xff3   :  { %22546 = vmatprep.subr.bf16.mxu1 %v26145_v3  ;;  %v26257_v26 = vand.u32 4294901760, %v9249_v21 }
 0xff4   :  { %v9396_v47 = vand.u32 4294901760, %v26259_v52 }
 0xff5   :  { %20674 = vmatmul.mubr.f32.vlgmr.msra.gmra.mrb[60].mxu1 %v26149_v28  ;;  %v9343_v1 = vsub.f32 %v9249_v21, %v26257_v26 }
 0xff6   :  { %22548 = vmatpush3.bf16.msra.mxu1 %v26145_v3  ;;  %20676 = vmatprep.mubr.f32.mxu1 %v26194_v23  ;;  %v9259_v3 = vsel %vm2542_vm2, %v9244_v29, 0  ;;  %v9251_v29 = vsel %vm2542_vm2, %v9236_v15, 0 }
 0xff7   :  { %22550 = vmatprep.subr.bf16.mxu1 %v26156_v19  ;;  %v9270_v63 = vand.u32 4294901760, %v9259_v3  ;;  %v26262_v54 = vand.u32 4294901760, %v9251_v29 }
 0xff9   :  { %20677 = vmatmul.mubr.f32.gmra.mrb[62].mxu1 %v26192_v11  ;;  %v9388_v2 = vsub.f32 %v9259_v3, %v9270_v63 }
 0xffa   :  { %22552 = vmatpush3.bf16.msra.mxu1 %v26156_v19  ;;  %20687 = vmatprep.mubr.f32.mxu1 %v26161_v35  ;;  %v27883_v19 = vand.u32 4294901760, %v26241_v44  ;;  %v9238_v35 = vpop.permute.xlu1 %9237 }
 0xffb   :  { %22554 = vmatprep.subr.bf16.mxu1 %v26236_v14  ;;  %v9253_v62 = vsel %vm2542_vm2, %v9238_v35, 0  ;;  %v9389_v3 = vand.u32 4294901760, %v9388_v2 }
 0xffc   :  { %v9376_v25 = vsub.f32 %v26241_v44, %v27883_v19  ;;  %v26275_v5 = vand.u32 4294901760, %v9253_v62  ;;  %v9397_v19 = vsub.f32 %v26259_v52, %v9396_v47 }
 0xffd   :  { %20688 = vmatmul.mubr.f32.vlgmr.msra.gmra.mrb[60].mxu1 %v26149_v28  ;;  %v26265_v28 = vpack.c.bf16 %v9273_v20, %v9270_v63  ;;  %v9344_v20 = vand.u32 4294901760, %v9343_v1 }
 0xffe   :  { %20690 = vmatprep.mubr.f32.mxu1 %v26194_v23  ;;  %v9383_v23 = vsub.f32 %v26239_v22, %v27882_v7  ;;  %v9377_v15 = vand.u32 4294901760, %v9376_v25  ;;  %v9363_v63 = vsub.f32 %v9253_v62, %v26275_v5  ;;  %v9390_v7 = vsub.f32 %v9388_v2, %v9389_v3 }
 0xfff   :  { %v9345_v21 = vsub.f32 %v9343_v1, %v9344_v20  ;;  %v9398_v49 = vand.u32 4294901760, %v9397_v19  ;;  %v22589_v19 = vpack.c.bf16 %v9396_v47, %v9389_v3 }
0x1000   :  { %v9384_v60 = vand.u32 4294901760, %v9383_v23  ;;  %v9364_v6 = vand.u32 4294901760, %v9363_v63 }
0x1001   :  { %20691 = vmatmul.mubr.f32.gmra.mrb[62].mxu1 %v26192_v11  ;;  %v9353_v11 = vsub.f32 %v9251_v29, %v26262_v54  ;;  %v9391_v29 = vand.u32 4294901760, %v9390_v7  ;;  %v9346_v50 = vand.u32 4294901760, %v9345_v21  ;;  %v22573_v7 = vpack.c.bf16 %v26259_v52, %v9388_v2 }
0x1002   :  { %20701 = vmatprep.mubr.f32.mxu1 %v9336_v53  ;;  %v22561_v53 = vpack.c.bf16 %v9384_v60, %v9377_v15  ;;  %v9365_v51 = vsub.f32 %v9363_v63, %v9364_v6  ;;  %v22569_v15 = vpack.c.bf16 %v26239_v22, %v26241_v44 }
0x1003   :  { %22556 = vmatpush3.bf16.xpose.msra.mxu1 %v26236_v14  ;;  %v9354_v35 = vand.u32 4294901760, %v9353_v11  ;;  %v22565_v23 = vpack.c.bf16 %v9398_v49, %v9391_v29 }
0x1004   :  { %22558 = vmatprep.subr.bf16.mxu1 %v26265_v28  ;;  %v9366_v62 = vand.u32 4294901760, %v9365_v51  ;;  %v28040_v51 = vand.u32 4294901760, %v26239_v22 }
0x1005   :  { %v9355_v58 = vsub.f32 %v9353_v11, %v9354_v35 }
0x1007   :  { %v9356_v25 = vand.u32 4294901760, %v9355_v58  ;;  %v28039_v58 = vand.u32 4294901760, %v26241_v44 }
0x1009   :  { %v22585_v49 = vpack.c.bf16 %v28040_v51, %v28039_v58 }
0x100b   :  { %22560 = vmatpush3.bf16.xpose.msra.mxu1 %v26265_v28 }
0x100c   :  { %22562 = vmatprep.subr.bf16.mxu1 %v22561_v53 }
0x1012   :  { %20702 = vmatmul.mubr.f32.vlgmr.msra.gmra.mrb[64].mxu1 %v9346_v50  ;;  %v28038_v50 = vand.u32 4294901760, %v26229_v45 }
0x1013   :  { %20704 = vmatprep.mubr.f32.mxu1 %v9356_v25  ;;  %22564 = vmatpush3.bf16.xpose.msra.mxu1 %v22561_v53  ;;  %v18303_v53 = vld [vmem:[%s27782_s6 + $0xb0] sm:$0xff] }
0x1014   :  { %22566 = vmatprep.subr.bf16.mxu1 %v22565_v23 }
0x1016   :  { %20705 = vmatmul.mubr.f32.gmra.mrb[66].mxu1 %v9366_v62 }
0x1017   :  { %20715 = vmatprep.mubr.f32.mxu1 %v26222_v48 }
0x101b   :  { %22568 = vmatpush3.bf16.xpose.msra.mxu1 %v22565_v23 }
0x101c   :  { %22570 = vmatprep.subr.bf16.mxu1 %v22569_v15 }
0x1022   :  { %20716 = vmatmul.mubr.f32.vlgmr.msra.gmra.mrb[64].mxu1 %v26257_v26 }
0x1023   :  { %20718 = vmatprep.mubr.f32.mxu1 %v26262_v54  ;;  %22572 = vmatpush3.bf16.xpose.msra.mxu1 %v22569_v15 }
0x1024   :  { %22574 = vmatprep.subr.bf16.mxu1 %v22573_v7 }
0x1026   :  { %20719 = vmatmul.mubr.f32.gmra.mrb[66].mxu1 %v26275_v5 }
0x1027   :  { %20729 = vmatprep.mubr.f32.mxu1 %v26229_v45 }
0x102b   :  { %22576 = vmatpush3.bf16.xpose.msra.mxu1 %v22573_v7 }
0x102c   :  { %22578 = vmatprep.subr.bf16.mxu1 %v26236_v14 }
0x1032   :  { %20730 = vmatmul.mubr.f32.vlgmr.msra.gmra.mrb[64].mxu1 %v9343_v1 }
0x1033   :  { %20732 = vmatprep.mubr.f32.mxu1 %v9353_v11  ;;  %22580 = vmatpush3.bf16.xpose.msra.mxu1 %v26236_v14  ;;  %v18304_v11 = vld [vmem:[%s27782_s6 + $0xb8] sm:$0xff] }
0x1034   :  { %22582 = vmatprep.subr.bf16.mxu1 %v26265_v28 }
0x1036   :  { %20733 = vmatmul.mubr.f32.gmra.mrb[66].mxu1 %v9363_v63 }
0x1037   :  { %20743 = vmatprep.mubr.f32.mxu1 %v28038_v50 }
0x103b   :  { %22584 = vmatpush3.bf16.xpose.msra.mxu1 %v26265_v28 }
0x103c   :  { %22586 = vmatprep.subr.bf16.mxu1 %v22585_v49 }
0x1042   :  { %20744 = vmatmul.mubr.f32.vlgmr.msra.gmra.mrb[64].mxu1 %v9344_v20 }
0x1043   :  { %20746 = vmatprep.mubr.f32.mxu1 %v9354_v35  ;;  %22588 = vmatpush3.bf16.xpose.msra.mxu1 %v22585_v49 }
0x1044   :  { %22590 = vmatprep.subr.bf16.mxu1 %v22589_v19 }
0x1046   :  { %20747 = vmatmul.mubr.f32.gmra.mrb[66].mxu1 %v9364_v6 }
0x1047   :  { %20757 = vmatprep.mubr.f32.mxu1 %v26222_v48 }
0x104b   :  { %22592 = vmatpush3.bf16.xpose.msra.mxu1 %v22589_v19 }
0x104c   :  { %22594 = vmatprep.subr.bf16.mxu1 %v26236_v14 }
0x1052   :  { %20758 = vmatmul.mubr.f32.vlgmr.msra.gmra.mrb[64].mxu1 %v26257_v26 }
0x1053   :  { %20760 = vmatprep.mubr.f32.mxu1 %v26262_v54  ;;  %22596 = vmatpush3.bf16.xpose.msra.mxu1 %v26236_v14 }
0x1054   :  { %22598 = vmatprep.subr.bf16.mxu1 %v26265_v28 }
0x1056   :  { %20761 = vmatmul.mubr.f32.gmra.mrb[66].mxu1 %v26275_v5 }
0x1057   :  { %20771 = vmatprep.mubr.f32.mxu1 %v26222_v48  ;;  %v18302_v48 = vld [vmem:[%s27782_s6 + $0xa8] sm:$0xff] }
0x105b   :  { %22600 = vmatpush3.bf16.xpose.msra.mxu1 %v26265_v28 }
0x1062   :  { %20772 = vmatmul.mubr.f32.vlgmr.msra.gmra.mrb[64].mxu1 %v26257_v26  ;;  %v18301_v26 = vld [vmem:[%s27782_s6 + $0xa0] sm:$0xff] }
0x1063   :  { %20774 = vmatprep.mubr.f32.mxu1 %v26262_v54 }
0x1066   :  { %20775 = vmatmul.mubr.f32.gmra.mrb[66].mxu1 %v26275_v5 }
0x10d0   :  { %v26313_v45 = vpop.f32.mrb[60].mxu1 }
0x10d1   :  { %28041 = vst [vmem:[#allocation16_spill] sm:$0xff] %v26313_v45  ;;  %v26315_v6 = vpop.f32.mrb[61].mxu1 }
0x10d2   :  { %28042 = vst [vmem:[#allocation18_spill] sm:$0xff] %v26315_v6 }
0x10d4   :  { %v26317_v22 = vpop.f32.mrb[62].mxu1 }
0x10d5   :  { %28043 = vst [vmem:[#allocation19_spill] sm:$0xff] %v26317_v22  ;;  %v26319_v14 = vpop.f32.mrb[63].mxu1 }
0x10d6   :  { %28044 = vst [vmem:[#allocation20_spill] sm:$0xff] %v26319_v14 }
0x1135   :  { %v20773_v44 = vpop.f32.mrb[64].mxu1 }
0x1136   :  { %v9878_v52 = vmul.f32 0.5, %v20773_v44  ;;  %v9855_v28 = vpop.f32.mrb[65].mxu1 }
0x1137   :  { %v9877_v54 = vmul.f32 0.5, %v9855_v28 }
0x1138   :  { %v9887_v2 = vadd.f32 %v18302_v48, %v9878_v52 }
0x1139   :  { %v20776_v1 = vpop.f32.mrb[66].mxu1  ;;  %v9886_v5 = vadd.f32 %v18301_v26, %v9877_v54 }
0x113a   :  { %v9880_v47 = vmul.f32 0.5, %v20776_v1  ;;  %v9867_v3 = vpop.f32.mrb[67].mxu1  ;;  %v9893_v60 = vsel %vm1819_vm1, %v9887_v2, -inf }
0x113b   :  { %v9879_v20 = vmul.f32 0.5, %v9867_v3  ;;  %9894 = vmax.xlane.f32.xlu1 %v9893_v60  ;;  %v9890_v63 = vsel %vm1819_vm1, %v9886_v5, -inf }
0x113c   :  { %9891 = vmax.xlane.f32.xlu0 %v9890_v63  ;;  %v9889_v35 = vadd.f32 %v18304_v11, %v9880_v47 }
0x113d   :  { %v9888_v29 = vadd.f32 %v18303_v53, %v9879_v20 }
0x113e   :  { %v9899_v21 = vsel %vm1819_vm1, %v9889_v35, -inf }
0x113f   :  { %v9896_v25 = vsel %vm1819_vm1, %v9888_v29, -inf }
0x1140   :  { %9900 = vmax.xlane.f32.xlu0 %v9899_v21 }
0x1144   :  { %9897 = vmax.xlane.f32.xlu0 %v9896_v25 }
0x114c   :  { %9928 = vrot.lane.b32.xlu1 %v25149_v32, %s24084_s4 }
0x1150   :  { %9930 = vrot.lane.b32.xlu1 %v25161_v8, %s24084_s4 }
0x1154   :  { %9932 = vrot.lane.b32.xlu1 %v25169_v37, %s24084_s4 }
0x1158   :  { %10582 = vrot.lane.b32.xlu1 %v25149_v32, %s24085_s2 }
0x115a   :  { %9926 = vrot.lane.b32.xlu0 %v25151_v30, %s24084_s4 }
0x115c   :  { %10586 = vrot.lane.b32.xlu1 %v25169_v37, %s24085_s2 }
0x115e   :  { %10580 = vrot.lane.b32.xlu0 %v25151_v30, %s24085_s2 }
0x1160   :  { %10574 = vrot.lane.b32.xlu1 %v25149_v32, %s24086_s12 }
0x1162   :  { %10584 = vrot.lane.b32.xlu0 %v25161_v8, %s24085_s2 }
0x1164   :  { %10578 = vrot.lane.b32.xlu1 %v25169_v37, %s24086_s12 }
0x1166   :  { %10572 = vrot.lane.b32.xlu0 %v25151_v30, %s24086_s12 }
0x116a   :  { %10576 = vrot.lane.b32.xlu0 %v25161_v8, %s24086_s12 }
0x11c8   :  { %v9895_v23 = vpop.xlane.xlu1 %9894 }
0x11c9   :  { %v9903_v62 = vsub.f32 %v9887_v2, %v9895_v23  ;;  %v9892_v15 = vpop.xlane.xlu0 %9891 }
0x11ca   :  { %v9902_v7 = vsub.f32 %v9886_v5, %v9892_v15 }
0x11cb   :  { %v9908_v50 = vmul.f32 1.442695, %v9903_v62 }
0x11cc   :  { %v9906_v58 = vmul.f32 1.442695, %v9902_v7  ;;  %v9929_v51 = vpop.permute.xlu1 %9928 }
0x11cd   :  { %23868 = vpow2.f32 %v9908_v50  ;;  %v9954_v49 = vand.u32 4294901760, %v9929_v51  ;;  %v9901_v19 = vpop.xlane.xlu0 %9900 }
0x11ce   :  { %23870 = vpow2.f32 %v9906_v58  ;;  %v9905_v44 = vsub.f32 %v9889_v35, %v9901_v19 }
0x11cf   :  { %v26349_v28 = vsub.f32 %v9929_v51, %v9954_v49 }
0x11d0   :  { %v9912_v48 = vmul.f32 1.442695, %v9905_v44  ;;  %v9931_v52 = vpop.permute.xlu1 %9930 }
0x11d1   :  { %v9898_v26 = vpop.xlane.xlu0 %9897  ;;  %v9957_v1 = vand.u32 4294901760, %v9931_v52  ;;  %v27886_v5 = vand.u32 4294901760, %v26349_v28 }
0x11d2   :  { %v9904_v54 = vsub.f32 %v9888_v29, %v9898_v26  ;;  %23872 = vpow2.f32 %v9912_v48 }
0x11d3   :  { %v26360_v21 = vsub.f32 %v9931_v52, %v9957_v1  ;;  %v10070_v62 = vsub.f32 %v26349_v28, %v27886_v5 }
0x11d4   :  { %v9910_v11 = vmul.f32 1.442695, %v9904_v54  ;;  %v9933_v2 = vpop.permute.xlu1 %9932 }
0x11d5   :  { %v9960_v47 = vand.u32 4294901760, %v9933_v2  ;;  %v9927_v3 = vpop.permute.xlu0 %9926  ;;  %v27889_v19 = vand.u32 4294901760, %v26360_v21 }
0x11d6   :  { %v9951_v60 = vand.u32 4294901760, %v9927_v3  ;;  %23874 = vpow2.f32 %v9910_v11 }
0x11d7   :  { %v26352_v20 = vpop.eup %23868  ;;  %v26354_v63 = vsub.f32 %v9933_v2, %v9960_v47  ;;  %v26373_v7 = vpack.c.bf16 %v9960_v47, %v9957_v1  ;;  %v10071_v1 = vand.u32 4294901760, %v10070_v62 }
0x11d8   :  { %v26356_v35 = vpop.eup %23870  ;;  %v9942_v53 = vsel %vm1819_vm1, %v26352_v20, 0  ;;  %v26362_v29 = vpack.c.bf16 %v9954_v49, %v9951_v60  ;;  %v26364_v25 = vsub.f32 %v9927_v3, %v9951_v60  ;;  %v10077_v60 = vsub.f32 %v26360_v21, %v27889_v19 }
0x11d9   :  { %v26366_v23 = vand.u32 4294901760, %v9942_v53  ;;  %v9939_v15 = vsel %vm1819_vm1, %v26356_v35, 0  ;;  %v27885_v50 = vand.u32 4294901760, %v26354_v63 }
0x11da   :  { %v27887_v58 = vand.u32 4294901760, %v26364_v25  ;;  %22602 = vmatprep.subr.bf16.mxu0 %v26362_v29  ;;  %v26378_v51 = vand.u32 4294901760, %v9939_v15 }
0x11db   :  { %v26381_v49 = vsub.f32 %v9942_v53, %v26366_v23  ;;  %22604 = vmatpush3.bf16.msra.mxu0 %v26362_v29  ;;  %v10084_v11 = vsub.f32 %v26354_v63, %v27885_v50 }
0x11dc   :  { %22606 = vmatprep.subr.bf16.mxu0 %v26373_v7  ;;  %v10063_v44 = vsub.f32 %v26364_v25, %v27887_v58  ;;  %v10020_v48 = vsub.f32 %v9939_v15, %v26378_v51  ;;  %v26391_v26 = vpop.eup %23872  ;;  %v10078_v58 = vand.u32 4294901760, %v10077_v60 }
0x11dd   :  { %v27888_v52 = vand.u32 4294901760, %v26381_v49  ;;  %v9948_v62 = vsel %vm1819_vm1, %v26391_v26, 0 }
0x11de   :  { %v10064_v54 = vand.u32 4294901760, %v10063_v44  ;;  %v10021_v2 = vand.u32 4294901760, %v10020_v48  ;;  %v10085_v44 = vand.u32 4294901760, %v10084_v11 }
0x11df   :  { %22608 = vmatpush3.bf16.msra.mxu0 %v26373_v7  ;;  %v10032_v3 = vsub.f32 %v26381_v49, %v27888_v52 }
0x11e0   :  { %v22609_v47 = vpack.c.bf16 %v10071_v1, %v10064_v54  ;;  %v26403_v53 = vpop.eup %23874  ;;  %v10022_v15 = vsub.f32 %v10020_v48, %v10021_v2  ;;  %v26409_v1 = vand.u32 4294901760, %v9948_v62  ;;  %v22613_v19 = vpack.c.bf16 %v10085_v44, %v10078_v58  ;;  %v10581_v58 = vpop.permute.xlu0 %10580 }
0x11e1   :  { %v10033_v5 = vand.u32 4294901760, %v10032_v3  ;;  %v9945_v54 = vsel %vm1819_vm1, %v26403_v53, 0  ;;  %v22617_v3 = vpack.c.bf16 %v26349_v28, %v26364_v25 }
0x11e2   :  { %22610 = vmatprep.subr.bf16.mxu0 %v22609_v47  ;;  %v10023_v50 = vand.u32 4294901760, %v10022_v15  ;;  %v26411_v52 = vand.u32 4294901760, %v9945_v54  ;;  %v10050_v22 = vsub.f32 %v9948_v62, %v26409_v1 }
0x11e4   :  { %20785 = vmatprep.mubr.f32.mxu0 %v10023_v50  ;;  %v10040_v14 = vsub.f32 %v9945_v54, %v26411_v52  ;;  %v10051_v11 = vand.u32 4294901760, %v10050_v22  ;;  %v28047_v54 = vand.u32 4294901760, %v26381_v49 }
0x11e5   :  { %20786 = vmatmul.mubr.f32.vlgmr.msra.gmra.mrb[36].mxu0 %v10033_v5  ;;  %v22621_v5 = vpack.c.bf16 %v26354_v63, %v26360_v21 }
0x11e6   :  { %22612 = vmatpush3.bf16.msra.mxu0 %v22609_v47  ;;  %v10041_v15 = vand.u32 4294901760, %v10040_v14  ;;  %v10052_v60 = vsub.f32 %v10050_v22, %v10051_v11 }
0x11e7   :  { %22614 = vmatprep.subr.bf16.mxu0 %v22613_v19 }
0x11e8   :  { %v10042_v45 = vsub.f32 %v10040_v14, %v10041_v15  ;;  %v10053_v6 = vand.u32 4294901760, %v10052_v60 }
0x11ea   :  { %22616 = vmatpush3.bf16.msra.mxu0 %v22613_v19  ;;  %v10043_v50 = vand.u32 4294901760, %v10042_v45  ;;  %v10585_v45 = vpop.permute.xlu0 %10584  ;;  %v28046_v19 = vand.u32 4294901760, %v26349_v28 }
0x11eb   :  { %22618 = vmatprep.subr.bf16.mxu0 %v22617_v3 }
0x11ec   :  { %20788 = vmatprep.mubr.f32.mxu0 %v10043_v50 }
0x11ed   :  { %20789 = vmatmul.mubr.f32.gmra.mrb[38].mxu0 %v10053_v6  ;;  %v28045_v6 = vand.u32 4294901760, %v26364_v25 }
0x11ee   :  { %20799 = vmatprep.mubr.f32.mxu0 %v26378_v51  ;;  %v10573_v62 = vpop.permute.xlu0 %10572 }
0x11ef   :  { %v22633_v47 = vpack.c.bf16 %v28046_v19, %v28045_v6  ;;  %v10588_v44 = vsel %vm2542_vm2, %v10573_v62, 0 }
0x11f0   :  { %v26439_v28 = vand.u32 4294901760, %v10588_v44 }
0x11f1   :  { %20800 = vmatmul.mubr.f32.vlgmr.msra.gmra.mrb[36].mxu0 %v26366_v23 }
0x11f2   :  { %22620 = vmatpush3.bf16.msra.mxu0 %v22617_v3  ;;  %20802 = vmatprep.mubr.f32.mxu0 %v26411_v52  ;;  %v10577_v19 = vpop.permute.xlu0 %10576 }
0x11f3   :  { %22622 = vmatprep.subr.bf16.mxu0 %v22621_v5 }
0x11f5   :  { %20803 = vmatmul.mubr.f32.gmra.mrb[38].mxu0 %v26409_v1 }
0x11f6   :  { %22624 = vmatpush3.bf16.msra.mxu0 %v22621_v5  ;;  %20813 = vmatprep.mubr.f32.mxu0 %v10020_v48  ;;  %v10583_v48 = vpop.permute.xlu1 %10582 }
0x11f7   :  { %22626 = vmatprep.subr.bf16.mxu0 %v26362_v29  ;;  %v10598_v25 = vsel %vm2542_vm2, %v10583_v48, 0 }
0x11f9   :  { %20814 = vmatmul.mubr.f32.vlgmr.msra.gmra.mrb[36].mxu0 %v26381_v49 }
0x11fa   :  { %22628 = vmatpush3.bf16.msra.mxu0 %v26362_v29  ;;  %20816 = vmatprep.mubr.f32.mxu0 %v10040_v14  ;;  %v28048_v14 = vand.u32 4294901760, %v26360_v21  ;;  %v10587_v60 = vpop.permute.xlu1 %10586  ;;  %v26446_v21 = vsub.f32 %v10588_v44, %v26439_v28 }
0x11fb   :  { %22630 = vmatprep.subr.bf16.mxu0 %v26373_v7  ;;  %v10602_v6 = vsel %vm2542_vm2, %v10587_v60, 0 }
0x11fc   :  { %v10614_v62 = vand.u32 4294901760, %v10602_v6 }
0x11fd   :  { %20817 = vmatmul.mubr.f32.gmra.mrb[38].mxu0 %v10050_v22  ;;  %v28049_v22 = vand.u32 4294901760, %v26354_v63  ;;  %v10608_v63 = vand.u32 4294901760, %v10598_v25 }
0x11fe   :  { %22632 = vmatpush3.bf16.msra.mxu0 %v26373_v7  ;;  %20827 = vmatprep.mubr.f32.mxu0 %v10021_v2  ;;  %v10596_v2 = vsel %vm2542_vm2, %v10581_v58, 0 }
0x11ff   :  { %22634 = vmatprep.subr.bf16.mxu0 %v22633_v47  ;;  %v22637_v3 = vpack.c.bf16 %v28049_v22, %v28048_v14  ;;  %v10605_v49 = vand.u32 4294901760, %v10596_v2  ;;  %v26456_v5 = vsub.f32 %v10598_v25, %v10608_v63 }
0x1201   :  { %20828 = vmatmul.mubr.f32.vlgmr.msra.gmra.mrb[36].mxu0 %v28047_v54  ;;  %v26453_v50 = vpack.c.bf16 %v10608_v63, %v10605_v49  ;;  %v26458_v58 = vsub.f32 %v10596_v2, %v10605_v49  ;;  %v27890_v44 = vand.u32 4294901760, %v26456_v5 }
0x1202   :  { %22636 = vmatpush3.bf16.msra.mxu0 %v22633_v47  ;;  %20830 = vmatprep.mubr.f32.mxu0 %v10041_v15  ;;  %v27892_v15 = vand.u32 4294901760, %v26446_v21 }
0x1203   :  { %22638 = vmatprep.subr.bf16.mxu0 %v22637_v3 }
0x1204   :  { %v10676_v47 = vsub.f32 %v26446_v21, %v27892_v15 }
0x1205   :  { %20831 = vmatmul.mubr.f32.gmra.mrb[38].mxu0 %v10051_v11  ;;  %v10575_v11 = vpop.permute.xlu1 %10574 }
0x1206   :  { %22640 = vmatpush3.bf16.msra.mxu0 %v22637_v3  ;;  %20841 = vmatprep.mubr.f32.mxu0 %v26378_v51  ;;  %v10590_v48 = vsel %vm2542_vm2, %v10575_v11, 0  ;;  %v10677_v22 = vand.u32 4294901760, %v10676_v47  ;;  %v26476_v3 = vsub.f32 %v10602_v6, %v10614_v62 }
0x1207   :  { %22642 = vmatprep.subr.bf16.mxu0 %v26362_v29  ;;  %v26474_v14 = vand.u32 4294901760, %v10590_v48 }
0x1208   :  { %v10737_v6 = vand.u32 4294901760, %v26476_v3 }
0x1209   :  { %20842 = vmatmul.mubr.f32.vlgmr.msra.gmra.mrb[36].mxu0 %v26366_v23  ;;  %v10684_v49 = vsub.f32 %v10590_v48, %v26474_v14 }
0x120a   :  { %22644 = vmatpush3.bf16.msra.mxu0 %v26362_v29  ;;  %20844 = vmatprep.mubr.f32.mxu0 %v26411_v52  ;;  %v10600_v29 = vsel %vm2542_vm2, %v10585_v45, 0  ;;  %v10592_v45 = vsel %vm2542_vm2, %v10577_v19, 0 }
0x120b   :  { %22646 = vmatprep.subr.bf16.mxu0 %v26373_v7  ;;  %v10611_v54 = vand.u32 4294901760, %v10600_v29  ;;  %v26479_v2 = vand.u32 4294901760, %v10592_v45 }
0x120d   :  { %20845 = vmatmul.mubr.f32.gmra.mrb[38].mxu0 %v26409_v1  ;;  %v10729_v60 = vsub.f32 %v10600_v29, %v10611_v54 }
0x120e   :  { %22648 = vmatpush3.bf16.msra.mxu0 %v26373_v7  ;;  %20855 = vmatprep.mubr.f32.mxu0 %v26378_v51  ;;  %v27891_v7 = vand.u32 4294901760, %v26458_v58  ;;  %v10579_v51 = vpop.permute.xlu1 %10578 }
0x120f   :  { %22650 = vmatprep.subr.bf16.mxu0 %v26453_v50  ;;  %v10594_v25 = vsel %vm2542_vm2, %v10579_v51, 0  ;;  %v10730_v29 = vand.u32 4294901760, %v10729_v60 }
0x1210   :  { %v10717_v63 = vsub.f32 %v26458_v58, %v27891_v7  ;;  %v26492_v11 = vand.u32 4294901760, %v10594_v25  ;;  %v10738_v7 = vsub.f32 %v26476_v3, %v10737_v6 }
0x1211   :  { %20856 = vmatmul.mubr.f32.vlgmr.msra.gmra.mrb[36].mxu0 %v26366_v23  ;;  %v26482_v23 = vpack.c.bf16 %v10614_v62, %v10611_v54  ;;  %v10685_v62 = vand.u32 4294901760, %v10684_v49 }
0x1212   :  { %20858 = vmatprep.mubr.f32.mxu0 %v26411_v52  ;;  %v10724_v52 = vsub.f32 %v26456_v5, %v27890_v44  ;;  %v10718_v19 = vand.u32 4294901760, %v10717_v63  ;;  %v10704_v54 = vsub.f32 %v10594_v25, %v26492_v11  ;;  %v10731_v44 = vsub.f32 %v10729_v60, %v10730_v29 }
0x1213   :  { %v10686_v48 = vsub.f32 %v10684_v49, %v10685_v62  ;;  %v10739_v59 = vand.u32 4294901760, %v10738_v7  ;;  %v22685_v7 = vpack.c.bf16 %v10737_v6, %v10730_v29 }
0x1214   :  { %v10725_v47 = vand.u32 4294901760, %v10724_v52  ;;  %v10705_v15 = vand.u32 4294901760, %v10704_v54 }
0x1215   :  { %20859 = vmatmul.mubr.f32.gmra.mrb[38].mxu0 %v26409_v1  ;;  %v10694_v1 = vsub.f32 %v10592_v45, %v26479_v2  ;;  %v10732_v45 = vand.u32 4294901760, %v10731_v44  ;;  %v10687_v12 = vand.u32 4294901760, %v10686_v48  ;;  %v22669_v44 = vpack.c.bf16 %v26476_v3, %v10729_v60 }
0x1216   :  { %20869 = vmatprep.mubr.f32.mxu0 %v10677_v22  ;;  %v22657_v22 = vpack.c.bf16 %v10725_v47, %v10718_v19  ;;  %v10706_v38 = vsub.f32 %v10704_v54, %v10705_v15  ;;  %v22665_v19 = vpack.c.bf16 %v26456_v5, %v26458_v58 }
0x1217   :  { %22652 = vmatpush3.bf16.xpose.msra.mxu0 %v26453_v50  ;;  %v10695_v51 = vand.u32 4294901760, %v10694_v1  ;;  %v22661_v52 = vpack.c.bf16 %v10739_v59, %v10732_v45 }
0x1218   :  { %22654 = vmatprep.subr.bf16.mxu0 %v26482_v23  ;;  %v10707_v25 = vand.u32 4294901760, %v10706_v38  ;;  %v28051_v38 = vand.u32 4294901760, %v26458_v58 }
0x1219   :  { %v10696_v40 = vsub.f32 %v10694_v1, %v10695_v51 }
0x121b   :  { %v10697_v63 = vand.u32 4294901760, %v10696_v40  ;;  %v28050_v40 = vand.u32 4294901760, %v26446_v21 }
0x121f   :  { %22656 = vmatpush3.bf16.xpose.msra.mxu0 %v26482_v23 }
0x1220   :  { %22658 = vmatprep.subr.bf16.mxu0 %v22657_v22 }
0x1226   :  { %20870 = vmatmul.mubr.f32.vlgmr.msra.gmra.mrb[40].mxu0 %v10687_v12  ;;  %v28052_v12 = vand.u32 4294901760, %v26456_v5 }
0x1227   :  { %20872 = vmatprep.mubr.f32.mxu0 %v10697_v63  ;;  %22660 = vmatpush3.bf16.xpose.msra.mxu0 %v22657_v22  ;;  %v18307_v22 = vld [vmem:[%s27782_s6 + $0xd0] sm:$0xff] }
0x1228   :  { %22662 = vmatprep.subr.bf16.mxu0 %v22661_v52  ;;  %v22681_v59 = vpack.c.bf16 %v28052_v12, %v28051_v38 }
0x122a   :  { %20873 = vmatmul.mubr.f32.gmra.mrb[42].mxu0 %v10707_v25 }
0x122b   :  { %20883 = vmatprep.mubr.f32.mxu0 %v26439_v28 }
0x122f   :  { %22664 = vmatpush3.bf16.xpose.msra.mxu0 %v22661_v52 }
0x1230   :  { %22666 = vmatprep.subr.bf16.mxu0 %v22665_v19 }
0x1236   :  { %20884 = vmatmul.mubr.f32.vlgmr.msra.gmra.mrb[40].mxu0 %v26474_v14 }
0x1237   :  { %20886 = vmatprep.mubr.f32.mxu0 %v26479_v2  ;;  %22668 = vmatpush3.bf16.xpose.msra.mxu0 %v22665_v19 }
0x1238   :  { %22670 = vmatprep.subr.bf16.mxu0 %v22669_v44 }
0x123a   :  { %20887 = vmatmul.mubr.f32.gmra.mrb[42].mxu0 %v26492_v11 }
0x123b   :  { %20897 = vmatprep.mubr.f32.mxu0 %v26446_v21 }
0x123f   :  { %22672 = vmatpush3.bf16.xpose.msra.mxu0 %v22669_v44 }
0x1240   :  { %22674 = vmatprep.subr.bf16.mxu0 %v26453_v50 }
0x1246   :  { %20898 = vmatmul.mubr.f32.vlgmr.msra.gmra.mrb[40].mxu0 %v10684_v49 }
0x1247   :  { %20900 = vmatprep.mubr.f32.mxu0 %v10694_v1  ;;  %22676 = vmatpush3.bf16.xpose.msra.mxu0 %v26453_v50  ;;  %v18308_v1 = vld [vmem:[%s27782_s6 + $0xd8] sm:$0xff] }
0x1248   :  { %22678 = vmatprep.subr.bf16.mxu0 %v26482_v23 }
0x124a   :  { %20901 = vmatmul.mubr.f32.gmra.mrb[42].mxu0 %v10704_v54 }
0x124b   :  { %20911 = vmatprep.mubr.f32.mxu0 %v28050_v40 }
0x124f   :  { %22680 = vmatpush3.bf16.xpose.msra.mxu0 %v26482_v23 }
0x1250   :  { %22682 = vmatprep.subr.bf16.mxu0 %v22681_v59 }
0x1256   :  { %20912 = vmatmul.mubr.f32.vlgmr.msra.gmra.mrb[40].mxu0 %v10685_v62 }
0x1257   :  { %20914 = vmatprep.mubr.f32.mxu0 %v10695_v51  ;;  %22684 = vmatpush3.bf16.xpose.msra.mxu0 %v22681_v59 }
0x1258   :  { %22686 = vmatprep.subr.bf16.mxu0 %v22685_v7 }
0x125a   :  { %20915 = vmatmul.mubr.f32.gmra.mrb[42].mxu0 %v10705_v15 }
0x125b   :  { %20925 = vmatprep.mubr.f32.mxu0 %v26439_v28 }
0x125f   :  { %22688 = vmatpush3.bf16.xpose.msra.mxu0 %v22685_v7 }
0x1260   :  { %22690 = vmatprep.subr.bf16.mxu0 %v26453_v50 }
0x1266   :  { %20926 = vmatmul.mubr.f32.vlgmr.msra.gmra.mrb[40].mxu0 %v26474_v14 }
0x1267   :  { %20928 = vmatprep.mubr.f32.mxu0 %v26479_v2  ;;  %22692 = vmatpush3.bf16.xpose.msra.mxu0 %v26453_v50 }
0x1268   :  { %22694 = vmatprep.subr.bf16.mxu0 %v26482_v23 }
0x126a   :  { %20929 = vmatmul.mubr.f32.gmra.mrb[42].mxu0 %v26492_v11 }
0x126b   :  { %20939 = vmatprep.mubr.f32.mxu0 %v26439_v28  ;;  %v18306_v28 = vld [vmem:[%s27782_s6 + $0xc8] sm:$0xff] }
0x126f   :  { %22696 = vmatpush3.bf16.xpose.msra.mxu0 %v26482_v23 }
0x1276   :  { %20940 = vmatmul.mubr.f32.vlgmr.msra.gmra.mrb[40].mxu0 %v26474_v14  ;;  %v18305_v14 = vld [vmem:[%s27782_s6 + $0xc0] sm:$0xff] }
0x1277   :  { %20942 = vmatprep.mubr.f32.mxu0 %v26479_v2 }
0x127a   :  { %20943 = vmatmul.mubr.f32.gmra.mrb[42].mxu0 %v26492_v11 }
0x12e4   :  { %v26530_v21 = vpop.f32.mrb[36].mxu0 }
0x12e5   :  { %28053 = vst [vmem:[#allocation21_spill] sm:$0xff] %v26530_v21  ;;  %v26532_v15 = vpop.f32.mrb[37].mxu0 }
0x12e6   :  { %28054 = vst [vmem:[#allocation22_spill] sm:$0xff] %v26532_v15 }
0x12e8   :  { %v26534_v5 = vpop.f32.mrb[38].mxu0 }
0x12e9   :  { %28055 = vst [vmem:[#allocation23_spill] sm:$0xff] %v26534_v5  ;;  %v26536_v50 = vpop.f32.mrb[39].mxu0 }
0x12ea   :  { %28056 = vst [vmem:[#allocation24_spill] sm:$0xff] %v26536_v50 }
0x1349   :  { %v20941_v58 = vpop.f32.mrb[40].mxu0 }
0x134a   :  { %v11219_v3 = vmul.f32 0.5, %v20941_v58  ;;  %v11196_v23 = vpop.f32.mrb[41].mxu0 }
0x134b   :  { %v11218_v2 = vmul.f32 0.5, %v11196_v23 }
0x134c   :  { %v11228_v60 = vadd.f32 %v18306_v28, %v11219_v3 }
0x134d   :  { %v11227_v49 = vadd.f32 %v18305_v14, %v11218_v2  ;;  %v20944_v11 = vpop.f32.mrb[42].mxu0 }
0x134e   :  { %v11221_v6 = vmul.f32 0.5, %v20944_v11  ;;  %v11208_v29 = vpop.f32.mrb[43].mxu0  ;;  %v11234_v47 = vsel %vm1819_vm1, %v11228_v60, -inf }
0x134f   :  { %v11220_v62 = vmul.f32 0.5, %v11208_v29  ;;  %11235 = vmax.xlane.f32.xlu1 %v11234_v47  ;;  %v11231_v54 = vsel %vm1819_vm1, %v11227_v49, -inf }
0x1350   :  { %v11230_v51 = vadd.f32 %v18308_v1, %v11221_v6  ;;  %11232 = vmax.xlane.f32.xlu0 %v11231_v54 }
0x1351   :  { %v11229_v45 = vadd.f32 %v18307_v22, %v11220_v62 }
0x1352   :  { %v11240_v48 = vsel %vm1819_vm1, %v11230_v51, -inf }
0x1353   :  { %v11237_v63 = vsel %vm1819_vm1, %v11229_v45, -inf }
0x1354   :  { %11241 = vmax.xlane.f32.xlu0 %v11240_v48 }
0x1358   :  { %11238 = vmax.xlane.f32.xlu0 %v11237_v63 }
0x1360   :  { %11269 = vrot.lane.b32.xlu1 %v25149_v32, %s24087_s23 }
0x1364   :  { %11271 = vrot.lane.b32.xlu1 %v25161_v8, %s24087_s23 }
0x1368   :  { %11273 = vrot.lane.b32.xlu1 %v25169_v37, %s24087_s23 }
0x136c   :  { %11923 = vrot.lane.b32.xlu1 %v25149_v32, %s24088_s25 }
0x136e   :  { %11267 = vrot.lane.b32.xlu0 %v25151_v30, %s24087_s23 }
0x1370   :  { %11927 = vrot.lane.b32.xlu1 %v25169_v37, %s24088_s25 }
0x1372   :  { %11921 = vrot.lane.b32.xlu0 %v25151_v30, %s24088_s25 }
0x1374   :  { %11915 = vrot.lane.b32.xlu1 %v25149_v32, %s24089_s26 }
0x1376   :  { %11925 = vrot.lane.b32.xlu0 %v25161_v8, %s24088_s25 }
0x1378   :  { %11919 = vrot.lane.b32.xlu1 %v25169_v37, %s24089_s26 }
0x137a   :  { %11913 = vrot.lane.b32.xlu0 %v25151_v30, %s24089_s26 }
0x137e   :  { %11917 = vrot.lane.b32.xlu0 %v25161_v8, %s24089_s26  ;;  %s24096_s26 = smov 28  }
0x13dc   :  { %v11236_v52 = vpop.xlane.xlu1 %11235 }
0x13dd   :  { %v11244_v25 = vsub.f32 %v11228_v60, %v11236_v52  ;;  %v11233_v19 = vpop.xlane.xlu0 %11232 }
0x13de   :  { %v11243_v44 = vsub.f32 %v11227_v49, %v11233_v19 }
0x13df   :  { %v11249_v40 = vmul.f32 1.442695, %v11244_v25 }
0x13e0   :  { %v11247_v38 = vmul.f32 1.442695, %v11243_v44  ;;  %v11270_v12 = vpop.permute.xlu1 %11269 }
0x13e1   :  { %23876 = vpow2.f32 %v11249_v40  ;;  %v11295_v59 = vand.u32 4294901760, %v11270_v12  ;;  %v11242_v7 = vpop.xlane.xlu0 %11241 }
0x13e2   :  { %23878 = vpow2.f32 %v11247_v38  ;;  %v11246_v58 = vsub.f32 %v11230_v51, %v11242_v7 }
0x13e3   :  { %v26566_v23 = vsub.f32 %v11270_v12, %v11295_v59 }
0x13e4   :  { %v11253_v28 = vmul.f32 1.442695, %v11246_v58  ;;  %v11272_v3 = vpop.permute.xlu1 %11271 }
0x13e5   :  { %v11239_v14 = vpop.xlane.xlu0 %11238  ;;  %v11298_v11 = vand.u32 4294901760, %v11272_v3  ;;  %v27894_v49 = vand.u32 4294901760, %v26566_v23 }
0x13e6   :  { %v11245_v2 = vsub.f32 %v11229_v45, %v11239_v14  ;;  %23880 = vpow2.f32 %v11253_v28 }
0x13e7   :  { %v26577_v48 = vsub.f32 %v11272_v3, %v11298_v11  ;;  %v11411_v25 = vsub.f32 %v26566_v23, %v27894_v49 }
0x13e8   :  { %v11251_v1 = vmul.f32 1.442695, %v11245_v2  ;;  %v11274_v60 = vpop.permute.xlu1 %11273 }
0x13e9   :  { %v11301_v6 = vand.u32 4294901760, %v11274_v60  ;;  %v11268_v29 = vpop.permute.xlu0 %11267  ;;  %v27897_v7 = vand.u32 4294901760, %v26577_v48 }
0x13ea   :  { %v11292_v47 = vand.u32 4294901760, %v11268_v29  ;;  %23882 = vpow2.f32 %v11251_v1 }
0x13eb   :  { %v26569_v62 = vpop.eup %23876  ;;  %v26571_v54 = vsub.f32 %v11274_v60, %v11301_v6  ;;  %v26590_v44 = vpack.c.bf16 %v11301_v6, %v11298_v11  ;;  %v11412_v11 = vand.u32 4294901760, %v11411_v25 }
0x13ec   :  { %v26573_v51 = vpop.eup %23878  ;;  %v11283_v22 = vsel %vm1819_vm1, %v26569_v62, 0  ;;  %v26579_v45 = vpack.c.bf16 %v11295_v59, %v11292_v47  ;;  %v26581_v63 = vsub.f32 %v11268_v29, %v11292_v47  ;;  %v11418_v47 = vsub.f32 %v26577_v48, %v27897_v7 }
0x13ed   :  { %v26583_v52 = vand.u32 4294901760, %v11283_v22  ;;  %v11280_v19 = vsel %vm1819_vm1, %v26573_v51, 0  ;;  %v27893_v40 = vand.u32 4294901760, %v26571_v54 }
0x13ee   :  { %v27895_v38 = vand.u32 4294901760, %v26581_v63  ;;  %22698 = vmatprep.subr.bf16.mxu1 %v26579_v45  ;;  %v26595_v12 = vand.u32 4294901760, %v11280_v19 }
0x13ef   :  { %v26598_v59 = vsub.f32 %v11283_v22, %v26583_v52  ;;  %22700 = vmatpush3.bf16.msra.mxu1 %v26579_v45  ;;  %v11425_v1 = vsub.f32 %v26571_v54, %v27893_v40 }
0x13f0   :  { %22702 = vmatprep.subr.bf16.mxu1 %v26590_v44  ;;  %v11404_v58 = vsub.f32 %v26581_v63, %v27895_v38  ;;  %v11361_v28 = vsub.f32 %v11280_v19, %v26595_v12  ;;  %v26608_v14 = vpop.eup %23880  ;;  %v11419_v38 = vand.u32 4294901760, %v11418_v47 }
0x13f1   :  { %v27896_v3 = vand.u32 4294901760, %v26598_v59  ;;  %v11289_v25 = vsel %vm1819_vm1, %v26608_v14, 0 }
0x13f2   :  { %v11405_v2 = vand.u32 4294901760, %v11404_v58  ;;  %v11362_v60 = vand.u32 4294901760, %v11361_v28  ;;  %v11426_v58 = vand.u32 4294901760, %v11425_v1 }
0x13f3   :  { %22704 = vmatpush3.bf16.msra.mxu1 %v26590_v44  ;;  %v11373_v29 = vsub.f32 %v26598_v59, %v27896_v3 }
0x13f4   :  { %v22705_v6 = vpack.c.bf16 %v11412_v11, %v11405_v2  ;;  %v26620_v22 = vpop.eup %23882  ;;  %v11363_v19 = vsub.f32 %v11361_v28, %v11362_v60  ;;  %v26626_v11 = vand.u32 4294901760, %v11289_v25  ;;  %v22709_v7 = vpack.c.bf16 %v11426_v58, %v11419_v38  ;;  %v11922_v38 = vpop.permute.xlu0 %11921 }
0x13f5   :  { %v11374_v49 = vand.u32 4294901760, %v11373_v29  ;;  %v11286_v2 = vsel %vm1819_vm1, %v26620_v22, 0  ;;  %v22713_v29 = vpack.c.bf16 %v26566_v23, %v26581_v63 }
0x13f6   :  { %22706 = vmatprep.subr.bf16.mxu1 %v22705_v6  ;;  %v11364_v40 = vand.u32 4294901760, %v11363_v19  ;;  %v26628_v3 = vand.u32 4294901760, %v11286_v2  ;;  %v11391_v50 = vsub.f32 %v11289_v25, %v26626_v11 }
0x13f8   :  { %20953 = vmatprep.mubr.f32.mxu1 %v11364_v40  ;;  %v11381_v5 = vsub.f32 %v11286_v2, %v26628_v3  ;;  %v11392_v1 = vand.u32 4294901760, %v11391_v50  ;;  %v28059_v2 = vand.u32 4294901760, %v26598_v59 }
0x13f9   :  { %20954 = vmatmul.mubr.f32.vlgmr.msra.gmra.mrb[68].mxu1 %v11374_v49  ;;  %v22717_v49 = vpack.c.bf16 %v26571_v54, %v26577_v48 }
0x13fa   :  { %22708 = vmatpush3.bf16.msra.mxu1 %v22705_v6  ;;  %v11382_v19 = vand.u32 4294901760, %v11381_v5  ;;  %v11393_v47 = vsub.f32 %v11391_v50, %v11392_v1 }
0x13fb   :  { %22710 = vmatprep.subr.bf16.mxu1 %v22709_v7 }
0x13fc   :  { %v11383_v21 = vsub.f32 %v11381_v5, %v11382_v19  ;;  %v11394_v15 = vand.u32 4294901760, %v11393_v47 }
0x13fe   :  { %22712 = vmatpush3.bf16.msra.mxu1 %v22709_v7  ;;  %v11384_v40 = vand.u32 4294901760, %v11383_v21  ;;  %v11926_v21 = vpop.permute.xlu0 %11925  ;;  %v28058_v7 = vand.u32 4294901760, %v26566_v23 }
0x13ff   :  { %22714 = vmatprep.subr.bf16.mxu1 %v22713_v29 }
0x1400   :  { %20956 = vmatprep.mubr.f32.mxu1 %v11384_v40 }
0x1401   :  { %20957 = vmatmul.mubr.f32.gmra.mrb[70].mxu1 %v11394_v15  ;;  %v28057_v15 = vand.u32 4294901760, %v26581_v63 }
0x1402   :  { %20967 = vmatprep.mubr.f32.mxu1 %v26595_v12  ;;  %v11914_v25 = vpop.permute.xlu0 %11913 }
0x1403   :  { %v22729_v6 = vpack.c.bf16 %v28058_v7, %v28057_v15  ;;  %v11929_v58 = vsel %vm2542_vm2, %v11914_v25, 0 }
0x1404   :  { %v26656_v23 = vand.u32 4294901760, %v11929_v58 }
0x1405   :  { %20968 = vmatmul.mubr.f32.vlgmr.msra.gmra.mrb[68].mxu1 %v26583_v52 }
0x1406   :  { %22716 = vmatpush3.bf16.msra.mxu1 %v22713_v29  ;;  %20970 = vmatprep.mubr.f32.mxu1 %v26628_v3  ;;  %v11918_v7 = vpop.permute.xlu0 %11917 }
0x1407   :  { %22718 = vmatprep.subr.bf16.mxu1 %v22717_v49 }
0x1409   :  { %20971 = vmatmul.mubr.f32.gmra.mrb[70].mxu1 %v26626_v11 }
0x140a   :  { %22720 = vmatpush3.bf16.msra.mxu1 %v22717_v49  ;;  %20981 = vmatprep.mubr.f32.mxu1 %v11361_v28  ;;  %v11924_v28 = vpop.permute.xlu1 %11923 }
0x140b   :  { %22722 = vmatprep.subr.bf16.mxu1 %v26579_v45  ;;  %v11939_v63 = vsel %vm2542_vm2, %v11924_v28, 0 }
0x140d   :  { %20982 = vmatmul.mubr.f32.vlgmr.msra.gmra.mrb[68].mxu1 %v26598_v59 }
0x140e   :  { %22724 = vmatpush3.bf16.msra.mxu1 %v26579_v45  ;;  %20984 = vmatprep.mubr.f32.mxu1 %v11381_v5  ;;  %v28060_v5 = vand.u32 4294901760, %v26577_v48  ;;  %v11928_v47 = vpop.permute.xlu1 %11927  ;;  %v26663_v48 = vsub.f32 %v11929_v58, %v26656_v23 }
0x140f   :  { %22726 = vmatprep.subr.bf16.mxu1 %v26590_v44  ;;  %v11943_v15 = vsel %vm2542_vm2, %v11928_v47, 0 }
0x1410   :  { %v11955_v25 = vand.u32 4294901760, %v11943_v15 }
0x1411   :  { %20985 = vmatmul.mubr.f32.gmra.mrb[70].mxu1 %v11391_v50  ;;  %v28061_v50 = vand.u32 4294901760, %v26571_v54  ;;  %v11949_v54 = vand.u32 4294901760, %v11939_v63 }
0x1412   :  { %22728 = vmatpush3.bf16.msra.mxu1 %v26590_v44  ;;  %20995 = vmatprep.mubr.f32.mxu1 %v11362_v60  ;;  %v11937_v60 = vsel %vm2542_vm2, %v11922_v38, 0 }
0x1413   :  { %22730 = vmatprep.subr.bf16.mxu1 %v22729_v6  ;;  %v22733_v29 = vpack.c.bf16 %v28061_v50, %v28060_v5  ;;  %v11946_v59 = vand.u32 4294901760, %v11937_v60  ;;  %v26673_v49 = vsub.f32 %v11939_v63, %v11949_v54 }
0x1415   :  { %20996 = vmatmul.mubr.f32.vlgmr.msra.gmra.mrb[68].mxu1 %v28059_v2  ;;  %v26670_v40 = vpack.c.bf16 %v11949_v54, %v11946_v59  ;;  %v26675_v38 = vsub.f32 %v11937_v60, %v11946_v59  ;;  %v27898_v58 = vand.u32 4294901760, %v26673_v49 }
0x1416   :  { %22732 = vmatpush3.bf16.msra.mxu1 %v22729_v6  ;;  %20998 = vmatprep.mubr.f32.mxu1 %v11382_v19  ;;  %v27900_v19 = vand.u32 4294901760, %v26663_v48 }
0x1417   :  { %22734 = vmatprep.subr.bf16.mxu1 %v22733_v29 }
0x1418   :  { %v12017_v6 = vsub.f32 %v26663_v48, %v27900_v19 }
0x1419   :  { %20999 = vmatmul.mubr.f32.gmra.mrb[70].mxu1 %v11392_v1  ;;  %v11916_v1 = vpop.permute.xlu1 %11915 }
0x141a   :  { %22736 = vmatpush3.bf16.msra.mxu1 %v22733_v29  ;;  %21009 = vmatprep.mubr.f32.mxu1 %v26595_v12  ;;  %v11931_v28 = vsel %vm2542_vm2, %v11916_v1, 0  ;;  %v12018_v50 = vand.u32 4294901760, %v12017_v6  ;;  %v26693_v29 = vsub.f32 %v11943_v15, %v11955_v25 }
0x141b   :  { %22738 = vmatprep.subr.bf16.mxu1 %v26579_v45  ;;  %v26691_v5 = vand.u32 4294901760, %v11931_v28 }
0x141c   :  { %v12078_v15 = vand.u32 4294901760, %v26693_v29 }
0x141d   :  { %21010 = vmatmul.mubr.f32.vlgmr.msra.gmra.mrb[68].mxu1 %v26583_v52  ;;  %v12025_v59 = vsub.f32 %v11931_v28, %v26691_v5 }
0x141e   :  { %22740 = vmatpush3.bf16.msra.mxu1 %v26579_v45  ;;  %21012 = vmatprep.mubr.f32.mxu1 %v26628_v3  ;;  %v11941_v45 = vsel %vm2542_vm2, %v11926_v21, 0  ;;  %v11933_v21 = vsel %vm2542_vm2, %v11918_v7, 0 }
0x141f   :  { %22742 = vmatprep.subr.bf16.mxu1 %v26590_v44  ;;  %v11952_v2 = vand.u32 4294901760, %v11941_v45  ;;  %v26696_v60 = vand.u32 4294901760, %v11933_v21 }
0x1421   :  { %21013 = vmatmul.mubr.f32.gmra.mrb[70].mxu1 %v26626_v11  ;;  %v12070_v47 = vsub.f32 %v11941_v45, %v11952_v2 }
0x1422   :  { %22744 = vmatpush3.bf16.msra.mxu1 %v26590_v44  ;;  %21023 = vmatprep.mubr.f32.mxu1 %v26595_v12  ;;  %v27899_v44 = vand.u32 4294901760, %v26675_v38  ;;  %v11920_v12 = vpop.permute.xlu1 %11919 }
0x1423   :  { %22746 = vmatprep.subr.bf16.mxu1 %v26670_v40  ;;  %v11935_v63 = vsel %vm2542_vm2, %v11920_v12, 0  ;;  %v12071_v45 = vand.u32 4294901760, %v12070_v47 }
0x1424   :  { %v12058_v54 = vsub.f32 %v26675_v38, %v27899_v44  ;;  %v26709_v1 = vand.u32 4294901760, %v11935_v63  ;;  %v12079_v44 = vsub.f32 %v26693_v29, %v12078_v15 }
0x1425   :  { %21024 = vmatmul.mubr.f32.vlgmr.msra.gmra.mrb[68].mxu1 %v26583_v52  ;;  %v26699_v52 = vpack.c.bf16 %v11955_v25, %v11952_v2  ;;  %v12026_v25 = vand.u32 4294901760, %v12025_v59 }
0x1426   :  { %21026 = vmatprep.mubr.f32.mxu1 %v26628_v3  ;;  %v12065_v3 = vsub.f32 %v26673_v49, %v27898_v58  ;;  %v12059_v7 = vand.u32 4294901760, %v12058_v54  ;;  %v12045_v2 = vsub.f32 %v11935_v63, %v26709_v1  ;;  %v12072_v58 = vsub.f32 %v12070_v47, %v12071_v45 }
0x1427   :  { %v12027_v28 = vsub.f32 %v12025_v59, %v12026_v25  ;;  %v12080_v57 = vand.u32 4294901760, %v12079_v44  ;;  %v22781_v44 = vpack.c.bf16 %v12078_v15, %v12071_v45 }
0x1428   :  { %v12066_v6 = vand.u32 4294901760, %v12065_v3  ;;  %v12046_v19 = vand.u32 4294901760, %v12045_v2 }
0x1429   :  { %21027 = vmatmul.mubr.f32.gmra.mrb[70].mxu1 %v26626_v11  ;;  %v12035_v11 = vsub.f32 %v11933_v21, %v26696_v60  ;;  %v12073_v21 = vand.u32 4294901760, %v12072_v58  ;;  %v12028_v39 = vand.u32 4294901760, %v12027_v28  ;;  %v22765_v58 = vpack.c.bf16 %v26693_v29, %v12070_v47 }
0x142a   :  { %21037 = vmatprep.mubr.f32.mxu1 %v12018_v50  ;;  %v22753_v50 = vpack.c.bf16 %v12066_v6, %v12059_v7  ;;  %v12047_v46 = vsub.f32 %v12045_v2, %v12046_v19  ;;  %v22761_v7 = vpack.c.bf16 %v26673_v49, %v26675_v38 }
0x142b   :  { %22748 = vmatpush3.bf16.xpose.msra.mxu1 %v26670_v40  ;;  %v12036_v12 = vand.u32 4294901760, %v12035_v11  ;;  %v22757_v3 = vpack.c.bf16 %v12080_v57, %v12073_v21  ;;  %v28064_v57 = vand.u32 4294901760, %v26673_v49 }
0x142c   :  { %22750 = vmatprep.subr.bf16.mxu1 %v26699_v52  ;;  %v12048_v63 = vand.u32 4294901760, %v12047_v46  ;;  %v28062_v46 = vand.u32 4294901760, %v26663_v48 }
0x142d   :  { %v12037_v31 = vsub.f32 %v12035_v11, %v12036_v12 }
0x142f   :  { %v12038_v54 = vand.u32 4294901760, %v12037_v31 }
0x1433   :  { %22752 = vmatpush3.bf16.xpose.msra.mxu1 %v26699_v52 }
0x1434   :  { %22754 = vmatprep.subr.bf16.mxu1 %v22753_v50 }
0x143a   :  { %21038 = vmatmul.mubr.f32.vlgmr.msra.gmra.mrb[72].mxu1 %v12028_v39  ;;  %v28063_v39 = vand.u32 4294901760, %v26675_v38 }
0x143b   :  { %21040 = vmatprep.mubr.f32.mxu1 %v12038_v54  ;;  %22756 = vmatpush3.bf16.xpose.msra.mxu1 %v22753_v50  ;;  %v18311_v50 = vld [vmem:[%s27782_s6 + $0xf0] sm:$0xff] }
0x143c   :  { %22758 = vmatprep.subr.bf16.mxu1 %v22757_v3  ;;  %v22777_v31 = vpack.c.bf16 %v28064_v57, %v28063_v39 }
0x143e   :  { %21041 = vmatmul.mubr.f32.gmra.mrb[74].mxu1 %v12048_v63  ;;  %v4550_v63 = vsel %vm1819_vm1, %v25488_v56, 0.0  ;;  %v5897_v56 = vsel %vm1819_vm1, %v25752_v42, 0.0  ;;  %v4559_v42 = vsel %vm1819_vm1, %v25523_v0, 0.0  ;;  %v9923_v0 = vsel %vm1819_vm1, %v26391_v26, 0.0 }
0x143f   :  { %21051 = vmatprep.mubr.f32.mxu1 %v26656_v23 }
0x1443   :  { %22760 = vmatpush3.bf16.xpose.msra.mxu1 %v22757_v3  ;;  %v4553_v3 = vsel %vm1819_vm1, %v25484_v18, 0.0  ;;  %v7232_v18 = vsel %vm1819_vm1, %v25922_v10, 0.0  ;;  %v8579_v10 = vsel %vm1819_vm1, %v26186_v55, 0.0  ;;  %v11258_v55 = vsel %vm1819_vm1, %v26569_v62, 0.0 }
0x1444   :  { %22762 = vmatprep.subr.bf16.mxu1 %v22761_v7 }
0x144a   :  { %21052 = vmatmul.mubr.f32.vlgmr.msra.gmra.mrb[72].mxu1 %v26691_v5 }
0x144b   :  { %21054 = vmatprep.mubr.f32.mxu1 %v26696_v60  ;;  %22764 = vmatpush3.bf16.xpose.msra.mxu1 %v22761_v7  ;;  %v7235_v7 = vsel %vm1819_vm1, %v25918_v41, 0.0  ;;  %v7238_v41 = vsel %vm1819_vm1, %v25969_v27, 0.0  ;;  %v5900_v27 = vsel %vm1819_vm1, %v25740_v36, 0.0  ;;  %v9920_v36 = vsel %vm1819_vm1, %v26403_v53, 0.0 }
0x144c   :  { %22766 = vmatprep.subr.bf16.mxu1 %v22765_v58 }
0x144e   :  { %21055 = vmatmul.mubr.f32.gmra.mrb[74].mxu1 %v26709_v1 }
0x144f   :  { %21065 = vmatprep.mubr.f32.mxu1 %v26663_v48 }
0x1453   :  { %22768 = vmatpush3.bf16.xpose.msra.mxu1 %v22765_v58 }
0x1454   :  { %22770 = vmatprep.subr.bf16.mxu1 %v26670_v40 }
0x145a   :  { %21066 = vmatmul.mubr.f32.vlgmr.msra.gmra.mrb[72].mxu1 %v12025_v59 }
0x145b   :  { %21068 = vmatprep.mubr.f32.mxu1 %v12035_v11  ;;  %22772 = vmatpush3.bf16.xpose.msra.mxu1 %v26670_v40  ;;  %v18312_v11 = vld [vmem:[%s27782_s6 + $0xf8] sm:$0xff] }
0x145c   :  { %22774 = vmatprep.subr.bf16.mxu1 %v26699_v52 }
0x145e   :  { %21069 = vmatmul.mubr.f32.gmra.mrb[74].mxu1 %v12045_v2 }
0x145f   :  { %21079 = vmatprep.mubr.f32.mxu1 %v28062_v46 }
0x1463   :  { %22776 = vmatpush3.bf16.xpose.msra.mxu1 %v26699_v52 }
0x1464   :  { %22778 = vmatprep.subr.bf16.mxu1 %v22777_v31 }
0x146a   :  { %21080 = vmatmul.mubr.f32.vlgmr.msra.gmra.mrb[72].mxu1 %v12026_v25 }
0x146b   :  { %21082 = vmatprep.mubr.f32.mxu1 %v12036_v12  ;;  %22780 = vmatpush3.bf16.xpose.msra.mxu1 %v22777_v31 }
0x146c   :  { %22782 = vmatprep.subr.bf16.mxu1 %v22781_v44 }
0x146e   :  { %21083 = vmatmul.mubr.f32.gmra.mrb[74].mxu1 %v12046_v19 }
0x146f   :  { %21093 = vmatprep.mubr.f32.mxu1 %v26656_v23 }
0x1473   :  { %22784 = vmatpush3.bf16.xpose.msra.mxu1 %v22781_v44 }
0x1474   :  { %22786 = vmatprep.subr.bf16.mxu1 %v26670_v40 }
0x147a   :  { %21094 = vmatmul.mubr.f32.vlgmr.msra.gmra.mrb[72].mxu1 %v26691_v5 }
0x147b   :  { %21096 = vmatprep.mubr.f32.mxu1 %v26696_v60  ;;  %22788 = vmatpush3.bf16.xpose.msra.mxu1 %v26670_v40 }
0x147c   :  { %22790 = vmatprep.subr.bf16.mxu1 %v26699_v52 }
0x147e   :  { %21097 = vmatmul.mubr.f32.gmra.mrb[74].mxu1 %v26709_v1 }
0x147f   :  { %21107 = vmatprep.mubr.f32.mxu1 %v26656_v23  ;;  %v18310_v23 = vld [vmem:[%s27782_s6 + $0xe8] sm:$0xff] }
0x1483   :  { %22792 = vmatpush3.bf16.xpose.msra.mxu1 %v26699_v52 }
0x148a   :  { %21108 = vmatmul.mubr.f32.vlgmr.msra.gmra.mrb[72].mxu1 %v26691_v5  ;;  %v18309_v5 = vld [vmem:[%s27782_s6 + $0xe0] sm:$0xff]  ;;  %s24091_s6 = smov 4  }
0x148b   :  { %21110 = vmatprep.mubr.f32.mxu1 %v26696_v60 }
0x148e   :  { %21111 = vmatmul.mubr.f32.gmra.mrb[74].mxu1 %v26709_v1 }
0x14f8   :  { %v26747_v48 = vpop.f32.mrb[68].mxu1 }
0x14f9   :  { %v26749_v19 = vpop.f32.mrb[69].mxu1 }
0x14fc   :  { %v26751_v49 = vpop.f32.mrb[70].mxu1 }
0x14fd   :  { %v26753_v40 = vpop.f32.mrb[71].mxu1 }
0x155d   :  { %v21109_v38 = vpop.f32.mrb[72].mxu1 }
0x155e   :  { %v12560_v29 = vmul.f32 0.5, %v21109_v38  ;;  %v12537_v52 = vpop.f32.mrb[73].mxu1 }
0x155f   :  { %v12559_v60 = vmul.f32 0.5, %v12537_v52 }
0x1560   :  { %v26761_v47 = vadd.f32 %v18310_v23, %v12560_v29 }
0x1561   :  { %v26763_v59 = vadd.f32 %v18309_v5, %v12559_v60  ;;  %v21112_v1 = vpop.f32.mrb[74].mxu1 }
0x1562   :  { %v12562_v15 = vmul.f32 0.5, %v21112_v1  ;;  %v12549_v45 = vpop.f32.mrb[75].mxu1  ;;  %v12575_v6 = vsel %vm1819_vm1, %v26761_v47, -inf }
0x1563   :  { %v12561_v25 = vmul.f32 0.5, %v12549_v45  ;;  %12576 = vmax.xlane.f32.xlu1 %v12575_v6  ;;  %v12572_v2 = vsel %vm1819_vm1, %v26763_v59, -inf }
0x1564   :  { %v26772_v12 = vadd.f32 %v18312_v11, %v12562_v15  ;;  %12573 = vmax.xlane.f32.xlu0 %v12572_v2 }
0x1565   :  { %v26779_v21 = vadd.f32 %v18311_v50, %v12561_v25 }
0x1566   :  { %v12581_v28 = vsel %vm1819_vm1, %v26772_v12, -inf }
0x1567   :  { %v12578_v54 = vsel %vm1819_vm1, %v26779_v21, -inf }
0x1568   :  { %12582 = vmax.xlane.f32.xlu0 %v12581_v28 }
0x156c   :  { %12579 = vmax.xlane.f32.xlu0 %v12578_v54 }
0x1574   :  { %12610 = vrot.lane.b32.xlu1 %v25149_v32, %s24090_s17  ;;  %v5891_v32 = vsel %vm1819_vm1, %v25705_v61, 0.0  ;;  %v8576_v61 = vsel %vm1819_vm1, %v26135_v4, 0.0  ;;  %v8582_v4 = vsel %vm1819_vm1, %v26174_v43, 0.0  ;;  %v7241_v43 = vsel %vm1819_vm1, %v25957_v34, 0.0 }
0x1578   :  { %12612 = vrot.lane.b32.xlu1 %v25161_v8, %s24090_s17  ;;  %v4556_v8 = vsel %vm1819_vm1, %v25535_v16, 0.0  ;;  %v8573_v16 = vsel %vm1819_vm1, %v26139_v13, 0.0  ;;  %v9917_v13 = vsel %vm1819_vm1, %v26352_v20, 0.0  ;;  %v11264_v20 = vsel %vm1819_vm1, %v26608_v14, 0.0 }
0x157c   :  { %12614 = vrot.lane.b32.xlu1 %v25169_v37, %s24090_s17  ;;  %v9914_v37 = vsel %vm1819_vm1, %v26356_v35, 0.0  ;;  %v11261_v35 = vsel %vm1819_vm1, %v26620_v22, 0.0 }
0x1582   :  { %12608 = vrot.lane.b32.xlu0 %v25151_v30, %s24090_s17  ;;  %v5894_v30 = vsel %vm1819_vm1, %v25701_v24, 0.0  ;;  %v11255_v24 = vsel %vm1819_vm1, %v26573_v51, 0.0 }
0x15a0   :  { %4554 = vadd.xlane.f32.xlu1 %v4553_v3 }
0x15a1   :  { %4551 = vadd.xlane.f32.xlu0 %v4550_v63 }
0x15a4   :  { %7236 = vadd.xlane.f32.xlu1 %v7235_v7 }
0x15a5   :  { %5892 = vadd.xlane.f32.xlu0 %v5891_v32 }
0x15a8   :  { %4557 = vadd.xlane.f32.xlu1 %v4556_v8 }
0x15a9   :  { %5895 = vadd.xlane.f32.xlu0 %v5894_v30 }
0x15ac   :  { %9915 = vadd.xlane.f32.xlu1 %v9914_v37 }
0x15ad   :  { %7233 = vadd.xlane.f32.xlu0 %v7232_v18 }
0x15b0   :  { %5898 = vadd.xlane.f32.xlu1 %v5897_v56 }
0x15b1   :  { %8574 = vadd.xlane.f32.xlu0 %v8573_v16 }
0x15b4   :  { %11256 = vadd.xlane.f32.xlu1 %v11255_v24 }
0x15b5   :  { %8577 = vadd.xlane.f32.xlu0 %v8576_v61 }
0x15b8   :  { %7239 = vadd.xlane.f32.xlu1 %v7238_v41 }
0x15b9   :  { %4560 = vadd.xlane.f32.xlu0 %v4559_v42 }
0x15bc   :  { %8580 = vadd.xlane.f32.xlu1 %v8579_v10 }
0x15bd   :  { %9918 = vadd.xlane.f32.xlu0 %v9917_v13 }
0x15c0   :  { %8583 = vadd.xlane.f32.xlu1 %v8582_v4 }
0x15c1   :  { %5901 = vadd.xlane.f32.xlu0 %v5900_v27 }
0x15c4   :  { %9924 = vadd.xlane.f32.xlu1 %v9923_v0 }
0x15c5   :  { %11259 = vadd.xlane.f32.xlu0 %v11258_v55 }
0x15c8   :  { %11265 = vadd.xlane.f32.xlu1 %v11264_v20 }
0x15c9   :  { %7242 = vadd.xlane.f32.xlu0 %v7241_v43 }
0x15cd   :  { %9921 = vadd.xlane.f32.xlu0 %v9920_v36 }
0x15d1   :  { %11262 = vadd.xlane.f32.xlu0 %v11261_v35 }
0x15f0   :  { %v12577_v26 = vpop.xlane.xlu1 %12576 }
0x15f1   :  { %v12585_v62 = vsub.f32 %v26761_v47, %v12577_v26  ;;  %v12574_v51 = vpop.xlane.xlu0 %12573  ;;  %v3212_v26 = vsel %vm1819_vm1, %v25267_v33, 0.0  ;;  %v3218_v33 = vsel %vm1819_vm1, %v25306_v9, 0.0 }
0x15f2   :  { %v12584_v58 = vsub.f32 %v26763_v59, %v12574_v51 }
0x15f3   :  { %v12590_v14 = vmul.f32 1.442695, %v12585_v62 }
0x15f4   :  { %v12588_v46 = vmul.f32 1.442695, %v12584_v58  ;;  %v12611_v39 = vpop.permute.xlu1 %12610 }
0x15f5   :  { %23884 = vpow2.f32 %v12590_v14  ;;  %v12583_v34 = vpop.xlane.xlu0 %12582  ;;  %v12636_v57 = vand.u32 4294901760, %v12611_v39 }
0x15f6   :  { %23886 = vpow2.f32 %v12588_v46  ;;  %v12587_v53 = vsub.f32 %v26772_v12, %v12583_v34 }
0x15f7   :  { %v26838_v22 = vsub.f32 %v12611_v39, %v12636_v57 }
0x15f8   :  { %v12594_v31 = vmul.f32 1.442695, %v12587_v53  ;;  %v12613_v44 = vpop.permute.xlu1 %12612 }
0x15f9   :  { %v12580_v38 = vpop.xlane.xlu0 %12579  ;;  %v12639_v29 = vand.u32 4294901760, %v12613_v44  ;;  %v12751_v59 = vand.u32 4294901760, %v26838_v22 }
0x15fa   :  { %23888 = vpow2.f32 %v12594_v31  ;;  %v12586_v23 = vsub.f32 %v26779_v21, %v12580_v38 }
0x15fb   :  { %v26842_v15 = vsub.f32 %v12613_v44, %v12639_v29  ;;  %v12752_v32 = vsub.f32 %v26838_v22, %v12751_v59  ;;  %v3209_v44 = vsel %vm1819_vm1, %v25271_v17, 0.0 }
0x15fc   :  { %v12592_v52 = vmul.f32 1.442695, %v12586_v23  ;;  %v12615_v5 = vpop.permute.xlu1 %12614 }
0x15fd   :  { %v12642_v60 = vand.u32 4294901760, %v12615_v5  ;;  %v12609_v47 = vpop.permute.xlu0 %12608  ;;  %v12758_v37 = vand.u32 4294901760, %v26842_v15  ;;  %v12753_v13 = vand.u32 4294901760, %v12752_v32 }
0x15fe   :  { %23890 = vpow2.f32 %v12592_v52  ;;  %v12633_v1 = vand.u32 4294901760, %v12609_v47 }
0x15ff   :  { %v23885_v11 = vpop.eup %23884  ;;  %v26844_v45 = vsub.f32 %v12615_v5, %v12642_v60  ;;  %v26857_v63 = vpack.c.bf16 %v12642_v60, %v12639_v29  ;;  %v12759_v55 = vsub.f32 %v26842_v15, %v12758_v37  ;;  %v28065_v5 = vld [vmem:[#allocation17_spill] sm:$0xff] }
0x1600   :  { %v23887_v6 = vpop.eup %23886  ;;  %v12624_v25 = vsel %vm1819_vm1, %v23885_v11, 0  ;;  %v26847_v2 = vpack.c.bf16 %v12636_v57, %v12633_v1  ;;  %v26849_v12 = vsub.f32 %v12609_v47, %v12633_v1  ;;  %v12599_v50 = vsel %vm1819_vm1, %v23885_v11, 0.0 }
0x1601   :  { %v26852_v28 = vand.u32 4294901760, %v12624_v25  ;;  %v12765_v21 = vand.u32 4294901760, %v26844_v45  ;;  %12600 = vadd.xlane.f32.xlu0 %v12599_v50  ;;  %v12596_v54 = vsel %vm1819_vm1, %v23887_v6, 0.0  ;;  %v12621_v3 = vsel %vm1819_vm1, %v23887_v6, 0 }
0x1602   :  { %v12744_v7 = vand.u32 4294901760, %v26849_v12  ;;  %12597 = vadd.xlane.f32.xlu1 %v12596_v54  ;;  %22794 = vmatprep.subr.bf16.mxu0 %v26847_v2  ;;  %v26864_v8 = vand.u32 4294901760, %v12621_v3  ;;  %v12760_v34 = vand.u32 4294901760, %v12759_v55  ;;  %v22809_v52 = vpack.c.bf16 %v26838_v22, %v26849_v12 }
0x1603   :  { %v26867_v30 = vsub.f32 %v12624_v25, %v26852_v28  ;;  %22796 = vmatpush3.bf16.msra.mxu0 %v26847_v2  ;;  %v12766_v24 = vsub.f32 %v26844_v45, %v12765_v21  ;;  %v3215_v60 = vsel %vm1819_vm1, %v28065_v5, 0.0  ;;  %v22813_v17 = vpack.c.bf16 %v26844_v45, %v26842_v15  ;;  %v28077_v5 = vld [vmem:[#allocation33_spill] sm:$0xff] }
0x1604   :  { %v23889_v18 = vpop.eup %23888  ;;  %v12745_v56 = vsub.f32 %v26849_v12, %v12744_v7  ;;  %22798 = vmatprep.subr.bf16.mxu0 %v26857_v63  ;;  %v26876_v16 = vsub.f32 %v12621_v3, %v26864_v8  ;;  %v22825_v1 = vpack.c.bf16 %v12751_v59, %v12744_v7  ;;  %v22829_v11 = vpack.c.bf16 %v12765_v21, %v12758_v37  ;;  %v28067_v7 = vld [vmem:[#allocation30_spill] sm:$0xff] }
0x1605   :  { %v12605_v61 = vsel %vm1819_vm1, %v23889_v18, 0.0  ;;  %v12713_v41 = vand.u32 4294901760, %v26867_v30  ;;  %v12630_v42 = vsel %vm1819_vm1, %v23889_v18, 0  ;;  %v12767_v51 = vand.u32 4294901760, %v12766_v24  ;;  %v28069_v24 = vld [vmem:[#allocation9_spill] sm:$0xff] }
0x1606   :  { %12606 = vadd.xlane.f32.xlu1 %v12605_v61  ;;  %v12746_v10 = vand.u32 4294901760, %v12745_v56  ;;  %v12703_v4 = vand.u32 4294901760, %v26876_v16  ;;  %v26885_v27 = vand.u32 4294901760, %v12630_v42 }
0x1607   :  { %22800 = vmatpush3.bf16.msra.mxu0 %v26857_v63  ;;  %v12714_v0 = vsub.f32 %v26867_v30, %v12713_v41  ;;  %v22805_v31 = vpack.c.bf16 %v12767_v51, %v12760_v34  ;;  %v28073_v51 = vld [vmem:[#allocation18_spill] sm:$0xff] }
0x1608   :  { %v23891_v20 = vpop.eup %23890  ;;  %v22801_v43 = vpack.c.bf16 %v12753_v13, %v12746_v10  ;;  %v12704_v36 = vsub.f32 %v26876_v16, %v12703_v4  ;;  %v12732_v35 = vsub.f32 %v12630_v42, %v26885_v27  ;;  %v28074_v34 = vld [vmem:[#allocation22_spill] sm:$0xff] }
0x1609   :  { %v12602_v62 = vsel %vm1819_vm1, %v23891_v20, 0.0  ;;  %v12627_v58 = vsel %vm1819_vm1, %v23891_v20, 0  ;;  %v12715_v39 = vand.u32 4294901760, %v12714_v0  ;;  %v28071_v0 = vld [vmem:[#allocation13_spill] sm:$0xff] }
0x160a   :  { %3213 = vadd.xlane.f32.xlu1 %v3212_v26  ;;  %12603 = vadd.xlane.f32.xlu0 %v12602_v62  ;;  %v12705_v14 = vand.u32 4294901760, %v12704_v36  ;;  %v26900_v46 = vand.u32 4294901760, %v12627_v58  ;;  %v12733_v57 = vand.u32 4294901760, %v12732_v35  ;;  %v28072_v26 = vld [vmem:[#allocation32_spill] sm:$0xff] }
0x160b   :  { %22802 = vmatprep.subr.bf16.mxu0 %v22801_v43 }
0x160c   :  { %21121 = vmatprep.mubr.f32.mxu0 %v12705_v14  ;;  %v12722_v53 = vsub.f32 %v12627_v58, %v26900_v46  ;;  %v12734_v23 = vsub.f32 %v12732_v35, %v12733_v57 }
0x160d   :  { %21122 = vmatmul.mubr.f32.vlgmr.msra.gmra.mrb[44].mxu0 %v12715_v39 }
0x160e   :  { %22804 = vmatpush3.bf16.msra.mxu0 %v22801_v43  ;;  %3219 = vadd.xlane.f32.xlu1 %v3218_v33  ;;  %v12723_v38 = vand.u32 4294901760, %v12722_v53  ;;  %v12735_v9 = vand.u32 4294901760, %v12734_v23 }
0x160f   :  { %3210 = vadd.xlane.f32.xlu0 %v3209_v44  ;;  %22806 = vmatprep.subr.bf16.mxu0 %v22805_v31 }
0x1610   :  { %v12724_v29 = vsub.f32 %v12722_v53, %v12723_v38 }
0x1612   :  { %22808 = vmatpush3.bf16.msra.mxu0 %v22805_v31  ;;  %v12725_v47 = vand.u32 4294901760, %v12724_v29  ;;  %v28076_v29 = vld [vmem:[#allocation11_spill] sm:$0xff] }
0x1613   :  { %3216 = vadd.xlane.f32.xlu0 %v3215_v60  ;;  %22810 = vmatprep.subr.bf16.mxu0 %v22809_v52 }
0x1614   :  { %21124 = vmatprep.mubr.f32.mxu0 %v12725_v47 }
0x1615   :  { %21125 = vmatmul.mubr.f32.gmra.mrb[46].mxu0 %v12735_v9 }
0x1616   :  { %21135 = vmatprep.mubr.f32.mxu0 %v26864_v8 }
0x1619   :  { %21136 = vmatmul.mubr.f32.vlgmr.msra.gmra.mrb[44].mxu0 %v26852_v28 }
0x161a   :  { %22812 = vmatpush3.bf16.msra.mxu0 %v22809_v52  ;;  %21138 = vmatprep.mubr.f32.mxu0 %v26900_v46 }
0x161b   :  { %22814 = vmatprep.subr.bf16.mxu0 %v22813_v17 }
0x161d   :  { %21139 = vmatmul.mubr.f32.gmra.mrb[46].mxu0 %v26885_v27 }
0x161e   :  { %22816 = vmatpush3.bf16.msra.mxu0 %v22813_v17  ;;  %21149 = vmatprep.mubr.f32.mxu0 %v26876_v16 }
0x161f   :  { %22818 = vmatprep.subr.bf16.mxu0 %v26847_v2 }
0x1621   :  { %21150 = vmatmul.mubr.f32.vlgmr.msra.gmra.mrb[44].mxu0 %v26867_v30 }
0x1622   :  { %22820 = vmatpush3.bf16.msra.mxu0 %v26847_v2  ;;  %21152 = vmatprep.mubr.f32.mxu0 %v12722_v53  ;;  %v28075_v53 = vld [vmem:[#allocation16_spill] sm:$0xff] }
0x1623   :  { %22822 = vmatprep.subr.bf16.mxu0 %v26857_v63 }
0x1625   :  { %21153 = vmatmul.mubr.f32.gmra.mrb[46].mxu0 %v12732_v35 }
0x1626   :  { %22824 = vmatpush3.bf16.msra.mxu0 %v26857_v63  ;;  %21163 = vmatprep.mubr.f32.mxu0 %v12703_v4  ;;  %v28070_v4 = vld [vmem:[#allocation12_spill] sm:$0xff] }
0x1627   :  { %22826 = vmatprep.subr.bf16.mxu0 %v22825_v1 }
0x1629   :  { %21164 = vmatmul.mubr.f32.vlgmr.msra.gmra.mrb[44].mxu0 %v12713_v41 }
0x162a   :  { %22828 = vmatpush3.bf16.msra.mxu0 %v22825_v1  ;;  %21166 = vmatprep.mubr.f32.mxu0 %v12723_v38 }
0x162b   :  { %22830 = vmatprep.subr.bf16.mxu0 %v22829_v11 }
0x162d   :  { %v4555_v6 = vpop.xlane.xlu1 %4554  ;;  %21167 = vmatmul.mubr.f32.gmra.mrb[46].mxu0 %v12733_v57 }
0x162e   :  { %23892 = vrcp.f32 %v4555_v6  ;;  %22832 = vmatpush3.bf16.msra.mxu0 %v22829_v11  ;;  %21177 = vmatprep.mubr.f32.mxu0 %v26864_v8  ;;  %v4552_v22 = vpop.xlane.xlu0 %4551  ;;  %v28078_v6 = vld [vmem:[#allocation21_spill] sm:$0xff] }
0x162f   :  { %22834 = vmatprep.subr.bf16.mxu0 %v26847_v2  ;;  %23894 = vrcp.f32 %v4552_v22 }
0x1631   :  { %v7237_v59 = vpop.xlane.xlu1 %7236  ;;  %21178 = vmatmul.mubr.f32.vlgmr.msra.gmra.mrb[44].mxu0 %v26852_v28 }
0x1632   :  { %22836 = vmatpush3.bf16.msra.mxu0 %v26847_v2  ;;  %21180 = vmatprep.mubr.f32.mxu0 %v26900_v46  ;;  %v5893_v15 = vpop.xlane.xlu0 %5892  ;;  %v28066_v2 = vld [vmem:[#allocation31_spill] sm:$0xff] }
0x1633   :  { %22838 = vmatprep.subr.bf16.mxu0 %v26857_v63  ;;  %23896 = vrcp.f32 %v5893_v15 }
0x1635   :  { %v4558_v45 = vpop.xlane.xlu1 %4557  ;;  %21181 = vmatmul.mubr.f32.gmra.mrb[46].mxu0 %v26885_v27 }
0x1636   :  { %22840 = vmatpush3.bf16.msra.mxu0 %v26857_v63  ;;  %21191 = vmatprep.mubr.f32.mxu0 %v26864_v8  ;;  %v5896_v25 = vpop.xlane.xlu0 %5895 }
0x1637   :  { %23898 = vrcp.f32 %v5896_v25  ;;  %v28079_v25 = vld [vmem:[#allocation15_spill] sm:$0xff] }
0x1638   :  { %v23893_v12 = vpop.eup %23892  ;;  %23900 = vrcp.f32 %v7237_v59 }
0x1639   :  { %v23895_v50 = vpop.eup %23894  ;;  %v9916_v21 = vpop.xlane.xlu1 %9915  ;;  %21192 = vmatmul.mubr.f32.vlgmr.msra.gmra.mrb[44].mxu0 %v26852_v28  ;;  %v5205_v54 = vmul.f32 %v23893_v12, %v28066_v2  ;;  %v28068_v28 = vld [vmem:[#allocation35_spill] sm:$0xff] }
0x163a   :  { %21194 = vmatprep.mubr.f32.mxu0 %v26900_v46  ;;  %v7234_v3 = vpop.xlane.xlu0 %7233  ;;  %v5204_v32 = vmul.f32 %v23895_v50, %v28067_v7  ;;  %v28080_v50 = vld [vmem:[#allocation10_spill] sm:$0xff] }
0x163b   :  { %23902 = vrcp.f32 %v7234_v3  ;;  %13260 = vrot.lane.b32.xlu1 %v5205_v54, %s24091_s6  ;;  %v28081_v3 = vld [vmem:[#allocation20_spill] sm:$0xff] }
0x163c   :  { %13258 = vrot.lane.b32.xlu0 %v5204_v32, %s24091_s6  ;;  %23904 = vrcp.f32 %v4558_v45 }
0x163d   :  { %v23897_v63 = vpop.eup %23896  ;;  %v5899_v8 = vpop.xlane.xlu1 %5898  ;;  %21195 = vmatmul.mubr.f32.gmra.mrb[46].mxu0 %v26885_v27 }
0x163e   :  { %v8575_v30 = vpop.xlane.xlu0 %8574  ;;  %v6545_v37 = vmul.f32 %v23897_v63, %v28068_v28 }
0x163f   :  { %23906 = vrcp.f32 %v8575_v30  ;;  %v28082_v30 = vld [vmem:[#allocation19_spill] sm:$0xff] }
0x1640   :  { %13274 = vrot.lane.b32.xlu1 %v6545_v37, %s24066_s24  ;;  %23908 = vrcp.f32 %v9916_v21  ;;  %v28083_v37 = vld [vmem:[#allocation14_spill] sm:$0xff] }
0x1641   :  { %v23899_v18 = vpop.eup %23898  ;;  %v11257_v56 = vpop.xlane.xlu1 %11256 }
0x1642   :  { %v8578_v16 = vpop.xlane.xlu0 %8577  ;;  %v6546_v61 = vmul.f32 %v23899_v18, %v28069_v24  ;;  %v23901_v41 = vpop.eup %23900  ;;  %v28084_v24 = vld [vmem:[#allocation23_spill] sm:$0xff] }
0x1643   :  { %23910 = vrcp.f32 %v8578_v16  ;;  %v7887_v27 = vmul.f32 %v23901_v41, %v28070_v4 }
0x1644   :  { %13276 = vrot.lane.b32.xlu1 %v6546_v61, %s24066_s24  ;;  %23912 = vrcp.f32 %v5899_v8 }
0x1645   :  { %v23903_v42 = vpop.eup %23902  ;;  %v7240_v10 = vpop.xlane.xlu1 %7239 }
0x1646   :  { %v4561_v13 = vpop.xlane.xlu0 %4560  ;;  %v7886_v55 = vmul.f32 %v23903_v42, %v28071_v0  ;;  %v23905_v20 = vpop.eup %23904 }
0x1647   :  { %23914 = vrcp.f32 %v4561_v13  ;;  %v5206_v62 = vmul.f32 %v23905_v20, %v28072_v26 }
0x1648   :  { %13292 = vrot.lane.b32.xlu1 %v7887_v27, %s24092_s5  ;;  %13290 = vrot.lane.b32.xlu0 %v7886_v55, %s24092_s5  ;;  %23916 = vrcp.f32 %v11257_v56 }
0x1649   :  { %v23907_v43 = vpop.eup %23906  ;;  %v8581_v36 = vpop.xlane.xlu1 %8580 }
0x164a   :  { %v9919_v35 = vpop.xlane.xlu0 %9918  ;;  %v9227_v58 = vmul.f32 %v23907_v43, %v28073_v51  ;;  %v23909_v14 = vpop.eup %23908 }
0x164b   :  { %23918 = vrcp.f32 %v9919_v35  ;;  %v10568_v57 = vmul.f32 %v23909_v14, %v28074_v34  ;;  %v13401_v34 = vld [vmem:[%s27783_s7 + $0x10] sm:$0xff] }
0x164c   :  { %13262 = vrot.lane.b32.xlu1 %v5206_v62, %s24091_s6  ;;  %13306 = vrot.lane.b32.xlu0 %v9227_v58, %s24093_s19  ;;  %23920 = vrcp.f32 %v7240_v10 }
0x164d   :  { %v23911_v46 = vpop.eup %23910  ;;  %v8584_v44 = vpop.xlane.xlu1 %8583 }
0x164e   :  { %v5902_v39 = vpop.xlane.xlu0 %5901  ;;  %v9228_v33 = vmul.f32 %v23911_v46, %v28075_v53  ;;  %v23913_v31 = vpop.eup %23912 }
0x164f   :  { %23922 = vrcp.f32 %v5902_v39  ;;  %v6547_v52 = vmul.f32 %v23913_v31, %v28076_v29 }
0x1650   :  { %13322 = vrot.lane.b32.xlu1 %v10568_v57, %s24094_s3  ;;  %13308 = vrot.lane.b32.xlu0 %v9228_v33, %s24093_s19  ;;  %23924 = vrcp.f32 %v8581_v36  ;;  %v13399_v36 = vld [vmem:[%s27783_s7] sm:$0xff]  ;;  %v13402_v57 = vld [vmem:[%s27783_s7 + $0x18] sm:$0xff]  ;;  %v13426_v33 = vand.u32 4294901760, %v13401_v34 }
0x1651   :  { %v23915_v38 = vpop.eup %23914  ;;  %v9925_v17 = vpop.xlane.xlu1 %9924  ;;  %v13420_v51 = vand.u32 4294901760, %v13399_v36  ;;  %v13429_v31 = vand.u32 4294901760, %v13402_v57 }
0x1652   :  { %v11260_v23 = vpop.xlane.xlu0 %11259  ;;  %v5207_v60 = vmul.f32 %v23915_v38, %v28077_v5  ;;  %v23917_v47 = vpop.eup %23916 }
0x1653   :  { %23926 = vrcp.f32 %v11260_v23  ;;  %v11909_v11 = vmul.f32 %v23917_v47, %v26749_v19  ;;  %v13530_v5 = vsub.f32 %v13399_v36, %v13420_v51 }
0x1654   :  { %13278 = vrot.lane.b32.xlu1 %v6547_v52, %s24066_s24  ;;  %13264 = vrot.lane.b32.xlu0 %v5207_v60, %s24091_s6  ;;  %23928 = vrcp.f32 %v8584_v44  ;;  %v27008_v52 = vpack.c.bf16 %v13429_v31, %v13426_v33 }
0x1655   :  { %v23919_v9 = vpop.eup %23918  ;;  %v11266_v13 = vpop.xlane.xlu1 %11265 }
0x1656   :  { %v7243_v1 = vpop.xlane.xlu0 %7242  ;;  %v10569_v22 = vmul.f32 %v23919_v9, %v28078_v6  ;;  %v23921_v59 = vpop.eup %23920  ;;  %v13531_v9 = vand.u32 4294901760, %v13530_v5 }
0x1657   :  { %23930 = vrcp.f32 %v7243_v1  ;;  %v7888_v12 = vmul.f32 %v23921_v59, %v28079_v25 }
0x1658   :  { %13338 = vrot.lane.b32.xlu1 %v11909_v11, %s24095_s20  ;;  %13324 = vrot.lane.b32.xlu0 %v10569_v22, %s24094_s3  ;;  %23932 = vrcp.f32 %v9925_v17  ;;  %v13532_v11 = vsub.f32 %v13530_v5, %v13531_v9  ;;  %v13551_v22 = vsub.f32 %v13402_v57, %v13429_v31 }
0x1659   :  { %v23923_v15 = vpop.eup %23922 }
0x165a   :  { %v9922_v45 = vpop.xlane.xlu0 %9921  ;;  %v6548_v21 = vmul.f32 %v23923_v15, %v28080_v50  ;;  %v23925_v2 = vpop.eup %23924  ;;  %v13533_v59 = vand.u32 4294901760, %v13532_v11  ;;  %v13552_v25 = vand.u32 4294901760, %v13551_v22 }
0x165b   :  { %23934 = vrcp.f32 %v9922_v45  ;;  %v9229_v7 = vmul.f32 %v23925_v2, %v28081_v3 }
0x165c   :  { %13294 = vrot.lane.b32.xlu1 %v7888_v12, %s24092_s5  ;;  %13280 = vrot.lane.b32.xlu0 %v6548_v21, %s24066_s24  ;;  %v13553_v21 = vsub.f32 %v13551_v22, %v13552_v25 }
0x165d   :  { %v23927_v19 = vpop.eup %23926 }
0x165e   :  { %v11263_v54 = vpop.xlane.xlu0 %11262  ;;  %v11910_v32 = vmul.f32 %v23927_v19, %v26747_v48  ;;  %v23929_v63 = vpop.eup %23928  ;;  %v28085_v48 = vld [vmem:[#allocation24_spill] sm:$0xff] }
0x165f   :  { %23936 = vrcp.f32 %v11263_v54  ;;  %v9230_v28 = vmul.f32 %v23929_v63, %v28082_v30  ;;  %v13554_v54 = vand.u32 4294901760, %v13553_v21 }
0x1660   :  { %13310 = vrot.lane.b32.xlu1 %v9229_v7, %s24093_s19  ;;  %13340 = vrot.lane.b32.xlu0 %v11910_v32, %s24095_s20 }
0x1661   :  { %v23931_v8 = vpop.eup %23930 }
0x1662   :  { %v7889_v18 = vmul.f32 %v23931_v8, %v28083_v37  ;;  %v23933_v56 = vpop.eup %23932 }
0x1663   :  { %v10571_v61 = vmul.f32 %v23933_v56, %v28084_v24 }
0x1664   :  { %13312 = vrot.lane.b32.xlu1 %v9230_v28, %s24093_s19  ;;  %13296 = vrot.lane.b32.xlu0 %v7889_v18, %s24092_s5 }
0x1665   :  { %v23935_v16 = vpop.eup %23934 }
0x1666   :  { %v10570_v41 = vmul.f32 %v23935_v16, %v28085_v48 }
0x1668   :  { %13328 = vrot.lane.b32.xlu1 %v10571_v61, %s24094_s3  ;;  %13326 = vrot.lane.b32.xlu0 %v10570_v41, %s24094_s3 }
0x1669   :  { %v23937_v42 = vpop.eup %23936 }
0x166a   :  { %v11911_v10 = vmul.f32 %v23937_v42, %v26753_v40  ;;  %v13400_v40 = vld [vmem:[%s27783_s7 + $0x8] sm:$0xff]  ;;  %s24097_s7 = smov 32  }
0x166b   :  { %v13423_v58 = vand.u32 4294901760, %v13400_v40 }
0x166c   :  { %13342 = vrot.lane.b32.xlu0 %v11911_v10, %s24095_s20 }
0x166d   :  { %v26997_v39 = vpack.c.bf16 %v13423_v58, %v13420_v51  ;;  %v13537_v60 = vsub.f32 %v13400_v40, %v13423_v58 }
0x166f   :  { %22842 = vmatprep.subr.bf16.mxu0 %v26997_v39  ;;  %v13538_v17 = vand.u32 4294901760, %v13537_v60  ;;  %v27015_v2 = vpack.c.bf16 %v13537_v60, %v13530_v5 }
0x1670   :  { %22844 = vmatpush3.bf16.msra.mxu0 %v26997_v39 }
0x1671   :  { %22846 = vmatprep.subr.bf16.mxu0 %v27008_v52  ;;  %v13539_v6 = vsub.f32 %v13537_v60, %v13538_v17  ;;  %v27022_v32 = vpack.c.bf16 %v13538_v17, %v13531_v9  ;;  %v28088_v9 = vld [vmem:[#allocation28_spill] sm:$0xff] }
0x1673   :  { %v13540_v15 = vand.u32 4294901760, %v13539_v6 }
0x1674   :  { %22848 = vmatpush3.bf16.msra.mxu0 %v27008_v52 }
0x1675   :  { %v27013_v12 = vpack.c.bf16 %v13540_v15, %v13533_v59  ;;  %v28089_v59 = vld [vmem:[#allocation29_spill] sm:$0xff] }
0x1677   :  { %22850 = vmatprep.subr.bf16.mxu0 %v27013_v12 }
0x168e   :  { %v12601_v4 = vpop.xlane.xlu0 %12600 }
0x168f   :  { %v12598_v27 = vpop.xlane.xlu1 %12597  ;;  %23938 = vrcp.f32 %v12601_v4 }
0x1690   :  { %23940 = vrcp.f32 %v12598_v27 }
0x1691   :  { %23942 = vrcp.f32 %v11266_v13 }
0x1693   :  { %v12607_v55 = vpop.xlane.xlu1 %12606 }
0x1697   :  { %v12604_v0 = vpop.xlane.xlu0 %12603  ;;  %v3214_v8 = vpop.xlane.xlu1 %3213 }
0x1698   :  { %23944 = vrcp.f32 %v12604_v0 }
0x1699   :  { %23946 = vrcp.f32 %v12607_v55  ;;  %v23939_v20 = vpop.eup %23938 }
0x169a   :  { %v23941_v35 = vpop.eup %23940  ;;  %23948 = vrcp.f32 %v3214_v8 }
0x169b   :  { %v23943_v46 = vpop.eup %23942  ;;  %v3220_v30 = vpop.xlane.xlu1 %3219 }
0x169c   :  { %v11912_v29 = vmul.f32 %v23943_v46, %v26751_v49  ;;  %v13544_v49 = vsub.f32 %v13401_v34, %v13426_v33  ;;  %v3211_v28 = vpop.xlane.xlu0 %3210  ;;  %v28087_v34 = vld [vmem:[#allocation26_spill] sm:$0xff] }
0x169d   :  { %23950 = vrcp.f32 %v3211_v28 }
0x169e   :  { %v13545_v45 = vand.u32 4294901760, %v13544_v49  ;;  %v27020_v7 = vpack.c.bf16 %v13551_v22, %v13544_v49 }
0x16a0   :  { %v13546_v50 = vsub.f32 %v13544_v49, %v13545_v45  ;;  %v27024_v63 = vpack.c.bf16 %v13552_v25, %v13545_v45  ;;  %v3217_v18 = vpop.xlane.xlu0 %3216 }
0x16a1   :  { %23952 = vrcp.f32 %v3217_v18 }
0x16a2   :  { %v23945_v44 = vpop.eup %23944  ;;  %v13547_v19 = vand.u32 4294901760, %v13546_v50  ;;  %23954 = vrcp.f32 %v3220_v30 }
0x16a3   :  { %v23947_v47 = vpop.eup %23946 }
0x16a4   :  { %v27018_v3 = vpack.c.bf16 %v13554_v54, %v13547_v19 }
0x16ad   :  { %v13261_v37 = vpop.permute.xlu1 %13260 }
0x16ae   :  { %v13259_v16 = vpop.permute.xlu0 %13258 }
0x16b2   :  { %v13275_v56 = vpop.permute.xlu1 %13274 }
0x16b6   :  { %v13277_v61 = vpop.permute.xlu1 %13276 }
0x16ba   :  { %v13291_v24 = vpop.permute.xlu0 %13290  ;;  %v13293_v41 = vpop.permute.xlu1 %13292 }
0x16be   :  { %v13307_v48 = vpop.permute.xlu0 %13306  ;;  %v13263_v10 = vpop.permute.xlu1 %13262 }
0x16c2   :  { %v13309_v42 = vpop.permute.xlu0 %13308  ;;  %v13323_v4 = vpop.permute.xlu1 %13322 }
0x16c6   :  { %v13265_v13 = vpop.permute.xlu0 %13264  ;;  %v13279_v0 = vpop.permute.xlu1 %13278 }
0x16ca   :  { %v13325_v27 = vpop.permute.xlu0 %13324 }
0x16ce   :  { %v13281_v55 = vpop.permute.xlu0 %13280 }
0x170c   :  { %v21193_v43 = vpop.f32.mrb[44].mxu0 }
0x170d   :  { %v13251_v26 = vmul.f32 %v23939_v20, %v21193_v43  ;;  %v13224_v62 = vpop.f32.mrb[45].mxu0  ;;  %v13339_v20 = vpop.permute.xlu1 %13338 }
0x170e   :  { %v13250_v14 = vmul.f32 %v23941_v35, %v13224_v62  ;;  %v13341_v43 = vpop.permute.xlu0 %13340 }
0x170f   :  { %13356 = vrot.lane.b32.xlu0 %v13251_v26, %s24096_s26  ;;  %v23949_v26 = vpop.eup %23948 }
0x1710   :  { %v21196_v53 = vpop.f32.mrb[46].mxu0  ;;  %13354 = vrot.lane.b32.xlu1 %v13250_v14, %s24096_s26  ;;  %v23951_v51 = vpop.eup %23950  ;;  %v28086_v14 = vld [vmem:[#allocation27_spill] sm:$0xff] }
0x1711   :  { %v13236_v38 = vpop.f32.mrb[47].mxu0  ;;  %v13253_v1 = vmul.f32 %v23947_v47, %v21196_v53  ;;  %v13295_v36 = vpop.permute.xlu1 %13294  ;;  %v3864_v46 = vmul.f32 %v23949_v26, %v28086_v14  ;;  %v3863_v57 = vmul.f32 %v23951_v51, %v28087_v34 }
0x1712   :  { %v13252_v23 = vmul.f32 %v23945_v44, %v13236_v38  ;;  %v13297_v40 = vpop.permute.xlu0 %13296  ;;  %v23953_v53 = vpop.eup %23952 }
0x1713   :  { %v13367_v33 = vsel %vm2542_vm2, %v3864_v46, %v13261_v37  ;;  %v13366_v31 = vsel %vm2542_vm2, %v3863_v57, %v13259_v16  ;;  %v3865_v17 = vmul.f32 %v23953_v53, %v28088_v9 }
0x1714   :  { %13344 = vrot.lane.b32.xlu1 %v11912_v29, %s24095_s20  ;;  %13358 = vrot.lane.b32.xlu0 %v13252_v23, %s24096_s26  ;;  %v13371_v44 = vsel %vm120_vm0, %v13367_v33, %v13277_v61  ;;  %v23955_v23 = vpop.eup %23954  ;;  %v13370_v29 = vsel %vm120_vm0, %v13366_v31, %v13275_v56 }
0x1715   :  { %v13311_v35 = vpop.permute.xlu1 %13310  ;;  %v13376_v5 = vsel %vm13374_vm3, %v13371_v44, %v13293_v41  ;;  %v13375_v47 = vsel %vm13374_vm3, %v13370_v29, %v13291_v24  ;;  %v13368_v49 = vsel %vm2542_vm2, %v3865_v17, %v13263_v10  ;;  %v3866_v15 = vmul.f32 %v23955_v23, %v28089_v59 }
0x1716   :  { %v13327_v62 = vpop.permute.xlu0 %13326  ;;  %v13380_v11 = vsel %vm13379_vm4, %v13375_v47, %v13307_v48  ;;  %v13372_v50 = vsel %vm120_vm0, %v13368_v49, %v13279_v0  ;;  %v14036_v47 = vld [vmem:[%s27784_s8 + $0x18] sm:$0xff] }
0x1717   :  { %v13385_v22 = vsel %vm13384_vm5, %v13380_v11, %v13323_v4  ;;  %v13369_v8 = vsel %vm2542_vm2, %v3866_v15, %v13265_v13  ;;  %v13377_v30 = vsel %vm13374_vm3, %v13372_v50, %v13295_v36  ;;  %v14673_v11 = vld [vmem:[%s27785_s9 + $0x10] sm:$0xff] }
0x1718   :  { %13360 = vrot.lane.b32.xlu1 %v13253_v1, %s24096_s26  ;;  %v13381_v1 = vsel %vm13379_vm4, %v13376_v5, %v13309_v42  ;;  %v13390_v21 = vsel %vm13389_vm6, %v13385_v22, %v13339_v20  ;;  %v13373_v18 = vsel %vm120_vm0, %v13369_v8, %v13281_v55  ;;  %v13382_v56 = vsel %vm13379_vm4, %v13377_v30, %v13311_v35 }
0x1719   :  { %v13313_v58 = vpop.permute.xlu1 %13312  ;;  %v13386_v6 = vsel %vm13384_vm5, %v13381_v1, %v13325_v27  ;;  %v13378_v61 = vsel %vm13374_vm3, %v13373_v18, %v13297_v40  ;;  %v13387_v48 = vsel %vm13384_vm5, %v13382_v56, %v13327_v62  ;;  %v14063_v1 = vand.u32 4294901760, %v14036_v47 }
0x171a   :  { %v13343_v38 = vpop.permute.xlu0 %13342  ;;  %v13391_v45 = vsel %vm13389_vm6, %v13386_v6, %v13341_v43  ;;  %v13383_v55 = vsel %vm13379_vm4, %v13378_v61, %v13313_v58  ;;  %v14674_v6 = vld [vmem:[%s27785_s9 + $0x18] sm:$0xff]  ;;  %v14682_v22 = vand.u32 4294901760, %v14673_v11 }
0x171b   :  { %v13392_v42 = vsel %vm13389_vm6, %v13387_v48, %v13343_v38  ;;  %v14685_v59 = vand.u32 4294901760, %v14674_v6  ;;  %v14185_v48 = vsub.f32 %v14036_v47, %v14063_v1 }
0x171d   :  { %v13329_v60 = vpop.permute.xlu1 %13328 }
0x171e   :  { %v13388_v36 = vsel %vm13384_vm5, %v13383_v55, %v13329_v60  ;;  %v14186_v55 = vand.u32 4294901760, %v14185_v48 }
0x1781   :  { %v13357_v25 = vpop.permute.xlu0 %13356 }
0x1782   :  { %v13396_v19 = vsel %vm13394_vm7, %v13391_v45, %v13357_v25  ;;  %v13355_v54 = vpop.permute.xlu1 %13354  ;;  %v27124_v25 = vpack.c.bf16 %v14685_v59, %v14682_v22 }
0x1783   :  { %v13411_v28 = vsel %vm1819_vm1, %v13396_v19, 0  ;;  %v13395_v37 = vsel %vm13394_vm7, %v13390_v21, %v13355_v54 }
0x1784   :  { %v27051_v16 = vand.u32 4294901760, %v13411_v28  ;;  %v13408_v24 = vsel %vm1819_vm1, %v13395_v37, 0 }
0x1785   :  { %v27056_v41 = vand.u32 4294901760, %v13408_v24 }
0x1786   :  { %v13499_v10 = vsub.f32 %v13411_v28, %v27051_v16  ;;  %v13345_v13 = vpop.permute.xlu1 %13344  ;;  %v13359_v4 = vpop.permute.xlu0 %13358 }
0x1787   :  { %v13489_v27 = vsub.f32 %v13408_v24, %v27056_v41  ;;  %v13397_v0 = vsel %vm13394_vm7, %v13392_v42, %v13359_v4  ;;  %v13393_v62 = vsel %vm13389_vm6, %v13388_v36, %v13345_v13  ;;  %v14807_v42 = vsub.f32 %v14674_v6, %v14685_v59 }
0x1788   :  { %v13500_v20 = vand.u32 4294901760, %v13499_v10  ;;  %v13414_v43 = vsel %vm1819_vm1, %v13397_v0, 0 }
0x1789   :  { %v13508_v40 = vand.u32 4294901760, %v13414_v43  ;;  %v13490_v35 = vand.u32 4294901760, %v13489_v27 }
0x178a   :  { %v13501_v26 = vsub.f32 %v13499_v10, %v13500_v20  ;;  %v13361_v51 = vpop.permute.xlu1 %13360 }
0x178b   :  { %v13509_v14 = vsub.f32 %v13414_v43, %v13508_v40  ;;  %v13398_v46 = vsel %vm13394_vm7, %v13393_v62, %v13361_v51  ;;  %v13491_v34 = vsub.f32 %v13489_v27, %v13490_v35  ;;  %v14808_v43 = vand.u32 4294901760, %v14807_v42 }
0x178c   :  { %v13417_v57 = vsel %vm1819_vm1, %v13398_v46, 0  ;;  %v13502_v31 = vand.u32 4294901760, %v13501_v26  ;;  %v14187_v62 = vsub.f32 %v14185_v48, %v14186_v55 }
0x178d   :  { %v13518_v53 = vand.u32 4294901760, %v13417_v57  ;;  %v13492_v33 = vand.u32 4294901760, %v13491_v34  ;;  %v13510_v58 = vand.u32 4294901760, %v13509_v14 }
0x178f   :  { %v13519_v44 = vsub.f32 %v13417_v57, %v13518_v53  ;;  %21205 = vmatprep.mubr.f32.mxu0 %v13492_v33  ;;  %v13511_v38 = vsub.f32 %v13509_v14, %v13510_v58  ;;  %v14188_v57 = vand.u32 4294901760, %v14187_v62 }
0x1790   :  { %21206 = vmatmul.mubr.f32.vlgmr.msra.gmra.mrb[48].mxu0 %v13502_v31 }
0x1791   :  { %v13512_v23 = vand.u32 4294901760, %v13511_v38  ;;  %22852 = vmatpush3.bf16.msra.mxu0 %v27013_v12  ;;  %v13520_v29 = vand.u32 4294901760, %v13519_v44  ;;  %v14033_v12 = vld [vmem:[%s27784_s8] sm:$0xff] }
0x1792   :  { %22854 = vmatprep.subr.bf16.mxu0 %v27018_v3 }
0x1793   :  { %21208 = vmatprep.mubr.f32.mxu0 %v13512_v23  ;;  %v13521_v5 = vsub.f32 %v13519_v44, %v13520_v29 }
0x1795   :  { %v13522_v60 = vand.u32 4294901760, %v13521_v5  ;;  %22856 = vmatpush3.bf16.msra.mxu0 %v27018_v3  ;;  %v14054_v3 = vand.u32 4294901760, %v14033_v12 }
0x1796   :  { %22858 = vmatprep.subr.bf16.mxu0 %v27015_v2 }
0x1797   :  { %21209 = vmatmul.mubr.f32.gmra.mrb[50].mxu0 %v13522_v60  ;;  %v14164_v50 = vsub.f32 %v14033_v12, %v14054_v3  ;;  %v18313_v12 = vld [vmem:[%s27791_s15 + $0x3] ss:$0 sm:$0xff] }
0x1798   :  { %21219 = vmatprep.mubr.f32.mxu0 %v27056_v41 }
0x1799   :  { %v14165_v8 = vand.u32 4294901760, %v14164_v50 }
0x179b   :  { %21220 = vmatmul.mubr.f32.vlgmr.msra.gmra.mrb[48].mxu0 %v27051_v16  ;;  %v14166_v18 = vsub.f32 %v14164_v50, %v14165_v8 }
0x179c   :  { %21222 = vmatprep.mubr.f32.mxu0 %v13508_v40  ;;  %22860 = vmatpush3.bf16.msra.mxu0 %v27015_v2  ;;  %v14034_v2 = vld [vmem:[%s27784_s8 + $0x8] sm:$0xff] }
0x179d   :  { %22862 = vmatprep.subr.bf16.mxu0 %v27020_v7 }
0x179f   :  { %21223 = vmatmul.mubr.f32.gmra.mrb[50].mxu0 %v13518_v53 }
0x17a0   :  { %22864 = vmatpush3.bf16.msra.mxu0 %v27020_v7  ;;  %21233 = vmatprep.mubr.f32.mxu0 %v13489_v27  ;;  %v14672_v7 = vld [vmem:[%s27785_s9 + $0x8] sm:$0xff] }
0x17a1   :  { %22866 = vmatprep.subr.bf16.mxu0 %v26997_v39  ;;  %v14679_v9 = vand.u32 4294901760, %v14672_v7 }
0x17a3   :  { %21234 = vmatmul.mubr.f32.vlgmr.msra.gmra.mrb[48].mxu0 %v13499_v10  ;;  %v14793_v54 = vsub.f32 %v14672_v7, %v14679_v9  ;;  %v14167_v10 = vand.u32 4294901760, %v14166_v18 }
0x17a4   :  { %21236 = vmatprep.mubr.f32.mxu0 %v13509_v14  ;;  %22868 = vmatpush3.bf16.msra.mxu0 %v26997_v39  ;;  %v14809_v14 = vsub.f32 %v14807_v42, %v14808_v43 }
0x17a5   :  { %22870 = vmatprep.subr.bf16.mxu0 %v27008_v52  ;;  %v14794_v37 = vand.u32 4294901760, %v14793_v54 }
0x17a6   :  { %v14810_v33 = vand.u32 4294901760, %v14809_v14 }
0x17a7   :  { %21237 = vmatmul.mubr.f32.gmra.mrb[50].mxu0 %v13519_v44  ;;  %v14795_v61 = vsub.f32 %v14793_v54, %v14794_v37 }
0x17a8   :  { %22872 = vmatpush3.bf16.msra.mxu0 %v27008_v52  ;;  %21247 = vmatprep.mubr.f32.mxu0 %v13490_v35 }
0x17a9   :  { %22874 = vmatprep.subr.bf16.mxu0 %v27022_v32  ;;  %v14796_v0 = vand.u32 4294901760, %v14795_v61 }
0x17ab   :  { %21248 = vmatmul.mubr.f32.vlgmr.msra.gmra.mrb[48].mxu0 %v13500_v20 }
0x17ac   :  { %21250 = vmatprep.mubr.f32.mxu0 %v13510_v58  ;;  %22876 = vmatpush3.bf16.msra.mxu0 %v27022_v32 }
0x17ad   :  { %22878 = vmatprep.subr.bf16.mxu0 %v27024_v63 }
0x17af   :  { %21251 = vmatmul.mubr.f32.gmra.mrb[50].mxu0 %v13520_v29 }
0x17b0   :  { %22880 = vmatpush3.bf16.msra.mxu0 %v27024_v63  ;;  %21261 = vmatprep.mubr.f32.mxu0 %v27056_v41  ;;  %v14035_v63 = vld [vmem:[%s27784_s8 + $0x10] sm:$0xff] }
0x17b1   :  { %22882 = vmatprep.subr.bf16.mxu0 %v26997_v39  ;;  %v14060_v17 = vand.u32 4294901760, %v14035_v63 }
0x17b3   :  { %21262 = vmatmul.mubr.f32.vlgmr.msra.gmra.mrb[48].mxu0 %v27051_v16  ;;  %v27121_v45 = vpack.c.bf16 %v14063_v1, %v14060_v17  ;;  %v14178_v24 = vsub.f32 %v14035_v63, %v14060_v17 }
0x17b4   :  { %21264 = vmatprep.mubr.f32.mxu0 %v13508_v40  ;;  %22884 = vmatpush3.bf16.msra.mxu0 %v26997_v39  ;;  %v14671_v39 = vld [vmem:[%s27785_s9] sm:$0xff] }
0x17b5   :  { %22886 = vmatprep.subr.bf16.mxu0 %v27008_v52  ;;  %v14676_v32 = vand.u32 4294901760, %v14671_v39  ;;  %v14179_v27 = vand.u32 4294901760, %v14178_v24  ;;  %v27137_v58 = vpack.c.bf16 %v14185_v48, %v14178_v24 }
0x17b7   :  { %21265 = vmatmul.mubr.f32.gmra.mrb[50].mxu0 %v13518_v53  ;;  %v27119_v15 = vpack.c.bf16 %v14679_v9, %v14676_v32  ;;  %v14786_v19 = vsub.f32 %v14671_v39, %v14676_v32  ;;  %v27145_v5 = vpack.c.bf16 %v14186_v55, %v14179_v27 }
0x17b8   :  { %22888 = vmatpush3.bf16.msra.mxu0 %v27008_v52  ;;  %21275 = vmatprep.mubr.f32.mxu0 %v27056_v41  ;;  %v14057_v52 = vand.u32 4294901760, %v14034_v2  ;;  %v14800_v41 = vsub.f32 %v14673_v11, %v14682_v22 }
0x17b9   :  { %22938 = vmatprep.subr.bf16.mxu0 %v27119_v15  ;;  %v14787_v28 = vand.u32 4294901760, %v14786_v19  ;;  %v27135_v34 = vpack.c.bf16 %v14793_v54, %v14786_v19 }
0x17ba   :  { %v27117_v49 = vpack.c.bf16 %v14057_v52, %v14054_v3  ;;  %v14171_v21 = vsub.f32 %v14034_v2, %v14057_v52  ;;  %v14801_v20 = vand.u32 4294901760, %v14800_v41  ;;  %v27139_v38 = vpack.c.bf16 %v14807_v42, %v14800_v41 }
0x17bb   :  { %21276 = vmatmul.mubr.f32.vlgmr.msra.gmra.mrb[48].mxu0 %v27051_v16  ;;  %v14788_v16 = vsub.f32 %v14786_v19, %v14787_v28  ;;  %v27143_v29 = vpack.c.bf16 %v14794_v37, %v14787_v28 }
0x17bc   :  { %21278 = vmatprep.mubr.f32.mxu0 %v13508_v40  ;;  %22890 = vmatprep.subr.bf16.mxu1 %v27117_v49  ;;  %v14172_v30 = vand.u32 4294901760, %v14171_v21  ;;  %v14180_v40 = vsub.f32 %v14178_v24, %v14179_v27  ;;  %v27133_v35 = vpack.c.bf16 %v14171_v21, %v14164_v50  ;;  %v14802_v51 = vsub.f32 %v14800_v41, %v14801_v20 }
0x17bd   :  { %22892 = vmatpush3.bf16.msra.mxu1 %v27117_v49  ;;  %22940 = vmatpush3.bf16.msra.mxu0 %v27119_v15  ;;  %v14789_v4 = vand.u32 4294901760, %v14788_v16  ;;  %v27147_v60 = vpack.c.bf16 %v14808_v43, %v14801_v20 }
0x17be   :  { %22894 = vmatprep.subr.bf16.mxu1 %v27121_v45  ;;  %22942 = vmatprep.subr.bf16.mxu0 %v27124_v25  ;;  %v14173_v56 = vsub.f32 %v14171_v21, %v14172_v30  ;;  %v14181_v46 = vand.u32 4294901760, %v14180_v40  ;;  %v27141_v23 = vpack.c.bf16 %v14172_v30, %v14165_v8 }
0x17bf   :  { %21279 = vmatmul.mubr.f32.gmra.mrb[50].mxu0 %v13518_v53  ;;  %v22945_v26 = vpack.c.bf16 %v14796_v0, %v14789_v4  ;;  %v14803_v53 = vand.u32 4294901760, %v14802_v51  ;;  %v28090_v4 = vld [vmem:[#allocation34_spill] sm:$0xff] }
0x17c0   :  { %v14174_v13 = vand.u32 4294901760, %v14173_v56  ;;  %v22901_v31 = vpack.c.bf16 %v14188_v57, %v14181_v46  ;;  %vm15350_vm8 = vcmp.lt.s32.totalorder %v28090_v4, 1 }
0x17c1   :  { %22896 = vmatpush3.bf16.msra.mxu1 %v27121_v45  ;;  %22944 = vmatpush3.bf16.msra.mxu0 %v27124_v25  ;;  %v22949_v44 = vpack.c.bf16 %v14810_v33, %v14803_v53 }
0x17c2   :  { %v22897_v36 = vpack.c.bf16 %v14174_v13, %v14167_v10  ;;  %22946 = vmatprep.subr.bf16.mxu0 %v22945_v26 }
0x17c4   :  { %22898 = vmatprep.subr.bf16.mxu1 %v22897_v36 }
0x188e   :  { %v21277_v2 = vpop.f32.mrb[48].mxu0 }
0x188f   :  { %v23237_v39 = vadd.f32 %v21277_v2, %v18313_v12  ;;  %v14011_v3 = vpop.f32.mrb[49].mxu0 }
0x1890   :  { %v23238_v52 = vadd.f32 %v18313_v12, %v14011_v3 }
0x1891   :  { %v14045_v7 = vsel %vm1819_vm1, %v23237_v39, 0 }
0x1892   :  { %v27153_v32 = vand.u32 4294901760, %v14045_v7  ;;  %v14042_v63 = vsel %vm1819_vm1, %v23238_v52, 0  ;;  %v21280_v47 = vpop.f32.mrb[50].mxu0 }
0x1893   :  { %v27156_v9 = vand.u32 4294901760, %v14042_v63  ;;  %v23239_v17 = vadd.f32 %v21280_v47, %v18313_v12  ;;  %v14023_v1 = vpop.f32.mrb[51].mxu0  ;;  %v27305_v47 = vld [vmem:[%s27791_s15 + $0x5] ss:$0 sm:$0xff] }
0x1894   :  { %v14133_v11 = vsub.f32 %v14045_v7, %v27153_v32  ;;  %v23240_v6 = vadd.f32 %v18313_v12, %v14023_v1  ;;  %v15422_v12 = vld [vmem:[%s27786_s10 + $0x18] sm:$0xff] }
0x1895   :  { %v14123_v22 = vsub.f32 %v14042_v63, %v27156_v9  ;;  %v14051_v59 = vsel %vm1819_vm1, %v23239_v17, 0  ;;  %v15433_v63 = vsel %vm1819_vm1, %v15422_v12, 0 }
0x1896   :  { %v27161_v50 = vand.u32 4294901760, %v14133_v11  ;;  %v27163_v21 = vand.u32 4294901760, %v14051_v59  ;;  %v14048_v19 = vsel %vm1819_vm1, %v23240_v6, 0 }
0x1897   :  { %v27166_v54 = vand.u32 4294901760, %v14048_v19  ;;  %v14124_v8 = vand.u32 4294901760, %v14123_v22 }
0x1898   :  { %v14135_v30 = vsub.f32 %v14133_v11, %v27161_v50  ;;  %v14153_v28 = vsub.f32 %v14051_v59, %v27163_v21 }
0x1899   :  { %v14143_v37 = vsub.f32 %v14048_v19, %v27166_v54  ;;  %v14125_v18 = vsub.f32 %v14123_v22, %v14124_v8 }
0x189a   :  { %v27171_v56 = vand.u32 4294901760, %v14153_v28  ;;  %v14136_v61 = vand.u32 4294901760, %v14135_v30 }
0x189b   :  { %v14126_v16 = vand.u32 4294901760, %v14125_v18  ;;  %v14144_v24 = vand.u32 4294901760, %v14143_v37 }
0x189c   :  { %v14155_v48 = vsub.f32 %v14153_v28, %v27171_v56 }
0x189d   :  { %21289 = vmatprep.mubr.f32.mxu1 %v14126_v16  ;;  %21373 = vmatprep.mubr.f32.mxu0 %v14126_v16  ;;  %v14145_v41 = vsub.f32 %v14143_v37, %v14144_v24 }
0x189e   :  { %21290 = vmatmul.mubr.f32.vlgmr.msra.gmra.mrb[76].mxu1 %v14136_v61  ;;  %21374 = vmatmul.mubr.f32.vlgmr.msra.gmra.mrb[52].mxu0 %v14136_v61  ;;  %v14156_v10 = vand.u32 4294901760, %v14155_v48 }
0x189f   :  { %22900 = vmatpush3.bf16.msra.mxu1 %v22897_v36  ;;  %22948 = vmatpush3.bf16.msra.mxu0 %v22945_v26  ;;  %v14146_v42 = vand.u32 4294901760, %v14145_v41  ;;  %v15419_v36 = vld [vmem:[%s27786_s10] sm:$0xff] }
0x18a0   :  { %22902 = vmatprep.subr.bf16.mxu1 %v22901_v31  ;;  %22950 = vmatprep.subr.bf16.mxu0 %v22949_v44  ;;  %v15424_v62 = vsel %vm1819_vm1, %v15419_v36, 0 }
0x18a1   :  { %21292 = vmatprep.mubr.f32.mxu1 %v14146_v42  ;;  %21376 = vmatprep.mubr.f32.mxu0 %v14146_v42  ;;  %v27271_v14 = vand.u32 4294901760, %v15424_v62 }
0x18a2   :  { %21293 = vmatmul.mubr.f32.gmra.mrb[78].mxu1 %v14156_v10  ;;  %21377 = vmatmul.mubr.f32.gmra.mrb[54].mxu0 %v14156_v10 }
0x18a3   :  { %22904 = vmatpush3.bf16.msra.mxu1 %v22901_v31  ;;  %21303 = vmatprep.mubr.f32.mxu1 %v27156_v9  ;;  %v27278_v57 = vsub.f32 %v15424_v62, %v27271_v14  ;;  %v15420_v31 = vld [vmem:[%s27786_s10 + $0x8] sm:$0xff] }
0x18a4   :  { %22952 = vmatpush3.bf16.msra.mxu0 %v22949_v44  ;;  %21387 = vmatprep.mubr.f32.mxu0 %v27156_v9  ;;  %v15298_v44 = vand.u32 15, %v28090_v4 }
0x18a5   :  { %22906 = vmatprep.subr.bf16.mxu1 %v27133_v35  ;;  %22954 = vmatprep.subr.bf16.mxu0 %v27135_v34  ;;  %v15506_v53 = vand.u32 4294901760, %v27278_v57 }
0x18a6   :  { %21304 = vmatmul.mubr.f32.vlgmr.msra.gmra.mrb[76].mxu1 %v27153_v32  ;;  %vm15342_vm9 = vcmp.eq.s32.totalorder %v15298_v44, 0 }
0x18a7   :  { %21388 = vmatmul.mubr.f32.vlgmr.msra.gmra.mrb[52].mxu0 %v27153_v32  ;;  %21306 = vmatprep.mubr.f32.mxu1 %v27166_v54  ;;  %v15507_v33 = vsub.f32 %v27278_v57, %v15506_v53 }
0x18a8   :  { %22908 = vmatpush3.bf16.msra.mxu1 %v27133_v35  ;;  %21390 = vmatprep.mubr.f32.mxu0 %v27166_v54 }
0x18a9   :  { %22956 = vmatpush3.bf16.msra.mxu0 %v27135_v34  ;;  %22910 = vmatprep.subr.bf16.mxu1 %v27137_v58 }
0x18aa   :  { %21307 = vmatmul.mubr.f32.gmra.mrb[78].mxu1 %v27163_v21  ;;  %22958 = vmatprep.subr.bf16.mxu0 %v27139_v38 }
0x18ab   :  { %21391 = vmatmul.mubr.f32.gmra.mrb[54].mxu0 %v27163_v21  ;;  %21317 = vmatprep.mubr.f32.mxu1 %v14123_v22 }
0x18ac   :  { %22912 = vmatpush3.bf16.msra.mxu1 %v27137_v58  ;;  %21401 = vmatprep.mubr.f32.mxu0 %v14123_v22  ;;  %v15508_v58 = vand.u32 4294901760, %v15507_v33  ;;  %v27312_v22 = vand.u32 4294901760, %v15433_v63 }
0x18ad   :  { %22960 = vmatpush3.bf16.msra.mxu0 %v27139_v38  ;;  %22914 = vmatprep.subr.bf16.mxu1 %v27117_v49  ;;  %v15292_v38 = vadd.s32 16, %v28090_v4 }
0x18ae   :  { %22962 = vmatprep.subr.bf16.mxu0 %v27119_v15 }
0x18af   :  { %21318 = vmatmul.mubr.f32.vlgmr.msra.gmra.mrb[76].mxu1 %v14133_v11 }
0x18b0   :  { %21402 = vmatmul.mubr.f32.vlgmr.msra.gmra.mrb[52].mxu0 %v14133_v11  ;;  %21320 = vmatprep.mubr.f32.mxu1 %v14143_v37 }
0x18b1   :  { %22916 = vmatpush3.bf16.msra.mxu1 %v27117_v49  ;;  %21404 = vmatprep.mubr.f32.mxu0 %v14143_v37 }
0x18b2   :  { %22964 = vmatpush3.bf16.msra.mxu0 %v27119_v15  ;;  %22918 = vmatprep.subr.bf16.mxu1 %v27121_v45 }
0x18b3   :  { %21321 = vmatmul.mubr.f32.gmra.mrb[78].mxu1 %v14153_v28  ;;  %22966 = vmatprep.subr.bf16.mxu0 %v27124_v25 }
0x18b4   :  { %21405 = vmatmul.mubr.f32.gmra.mrb[54].mxu0 %v14153_v28  ;;  %21331 = vmatprep.mubr.f32.mxu1 %v14124_v8 }
0x18b5   :  { %22920 = vmatpush3.bf16.msra.mxu1 %v27121_v45  ;;  %21415 = vmatprep.mubr.f32.mxu0 %v14124_v8 }
0x18b6   :  { %22968 = vmatpush3.bf16.msra.mxu0 %v27124_v25  ;;  %22922 = vmatprep.subr.bf16.mxu1 %v27141_v23 }
0x18b7   :  { %22970 = vmatprep.subr.bf16.mxu0 %v27143_v29 }
0x18b8   :  { %21332 = vmatmul.mubr.f32.vlgmr.msra.gmra.mrb[76].mxu1 %v27161_v50 }
0x18b9   :  { %21416 = vmatmul.mubr.f32.vlgmr.msra.gmra.mrb[52].mxu0 %v27161_v50  ;;  %21334 = vmatprep.mubr.f32.mxu1 %v14144_v24 }
0x18ba   :  { %22924 = vmatpush3.bf16.msra.mxu1 %v27141_v23  ;;  %21418 = vmatprep.mubr.f32.mxu0 %v14144_v24  ;;  %v15421_v23 = vld [vmem:[%s27786_s10 + $0x10] sm:$0xff]  ;;  %v27321_v24 = vsub.f32 %v15433_v63, %v27312_v22 }
0x18bb   :  { %22972 = vmatpush3.bf16.msra.mxu0 %v27143_v29  ;;  %22926 = vmatprep.subr.bf16.mxu1 %v27145_v5  ;;  %v15427_v29 = vsel %vm1819_vm1, %v15420_v31, 0 }
0x18bc   :  { %21335 = vmatmul.mubr.f32.gmra.mrb[78].mxu1 %v27171_v56  ;;  %22974 = vmatprep.subr.bf16.mxu0 %v27147_v60  ;;  %v27297_v2 = vand.u32 4294901760, %v15427_v29  ;;  %v15536_v62 = vand.u32 4294901760, %v27321_v24 }
0x18bd   :  { %21419 = vmatmul.mubr.f32.gmra.mrb[54].mxu0 %v27171_v56  ;;  %21345 = vmatprep.mubr.f32.mxu1 %v27156_v9 }
0x18be   :  { %22928 = vmatpush3.bf16.msra.mxu1 %v27145_v5  ;;  %21429 = vmatprep.mubr.f32.mxu0 %v27156_v9  ;;  %v15312_v5 = vand.u32 15, %v15292_v38  ;;  %v27309_v1 = vsub.f32 %v15427_v29, %v27297_v2  ;;  %v15537_v12 = vsub.f32 %v27321_v24, %v15536_v62 }
0x18bf   :  { %22976 = vmatpush3.bf16.msra.mxu0 %v27147_v60  ;;  %22930 = vmatprep.subr.bf16.mxu1 %v27117_v49  ;;  %v15430_v60 = vsel %vm1819_vm1, %v15421_v23, 0 }
0x18c0   :  { %22978 = vmatprep.subr.bf16.mxu0 %v27119_v15  ;;  %vm15344_vm10 = vcmp.eq.s32.totalorder %v15312_v5, 0  ;;  %v15516_v18 = vand.u32 4294901760, %v27309_v1 }
0x18c1   :  { %21346 = vmatmul.mubr.f32.vlgmr.msra.gmra.mrb[76].mxu1 %v27153_v32 }
0x18c2   :  { %21430 = vmatmul.mubr.f32.vlgmr.msra.gmra.mrb[52].mxu0 %v27153_v32  ;;  %21348 = vmatprep.mubr.f32.mxu1 %v27166_v54 }
0x18c3   :  { %22932 = vmatpush3.bf16.msra.mxu1 %v27117_v49  ;;  %21432 = vmatprep.mubr.f32.mxu0 %v27166_v54 }
0x18c4   :  { %22980 = vmatpush3.bf16.msra.mxu0 %v27119_v15  ;;  %22934 = vmatprep.subr.bf16.mxu1 %v27121_v45 }
0x18c5   :  { %21349 = vmatmul.mubr.f32.gmra.mrb[78].mxu1 %v27163_v21  ;;  %22982 = vmatprep.subr.bf16.mxu0 %v27124_v25 }
0x18c6   :  { %21433 = vmatmul.mubr.f32.gmra.mrb[54].mxu0 %v27163_v21  ;;  %21359 = vmatprep.mubr.f32.mxu1 %v27156_v9 }
0x18c7   :  { %22936 = vmatpush3.bf16.msra.mxu1 %v27121_v45  ;;  %21443 = vmatprep.mubr.f32.mxu0 %v27156_v9 }
0x18c8   :  { %22984 = vmatpush3.bf16.msra.mxu0 %v27124_v25 }
0x18ca   :  { %21360 = vmatmul.mubr.f32.vlgmr.msra.gmra.mrb[76].mxu1 %v27153_v32 }
0x18cb   :  { %21444 = vmatmul.mubr.f32.vlgmr.msra.gmra.mrb[52].mxu0 %v27153_v32  ;;  %21362 = vmatprep.mubr.f32.mxu1 %v27166_v54  ;;  %v27299_v32 = vand.u32 4294901760, %v15430_v60 }
0x18cc   :  { %21446 = vmatprep.mubr.f32.mxu0 %v27166_v54 }
0x18cd   :  { %v27315_v54 = vsub.f32 %v15430_v60, %v27299_v32 }
0x18ce   :  { %21363 = vmatmul.mubr.f32.gmra.mrb[78].mxu1 %v27163_v21 }
0x18cf   :  { %21447 = vmatmul.mubr.f32.gmra.mrb[54].mxu0 %v27163_v21  ;;  %21457 = vmatprep.mubr.f32.mxu1 %v15508_v58  ;;  %v15526_v41 = vand.u32 4294901760, %v27315_v54 }
0x18d1   :  { %v15527_v33 = vsub.f32 %v27315_v54, %v15526_v41 }
0x199d   :  { %v27234_v49 = vpop.f32.mrb[76].mxu1 }
0x199e   :  { %v27236_v15 = vpop.f32.mrb[52].mxu0  ;;  %v27238_v45 = vpop.f32.mrb[77].mxu1 }
0x199f   :  { %v15347_v25 = vrot.slane %v27236_v15, 7  ;;  %15365 = vrot.lane.b32.xlu1 %v27236_v15, %s24068_s18  ;;  %v27243_v13 = vpop.f32.mrb[53].mxu0 }
0x19a0   :  { %v15346_v27 = vrot.slane %v27243_v13, 7  ;;  %15363 = vrot.lane.b32.xlu0 %v27243_v13, %s24068_s18 }
0x19a1   :  { %v27249_v0 = vpop.f32.mrb[78].mxu1 }
0x19a2   :  { %v27251_v55 = vpop.f32.mrb[54].mxu0  ;;  %v27253_v20 = vpop.f32.mrb[79].mxu1  ;;  %v15353_v43 = vsel %vm15350_vm8, %v15346_v27, %v15347_v25 }
0x19a3   :  { %v15349_v40 = vrot.slane %v27251_v55, 7  ;;  %15369 = vrot.lane.b32.xlu1 %v27251_v55, %s24068_s18  ;;  %v27263_v35 = vpop.f32.mrb[55].mxu0 }
0x19a4   :  { %v15348_v26 = vrot.slane %v27263_v35, 7  ;;  %15367 = vrot.lane.b32.xlu0 %v27263_v35, %s24068_s18 }
0x19a5   :  { %v15354_v51 = vsel %vm15350_vm8, %v15349_v40, %v15346_v27 }
0x19a6   :  { %v15351_v46 = vsel %vm15350_vm8, %v15348_v26, %v15349_v40  ;;  %v15352_v34 = vsel %vm15350_vm8, %v15347_v25, %v15348_v26  ;;  %v15355_v7 = vsel %vm15342_vm9, 0.0, %v15354_v51 }
0x19a7   :  { %v15357_v19 = vsel %vm15344_vm10, 0.0, %v15352_v34 }
0x1a11   :  { %v15366_v39 = vpop.permute.xlu1 %15365 }
0x1a12   :  { %v15376_v3 = vadd.f32 %v15366_v39, %v15353_v43  ;;  %v15364_v52 = vpop.permute.xlu0 %15363  ;;  %v15517_v43 = vsub.f32 %v27309_v1, %v15516_v18 }
0x1a13   :  { %v15375_v9 = vadd.f32 %v15364_v52, %v15355_v7  ;;  %v15528_v52 = vand.u32 4294901760, %v15527_v33 }
0x1a14   :  { %v15384_v17 = vadd.f32 %v27305_v47, %v15376_v3  ;;  %v15518_v23 = vand.u32 4294901760, %v15517_v43 }
0x1a15   :  { %v15383_v11 = vadd.f32 %v27305_v47, %v15375_v9  ;;  %v15370_v6 = vpop.permute.xlu1 %15369 }
0x1a16   :  { %v15388_v59 = vmax.f32 %v15384_v17, 0.0  ;;  %v15378_v50 = vadd.f32 %v15370_v6, %v15351_v46  ;;  %v15368_v21 = vpop.permute.xlu0 %15367  ;;  %v15538_v6 = vand.u32 4294901760, %v15537_v12 }
0x1a17   :  { %v15387_v8 = vmax.f32 %v15383_v11, 0.0  ;;  %v15377_v30 = vadd.f32 %v15368_v21, %v15357_v19 }
0x1a18   :  { %v15439_v28 = vand.u32 4294901760, %v15388_v59  ;;  %v15386_v37 = vadd.f32 %v27305_v47, %v15378_v50 }
0x1a19   :  { %v15436_v56 = vand.u32 4294901760, %v15387_v8  ;;  %v15385_v16 = vadd.f32 %v27305_v47, %v15377_v30 }
0x1a1a   :  { %v15553_v61 = vsub.f32 %v15388_v59, %v15439_v28  ;;  %v15390_v48 = vmax.f32 %v15386_v37, 0.0 }
0x1a1b   :  { %v27324_v42 = vpack.c.bf16 %v15439_v28, %v15436_v56  ;;  %v15546_v10 = vsub.f32 %v15387_v8, %v15436_v56  ;;  %v15389_v25 = vmax.f32 %v15385_v16, 0.0 }
0x1a1c   :  { %v15445_v27 = vand.u32 4294901760, %v15390_v48  ;;  %v15554_v36 = vand.u32 4294901760, %v15553_v61 }
0x1a1d   :  { %v15442_v40 = vand.u32 4294901760, %v15389_v25  ;;  %22986 = vmatprep.subr.bf16.mxu1 %v27324_v42  ;;  %v15547_v26 = vand.u32 4294901760, %v15546_v10  ;;  %v23001_v51 = vpack.c.bf16 %v15553_v61, %v15546_v10 }
0x1a1e   :  { %v15567_v46 = vsub.f32 %v15390_v48, %v15445_v27  ;;  %22988 = vmatpush3.bf16.msra.mxu1 %v27324_v42  ;;  %v15555_v34 = vsub.f32 %v15553_v61, %v15554_v36 }
0x1a1f   :  { %v22989_v58 = vpack.c.bf16 %v15445_v27, %v15442_v40  ;;  %v15560_v31 = vsub.f32 %v15389_v25, %v15442_v40  ;;  %v15548_v44 = vsub.f32 %v15546_v10, %v15547_v26  ;;  %v23017_v38 = vpack.c.bf16 %v15554_v36, %v15547_v26 }
0x1a20   :  { %v15556_v29 = vand.u32 4294901760, %v15555_v34  ;;  %v15568_v5 = vand.u32 4294901760, %v15567_v46  ;;  %v15291_v34 = vadd.s32 8, %v28090_v4 }
0x1a21   :  { %22990 = vmatprep.subr.bf16.mxu1 %v22989_v58  ;;  %v15549_v60 = vand.u32 4294901760, %v15548_v44  ;;  %v15561_v39 = vand.u32 4294901760, %v15560_v31  ;;  %v23005_v3 = vpack.c.bf16 %v15567_v46, %v15560_v31  ;;  %v15408_v44 = vadd.f32 %v27236_v15, %v27305_v47 }
0x1a22   :  { %22992 = vmatpush3.bf16.msra.mxu1 %v22989_v58  ;;  %v15569_v7 = vsub.f32 %v15567_v46, %v15568_v5  ;;  %v15305_v33 = vand.u32 15, %v15291_v34 }
0x1a23   :  { %v22993_v63 = vpack.c.bf16 %v15556_v29, %v15549_v60  ;;  %v15562_v9 = vsub.f32 %v15560_v31, %v15561_v39  ;;  %v23021_v17 = vpack.c.bf16 %v15568_v5, %v15561_v39  ;;  %v18314_v29 = vld [vmem:[%s27791_s15 + $0x4] ss:$0 sm:$0xff]  ;;  %v15407_v5 = vadd.f32 %v27305_v47, %v27243_v13 }
0x1a24   :  { %v15570_v11 = vand.u32 4294901760, %v15569_v7  ;;  %vm15392_vm11 = vcmp.eq.s32.totalorder %v15305_v33, 15  ;;  %v23241_v12 = vadd.f32 %v27234_v49, %v18314_v29  ;;  %v15412_v39 = vmax.f32 %v15408_v44, 0.0 }
0x1a25   :  { %21458 = vmatmul.mubr.f32.vlgmr.msra.gmra.mrb[80].mxu1 %v15518_v23  ;;  %22994 = vmatprep.subr.bf16.mxu1 %v22993_v63  ;;  %v15563_v59 = vand.u32 4294901760, %v15562_v9  ;;  %v23242_v15 = vadd.f32 %v18314_v29, %v27238_v45  ;;  %v15409_v7 = vadd.f32 %v27305_v47, %v27263_v35  ;;  %v23243_v13 = vadd.f32 %v27249_v0, %v18314_v29 }
0x1a26   :  { %22996 = vmatpush3.bf16.msra.mxu1 %v22993_v63  ;;  %21460 = vmatprep.mubr.f32.mxu1 %v15528_v52  ;;  %v15411_v52 = vmax.f32 %v15407_v5, 0.0  ;;  %v14668_v9 = vmax.f32 %v23241_v12, 0.0  ;;  %v23244_v49 = vadd.f32 %v18314_v29, %v27253_v20 }
0x1a27   :  { %v22997_v50 = vpack.c.bf16 %v15570_v11, %v15563_v59 }
0x1a28   :  { %v16050_v45 = vmul.f32 0.5, %v14668_v9 }
0x1a29   :  { %21461 = vmatmul.mubr.f32.gmra.mrb[82].mxu1 %v15538_v6  ;;  %22998 = vmatprep.subr.bf16.mxu1 %v22997_v50  ;;  %v14667_v6 = vmax.f32 %v23242_v15, 0.0 }
0x1a2a   :  { %23000 = vmatpush3.bf16.msra.mxu1 %v22997_v50  ;;  %21471 = vmatprep.mubr.f32.mxu1 %v27271_v14  ;;  %v15415_v50 = vmul.f32 0.0, %v15411_v52 }
0x1a2b   :  { %23002 = vmatprep.subr.bf16.mxu1 %v23001_v51  ;;  %v16049_v35 = vmul.f32 0.5, %v14667_v6 }
0x1a2d   :  { %21472 = vmatmul.mubr.f32.vlgmr.msra.gmra.mrb[80].mxu1 %v27297_v2 }
0x1a2e   :  { %23004 = vmatpush3.bf16.msra.mxu1 %v23001_v51  ;;  %21474 = vmatprep.mubr.f32.mxu1 %v27299_v32 }
0x1a2f   :  { %23006 = vmatprep.subr.bf16.mxu1 %v23005_v3 }
0x1a31   :  { %21475 = vmatmul.mubr.f32.gmra.mrb[82].mxu1 %v27312_v22 }
0x1a32   :  { %23008 = vmatpush3.bf16.msra.mxu1 %v23005_v3  ;;  %21485 = vmatprep.mubr.f32.mxu1 %v27278_v57  ;;  %v16061_v57 = vld [vmem:[%s27787_s11] sm:$0xff] }
0x1a33   :  { %23010 = vmatprep.subr.bf16.mxu1 %v27324_v42  ;;  %v16082_v21 = vand.u32 4294901760, %v16061_v57 }
0x1a35   :  { %21486 = vmatmul.mubr.f32.vlgmr.msra.gmra.mrb[80].mxu1 %v27309_v1  ;;  %v16063_v1 = vld [vmem:[%s27787_s11 + $0x10] sm:$0xff]  ;;  %v16192_v8 = vsub.f32 %v16061_v57, %v16082_v21 }
0x1a36   :  { %23012 = vmatpush3.bf16.msra.mxu1 %v27324_v42  ;;  %21488 = vmatprep.mubr.f32.mxu1 %v27315_v54 }
0x1a37   :  { %23014 = vmatprep.subr.bf16.mxu1 %v22989_v58  ;;  %v16193_v28 = vand.u32 4294901760, %v16192_v8 }
0x1a39   :  { %21489 = vmatmul.mubr.f32.gmra.mrb[82].mxu1 %v27321_v24 }
0x1a3a   :  { %23016 = vmatpush3.bf16.msra.mxu1 %v22989_v58  ;;  %21499 = vmatprep.mubr.f32.mxu1 %v15506_v53  ;;  %v16062_v53 = vld [vmem:[%s27787_s11 + $0x8] sm:$0xff] }
0x1a3b   :  { %23018 = vmatprep.subr.bf16.mxu1 %v23017_v38 }
0x1a3d   :  { %21500 = vmatmul.mubr.f32.vlgmr.msra.gmra.mrb[80].mxu1 %v15516_v18  ;;  %v16194_v18 = vsub.f32 %v16192_v8, %v16193_v28 }
0x1a3e   :  { %23020 = vmatpush3.bf16.msra.mxu1 %v23017_v38  ;;  %21502 = vmatprep.mubr.f32.mxu1 %v15526_v41  ;;  %v28091_v38 = vmov 0.0  }
0x1a3f   :  { %23022 = vmatprep.subr.bf16.mxu1 %v23021_v17  ;;  %v16195_v61 = vand.u32 4294901760, %v16194_v18  ;;  %v18316_v23 = vsel %vm15392_vm11, 1.0, %v28091_v38 }
0x1a40   :  { %v15404_v60 = vmul.f32 0.96875, %v18316_v23 }
0x1a41   :  { %21503 = vmatmul.mubr.f32.gmra.mrb[82].mxu1 %v15536_v62 }
0x1a42   :  { %23024 = vmatpush3.bf16.msra.mxu1 %v23021_v17  ;;  %21513 = vmatprep.mubr.f32.mxu1 %v27271_v14  ;;  %v15416_v11 = vmul.f32 %v15412_v39, %v15404_v60 }
0x1a43   :  { %23026 = vmatprep.subr.bf16.mxu1 %v27324_v42 }
0x1a45   :  { %21514 = vmatmul.mubr.f32.vlgmr.msra.gmra.mrb[80].mxu1 %v27297_v2 }
0x1a46   :  { %23028 = vmatpush3.bf16.msra.mxu1 %v27324_v42  ;;  %21516 = vmatprep.mubr.f32.mxu1 %v27299_v32 }
0x1a47   :  { %23030 = vmatprep.subr.bf16.mxu1 %v22989_v58 }
0x1a49   :  { %21517 = vmatmul.mubr.f32.gmra.mrb[82].mxu1 %v27312_v22 }
0x1a4a   :  { %23032 = vmatpush3.bf16.msra.mxu1 %v22989_v58  ;;  %21527 = vmatprep.mubr.f32.mxu1 %v27271_v14  ;;  %v16085_v14 = vand.u32 4294901760, %v16062_v53  ;;  %v15293_v58 = vadd.s32 24, %v28090_v4  ;;  %v15410_v4 = vadd.f32 %v27251_v55, %v27305_v47  ;;  %v15413_v55 = vmax.f32 %v15409_v7, 0.0 }
0x1a4b   :  { %v14669_v47 = vmax.f32 %v23244_v49, 0.0 }
0x1a4c   :  { %v27374_v19 = vpack.c.bf16 %v16085_v14, %v16082_v21  ;;  %v16199_v30 = vsub.f32 %v16062_v53, %v16085_v14  ;;  %v15319_v31 = vand.u32 15, %v15293_v58  ;;  %v15414_v17 = vmax.f32 %v15410_v4, 0.0 }
0x1a4d   :  { %21528 = vmatmul.mubr.f32.vlgmr.msra.gmra.mrb[80].mxu1 %v27297_v2  ;;  %v16064_v2 = vld [vmem:[%s27787_s11 + $0x18] sm:$0xff]  ;;  %v14670_v21 = vmax.f32 %v23243_v13, 0.0  ;;  %v15417_v0 = vmul.f32 0.0, %v15413_v55 }
0x1a4e   :  { %21530 = vmatprep.mubr.f32.mxu1 %v27299_v32  ;;  %v16088_v32 = vand.u32 4294901760, %v16063_v1  ;;  %23034 = vmatprep.subr.bf16.mxu0 %v27374_v19  ;;  %v16200_v37 = vand.u32 4294901760, %v16199_v30  ;;  %v27384_v43 = vpack.c.bf16 %v16199_v30, %v16192_v8  ;;  %vm15394_vm12 = vcmp.eq.s32.totalorder %v15319_v31, 15 }
0x1a4f   :  { %23036 = vmatpush3.bf16.msra.mxu0 %v27374_v19  ;;  %v18317_v3 = vsel %vm15394_vm12, 1.0, %v28091_v38  ;;  %v16052_v18 = vmul.f32 0.5, %v14670_v21 }
0x1a50   :  { %v16201_v56 = vsub.f32 %v16199_v30, %v16200_v37  ;;  %v16206_v16 = vsub.f32 %v16063_v1, %v16088_v32  ;;  %v27391_v51 = vpack.c.bf16 %v16200_v37, %v16193_v28  ;;  %v15406_v63 = vmul.f32 0.96875, %v18317_v3 }
0x1a51   :  { %21531 = vmatmul.mubr.f32.gmra.mrb[82].mxu1 %v27312_v22  ;;  %v16091_v22 = vand.u32 4294901760, %v16064_v2 }
0x1a52   :  { %v16202_v48 = vand.u32 4294901760, %v16201_v56  ;;  %v16207_v41 = vand.u32 4294901760, %v16206_v16 }
0x1a53   :  { %v27376_v54 = vpack.c.bf16 %v16091_v22, %v16088_v32  ;;  %v16213_v24 = vsub.f32 %v16064_v2, %v16091_v22  ;;  %v15418_v2 = vmul.f32 %v15414_v17, %v15406_v63 }
0x1a54   :  { %v27382_v10 = vpack.c.bf16 %v16202_v48, %v16195_v61  ;;  %v16208_v25 = vsub.f32 %v16206_v16, %v16207_v41 }
0x1a55   :  { %23038 = vmatprep.subr.bf16.mxu0 %v27376_v54  ;;  %v16214_v42 = vand.u32 4294901760, %v16213_v24  ;;  %v27389_v62 = vpack.c.bf16 %v16213_v24, %v16206_v16 }
0x1a56   :  { %23040 = vmatpush3.bf16.msra.mxu0 %v27376_v54  ;;  %v16209_v36 = vand.u32 4294901760, %v16208_v25 }
0x1a57   :  { %v16215_v27 = vsub.f32 %v16213_v24, %v16214_v42  ;;  %23042 = vmatprep.subr.bf16.mxu0 %v27382_v10  ;;  %v27393_v46 = vpack.c.bf16 %v16214_v42, %v16207_v41  ;;  %v16051_v24 = vmul.f32 0.5, %v14669_v47 }
0x1a59   :  { %v16216_v40 = vand.u32 4294901760, %v16215_v27 }
0x1a5b   :  { %v27387_v26 = vpack.c.bf16 %v16216_v40, %v16209_v36 }
0x1b20   :  { %v21529_v59 = vpop.f32.mrb[80].mxu1 }
0x1b21   :  { %v23245_v57 = vadd.f32 %v21529_v59, %v15416_v11  ;;  %v16027_v53 = vpop.f32.mrb[81].mxu1 }
0x1b22   :  { %v23246_v1 = vadd.f32 %v16027_v53, %v15415_v50 }
0x1b23   :  { %v16054_v14 = vmul.f32 0.5, %v23245_v57 }
0x1b24   :  { %v16053_v32 = vmul.f32 0.5, %v23246_v1  ;;  %v21532_v22 = vpop.f32.mrb[82].mxu1 }
0x1b25   :  { %v16058_v8 = vadd.f32 %v16054_v14, %v16050_v45  ;;  %v23247_v30 = vadd.f32 %v21532_v22, %v15418_v2  ;;  %v16039_v28 = vpop.f32.mrb[83].mxu1 }
0x1b26   :  { %v16057_v37 = vadd.f32 %v16053_v32, %v16049_v35  ;;  %v23248_v20 = vadd.f32 %v16039_v28, %v15417_v0 }
0x1b27   :  { %v16073_v56 = vsel %vm1819_vm1, %v16058_v8, 0  ;;  %v16056_v16 = vmul.f32 0.5, %v23247_v30 }
0x1b28   :  { %v27415_v61 = vand.u32 4294901760, %v16073_v56  ;;  %v16070_v48 = vsel %vm1819_vm1, %v16057_v37, 0  ;;  %v16055_v41 = vmul.f32 0.5, %v23248_v20  ;;  %v16767_v20 = vld [vmem:[#allocation6] sm:$0xff] }
0x1b29   :  { %v16150_v42 = vand.u32 4294901760, %v16070_v48  ;;  %v16060_v25 = vadd.f32 %v16056_v16, %v16052_v18  ;;  %v16768_v18 = vld [vmem:[#allocation6 + $0x8] sm:$0xff]  ;;  %v16788_v16 = vand.u32 4294901760, %v16767_v20 }
0x1b2a   :  { %v16161_v27 = vsub.f32 %v16073_v56, %v27415_v61  ;;  %v16059_v36 = vadd.f32 %v16055_v41, %v16051_v24  ;;  %v16769_v56 = vld [vmem:[#allocation6 + $0x10] sm:$0xff]  ;;  %v16791_v24 = vand.u32 4294901760, %v16768_v18 }
0x1b2b   :  { %v16151_v40 = vsub.f32 %v16070_v48, %v16150_v42  ;;  %v16079_v34 = vsel %vm1819_vm1, %v16060_v25, 0  ;;  %v16794_v48 = vand.u32 4294901760, %v16769_v56 }
0x1b2c   :  { %v16162_v33 = vand.u32 4294901760, %v16161_v27  ;;  %v16180_v58 = vand.u32 4294901760, %v16079_v34  ;;  %v16076_v31 = vsel %vm1819_vm1, %v16059_v36, 0  ;;  %v16905_v36 = vsub.f32 %v16768_v18, %v16791_v24 }
0x1b2d   :  { %v16170_v44 = vand.u32 4294901760, %v16076_v31  ;;  %v16152_v38 = vand.u32 4294901760, %v16151_v40 }
0x1b2e   :  { %v16163_v23 = vsub.f32 %v16161_v27, %v16162_v33  ;;  %v16181_v29 = vsub.f32 %v16079_v34, %v16180_v58  ;;  %v16906_v34 = vand.u32 4294901760, %v16905_v36 }
0x1b2f   :  { %v16171_v5 = vsub.f32 %v16076_v31, %v16170_v44  ;;  %v16153_v60 = vsub.f32 %v16151_v40, %v16152_v38  ;;  %v16912_v31 = vsub.f32 %v16769_v56, %v16794_v48 }
0x1b30   :  { %v16182_v12 = vand.u32 4294901760, %v16181_v29  ;;  %v16164_v3 = vand.u32 4294901760, %v16163_v23 }
0x1b31   :  { %v16154_v39 = vand.u32 4294901760, %v16153_v60  ;;  %v16172_v4 = vand.u32 4294901760, %v16171_v5 }
0x1b32   :  { %v16183_v15 = vsub.f32 %v16181_v29, %v16182_v12 }
0x1b33   :  { %21541 = vmatprep.mubr.f32.mxu0 %v16154_v39  ;;  %v16173_v52 = vsub.f32 %v16171_v5, %v16172_v4 }
0x1b34   :  { %21542 = vmatmul.mubr.f32.vlgmr.msra.gmra.mrb[56].mxu0 %v16164_v3  ;;  %v16184_v63 = vand.u32 4294901760, %v16183_v15 }
0x1b35   :  { %23044 = vmatpush3.bf16.msra.mxu0 %v27382_v10  ;;  %v16174_v7 = vand.u32 4294901760, %v16173_v52  ;;  %v18318_v10 = vld [vmem:[%s27791_s15 + $0x6] ss:$0 sm:$0xff] }
0x1b36   :  { %23046 = vmatprep.subr.bf16.mxu0 %v27387_v26 }
0x1b37   :  { %21544 = vmatprep.mubr.f32.mxu0 %v16174_v7 }
0x1b38   :  { %21545 = vmatmul.mubr.f32.gmra.mrb[58].mxu0 %v16184_v63 }
0x1b39   :  { %23048 = vmatpush3.bf16.msra.mxu0 %v27387_v26  ;;  %21555 = vmatprep.mubr.f32.mxu0 %v16150_v42 }
0x1b3a   :  { %23050 = vmatprep.subr.bf16.mxu0 %v27384_v43 }
0x1b3c   :  { %21556 = vmatmul.mubr.f32.vlgmr.msra.gmra.mrb[56].mxu0 %v27415_v61 }
0x1b3d   :  { %21558 = vmatprep.mubr.f32.mxu0 %v16170_v44  ;;  %23052 = vmatpush3.bf16.msra.mxu0 %v27384_v43 }
0x1b3e   :  { %23054 = vmatprep.subr.bf16.mxu0 %v27389_v62 }
0x1b40   :  { %21559 = vmatmul.mubr.f32.gmra.mrb[58].mxu0 %v16180_v58 }
0x1b41   :  { %23056 = vmatpush3.bf16.msra.mxu0 %v27389_v62  ;;  %21569 = vmatprep.mubr.f32.mxu0 %v16151_v40 }
0x1b42   :  { %23058 = vmatprep.subr.bf16.mxu0 %v27374_v19 }
0x1b44   :  { %21570 = vmatmul.mubr.f32.vlgmr.msra.gmra.mrb[56].mxu0 %v16161_v27  ;;  %v16898_v27 = vsub.f32 %v16767_v20, %v16788_v16 }
0x1b45   :  { %21572 = vmatprep.mubr.f32.mxu0 %v16171_v5  ;;  %23060 = vmatpush3.bf16.msra.mxu0 %v27374_v19 }
0x1b46   :  { %23062 = vmatprep.subr.bf16.mxu0 %v27376_v54  ;;  %v16899_v40 = vand.u32 4294901760, %v16898_v27 }
0x1b48   :  { %21573 = vmatmul.mubr.f32.gmra.mrb[58].mxu0 %v16181_v29  ;;  %v16913_v29 = vand.u32 4294901760, %v16912_v31  ;;  %v27487_v63 = vpack.c.bf16 %v16906_v34, %v16899_v40 }
0x1b49   :  { %23064 = vmatpush3.bf16.msra.mxu0 %v27376_v54  ;;  %21583 = vmatprep.mubr.f32.mxu0 %v16152_v38 }
0x1b4a   :  { %23066 = vmatprep.subr.bf16.mxu0 %v27391_v51 }
0x1b4c   :  { %21584 = vmatmul.mubr.f32.vlgmr.msra.gmra.mrb[56].mxu0 %v16162_v33  ;;  %v16900_v33 = vsub.f32 %v16898_v27, %v16899_v40 }
0x1b4d   :  { %21586 = vmatprep.mubr.f32.mxu0 %v16172_v4  ;;  %23068 = vmatpush3.bf16.msra.mxu0 %v27391_v51  ;;  %v27480_v4 = vpack.c.bf16 %v16905_v36, %v16898_v27 }
0x1b4e   :  { %23070 = vmatprep.subr.bf16.mxu0 %v27393_v46  ;;  %v16901_v38 = vand.u32 4294901760, %v16900_v33 }
0x1b50   :  { %21587 = vmatmul.mubr.f32.gmra.mrb[58].mxu0 %v16182_v12  ;;  %v16914_v12 = vsub.f32 %v16912_v31, %v16913_v29 }
0x1b51   :  { %23072 = vmatpush3.bf16.msra.mxu0 %v27393_v46  ;;  %21597 = vmatprep.mubr.f32.mxu0 %v16150_v42 }
0x1b52   :  { %23074 = vmatprep.subr.bf16.mxu0 %v27374_v19  ;;  %v16915_v3 = vand.u32 4294901760, %v16914_v12 }
0x1b54   :  { %21598 = vmatmul.mubr.f32.vlgmr.msra.gmra.mrb[56].mxu0 %v27415_v61 }
0x1b55   :  { %21600 = vmatprep.mubr.f32.mxu0 %v16170_v44  ;;  %23076 = vmatpush3.bf16.msra.mxu0 %v27374_v19 }
0x1b56   :  { %23078 = vmatprep.subr.bf16.mxu0 %v27376_v54 }
0x1b58   :  { %21601 = vmatmul.mubr.f32.gmra.mrb[58].mxu0 %v16180_v58 }
0x1b59   :  { %23080 = vmatpush3.bf16.msra.mxu0 %v27376_v54  ;;  %21611 = vmatprep.mubr.f32.mxu0 %v16150_v42  ;;  %v27470_v42 = vpack.c.bf16 %v16791_v24, %v16788_v16 }
0x1b5b   :  { %23082 = vmatprep.subr.bf16.mxu1 %v27470_v42 }
0x1b5c   :  { %21612 = vmatmul.mubr.f32.vlgmr.msra.gmra.mrb[56].mxu0 %v27415_v61  ;;  %v16770_v61 = vld [vmem:[#allocation6 + $0x18] sm:$0xff]  ;;  %23084 = vmatpush3.bf16.msra.mxu1 %v27470_v42 }
0x1b5d   :  { %21614 = vmatprep.mubr.f32.mxu0 %v16170_v44  ;;  %v16797_v41 = vand.u32 4294901760, %v16770_v61 }
0x1b5f   :  { %v27472_v25 = vpack.c.bf16 %v16797_v41, %v16794_v48  ;;  %v16919_v44 = vsub.f32 %v16770_v61, %v16797_v41 }
0x1b60   :  { %21615 = vmatmul.mubr.f32.gmra.mrb[58].mxu0 %v16180_v58  ;;  %v16907_v58 = vsub.f32 %v16905_v36, %v16906_v34 }
0x1b61   :  { %23086 = vmatprep.subr.bf16.mxu1 %v27472_v25  ;;  %v16920_v5 = vand.u32 4294901760, %v16919_v44  ;;  %v27485_v7 = vpack.c.bf16 %v16919_v44, %v16912_v31 }
0x1b62   :  { %23088 = vmatpush3.bf16.msra.mxu1 %v27472_v25  ;;  %v16908_v23 = vand.u32 4294901760, %v16907_v58 }
0x1b63   :  { %v16921_v39 = vsub.f32 %v16919_v44, %v16920_v5 }
0x1b64   :  { %v27478_v60 = vpack.c.bf16 %v16908_v23, %v16901_v38 }
0x1b65   :  { %v16922_v15 = vand.u32 4294901760, %v16921_v39 }
0x1b66   :  { %23090 = vmatprep.subr.bf16.mxu1 %v27478_v60 }
0x1b67   :  { %v27483_v52 = vpack.c.bf16 %v16922_v15, %v16915_v3 }
0x1c2f   :  { %v21613_v43 = vpop.f32.mrb[56].mxu0 }
0x1c30   :  { %v23249_v26 = vadd.f32 %v21613_v43, %v18318_v10  ;;  %v16673_v62 = vpop.f32.mrb[57].mxu0 }
0x1c31   :  { %v23250_v51 = vadd.f32 %v18318_v10, %v16673_v62 }
0x1c32   :  { %v16698_v19 = vsel %vm1819_vm1, %v23249_v26, 0.0 }
0x1c33   :  { %16699 = vadd.xlane.f32.xlu1 %v16698_v19  ;;  %v21616_v46 = vpop.f32.mrb[58].mxu0  ;;  %v16695_v9 = vsel %vm1819_vm1, %v23250_v51, 0.0 }
0x1c34   :  { %v16685_v54 = vpop.f32.mrb[59].mxu0  ;;  %16696 = vadd.xlane.f32.xlu0 %v16695_v9  ;;  %v23251_v17 = vadd.f32 %v21616_v46, %v18318_v10 }
0x1c35   :  { %v23252_v13 = vadd.f32 %v18318_v10, %v16685_v54  ;;  %v27489_v10 = vpack.c.bf16 %v16920_v5, %v16913_v29 }
0x1c36   :  { %v16704_v6 = vsel %vm1819_vm1, %v23251_v17, 0.0 }
0x1c37   :  { %v16701_v11 = vsel %vm1819_vm1, %v23252_v13, 0.0 }
0x1c38   :  { %16702 = vadd.xlane.f32.xlu0 %v16701_v11 }
0x1c3c   :  { %16705 = vadd.xlane.f32.xlu0 %v16704_v6 }
0x1cc0   :  { %v16700_v49 = vpop.xlane.xlu1 %16699 }
0x1cc1   :  { %v16708_v59 = vmul.f32 0.03125, %v16700_v49  ;;  %v16697_v50 = vpop.xlane.xlu0 %16696 }
0x1cc2   :  { %v16707_v55 = vmul.f32 0.03125, %v16697_v50 }
0x1cc3   :  { %v27450_v57 = vsub.f32 %v23249_v26, %v16708_v59  ;;  %v18319_v59 = vld [vmem:[%s27791_s15 + $0x7] ss:$0 sm:$0xff] }
0x1cc4   :  { %v27452_v53 = vsub.f32 %v23250_v51, %v16707_v55 }
0x1cc5   :  { %v16703_v1 = vpop.xlane.xlu0 %16702  ;;  %v16716_v45 = vmul.f32 %v27450_v57, %v27450_v57 }
0x1cc6   :  { %v16709_v21 = vmul.f32 0.03125, %v16703_v1  ;;  %v16715_v14 = vmul.f32 %v27452_v53, %v27452_v53  ;;  %v18320_v1 = vld [vmem:[%s27791_s15 + $0x8] ss:$0 sm:$0xff] }
0x1cc7   :  { %v16722_v2 = vsel %vm1819_vm1, %v16716_v45, 0.0 }
0x1cc8   :  { %v27459_v35 = vsub.f32 %v23252_v13, %v16709_v21  ;;  %16723 = vadd.xlane.f32.xlu1 %v16722_v2  ;;  %v16719_v47 = vsel %vm1819_vm1, %v16715_v14, 0.0 }
0x1cc9   :  { %16720 = vadd.xlane.f32.xlu0 %v16719_v47  ;;  %v16706_v32 = vpop.xlane.xlu0 %16705 }
0x1cca   :  { %v16710_v22 = vmul.f32 0.03125, %v16706_v32  ;;  %v16717_v0 = vmul.f32 %v27459_v35, %v27459_v35 }
0x1ccc   :  { %v27464_v8 = vsub.f32 %v23251_v17, %v16710_v22  ;;  %v16725_v30 = vsel %vm1819_vm1, %v16717_v0, 0.0 }
0x1ccd   :  { %16726 = vadd.xlane.f32.xlu0 %v16725_v30 }
0x1cce   :  { %v16718_v28 = vmul.f32 %v27464_v8, %v27464_v8 }
0x1cd0   :  { %v16728_v37 = vsel %vm1819_vm1, %v16718_v28, 0.0 }
0x1cd1   :  { %16729 = vadd.xlane.f32.xlu1 %v16728_v37 }
0x1d55   :  { %v16724_v43 = vpop.xlane.xlu1 %16723 }
0x1d56   :  { %v16732_v26 = vmul.f32 0.03125, %v16724_v43  ;;  %v16721_v62 = vpop.xlane.xlu0 %16720 }
0x1d57   :  { %v16731_v51 = vmul.f32 0.03125, %v16721_v62 }
0x1d58   :  { %v16736_v19 = vadd.f32 1e-05, %v16732_v26 }
0x1d59   :  { %v16735_v46 = vadd.f32 1e-05, %v16731_v51 }
0x1d5a   :  { %23956 = vrsqrt.f32 %v16736_v19  ;;  %v16727_v9 = vpop.xlane.xlu0 %16726 }
0x1d5b   :  { %23958 = vrsqrt.f32 %v16735_v46  ;;  %v16733_v54 = vmul.f32 0.03125, %v16727_v9 }
0x1d5d   :  { %v16737_v13 = vadd.f32 1e-05, %v16733_v54 }
0x1d5e   :  { %v16730_v17 = vpop.xlane.xlu1 %16729 }
0x1d5f   :  { %23960 = vrsqrt.f32 %v16737_v13  ;;  %v16734_v11 = vmul.f32 0.03125, %v16730_v17 }
0x1d61   :  { %v16738_v6 = vadd.f32 1e-05, %v16734_v11 }
0x1d63   :  { %23962 = vrsqrt.f32 %v16738_v6 }
0x1d64   :  { %v23957_v49 = vpop.eup %23956 }
0x1d65   :  { %v23959_v50 = vpop.eup %23958  ;;  %v16744_v55 = vmul.f32 %v23957_v49, %v27450_v57 }
0x1d66   :  { %v16743_v45 = vmul.f32 %v23959_v50, %v27452_v53 }
0x1d67   :  { %v16752_v21 = vmul.f32 %v18319_v59, %v16744_v55 }
0x1d68   :  { %v16751_v14 = vmul.f32 %v18319_v59, %v16743_v45 }
0x1d69   :  { %v23961_v2 = vpop.eup %23960  ;;  %v27499_v47 = vadd.f32 %v18320_v1, %v16752_v21 }
0x1d6a   :  { %v16745_v32 = vmul.f32 %v23961_v2, %v27459_v35  ;;  %v27502_v22 = vadd.f32 %v18320_v1, %v16751_v14 }
0x1d6b   :  { %v16764_v0 = vmax.f32 %v27499_v47, 0.0 }
0x1d6c   :  { %v16763_v30 = vmax.f32 %v27502_v22, 0.0  ;;  %v16753_v57 = vmul.f32 %v18319_v59, %v16745_v32  ;;  %v17491_v22 = vld [vmem:[%s27789_s13 + $0x10] sm:$0xff] }
0x1d6d   :  { %v23963_v28 = vpop.eup %23962  ;;  %v16779_v37 = vsel %vm1819_vm1, %v16764_v0, 0 }
0x1d6e   :  { %v16746_v53 = vmul.f32 %v23963_v28, %v27464_v8  ;;  %v16776_v20 = vsel %vm1819_vm1, %v16763_v30, 0  ;;  %v27513_v18 = vand.u32 4294901760, %v16779_v37  ;;  %v27515_v35 = vadd.f32 %v18320_v1, %v16753_v57 }
0x1d6f   :  { %v27517_v56 = vand.u32 4294901760, %v16776_v20 }
0x1d70   :  { %v16867_v16 = vsub.f32 %v16779_v37, %v27513_v18  ;;  %v16765_v24 = vmax.f32 %v27515_v35, 0.0  ;;  %v16754_v61 = vmul.f32 %v18319_v59, %v16746_v53  ;;  %v17524_v35 = vand.u32 4294901760, %v17491_v22 }
0x1d71   :  { %v16857_v48 = vsub.f32 %v16776_v20, %v27517_v56 }
0x1d72   :  { %v16868_v41 = vand.u32 4294901760, %v16867_v16  ;;  %v16782_v8 = vsel %vm1819_vm1, %v16765_v24, 0  ;;  %v27525_v27 = vadd.f32 %v18320_v1, %v16754_v61  ;;  %v17493_v61 = vld [vmem:[%s27789_s13 + $0x20] sm:$0xff] }
0x1d73   :  { %v16858_v36 = vand.u32 4294901760, %v16857_v48  ;;  %v16876_v40 = vand.u32 4294901760, %v16782_v8 }
0x1d74   :  { %v16869_v34 = vsub.f32 %v16867_v16, %v16868_v41  ;;  %v16766_v33 = vmax.f32 %v27525_v27, 0.0 }
0x1d75   :  { %v16859_v58 = vsub.f32 %v16857_v48, %v16858_v36  ;;  %v16877_v31 = vsub.f32 %v16782_v8, %v16876_v40  ;;  %v17530_v8 = vand.u32 4294901760, %v17493_v61 }
0x1d76   :  { %v16785_v44 = vsel %vm1819_vm1, %v16766_v33, 0  ;;  %v16870_v5 = vand.u32 4294901760, %v16869_v34 }
0x1d77   :  { %v16860_v38 = vand.u32 4294901760, %v16859_v58  ;;  %v16878_v23 = vand.u32 4294901760, %v16877_v31  ;;  %v16886_v29 = vand.u32 4294901760, %v16785_v44 }
0x1d79   :  { %21625 = vmatprep.mubr.f32.mxu1 %v16860_v38  ;;  %v16879_v12 = vsub.f32 %v16877_v31, %v16878_v23  ;;  %v16887_v39 = vsub.f32 %v16785_v44, %v16886_v29 }
0x1d7a   :  { %21626 = vmatmul.mubr.f32.vlgmr.msra.gmra.mrb[84].mxu1 %v16870_v5 }
0x1d7b   :  { %v16880_v3 = vand.u32 4294901760, %v16879_v12  ;;  %23092 = vmatpush3.bf16.msra.mxu1 %v27478_v60  ;;  %v16888_v15 = vand.u32 4294901760, %v16887_v39  ;;  %v18321_v60 = vld [vmem:[%s27791_s15 + $0x9] ss:$0 sm:$0xff] }
0x1d7c   :  { %23094 = vmatprep.subr.bf16.mxu1 %v27483_v52 }
0x1d7d   :  { %21628 = vmatprep.mubr.f32.mxu1 %v16880_v3  ;;  %v16889_v43 = vsub.f32 %v16887_v39, %v16888_v15 }
0x1d7f   :  { %v16890_v26 = vand.u32 4294901760, %v16889_v43  ;;  %23096 = vmatpush3.bf16.msra.mxu1 %v27483_v52 }
0x1d80   :  { %23098 = vmatprep.subr.bf16.mxu1 %v27480_v4 }
0x1d81   :  { %21629 = vmatmul.mubr.f32.gmra.mrb[86].mxu1 %v16890_v26 }
0x1d82   :  { %21639 = vmatprep.mubr.f32.mxu1 %v27517_v56 }
0x1d85   :  { %21640 = vmatmul.mubr.f32.vlgmr.msra.gmra.mrb[84].mxu1 %v27513_v18 }
0x1d86   :  { %21642 = vmatprep.mubr.f32.mxu1 %v16876_v40  ;;  %23100 = vmatpush3.bf16.msra.mxu1 %v27480_v4 }
0x1d87   :  { %23102 = vmatprep.subr.bf16.mxu1 %v27485_v7 }
0x1d89   :  { %21643 = vmatmul.mubr.f32.gmra.mrb[86].mxu1 %v16886_v29 }
0x1d8a   :  { %23104 = vmatpush3.bf16.msra.mxu1 %v27485_v7  ;;  %21653 = vmatprep.mubr.f32.mxu1 %v16857_v48  ;;  %v17494_v48 = vld [vmem:[%s27789_s13 + $0x28] sm:$0xff] }
0x1d8b   :  { %23106 = vmatprep.subr.bf16.mxu1 %v27470_v42  ;;  %v17533_v27 = vand.u32 4294901760, %v17494_v48 }
0x1d8d   :  { %21654 = vmatmul.mubr.f32.vlgmr.msra.gmra.mrb[84].mxu1 %v16867_v16  ;;  %v27621_v58 = vpack.c.bf16 %v17533_v27, %v17530_v8 }
0x1d8e   :  { %21656 = vmatprep.mubr.f32.mxu1 %v16877_v31  ;;  %23108 = vmatpush3.bf16.msra.mxu1 %v27470_v42 }
0x1d8f   :  { %23110 = vmatprep.subr.bf16.mxu1 %v27472_v25 }
0x1d91   :  { %21657 = vmatmul.mubr.f32.gmra.mrb[86].mxu1 %v16887_v39  ;;  %v17646_v39 = vsub.f32 %v17491_v22, %v17524_v35  ;;  %v24098_v22 = vmov 7  }
0x1d92   :  { %23112 = vmatpush3.bf16.msra.mxu1 %v27472_v25  ;;  %21667 = vmatprep.mubr.f32.mxu1 %v16858_v36  ;;  %v17496_v36 = vld [vmem:[%s27789_s13 + $0x38] sm:$0xff] }
0x1d93   :  { %23114 = vmatprep.subr.bf16.mxu1 %v27487_v63  ;;  %v17647_v26 = vand.u32 4294901760, %v17646_v39  ;;  %23819 = vset.pattern.permute.xlu1 %v24098_v22 }
0x1d94   :  { %23818 = vset.pattern.permute.xlu0 %v24098_v22 }
0x1d95   :  { %21668 = vmatmul.mubr.f32.vlgmr.msra.gmra.mrb[84].mxu1 %v16868_v41  ;;  %v17495_v41 = vld [vmem:[%s27789_s13 + $0x30] sm:$0xff] }
0x1d96   :  { %21670 = vmatprep.mubr.f32.mxu1 %v16878_v23  ;;  %23116 = vmatpush3.bf16.msra.mxu1 %v27487_v63  ;;  %v17536_v34 = vand.u32 4294901760, %v17495_v41 }
0x1d97   :  { %23118 = vmatprep.subr.bf16.mxu1 %v27489_v10 }
0x1d99   :  { %21671 = vmatmul.mubr.f32.gmra.mrb[86].mxu1 %v16888_v15 }
0x1d9a   :  { %23120 = vmatpush3.bf16.msra.mxu1 %v27489_v10  ;;  %21681 = vmatprep.mubr.f32.mxu1 %v27517_v56 }
0x1d9b   :  { %23122 = vmatprep.subr.bf16.mxu1 %v27470_v42 }
0x1d9d   :  { %21682 = vmatmul.mubr.f32.vlgmr.msra.gmra.mrb[84].mxu1 %v27513_v18 }
0x1d9e   :  { %21684 = vmatprep.mubr.f32.mxu1 %v16876_v40  ;;  %23124 = vmatpush3.bf16.msra.mxu1 %v27470_v42 }
0x1d9f   :  { %23126 = vmatprep.subr.bf16.mxu1 %v27472_v25 }
0x1da1   :  { %21685 = vmatmul.mubr.f32.gmra.mrb[86].mxu1 %v16886_v29 }
0x1da2   :  { %23128 = vmatpush3.bf16.msra.mxu1 %v27472_v25  ;;  %21695 = vmatprep.mubr.f32.mxu1 %v27517_v56  ;;  %v17490_v56 = vld [vmem:[%s27789_s13 + $0x8] sm:$0xff] }
0x1da3   :  { %v17521_v47 = vand.u32 4294901760, %v17490_v56 }
0x1da5   :  { %21696 = vmatmul.mubr.f32.vlgmr.msra.gmra.mrb[84].mxu1 %v27513_v18  ;;  %v17489_v18 = vld [vmem:[%s27789_s13] sm:$0xff]  ;;  %v17639_v44 = vsub.f32 %v17490_v56, %v17521_v47 }
0x1da6   :  { %21698 = vmatprep.mubr.f32.mxu1 %v16876_v40  ;;  %v17518_v16 = vand.u32 4294901760, %v17489_v18 }
0x1da7   :  { %v17640_v23 = vand.u32 4294901760, %v17639_v44 }
0x1da8   :  { %v17632_v31 = vsub.f32 %v17489_v18, %v17518_v16 }
0x1da9   :  { %21699 = vmatmul.mubr.f32.gmra.mrb[86].mxu1 %v16886_v29  ;;  %v17641_v12 = vsub.f32 %v17639_v44, %v17640_v23 }
0x1daa   :  { %v17633_v38 = vand.u32 4294901760, %v17632_v31 }
0x1dab   :  { %v17642_v43 = vand.u32 4294901760, %v17641_v12 }
0x1dac   :  { %v17634_v5 = vsub.f32 %v17632_v31, %v17633_v38  ;;  %v27648_v18 = vpack.c.bf16 %v17640_v23, %v17633_v38 }
0x1dae   :  { %v17635_v15 = vand.u32 4294901760, %v17634_v5 }
0x1e78   :  { %v21697_v4 = vpop.f32.mrb[84].mxu1 }
0x1e79   :  { %v23253_v52 = vadd.f32 %v21697_v4, %v18321_v60  ;;  %v17379_v7 = vpop.f32.mrb[85].mxu1  ;;  %v17660_v4 = vsub.f32 %v17493_v61, %v17530_v8  ;;  %v23990_v61 = vld [vmem:[%s27903_s22 + $0x18] sm:$0xff] }
0x1e7a   :  { %v23254_v63 = vadd.f32 %v18321_v60, %v17379_v7  ;;  %v27630_v7 = vpack.c.bf16 %v17642_v43, %v17635_v15 }
0x1e7b   :  { %v17404_v42 = vsel %vm1819_vm1, %v23253_v52, 0.0 }
0x1e7c   :  { %17405 = vadd.xlane.f32.xlu1 %v17404_v42  ;;  %v21700_v10 = vpop.f32.mrb[86].mxu1  ;;  %v17401_v25 = vsel %vm1819_vm1, %v23254_v63, 0.0 }
0x1e7d   :  { %v23255_v62 = vadd.f32 %v21700_v10, %v18321_v60  ;;  %v17391_v51 = vpop.f32.mrb[87].mxu1  ;;  %17402 = vadd.xlane.f32.xlu0 %v17401_v25  ;;  %v17661_v10 = vand.u32 4294901760, %v17660_v4 }
0x1e7e   :  { %v23256_v19 = vadd.f32 %v18321_v60, %v17391_v51 }
0x1e7f   :  { %v17410_v46 = vsel %vm1819_vm1, %v23255_v62, 0.0 }
0x1e80   :  { %17411 = vadd.xlane.f32.xlu1 %v17410_v46  ;;  %v17407_v9 = vsel %vm1819_vm1, %v23256_v19, 0.0 }
0x1e81   :  { %17408 = vadd.xlane.f32.xlu0 %v17407_v9  ;;  %v17662_v9 = vsub.f32 %v17660_v4, %v17661_v10 }
0x1f09   :  { %v17406_v54 = vpop.xlane.xlu1 %17405 }
0x1f0a   :  { %v17414_v13 = vmul.f32 0.03125, %v17406_v54  ;;  %v17403_v17 = vpop.xlane.xlu0 %17402 }
0x1f0b   :  { %v17413_v11 = vmul.f32 0.03125, %v17403_v17 }
0x1f0c   :  { %v27563_v6 = vsub.f32 %v23253_v52, %v17414_v13  ;;  %v17667_v52 = vsub.f32 %v17494_v48, %v17533_v27  ;;  %v23991_v48 = vld [vmem:[%s27903_s22 + $0x10] sm:$0xff] }
0x1f0d   :  { %v27565_v49 = vsub.f32 %v23254_v63, %v17413_v11  ;;  %v17412_v59 = vpop.xlane.xlu1 %17411  ;;  %v17648_v63 = vsub.f32 %v17646_v39, %v17647_v26 }
0x1f0e   :  { %v17416_v50 = vmul.f32 0.03125, %v17412_v59  ;;  %v17409_v55 = vpop.xlane.xlu0 %17408  ;;  %v17422_v1 = vmul.f32 %v27563_v6, %v27563_v6  ;;  %v17668_v25 = vand.u32 4294901760, %v17667_v52  ;;  %v17663_v59 = vand.u32 4294901760, %v17662_v9 }
0x1f0f   :  { %v17415_v45 = vmul.f32 0.03125, %v17409_v55  ;;  %v17421_v21 = vmul.f32 %v27565_v49, %v27565_v49 }
0x1f10   :  { %v27571_v14 = vsub.f32 %v23255_v62, %v17416_v50  ;;  %v17428_v2 = vsel %vm1819_vm1, %v17422_v1, 0.0  ;;  %v17649_v62 = vand.u32 4294901760, %v17648_v63  ;;  %v17669_v54 = vsub.f32 %v17667_v52, %v17668_v25 }
0x1f11   :  { %v27574_v32 = vsub.f32 %v23256_v19, %v17415_v45  ;;  %17429 = vadd.xlane.f32.xlu1 %v17428_v2  ;;  %v17425_v57 = vsel %vm1819_vm1, %v17421_v21, 0.0  ;;  %v17674_v19 = vsub.f32 %v17495_v41, %v17536_v34 }
0x1f12   :  { %17426 = vadd.xlane.f32.xlu0 %v17425_v57  ;;  %v17424_v28 = vmul.f32 %v27571_v14, %v27571_v14  ;;  %v17670_v50 = vand.u32 4294901760, %v17669_v54  ;;  %v27638_v57 = vpack.c.bf16 %v17639_v44, %v17632_v31 }
0x1f13   :  { %v17423_v37 = vmul.f32 %v27574_v32, %v27574_v32  ;;  %v17675_v17 = vand.u32 4294901760, %v17674_v19 }
0x1f14   :  { %v17434_v53 = vsel %vm1819_vm1, %v17424_v28, 0.0  ;;  %v27636_v45 = vpack.c.bf16 %v17670_v50, %v17663_v59 }
0x1f15   :  { %17435 = vadd.xlane.f32.xlu1 %v17434_v53  ;;  %v17431_v20 = vsel %vm1819_vm1, %v17423_v37, 0.0  ;;  %v17676_v55 = vsub.f32 %v17674_v19, %v17675_v17  ;;  %v27644_v53 = vpack.c.bf16 %v17667_v52, %v17660_v4 }
0x1f16   :  { %17432 = vadd.xlane.f32.xlu0 %v17431_v20 }
0x1f17   :  { %v17677_v21 = vand.u32 4294901760, %v17676_v55 }
0x1f26   :  { %17475 = vrot.lane.b32.xlu1 %v16764_v0, %s24097_s7  ;;  %v27597_v0 = vpack.c.bf16 %v17521_v47, %v17518_v16  ;;  %v27652_v16 = vpack.c.bf16 %v17668_v25, %v17661_v10 }
0x1f28   :  { %23130 = vmatprep.subr.bf16.mxu0 %v27597_v0 }
0x1f29   :  { %23132 = vmatpush3.bf16.msra.mxu0 %v27597_v0 }
0x1f2a   :  { %17477 = vrot.lane.b32.xlu1 %v16765_v24, %s24097_s7 }
0x1f2c   :  { %17473 = vrot.lane.b32.xlu0 %v16763_v30, %s24097_s7  ;;  %v17492_v30 = vld [vmem:[%s27789_s13 + $0x18] sm:$0xff] }
0x1f2d   :  { %v17527_v24 = vand.u32 4294901760, %v17492_v30 }
0x1f2e   :  { %17479 = vrot.lane.b32.xlu1 %v16766_v33, %s24097_s7  ;;  %v17539_v33 = vand.u32 4294901760, %v17496_v36 }
0x1f2f   :  { %v27619_v40 = vpack.c.bf16 %v17527_v24, %v17524_v35  ;;  %v17653_v3 = vsub.f32 %v17492_v30, %v17527_v24  ;;  %v23988_v30 = vld [vmem:[%s27903_s22 + $0x8] sm:$0xff]  ;;  %v23989_v35 = vld [vmem:[%s27903_s22] sm:$0xff] }
0x1f30   :  { %v27626_v29 = vpack.c.bf16 %v17539_v33, %v17536_v34  ;;  %v17681_v46 = vsub.f32 %v17496_v36, %v17539_v33  ;;  %18208 = vperm.xlu0 %23818, %v23989_v35  }
0x1f31   :  { %23134 = vmatprep.subr.bf16.mxu0 %v27619_v40  ;;  %v17654_v60 = vand.u32 4294901760, %v17653_v3  ;;  %v27642_v37 = vpack.c.bf16 %v17653_v3, %v17646_v39  ;;  %v18322_v39 = vld [vmem:[%s27791_s15 + $0xa] ss:$0 sm:$0xff] }
0x1f32   :  { %23136 = vmatpush3.bf16.msra.mxu0 %v27619_v40  ;;  %v17682_v11 = vand.u32 4294901760, %v17681_v46  ;;  %v27646_v20 = vpack.c.bf16 %v17681_v46, %v17674_v19  ;;  %18212 = vperm.xlu1 %23819, %v23988_v30  }
0x1f33   :  { %23138 = vmatprep.subr.bf16.mxu0 %v27621_v58  ;;  %v17655_v42 = vsub.f32 %v17653_v3, %v17654_v60  ;;  %v27650_v56 = vpack.c.bf16 %v17654_v60, %v17647_v26  ;;  %v18323_v26 = vld [vmem:[%s27791_s15 + $0xb] ss:$0 sm:$0xff] }
0x1f34   :  { %v17683_v1 = vsub.f32 %v17681_v46, %v17682_v11  ;;  %v27654_v47 = vpack.c.bf16 %v17682_v11, %v17675_v17  ;;  %18220 = vperm.xlu0 %23818, %v23990_v61  }
0x1f35   :  { %v17656_v51 = vand.u32 4294901760, %v17655_v42 }
0x1f36   :  { %23140 = vmatpush3.bf16.msra.mxu0 %v27621_v58  ;;  %v17684_v2 = vand.u32 4294901760, %v17683_v1  ;;  %18216 = vperm.xlu1 %23819, %v23991_v48  }
0x1f37   :  { %23142 = vmatprep.subr.bf16.mxu0 %v27626_v29  ;;  %v27634_v13 = vpack.c.bf16 %v17656_v51, %v17649_v62 }
0x1f38   :  { %v27640_v28 = vpack.c.bf16 %v17684_v2, %v17677_v21 }
0x1f3a   :  { %23144 = vmatpush3.bf16.msra.mxu0 %v27626_v29 }
0x1f3b   :  { %23146 = vmatprep.subr.bf16.mxu0 %v27630_v7 }
0x1f9e   :  { %v17430_v24 = vpop.xlane.xlu1 %17429 }
0x1f9f   :  { %v17438_v41 = vmul.f32 0.03125, %v17430_v24  ;;  %v17427_v8 = vpop.xlane.xlu0 %17426 }
0x1fa0   :  { %v17437_v27 = vmul.f32 0.03125, %v17427_v8 }
0x1fa1   :  { %v17442_v36 = vadd.f32 1e-05, %v17438_v41 }
0x1fa2   :  { %v17441_v34 = vadd.f32 1e-05, %v17437_v27  ;;  %v17436_v33 = vpop.xlane.xlu1 %17435 }
0x1fa3   :  { %23964 = vrsqrt.f32 %v17442_v36  ;;  %v17440_v31 = vmul.f32 0.03125, %v17436_v33  ;;  %v17433_v44 = vpop.xlane.xlu0 %17432 }
0x1fa4   :  { %23966 = vrsqrt.f32 %v17441_v34  ;;  %v17439_v38 = vmul.f32 0.03125, %v17433_v44 }
0x1fa5   :  { %v17444_v23 = vadd.f32 1e-05, %v17440_v31 }
0x1fa6   :  { %v17443_v5 = vadd.f32 1e-05, %v17439_v38  ;;  %v17476_v3 = vpop.permute.xlu1 %17475 }
0x1fa7   :  { %23968 = vrsqrt.f32 %v17444_v23  ;;  %v17474_v11 = vpop.permute.xlu0 %17473 }
0x1fa8   :  { %23970 = vrsqrt.f32 %v17443_v5 }
0x1faa   :  { %v17478_v51 = vpop.permute.xlu1 %17477 }
0x1fad   :  { %v23965_v12 = vpop.eup %23964 }
0x1fae   :  { %v23967_v15 = vpop.eup %23966  ;;  %v17450_v43 = vmul.f32 %v23965_v12, %v27563_v6  ;;  %v17480_v22 = vpop.permute.xlu1 %17479 }
0x1faf   :  { %v17449_v60 = vmul.f32 %v23967_v15, %v27565_v49 }
0x1fb0   :  { %v17458_v4 = vmul.f32 %v18322_v39, %v17450_v43 }
0x1fb1   :  { %v23969_v52 = vpop.eup %23968  ;;  %v17457_v63 = vmul.f32 %v18322_v39, %v17449_v60 }
0x1fb2   :  { %v23971_v42 = vpop.eup %23970  ;;  %v17466_v10 = vadd.f32 %v18323_v26, %v17458_v4  ;;  %v17452_v25 = vmul.f32 %v23969_v52, %v27571_v14 }
0x1fb3   :  { %v17465_v62 = vadd.f32 %v18323_v26, %v17457_v63  ;;  %v17451_v19 = vmul.f32 %v23971_v42, %v27574_v32 }
0x1fb4   :  { %v17470_v46 = vmax.f32 %v17466_v10, 0.0  ;;  %v17460_v6 = vmul.f32 %v18322_v39, %v17452_v25  ;;  %v18209_v10 = vpop.permute.xlu0 %18208  ;;  %v18213_v25 = vpop.permute.xlu1 %18212 }
0x1fb5   :  { %v17469_v9 = vmax.f32 %v17465_v62, 0.0  ;;  %v17459_v54 = vmul.f32 %v18322_v39, %v17451_v19 }
0x1fb6   :  { %v17486_v17 = vsel %vm1819_vm1, %v17470_v46, %v17476_v3  ;;  %v17468_v49 = vadd.f32 %v18323_v26, %v17460_v6 }
0x1fb7   :  { %v17509_v59 = vsel %vm17504_vm13, %v17486_v17, 0  ;;  %v17485_v50 = vsel %vm1819_vm1, %v17469_v9, %v17474_v11  ;;  %v17467_v55 = vadd.f32 %v18323_v26, %v17459_v54 }
0x1fb8   :  { %v27681_v1 = vand.u32 4294901760, %v17509_v59  ;;  %v17506_v14 = vsel %vm17504_vm13, %v17485_v50, 0  ;;  %v17472_v21 = vmax.f32 %v17468_v49, 0.0  ;;  %v18217_v46 = vpop.permute.xlu1 %18216 }
0x1fb9   :  { %v27684_v32 = vand.u32 4294901760, %v17506_v14  ;;  %v17471_v2 = vmax.f32 %v17467_v55, 0.0 }
0x1fba   :  { %v17601_v30 = vsub.f32 %v17509_v59, %v27681_v1  ;;  %v17488_v35 = vsel %vm1819_vm1, %v17472_v21, %v17480_v22 }
0x1fbb   :  { %v17591_v24 = vsub.f32 %v17506_v14, %v27684_v32  ;;  %v17487_v61 = vsel %vm1819_vm1, %v17471_v2, %v17478_v51  ;;  %v17515_v48 = vsel %vm17504_vm13, %v17488_v35, 0  ;;  %v18221_v51 = vpop.permute.xlu0 %18220 }
0x1fbc   :  { %v17602_v41 = vand.u32 4294901760, %v17601_v30  ;;  %v17512_v8 = vsel %vm17504_vm13, %v17487_v61, 0  ;;  %v27692_v27 = vand.u32 4294901760, %v17515_v48 }
0x1fbd   :  { %v27694_v36 = vand.u32 4294901760, %v17512_v8  ;;  %v17592_v34 = vand.u32 4294901760, %v17591_v24 }
0x1fbe   :  { %v17603_v33 = vsub.f32 %v17601_v30, %v17602_v41  ;;  %v17621_v31 = vsub.f32 %v17515_v48, %v27692_v27 }
0x1fbf   :  { %v17611_v44 = vsub.f32 %v17512_v8, %v27694_v36  ;;  %v17593_v38 = vsub.f32 %v17591_v24, %v17592_v34 }
0x1fc0   :  { %v17622_v23 = vand.u32 4294901760, %v17621_v31  ;;  %v17604_v39 = vand.u32 4294901760, %v17603_v33 }
0x1fc1   :  { %v17594_v5 = vand.u32 4294901760, %v17593_v38  ;;  %v17612_v12 = vand.u32 4294901760, %v17611_v44 }
0x1fc2   :  { %v17623_v3 = vsub.f32 %v17621_v31, %v17622_v23 }
0x1fc3   :  { %21717 = vmatprep.mubr.f32.mxu0 %v17594_v5  ;;  %v17613_v15 = vsub.f32 %v17611_v44, %v17612_v12 }
0x1fc4   :  { %21718 = vmatmul.mubr.f32.vlgmr.msra.gmra.mrb[60].mxu0 %v17604_v39  ;;  %v17624_v26 = vand.u32 4294901760, %v17623_v3 }
0x1fc5   :  { %23148 = vmatpush3.bf16.msra.mxu0 %v27630_v7  ;;  %v17614_v43 = vand.u32 4294901760, %v17613_v15 }
0x1fc6   :  { %23150 = vmatprep.subr.bf16.mxu0 %v27634_v13 }
0x1fc7   :  { %21720 = vmatprep.mubr.f32.mxu0 %v17614_v43 }
0x1fc8   :  { %21721 = vmatmul.mubr.f32.gmra.mrb[62].mxu0 %v17624_v26 }
0x1fc9   :  { %23152 = vmatpush3.bf16.msra.mxu0 %v27634_v13  ;;  %21739 = vmatprep.mubr.f32.mxu0 %v27684_v32 }
0x1fca   :  { %23154 = vmatprep.subr.bf16.mxu0 %v27636_v45 }
0x1fcd   :  { %23156 = vmatpush3.bf16.msra.mxu0 %v27636_v45 }
0x1fce   :  { %23158 = vmatprep.subr.bf16.mxu0 %v27640_v28 }
0x1fd1   :  { %23160 = vmatpush3.bf16.msra.mxu0 %v27640_v28 }
0x1fd2   :  { %23162 = vmatprep.subr.bf16.mxu0 %v27638_v57 }
0x1fd4   :  { %21740 = vmatmul.mubr.f32.vlgmr.msra.gmra.mrb[60].mxu0 %v27681_v1 }
0x1fd5   :  { %21742 = vmatprep.mubr.f32.mxu0 %v27694_v36  ;;  %23164 = vmatpush3.bf16.msra.mxu0 %v27638_v57 }
0x1fd6   :  { %23166 = vmatprep.subr.bf16.mxu0 %v27642_v37 }
0x1fd8   :  { %21743 = vmatmul.mubr.f32.gmra.mrb[62].mxu0 %v27692_v27 }
0x1fd9   :  { %23168 = vmatpush3.bf16.msra.mxu0 %v27642_v37  ;;  %21761 = vmatprep.mubr.f32.mxu0 %v17591_v24 }
0x1fda   :  { %23170 = vmatprep.subr.bf16.mxu0 %v27644_v53 }
0x1fdd   :  { %23172 = vmatpush3.bf16.msra.mxu0 %v27644_v53 }
0x1fde   :  { %23174 = vmatprep.subr.bf16.mxu0 %v27646_v20 }
0x1fe1   :  { %23176 = vmatpush3.bf16.msra.mxu0 %v27646_v20 }
0x1fe2   :  { %23178 = vmatprep.subr.bf16.mxu0 %v27597_v0 }
0x1fe4   :  { %21762 = vmatmul.mubr.f32.vlgmr.msra.gmra.mrb[60].mxu0 %v17601_v30 }
0x1fe5   :  { %21764 = vmatprep.mubr.f32.mxu0 %v17611_v44  ;;  %23180 = vmatpush3.bf16.msra.mxu0 %v27597_v0 }
0x1fe6   :  { %23182 = vmatprep.subr.bf16.mxu0 %v27619_v40 }
0x1fe8   :  { %21765 = vmatmul.mubr.f32.gmra.mrb[62].mxu0 %v17621_v31 }
0x1fe9   :  { %23184 = vmatpush3.bf16.msra.mxu0 %v27619_v40  ;;  %21783 = vmatprep.mubr.f32.mxu0 %v17592_v34 }
0x1fea   :  { %23186 = vmatprep.subr.bf16.mxu0 %v27621_v58 }
0x1fed   :  { %23188 = vmatpush3.bf16.msra.mxu0 %v27621_v58 }
0x1fee   :  { %23190 = vmatprep.subr.bf16.mxu0 %v27626_v29 }
0x1ff1   :  { %23192 = vmatpush3.bf16.msra.mxu0 %v27626_v29 }
0x1ff2   :  { %23194 = vmatprep.subr.bf16.mxu0 %v27648_v18 }
0x1ff4   :  { %21784 = vmatmul.mubr.f32.vlgmr.msra.gmra.mrb[60].mxu0 %v17602_v41 }
0x1ff5   :  { %21786 = vmatprep.mubr.f32.mxu0 %v17612_v12  ;;  %23196 = vmatpush3.bf16.msra.mxu0 %v27648_v18 }
0x1ff6   :  { %23198 = vmatprep.subr.bf16.mxu0 %v27650_v56 }
0x1ff8   :  { %21787 = vmatmul.mubr.f32.gmra.mrb[62].mxu0 %v17622_v23 }
0x1ff9   :  { %23200 = vmatpush3.bf16.msra.mxu0 %v27650_v56  ;;  %21805 = vmatprep.mubr.f32.mxu0 %v27684_v32 }
0x1ffa   :  { %23202 = vmatprep.subr.bf16.mxu0 %v27652_v16 }
0x1ffd   :  { %23204 = vmatpush3.bf16.msra.mxu0 %v27652_v16 }
0x1ffe   :  { %23206 = vmatprep.subr.bf16.mxu0 %v27654_v47 }
0x2001   :  { %23208 = vmatpush3.bf16.msra.mxu0 %v27654_v47 }
0x2002   :  { %23210 = vmatprep.subr.bf16.mxu0 %v27597_v0 }
0x2004   :  { %21806 = vmatmul.mubr.f32.vlgmr.msra.gmra.mrb[60].mxu0 %v27681_v1 }
0x2005   :  { %21808 = vmatprep.mubr.f32.mxu0 %v27694_v36  ;;  %23212 = vmatpush3.bf16.msra.mxu0 %v27597_v0  ;;  %v18324_v0 = vld [vmem:[%s27790_s14] ss:$0 sm:$0xff] }
0x2006   :  { %23214 = vmatprep.subr.bf16.mxu0 %v27619_v40 }
0x2008   :  { %21809 = vmatmul.mubr.f32.gmra.mrb[62].mxu0 %v27692_v27 }
0x2009   :  { %23216 = vmatpush3.bf16.msra.mxu0 %v27619_v40  ;;  %21827 = vmatprep.mubr.f32.mxu0 %v27684_v32 }
0x200a   :  { %23218 = vmatprep.subr.bf16.mxu0 %v27621_v58 }
0x200d   :  { %23220 = vmatpush3.bf16.msra.mxu0 %v27621_v58 }
0x200e   :  { %23222 = vmatprep.subr.bf16.mxu0 %v27626_v29 }
0x2011   :  { %23224 = vmatpush3.bf16.msra.mxu0 %v27626_v29 }
0x2014   :  { %21828 = vmatmul.mubr.f32.vlgmr.msra.gmra.mrb[60].mxu0 %v27681_v1 }
0x2015   :  { %21830 = vmatprep.mubr.f32.mxu0 %v27694_v36 }
0x2018   :  { %21831 = vmatmul.mubr.f32.gmra.mrb[62].mxu0 %v27692_v27 }
0x20e7   :  { %v21829_v40 = vpop.f32.mrb[60].mxu0 }
0x20e8   :  { %v23257_v7 = vadd.f32 %v21829_v40, %v18324_v0  ;;  %v18161_v13 = vpop.f32.mrb[61].mxu0 }
0x20e9   :  { %v23258_v45 = vadd.f32 %v18324_v0, %v18161_v13 }
0x20ea   :  { %18237 = vrot.lane.b32.xlu0 %v23257_v7, %s24091_s6  ;;  %v18326_v37 = vmul.f32 -1.442695, %v23257_v7 }
0x20eb   :  { %v21832_v58 = vpop.f32.mrb[62].mxu0  ;;  %18235 = vrot.lane.b32.xlu1 %v23258_v45, %s24091_s6  ;;  %v18325_v53 = vmul.f32 -1.442695, %v23258_v45 }
0x20ec   :  { %v23259_v29 = vadd.f32 %v21832_v58, %v18324_v0  ;;  %v18173_v57 = vpop.f32.mrb[63].mxu0  ;;  %23972 = vpow2.f32 %v18326_v37 }
0x20ed   :  { %v23260_v28 = vadd.f32 %v18324_v0, %v18173_v57  ;;  %23974 = vpow2.f32 %v18325_v53 }
0x20ee   :  { %18241 = vrot.lane.b32.xlu0 %v23259_v29, %s24091_s6  ;;  %v18328_v20 = vmul.f32 -1.442695, %v23259_v29 }
0x20ef   :  { %18239 = vrot.lane.b32.xlu1 %v23260_v28, %s24091_s6  ;;  %v18327_v18 = vmul.f32 -1.442695, %v23260_v28 }
0x20f0   :  { %23976 = vpow2.f32 %v18328_v20 }
0x20f1   :  { %23978 = vpow2.f32 %v18327_v18 }
0x20f6   :  { %v23973_v56 = vpop.eup %23972 }
0x20f7   :  { %v23975_v16 = vpop.eup %23974  ;;  %v18196_v47 = vadd.f32 1.0, %v23973_v56 }
0x20f8   :  { %v18195_v4 = vadd.f32 1.0, %v23975_v16 }
0x20f9   :  { %23980 = vrcp.f32 %v18196_v47 }
0x20fa   :  { %v23977_v60 = vpop.eup %23976  ;;  %23982 = vrcp.f32 %v18195_v4 }
0x20fb   :  { %v23979_v52 = vpop.eup %23978  ;;  %v18198_v63 = vadd.f32 1.0, %v23977_v60 }
0x20fc   :  { %v18197_v42 = vadd.f32 1.0, %v23979_v52 }
0x20fd   :  { %23984 = vrcp.f32 %v18198_v63 }
0x20fe   :  { %23986 = vrcp.f32 %v18197_v42 }
0x2103   :  { %v23981_v62 = vpop.eup %23980 }
0x2104   :  { %v23983_v19 = vpop.eup %23982  ;;  %v18228_v6 = vsub.f32 1.0, %v23981_v62  ;;  %v18224_v49 = vmul.f32 %v23981_v62, %v18213_v25 }
0x2105   :  { %v18227_v17 = vsub.f32 1.0, %v23983_v19  ;;  %v18223_v55 = vmul.f32 %v23983_v19, %v18209_v10 }
0x2107   :  { %v23985_v9 = vpop.eup %23984 }
0x2108   :  { %v23987_v11 = vpop.eup %23986  ;;  %v18230_v21 = vsub.f32 1.0, %v23985_v9  ;;  %v18226_v30 = vmul.f32 %v23985_v9, %v18221_v51 }
0x2109   :  { %v18229_v22 = vsub.f32 1.0, %v23987_v11  ;;  %v18225_v61 = vmul.f32 %v23987_v11, %v18217_v46 }
0x215c   :  { %v18238_v54 = vpop.permute.xlu0 %18237 }
0x215d   :  { %v18248_v59 = vmul.f32 %v18238_v54, %v18228_v6  ;;  %v18236_v50 = vpop.permute.xlu1 %18235 }
0x215e   :  { %v18247_v1 = vmul.f32 %v18236_v50, %v18227_v17 }
0x215f   :  { %v18252_v14 = vadd.f32 %v18248_v59, %v18224_v49 }
0x2160   :  { %v18251_v32 = vadd.f32 %v18247_v1, %v18223_v55  ;;  %v18242_v2 = vpop.permute.xlu0 %18241 }
0x2161   :  { %v18250_v35 = vmul.f32 %v18242_v2, %v18230_v21  ;;  %v18240_v24 = vpop.permute.xlu1 %18239  ;;  %18261 = vrot.lane.b32.xlu0 %v18252_v14, %s24071_s28 }
0x2162   :  { %v18249_v48 = vmul.f32 %v18240_v24, %v18229_v22  ;;  %18259 = vrot.lane.b32.xlu1 %v18251_v32, %s24071_s28 }
0x2163   :  { %v18254_v41 = vadd.f32 %v18250_v35, %v18226_v30 }
0x2164   :  { %v18253_v8 = vadd.f32 %v18249_v48, %v18225_v61 }
0x2165   :  { %18265 = vrot.lane.b32.xlu0 %v18254_v41, %s24071_s28 }
0x2166   :  { %18263 = vrot.lane.b32.xlu1 %v18253_v8, %s24071_s28 }
0x21d3   :  { %v18262_v27 = vpop.permute.xlu0 %18261 }
0x21d4   :  { %18272 = vst.msk [vmem:[%s27792_s16 + $0x8] sm:$0xff] %vm2542_vm2, %v18262_v27  ;;  %v18260_v36 = vpop.permute.xlu1 %18259 }
0x21d5   :  { %18271 = vst.msk [vmem:[%s27792_s16] sm:$0xff] %vm2542_vm2, %v18260_v36 }
0x21d7   :  { %v18266_v34 = vpop.permute.xlu0 %18265 }
0x21d8   :  { %18274 = vst.msk [vmem:[%s27792_s16 + $0x18] sm:$0xff] %vm2542_vm2, %v18266_v34  ;;  %v18264_v33 = vpop.permute.xlu1 %18263 }
0x21d9   :  { %18273 = vst.msk [vmem:[%s27792_s16 + $0x10] sm:$0xff] %vm2542_vm2, %v18264_v33 }
0x21da   :  { %18279 = vsyncpa [#allocation3], 1 }
0x21db   :  { %18280 = vsyncpa [#allocation5], 1 }

</bundles_post_ra>
